<compile_context>
chip_gen: v6e
topology: v6e:2x2x1
jax: 0.10.0
libtpu: 0.0.40
codegen_flags: <defaults>
</compile_context>

<pallas_src>
import functools

import jax
import jax.numpy as jnp
from jax import lax
from jax.experimental import pallas as pl
from jax.experimental.pallas import tpu as pltpu

BN_EPS = 1e-5
LANES = 128                # output channels padded to this many lanes
MAX_TILE_ROWS = 2048       # GEMM rows (pixels) per conv grid step
MAX_EW_ROWS = 8192         # rows per elementwise grid step


def _vmem_limit_bytes():
    # Generation-aware budget: ~3/4 of physical VMEM, capped.
    # (v5e/v6e: 128 MiB physical -> 96 MiB budget; v7x: 64 MiB -> 48 MiB.)
    try:
        cap = int(pltpu.get_tpu_info().vmem_capacity_bytes)
    except Exception:
        cap = 64 * 1024 * 1024
    return min((cap // 4) * 3, 96 * 1024 * 1024)


VMEM_LIMIT = _vmem_limit_bytes()


# ----------------------- conv (+ fused input act) + stats --------------------
def _conv_stage_kernel(*refs, tile_h, height, width, cin, apply_input_act):
    if apply_input_act:
        x_ref, w_ref, scale_ref, shift_ref, raw_ref, stats_ref, xpad = refs
    else:
        x_ref, w_ref, raw_ref, stats_ref, xpad = refs
        scale_ref = shift_ref = None

    t = pl.program_id(1)

    # Once per image: (optionally activate and) zero-pad the input into VMEM.
    @pl.when(t == 0)
    def _fill_padded_input():
        img = x_ref[0]                                   # (H, W, Cin)
        if apply_input_act:
            img = jnp.maximum(
                img.astype(jnp.float32) * scale_ref[...] + shift_ref[...], 0.0)
        xpad[...] = jnp.zeros(xpad.shape, xpad.dtype)
        xpad[1:height + 1, 1:width + 1, :] = img.astype(xpad.dtype)

    # Implicit im2col: all 9 taps folded into the contraction dim -> a single
    # deep MXU dot (K = 9*Cin) per row tile, no per-tap f32 accumulator adds.
    row0 = t * tile_h
    tile_m = tile_h * width
    parts = []
    for ky in range(3):
        band = xpad[pl.ds(row0 + ky, tile_h)]            # (tile_h, W+2, Cin)
        for kx in range(3):
            parts.append(band[:, kx:kx + width, :])      # (tile_h, W, Cin)
    lhs = jnp.concatenate(parts, axis=-1)                # (tile_h, W, 9*Cin)
    lhs = lhs.reshape(tile_m, 9 * cin)
    out = jnp.dot(lhs, w_ref[...], preferred_element_type=jnp.float32)

    raw_ref[0] = out.reshape(tile_h, width, LANES).astype(raw_ref.dtype)

    # Mean-centred partial stats (f32) for a Welford-style merge outside.
    psum = jnp.sum(out, axis=0, keepdims=True)           # (1, 128)
    mu = psum * (1.0 / tile_m)
    d = out - mu
    stats_ref[0, 0, 0:1, :] = psum
    stats_ref[0, 0, 1:2, :] = jnp.sum(d * d, axis=0, keepdims=True)


def _pick_tile_h(h, w):
    best = 1
    for th in range(1, h + 1):
        if h % th == 0 and th * w <= MAX_TILE_ROWS:
            best = th
    return best


def _conv_stage(x_img, w_packed, in_scale=None, in_shift=None):
    """One Conv3x3 pass: raw (N,H,W,128) bf16 + per-tile (sum, centred ssq).

    If in_scale/in_shift are given, relu(x * scale + shift) is applied to the
    input inside the kernel (the previous stage's BN+ReLU, fused).
    """
    n, h, w, cin = x_img.shape
    apply_act = in_scale is not None
    tile_h = _pick_tile_h(h, w)
    t_tiles = h // tile_h
    tile_m = tile_h * w

    kernel = functools.partial(
        _conv_stage_kernel, tile_h=tile_h, height=h, width=w, cin=cin,
        apply_input_act=apply_act)

    # TODO(synk): for large images on v7x, single-buffer these grid-constant
    # inputs (pipeline_mode=pl.Buffered(1)) and/or replace the whole-image
    # residency with a halo'd row-band DMA (memory_space=pl.ANY + manual
    # make_async_copy) so VMEM stops scaling with H*W*Cin.
    in_specs = [
        pl.BlockSpec((1, h, w, cin), lambda i, j: (i, 0, 0, 0)),
        pl.BlockSpec((9 * cin, LANES), lambda i, j: (0, 0)),
    ]
    operands = [x_img, w_packed]
    if apply_act:
        in_specs += [pl.BlockSpec((1, LANES), lambda i, j: (0, 0)),
                     pl.BlockSpec((1, LANES), lambda i, j: (0, 0))]
        operands += [in_scale.reshape(1, LANES), in_shift.reshape(1, LANES)]

    flops = 2 * n * h * w * 9 * cin * LANES
    bytes_accessed = int(
        x_img.size * x_img.dtype.itemsize
        + w_packed.size * w_packed.dtype.itemsize
        + n * h * w * LANES * 2 + n * t_tiles * 2 * LANES * 4)

    raw, stats = pl.pallas_call(
        kernel,
        out_shape=(jax.ShapeDtypeStruct((n, h, w, LANES), jnp.bfloat16),
                   jax.ShapeDtypeStruct((n, t_tiles, 2, LANES), jnp.float32)),
        grid=(n, t_tiles),
        in_specs=in_specs,
        out_specs=(
            pl.BlockSpec((1, tile_h, w, LANES), lambda i, j: (i, j, 0, 0)),
            pl.BlockSpec((1, 1, 2, LANES), lambda i, j: (i, j, 0, 0)),
        ),
        scratch_shapes=[pltpu.VMEM((h + 2, w + 2, cin), jnp.bfloat16)],
        compiler_params=pltpu.CompilerParams(
            dimension_semantics=("parallel", "arbitrary"),
            vmem_limit_bytes=VMEM_LIMIT),
        cost_estimate=pl.CostEstimate(
            flops=flops, transcendentals=0, bytes_accessed=bytes_accessed),
    )(*operands)
    return raw, stats, tile_m


# ----------------------- final BN (scale/shift) + ReLU ------------------------
def _scale_shift_relu_kernel(y_ref, scale_ref, shift_ref, o_ref):
    y = y_ref[...].astype(jnp.float32) * scale_ref[...] + shift_ref[...]
    o_ref[...] = jnp.maximum(y, 0.0).astype(o_ref.dtype)


def _pick_ew_rows(m):
    if m <= MAX_EW_ROWS:
        return m
    for r in range(MAX_EW_ROWS - MAX_EW_ROWS % 8, 7, -8):
        if m % r == 0:
            return r
    return m


def _scale_shift_relu(raw_flat, scale, shift, out_dtype):
    m, c = raw_flat.shape
    rows = _pick_ew_rows(m)                   # decoupled from the conv tile
    nb = m // rows
    bytes_accessed = int(m * c * (raw_flat.dtype.itemsize
                                  + jnp.dtype(out_dtype).itemsize) + 2 * c * 4)
    return pl.pallas_call(
        _scale_shift_relu_kernel,
        out_shape=jax.ShapeDtypeStruct((m, c), out_dtype),
        grid=(nb,),
        in_specs=[pl.BlockSpec((rows, c), lambda i: (i, 0)),
                  pl.BlockSpec((1, c), lambda i: (0, 0)),
                  pl.BlockSpec((1, c), lambda i: (0, 0))],
        out_specs=pl.BlockSpec((rows, c), lambda i: (i, 0)),
        compiler_params=pltpu.CompilerParams(
            dimension_semantics=("parallel",), vmem_limit_bytes=VMEM_LIMIT),
        cost_estimate=pl.CostEstimate(
            flops=2 * m * c, transcendentals=0, bytes_accessed=bytes_accessed),
    )(raw_flat, scale.reshape(1, c), shift.reshape(1, c))


# --------------------------------- JAX glue -----------------------------------
def _fold_bn(stats, gamma_pad, beta_pad, tile_m):
    """Per-tile (sum, centred ssq) -> per-channel scale/shift (Welford merge)."""
    sums = stats[..., 0, :].reshape(-1, LANES)
    ssqc = stats[..., 1, :].reshape(-1, LANES)
    nb = sums.shape[0]
    m_total = float(nb * tile_m)
    mean_t = sums / float(tile_m)
    mean = jnp.mean(mean_t, axis=0)
    m2 = jnp.sum(ssqc, axis=0) + float(tile_m) * jnp.sum(
        jnp.square(mean_t - mean), axis=0)
    var = jnp.maximum(m2 / m_total, 0.0)      # biased variance, as in BN
    inv = lax.rsqrt(var + BN_EPS)
    scale = gamma_pad * inv
    shift = beta_pad - mean * scale
    return scale, shift


def _prep_conv_weight(w_oihw, pad_cin_to=None):
    """PyTorch (Co, Ci, 3, 3) -> (9*Ci_pad, 128) bf16, taps folded into K."""
    co, ci = w_oihw.shape[0], w_oihw.shape[1]
    w = jnp.transpose(w_oihw, (2, 3, 1, 0))                  # (3, 3, Ci, Co)
    ci_pad = (pad_cin_to or ci) - ci
    w = jnp.pad(w, ((0, 0), (0, 0), (0, ci_pad), (0, LANES - co)))
    return w.reshape(9 * (ci + ci_pad), LANES).astype(jnp.bfloat16)


def _pad_vec(v):
    return jnp.pad(v.astype(jnp.float32), (0, LANES - v.shape[0]))


def prepare_params(params):
    """Weight packing/padding, hoisted out of the per-forward path.

    Conv biases are dropped on purpose: training-mode BatchNorm subtracts the
    per-channel batch mean, which cancels a constant bias exactly.
    TODO(synk): reinstate the conv biases if eval-mode (running-stats) BN is
    ever needed.
    """
    return {
        "w1": _prep_conv_weight(params["w1"]),
        "g1": _pad_vec(params["g1"]), "b1": _pad_vec(params["b1"]),
        # Stage-2 input stays at 128 lanes -> pad w2's Cin axis to 128 too.
        "w2": _prep_conv_weight(params["w2"], pad_cin_to=LANES),
        "g2": _pad_vec(params["g2"]), "b2": _pad_vec(params["b2"]),
    }


@functools.partial(jax.jit, static_argnames=("cout",))
def conv_block_forward(x_nchw, prepped, *, cout):
    x = jnp.transpose(x_nchw, (0, 2, 3, 1))                 # NCHW -> NHWC
    n, h, w, _ = x.shape

    # Stage 1: conv + partial stats (zero padding done inside the kernel).
    raw1, stats1, tm1 = _conv_stage(x, prepped["w1"])
    scale1, shift1 = _fold_bn(stats1, prepped["g1"], prepped["b1"], tm1)

    # Stage 2: BN1+ReLU fused into the conv input path; the stage-1 activation
    # stays at 128 lanes (no slice/pad/cast XLA passes, K = 9*128 on the MXU).
    raw2, stats2, tm2 = _conv_stage(raw1, prepped["w2"], scale1, shift1)
    scale2, shift2 = _fold_bn(stats2, prepped["g2"], prepped["b2"], tm2)

    # Final BN + ReLU: HBM-bound elementwise pass with its own (large) tile.
    out = _scale_shift_relu(raw2.reshape(n * h * w, LANES), scale2, shift2,
                            jnp.float32)
    out = out.reshape(n, h, w, LANES)[..., :cout]
    return jnp.transpose(out, (0, 3, 1, 2))                 # back to NCHW


# ------------------------------ pure-JAX reference ----------------------------
def _reference(x_nchw, params):
    def conv(x, w, b):
        y = lax.conv_general_dilated(
            x, w, window_strides=(1, 1), padding="SAME",
            dimension_numbers=("NCHW", "OIHW", "NCHW"))
        return y + b[None, :, None, None]

    def bn_relu(x, g, b):
        mean = jnp.mean(x, axis=(0, 2, 3), keepdims=True)
        var = jnp.mean(jnp.square(x - mean), axis=(0, 2, 3), keepdims=True)
        y = (x - mean) * lax.rsqrt(var + BN_EPS)
        y = y * g[None, :, None, None] + b[None, :, None, None]
        return jnp.maximum(y, 0.0)

    y = bn_relu(conv(x_nchw, params["w1"], params["cb1"]),
                params["g1"], params["b1"])
    y = bn_relu(conv(y, params["w2"], params["cb2"]),
                params["g2"], params["b2"])
    return y


# -------------------------------------- main ----------------------------------
if __name__ == "__main__":
    N, Cin, Cout, H, W = 2, 4, 8, 16, 16

    key = jax.random.PRNGKey(0)
    kx_, kw1, kb1, kw2, kb2 = jax.random.split(key, 5)

    x = jax.random.normal(kx_, (N, Cin, H, W), dtype=jnp.float32)
    params = {
        "w1": 0.1 * jax.random.normal(kw1, (Cout, Cin, 3, 3), jnp.float32),
        "cb1": 0.1 * jax.random.normal(kb1, (Cout,), jnp.float32),
        "g1": jnp.ones((Cout,), jnp.float32),   # BatchNorm2d weight init
        "b1": jnp.zeros((Cout,), jnp.float32),  # BatchNorm2d bias init
        "w2": 0.1 * jax.random.normal(kw2, (Cout, Cout, 3, 3), jnp.float32),
        "cb2": 0.1 * jax.random.normal(kb2, (Cout,), jnp.float32),
        "g2": jnp.ones((Cout,), jnp.float32),
        "b2": jnp.zeros((Cout,), jnp.float32),
    }

    prepped = prepare_params(params)            # hoisted weight prep (once)
    out = jax.block_until_ready(conv_block_forward(x, prepped, cout=Cout))

    ref = jax.block_until_ready(_reference(x, params))
    assert out.shape == (N, Cout, H, W), out.shape
    # bf16 MXU operands + bf16 raw intermediate across two conv+BN stages ->
    # relaxed tolerance vs the full-f32 reference.
    assert jnp.allclose(out, ref, atol=5e-2, rtol=5e-2), (
        float(jnp.max(jnp.abs(out - ref))))

    print("KERNEL_OK")
</pallas_src>

<mosaic_0001>
module attributes {stable_mosaic.version = 11 : i64} {
  func.func @_conv_stage_kernel(%arg0: i32, %arg1: i32, %arg2: memref<1x16x16x4xf32, #tpu.memory_space<vmem>>, %arg3: memref<36x128xbf16, #tpu.memory_space<vmem>>, %arg4: memref<1x16x16x128xbf16, #tpu.memory_space<vmem>>, %arg5: memref<1x1x2x128xf32, #tpu.memory_space<vmem>>, %arg6: memref<18x18x4xbf16, #tpu.memory_space<vmem>>) attributes {dimension_semantics = [#tpu.dimension_semantics<parallel>, #tpu.dimension_semantics<arbitrary>], iteration_bounds = array<i64: 2, 1>, scalar_prefetch = 0 : i64, scratch_operands = 1 : i64, tpu.core_type = #tpu.core_type<tc>, window_params = [{transform_indices = @transform_0, window_bounds = array<i64: 1, 16, 16, 4>}, {pipeline_mode = #tpu.pipeline_mode<synchronous>, transform_indices = @transform_1, window_bounds = array<i64: 36, 128>}, {transform_indices = @transform_2, window_bounds = array<i64: 1, 16, 16, 128>}, {transform_indices = @transform_3, window_bounds = array<i64: 1, 1, 2, 128>}]} {
    %c0_i32 = arith.constant 0 : i32
    %0 = arith.cmpi eq, %arg1, %c0_i32 : i32
    %1 = arith.extui %0 : i1 to i32
    %c0_i32_0 = arith.constant 0 : i32
    %2 = arith.cmpi ne, %1, %c0_i32_0 : i32
    scf.if %2 {
      %c0_23 = arith.constant 0 : index
      %c0_24 = arith.constant 0 : index
      %c0_25 = arith.constant 0 : index
      %c0_26 = arith.constant 0 : index
      %46 = vector.load %arg2[%c0_23, %c0_24, %c0_25, %c0_26] : memref<1x16x16x4xf32, #tpu.memory_space<vmem>>, vector<1x16x16x4xf32>
      %47 = vector.shape_cast %46 : vector<1x16x16x4xf32> to vector<16x16x4xf32>
      %cst_27 = arith.constant 0.000000e+00 : bf16
      %48 = vector.broadcast %cst_27 : bf16 to vector<18x18x4xbf16>
      %c0_28 = arith.constant 0 : index
      %c0_29 = arith.constant 0 : index
      %c0_30 = arith.constant 0 : index
      %49 = vector.load %arg6[%c0_28, %c0_29, %c0_30] : memref<18x18x4xbf16, #tpu.memory_space<vmem>>, vector<18x18x4xbf16>
      tpu.vector_store %arg6[%c0_28, %c0_29, %c0_30], %48 {strides = array<i32>} : memref<18x18x4xbf16, #tpu.memory_space<vmem>>, vector<18x18x4xbf16>,
      %50 = arith.truncf %47 : vector<16x16x4xf32> to vector<16x16x4xbf16>
      %c1_31 = arith.constant 1 : index
      %c1_32 = arith.constant 1 : index
      %c0_33 = arith.constant 0 : index
      %51 = vector.load %arg6[%c1_31, %c1_32, %c0_33] : memref<18x18x4xbf16, #tpu.memory_space<vmem>>, vector<16x16x4xbf16>
      tpu.vector_store %arg6[%c1_31, %c1_32, %c0_33], %50 {strides = array<i32>} : memref<18x18x4xbf16, #tpu.memory_space<vmem>>, vector<16x16x4xbf16>,
    } else {
    }
    %c16_i32 = arith.constant 16 : i32
    %3 = arith.muli %arg1, %c16_i32 : i32
    %c0_i32_1 = arith.constant 0 : i32
    %4 = arith.addi %3, %c0_i32_1 : i32
    %5 = arith.index_cast %4 : i32 to index
    %c0 = arith.constant 0 : index
    %c0_2 = arith.constant 0 : index
    %6 = vector.load %arg6[%5, %c0, %c0_2] : memref<18x18x4xbf16, #tpu.memory_space<vmem>>, vector<16x18x4xbf16>
    %7 = vector.extract_strided_slice %6 {offsets = [0, 0, 0], sizes = [16, 16, 4], strides = [1, 1, 1]} : vector<16x18x4xbf16> to vector<16x16x4xbf16>
    %8 = vector.extract_strided_slice %6 {offsets = [0, 1, 0], sizes = [16, 16, 4], strides = [1, 1, 1]} : vector<16x18x4xbf16> to vector<16x16x4xbf16>
    %9 = vector.extract_strided_slice %6 {offsets = [0, 2, 0], sizes = [16, 16, 4], strides = [1, 1, 1]} : vector<16x18x4xbf16> to vector<16x16x4xbf16>
    %c1_i32 = arith.constant 1 : i32
    %10 = arith.addi %3, %c1_i32 : i32
    %11 = arith.index_cast %10 : i32 to index
    %c0_3 = arith.constant 0 : index
    %c0_4 = arith.constant 0 : index
    %12 = vector.load %arg6[%11, %c0_3, %c0_4] : memref<18x18x4xbf16, #tpu.memory_space<vmem>>, vector<16x18x4xbf16>
    %13 = vector.extract_strided_slice %12 {offsets = [0, 0, 0], sizes = [16, 16, 4], strides = [1, 1, 1]} : vector<16x18x4xbf16> to vector<16x16x4xbf16>
    %14 = vector.extract_strided_slice %12 {offsets = [0, 1, 0], sizes = [16, 16, 4], strides = [1, 1, 1]} : vector<16x18x4xbf16> to vector<16x16x4xbf16>
    %15 = vector.extract_strided_slice %12 {offsets = [0, 2, 0], sizes = [16, 16, 4], strides = [1, 1, 1]} : vector<16x18x4xbf16> to vector<16x16x4xbf16>
    %c2_i32 = arith.constant 2 : i32
    %16 = arith.addi %3, %c2_i32 : i32
    %17 = arith.index_cast %16 : i32 to index
    %c0_5 = arith.constant 0 : index
    %c0_6 = arith.constant 0 : index
    %18 = vector.load %arg6[%17, %c0_5, %c0_6] : memref<18x18x4xbf16, #tpu.memory_space<vmem>>, vector<16x18x4xbf16>
    %19 = vector.extract_strided_slice %18 {offsets = [0, 0, 0], sizes = [16, 16, 4], strides = [1, 1, 1]} : vector<16x18x4xbf16> to vector<16x16x4xbf16>
    %20 = vector.extract_strided_slice %18 {offsets = [0, 1, 0], sizes = [16, 16, 4], strides = [1, 1, 1]} : vector<16x18x4xbf16> to vector<16x16x4xbf16>
    %21 = vector.extract_strided_slice %18 {offsets = [0, 2, 0], sizes = [16, 16, 4], strides = [1, 1, 1]} : vector<16x18x4xbf16> to vector<16x16x4xbf16>
    %22 = tpu.concatenate %7, %8, %9, %13, %14, %15, %19, %20, %21 in 2 : vector<16x16x4xbf16>, vector<16x16x4xbf16>, vector<16x16x4xbf16>, vector<16x16x4xbf16>, vector<16x16x4xbf16>, vector<16x16x4xbf16>, vector<16x16x4xbf16>, vector<16x16x4xbf16>, vector<16x16x4xbf16> -> vector<16x16x36xbf16>
    %23 = vector.shape_cast %22 : vector<16x16x36xbf16> to vector<256x36xbf16>
    %c0_7 = arith.constant 0 : index
    %c0_8 = arith.constant 0 : index
    %24 = vector.load %arg3[%c0_7, %c0_8] : memref<36x128xbf16, #tpu.memory_space<vmem>>, vector<36x128xbf16>
    %cst = arith.constant dense<0.000000e+00> : vector<256x128xf32>
    %25 = tpu.matmul %23, %24, %cst {dimension_numbers = #tpu.dot_dimension_numbers<[1], [0], [0], [1], [0, 0, 1, 1], [], []>} : vector<256x36xbf16>, vector<36x128xbf16>, vector<256x128xf32> -> vector<256x128xf32>
    %26 = vector.shape_cast %25 : vector<256x128xf32> to vector<16x16x128xf32>
    %27 = arith.truncf %26 : vector<16x16x128xf32> to vector<16x16x128xbf16>
    %c0_9 = arith.constant 0 : index
    %c0_10 = arith.constant 0 : index
    %c0_11 = arith.constant 0 : index
    %c0_12 = arith.constant 0 : index
    %28 = vector.load %arg4[%c0_9, %c0_10, %c0_11, %c0_12] : memref<1x16x16x128xbf16, #tpu.memory_space<vmem>>, vector<1x16x16x128xbf16>
    %29 = vector.shape_cast %28 : vector<1x16x16x128xbf16> to vector<16x16x128xbf16>
    %30 = vector.shape_cast %27 : vector<16x16x128xbf16> to vector<1x16x16x128xbf16>
    tpu.vector_store %arg4[%c0_9, %c0_10, %c0_11, %c0_12], %30 {strides = array<i32>} : memref<1x16x16x128xbf16, #tpu.memory_space<vmem>>, vector<1x16x16x128xbf16>,
    %cst_13 = arith.constant dense<0.000000e+00> : vector<128xf32>
    %31 = vector.multi_reduction <add>, %25, %cst_13 [0] : vector<256x128xf32> to vector<128xf32>
    %32 = vector.shape_cast %31 : vector<128xf32> to vector<1x128xf32>
    %cst_14 = arith.constant 3.906250e-03 : f32
    %33 = vector.broadcast %cst_14 : f32 to vector<1x128xf32>
    %34 = arith.mulf %32, %33 : vector<1x128xf32>
    %35 = vector.broadcast %34 : vector<1x128xf32> to vector<256x128xf32>
    %36 = arith.subf %25, %35 : vector<256x128xf32>
    %c0_15 = arith.constant 0 : index
    %c0_16 = arith.constant 0 : index
    %c0_17 = arith.constant 0 : index
    %c0_18 = arith.constant 0 : index
    %37 = vector.load %arg5[%c0_15, %c0_16, %c0_17, %c0_18] : memref<1x1x2x128xf32, #tpu.memory_space<vmem>>, vector<1x1x1x128xf32>
    %38 = vector.shape_cast %37 : vector<1x1x1x128xf32> to vector<1x128xf32>
    %39 = vector.shape_cast %32 : vector<1x128xf32> to vector<1x1x1x128xf32>
    tpu.vector_store %arg5[%c0_15, %c0_16, %c0_17, %c0_18], %39 {strides = array<i32>} : memref<1x1x2x128xf32, #tpu.memory_space<vmem>>, vector<1x1x1x128xf32>,
    %40 = arith.mulf %36, %36 : vector<256x128xf32>
    %cst_19 = arith.constant dense<0.000000e+00> : vector<128xf32>
    %41 = vector.multi_reduction <add>, %40, %cst_19 [0] : vector<256x128xf32> to vector<128xf32>
    %42 = vector.shape_cast %41 : vector<128xf32> to vector<1x128xf32>
    %c0_20 = arith.constant 0 : index
    %c0_21 = arith.constant 0 : index
    %c1 = arith.constant 1 : index
    %c0_22 = arith.constant 0 : index
    %43 = vector.load %arg5[%c0_20, %c0_21, %c1, %c0_22] : memref<1x1x2x128xf32, #tpu.memory_space<vmem>>, vector<1x1x1x128xf32>
    %44 = vector.shape_cast %43 : vector<1x1x1x128xf32> to vector<1x128xf32>
    %45 = vector.shape_cast %42 : vector<1x128xf32> to vector<1x1x1x128xf32>
    tpu.vector_store %arg5[%c0_20, %c0_21, %c1, %c0_22], %45 {strides = array<i32>} : memref<1x1x2x128xf32, #tpu.memory_space<vmem>>, vector<1x1x1x128xf32>,
    return
  }
  func.func @transform_0(%arg0: i32, %arg1: i32) -> (i32, i32, i32, i32) {
    %c0_i32 = arith.constant 0 : i32
    %c0_i32_0 = arith.constant 0 : i32
    %c0_i32_1 = arith.constant 0 : i32
    %c0_i32_2 = arith.constant 0 : i32
    return %arg0, %c0_i32, %c0_i32_0, %c0_i32_1 : i32, i32, i32, i32
  }
  func.func @transform_1(%arg0: i32, %arg1: i32) -> (i32, i32) {
    %c0_i32 = arith.constant 0 : i32
    %c0_i32_0 = arith.constant 0 : i32
    %c0_i32_1 = arith.constant 0 : i32
    return %c0_i32, %c0_i32_0 : i32, i32
  }
  func.func @transform_2(%arg0: i32, %arg1: i32) -> (i32, i32, i32, i32) {
    %c0_i32 = arith.constant 0 : i32
    %c0_i32_0 = arith.constant 0 : i32
    %c0_i32_1 = arith.constant 0 : i32
    return %arg0, %arg1, %c0_i32, %c0_i32_0 : i32, i32, i32, i32
  }
  func.func @transform_3(%arg0: i32, %arg1: i32) -> (i32, i32, i32, i32) {
    %c0_i32 = arith.constant 0 : i32
    %c0_i32_0 = arith.constant 0 : i32
    %c0_i32_1 = arith.constant 0 : i32
    return %arg0, %arg1, %c0_i32, %c0_i32_0 : i32, i32, i32, i32
  }
}

module attributes {stable_mosaic.version = 11 : i64} {
  func.func @_scale_shift_relu_kernel(%arg0: i32, %arg1: memref<512x128xbf16, #tpu.memory_space<vmem>>, %arg2: memref<1x128xf32, #tpu.memory_space<vmem>>, %arg3: memref<1x128xf32, #tpu.memory_space<vmem>>, %arg4: memref<512x128xf32, #tpu.memory_space<vmem>>) attributes {dimension_semantics = [#tpu.dimension_semantics<parallel>], iteration_bounds = array<i64: 1>, scalar_prefetch = 0 : i64, scratch_operands = 0 : i64, tpu.core_type = #tpu.core_type<tc>, window_params = [{transform_indices = @transform_0, window_bounds = array<i64: 512, 128>}, {pipeline_mode = #tpu.pipeline_mode<synchronous>, transform_indices = @transform_1, window_bounds = array<i64: 1, 128>}, {pipeline_mode = #tpu.pipeline_mode<synchronous>, transform_indices = @transform_2, window_bounds = array<i64: 1, 128>}, {transform_indices = @transform_3, window_bounds = array<i64: 512, 128>}]} {
    %c0 = arith.constant 0 : index
    %c0_0 = arith.constant 0 : index
    %0 = vector.load %arg1[%c0, %c0_0] : memref<512x128xbf16, #tpu.memory_space<vmem>>, vector<512x128xbf16>
    %1 = arith.extf %0 : vector<512x128xbf16> to vector<512x128xf32>
    %c0_1 = arith.constant 0 : index
    %c0_2 = arith.constant 0 : index
    %2 = vector.load %arg2[%c0_1, %c0_2] : memref<1x128xf32, #tpu.memory_space<vmem>>, vector<1x128xf32>
    %3 = vector.broadcast %2 : vector<1x128xf32> to vector<512x128xf32>
    %4 = arith.mulf %1, %3 : vector<512x128xf32>
    %c0_3 = arith.constant 0 : index
    %c0_4 = arith.constant 0 : index
    %5 = vector.load %arg3[%c0_3, %c0_4] : memref<1x128xf32, #tpu.memory_space<vmem>>, vector<1x128xf32>
    %6 = vector.broadcast %5 : vector<1x128xf32> to vector<512x128xf32>
    %7 = arith.addf %4, %6 : vector<512x128xf32>
    %cst = arith.constant 0.000000e+00 : f32
    %8 = vector.broadcast %cst : f32 to vector<512x128xf32>
    %9 = arith.maximumf %7, %8 : vector<512x128xf32>
    %c0_5 = arith.constant 0 : index
    %c0_6 = arith.constant 0 : index
    %10 = vector.load %arg4[%c0_5, %c0_6] : memref<512x128xf32, #tpu.memory_space<vmem>>, vector<512x128xf32>
    tpu.vector_store %arg4[%c0_5, %c0_6], %9 {strides = array<i32>} : memref<512x128xf32, #tpu.memory_space<vmem>>, vector<512x128xf32>,
    return
  }
  func.func @transform_0(%arg0: i32) -> (i32, i32) {
    %c0_i32 = arith.constant 0 : i32
    %c0_i32_0 = arith.constant 0 : i32
    return %arg0, %c0_i32 : i32, i32
  }
  func.func @transform_1(%arg0: i32) -> (i32, i32) {
    %c0_i32 = arith.constant 0 : i32
    %c0_i32_0 = arith.constant 0 : i32
    %c0_i32_1 = arith.constant 0 : i32
    return %c0_i32, %c0_i32_0 : i32, i32
  }
  func.func @transform_2(%arg0: i32) -> (i32, i32) {
    %c0_i32 = arith.constant 0 : i32
    %c0_i32_0 = arith.constant 0 : i32
    %c0_i32_1 = arith.constant 0 : i32
    return %c0_i32, %c0_i32_0 : i32, i32
  }
  func.func @transform_3(%arg0: i32) -> (i32, i32) {
    %c0_i32 = arith.constant 0 : i32
    %c0_i32_0 = arith.constant 0 : i32
    return %arg0, %c0_i32 : i32, i32
  }
}

module attributes {stable_mosaic.version = 11 : i64} {
  func.func @_conv_stage_kernel(%arg0: i32, %arg1: i32, %arg2: memref<1x16x16x128xbf16, #tpu.memory_space<vmem>>, %arg3: memref<1152x128xbf16, #tpu.memory_space<vmem>>, %arg4: memref<1x128xf32, #tpu.memory_space<vmem>>, %arg5: memref<1x128xf32, #tpu.memory_space<vmem>>, %arg6: memref<1x16x16x128xbf16, #tpu.memory_space<vmem>>, %arg7: memref<1x1x2x128xf32, #tpu.memory_space<vmem>>, %arg8: memref<18x18x128xbf16, #tpu.memory_space<vmem>>) attributes {dimension_semantics = [#tpu.dimension_semantics<parallel>, #tpu.dimension_semantics<arbitrary>], iteration_bounds = array<i64: 2, 1>, scalar_prefetch = 0 : i64, scratch_operands = 1 : i64, tpu.core_type = #tpu.core_type<tc>, window_params = [{transform_indices = @transform_0, window_bounds = array<i64: 1, 16, 16, 128>}, {pipeline_mode = #tpu.pipeline_mode<synchronous>, transform_indices = @transform_1, window_bounds = array<i64: 1152, 128>}, {pipeline_mode = #tpu.pipeline_mode<synchronous>, transform_indices = @transform_2, window_bounds = array<i64: 1, 128>}, {pipeline_mode = #tpu.pipeline_mode<synchronous>, transform_indices = @transform_3, window_bounds = array<i64: 1, 128>}, {transform_indices = @transform_4, window_bounds = array<i64: 1, 16, 16, 128>}, {transform_indices = @transform_5, window_bounds = array<i64: 1, 1, 2, 128>}]} {
    %c0_i32 = arith.constant 0 : i32
    %0 = arith.cmpi eq, %arg1, %c0_i32 : i32
    %1 = arith.extui %0 : i1 to i32
    %c0_i32_0 = arith.constant 0 : i32
    %2 = arith.cmpi ne, %1, %c0_i32_0 : i32
    scf.if %2 {
      %c0_23 = arith.constant 0 : index
      %c0_24 = arith.constant 0 : index
      %c0_25 = arith.constant 0 : index
      %c0_26 = arith.constant 0 : index
      %46 = vector.load %arg2[%c0_23, %c0_24, %c0_25, %c0_26] : memref<1x16x16x128xbf16, #tpu.memory_space<vmem>>, vector<1x16x16x128xbf16>
      %47 = vector.shape_cast %46 : vector<1x16x16x128xbf16> to vector<16x16x128xbf16>
      %48 = arith.extf %47 : vector<16x16x128xbf16> to vector<16x16x128xf32>
      %c0_27 = arith.constant 0 : index
      %c0_28 = arith.constant 0 : index
      %49 = vector.load %arg4[%c0_27, %c0_28] : memref<1x128xf32, #tpu.memory_space<vmem>>, vector<1x128xf32>
      %50 = vector.shape_cast %49 : vector<1x128xf32> to vector<1x1x128xf32>
      %51 = vector.broadcast %50 : vector<1x1x128xf32> to vector<16x16x128xf32>
      %52 = arith.mulf %48, %51 : vector<16x16x128xf32>
      %c0_29 = arith.constant 0 : index
      %c0_30 = arith.constant 0 : index
      %53 = vector.load %arg5[%c0_29, %c0_30] : memref<1x128xf32, #tpu.memory_space<vmem>>, vector<1x128xf32>
      %54 = vector.shape_cast %53 : vector<1x128xf32> to vector<1x1x128xf32>
      %55 = vector.broadcast %54 : vector<1x1x128xf32> to vector<16x16x128xf32>
      %56 = arith.addf %52, %55 : vector<16x16x128xf32>
      %cst_31 = arith.constant 0.000000e+00 : f32
      %57 = vector.broadcast %cst_31 : f32 to vector<16x16x128xf32>
      %58 = arith.maximumf %56, %57 : vector<16x16x128xf32>
      %cst_32 = arith.constant 0.000000e+00 : bf16
      %59 = vector.broadcast %cst_32 : bf16 to vector<18x18x128xbf16>
      %c0_33 = arith.constant 0 : index
      %c0_34 = arith.constant 0 : index
      %c0_35 = arith.constant 0 : index
      %60 = vector.load %arg8[%c0_33, %c0_34, %c0_35] : memref<18x18x128xbf16, #tpu.memory_space<vmem>>, vector<18x18x128xbf16>
      tpu.vector_store %arg8[%c0_33, %c0_34, %c0_35], %59 {strides = array<i32>} : memref<18x18x128xbf16, #tpu.memory_space<vmem>>, vector<18x18x128xbf16>,
      %61 = arith.truncf %58 : vector<16x16x128xf32> to vector<16x16x128xbf16>
      %c1_36 = arith.constant 1 : index
      %c1_37 = arith.constant 1 : index
      %c0_38 = arith.constant 0 : index
      %62 = vector.load %arg8[%c1_36, %c1_37, %c0_38] : memref<18x18x128xbf16, #tpu.memory_space<vmem>>, vector<16x16x128xbf16>
      tpu.vector_store %arg8[%c1_36, %c1_37, %c0_38], %61 {strides = array<i32>} : memref<18x18x128xbf16, #tpu.memory_space<vmem>>, vector<16x16x128xbf16>,
    } else {
    }
    %c16_i32 = arith.constant 16 : i32
    %3 = arith.muli %arg1, %c16_i32 : i32
    %c0_i32_1 = arith.constant 0 : i32
    %4 = arith.addi %3, %c0_i32_1 : i32
    %5 = arith.index_cast %4 : i32 to index
    %c0 = arith.constant 0 : index
    %c0_2 = arith.constant 0 : index
    %6 = vector.load %arg8[%5, %c0, %c0_2] : memref<18x18x128xbf16, #tpu.memory_space<vmem>>, vector<16x18x128xbf16>
    %7 = vector.extract_strided_slice %6 {offsets = [0, 0, 0], sizes = [16, 16, 128], strides = [1, 1, 1]} : vector<16x18x128xbf16> to vector<16x16x128xbf16>
    %8 = vector.extract_strided_slice %6 {offsets = [0, 1, 0], sizes = [16, 16, 128], strides = [1, 1, 1]} : vector<16x18x128xbf16> to vector<16x16x128xbf16>
    %9 = vector.extract_strided_slice %6 {offsets = [0, 2, 0], sizes = [16, 16, 128], strides = [1, 1, 1]} : vector<16x18x128xbf16> to vector<16x16x128xbf16>
    %c1_i32 = arith.constant 1 : i32
    %10 = arith.addi %3, %c1_i32 : i32
    %11 = arith.index_cast %10 : i32 to index
    %c0_3 = arith.constant 0 : index
    %c0_4 = arith.constant 0 : index
    %12 = vector.load %arg8[%11, %c0_3, %c0_4] : memref<18x18x128xbf16, #tpu.memory_space<vmem>>, vector<16x18x128xbf16>
    %13 = vector.extract_strided_slice %12 {offsets = [0, 0, 0], sizes = [16, 16, 128], strides = [1, 1, 1]} : vector<16x18x128xbf16> to vector<16x16x128xbf16>
    %14 = vector.extract_strided_slice %12 {offsets = [0, 1, 0], sizes = [16, 16, 128], strides = [1, 1, 1]} : vector<16x18x128xbf16> to vector<16x16x128xbf16>
    %15 = vector.extract_strided_slice %12 {offsets = [0, 2, 0], sizes = [16, 16, 128], strides = [1, 1, 1]} : vector<16x18x128xbf16> to vector<16x16x128xbf16>
    %c2_i32 = arith.constant 2 : i32
    %16 = arith.addi %3, %c2_i32 : i32
    %17 = arith.index_cast %16 : i32 to index
    %c0_5 = arith.constant 0 : index
    %c0_6 = arith.constant 0 : index
    %18 = vector.load %arg8[%17, %c0_5, %c0_6] : memref<18x18x128xbf16, #tpu.memory_space<vmem>>, vector<16x18x128xbf16>
    %19 = vector.extract_strided_slice %18 {offsets = [0, 0, 0], sizes = [16, 16, 128], strides = [1, 1, 1]} : vector<16x18x128xbf16> to vector<16x16x128xbf16>
    %20 = vector.extract_strided_slice %18 {offsets = [0, 1, 0], sizes = [16, 16, 128], strides = [1, 1, 1]} : vector<16x18x128xbf16> to vector<16x16x128xbf16>
    %21 = vector.extract_strided_slice %18 {offsets = [0, 2, 0], sizes = [16, 16, 128], strides = [1, 1, 1]} : vector<16x18x128xbf16> to vector<16x16x128xbf16>
    %22 = tpu.concatenate %7, %8, %9, %13, %14, %15, %19, %20, %21 in 2 : vector<16x16x128xbf16>, vector<16x16x128xbf16>, vector<16x16x128xbf16>, vector<16x16x128xbf16>, vector<16x16x128xbf16>, vector<16x16x128xbf16>, vector<16x16x128xbf16>, vector<16x16x128xbf16>, vector<16x16x128xbf16> -> vector<16x16x1152xbf16>
    %23 = vector.shape_cast %22 : vector<16x16x1152xbf16> to vector<256x1152xbf16>
    %c0_7 = arith.constant 0 : index
    %c0_8 = arith.constant 0 : index
    %24 = vector.load %arg3[%c0_7, %c0_8] : memref<1152x128xbf16, #tpu.memory_space<vmem>>, vector<1152x128xbf16>
    %cst = arith.constant dense<0.000000e+00> : vector<256x128xf32>
    %25 = tpu.matmul %23, %24, %cst {dimension_numbers = #tpu.dot_dimension_numbers<[1], [0], [0], [1], [0, 0, 1, 1], [], []>} : vector<256x1152xbf16>, vector<1152x128xbf16>, vector<256x128xf32> -> vector<256x128xf32>
    %26 = vector.shape_cast %25 : vector<256x128xf32> to vector<16x16x128xf32>
    %27 = arith.truncf %26 : vector<16x16x128xf32> to vector<16x16x128xbf16>
    %c0_9 = arith.constant 0 : index
    %c0_10 = arith.constant 0 : index
    %c0_11 = arith.constant 0 : index
    %c0_12 = arith.constant 0 : index
    %28 = vector.load %arg6[%c0_9, %c0_10, %c0_11, %c0_12] : memref<1x16x16x128xbf16, #tpu.memory_space<vmem>>, vector<1x16x16x128xbf16>
    %29 = vector.shape_cast %28 : vector<1x16x16x128xbf16> to vector<16x16x128xbf16>
    %30 = vector.shape_cast %27 : vector<16x16x128xbf16> to vector<1x16x16x128xbf16>
    tpu.vector_store %arg6[%c0_9, %c0_10, %c0_11, %c0_12], %30 {strides = array<i32>} : memref<1x16x16x128xbf16, #tpu.memory_space<vmem>>, vector<1x16x16x128xbf16>,
    %cst_13 = arith.constant dense<0.000000e+00> : vector<128xf32>
    %31 = vector.multi_reduction <add>, %25, %cst_13 [0] : vector<256x128xf32> to vector<128xf32>
    %32 = vector.shape_cast %31 : vector<128xf32> to vector<1x128xf32>
    %cst_14 = arith.constant 3.906250e-03 : f32
    %33 = vector.broadcast %cst_14 : f32 to vector<1x128xf32>
    %34 = arith.mulf %32, %33 : vector<1x128xf32>
    %35 = vector.broadcast %34 : vector<1x128xf32> to vector<256x128xf32>
    %36 = arith.subf %25, %35 : vector<256x128xf32>
    %c0_15 = arith.constant 0 : index
    %c0_16 = arith.constant 0 : index
    %c0_17 = arith.constant 0 : index
    %c0_18 = arith.constant 0 : index
    %37 = vector.load %arg7[%c0_15, %c0_16, %c0_17, %c0_18] : memref<1x1x2x128xf32, #tpu.memory_space<vmem>>, vector<1x1x1x128xf32>
    %38 = vector.shape_cast %37 : vector<1x1x1x128xf32> to vector<1x128xf32>
    %39 = vector.shape_cast %32 : vector<1x128xf32> to vector<1x1x1x128xf32>
    tpu.vector_store %arg7[%c0_15, %c0_16, %c0_17, %c0_18], %39 {strides = array<i32>} : memref<1x1x2x128xf32, #tpu.memory_space<vmem>>, vector<1x1x1x128xf32>,
    %40 = arith.mulf %36, %36 : vector<256x128xf32>
    %cst_19 = arith.constant dense<0.000000e+00> : vector<128xf32>
    %41 = vector.multi_reduction <add>, %40, %cst_19 [0] : vector<256x128xf32> to vector<128xf32>
    %42 = vector.shape_cast %41 : vector<128xf32> to vector<1x128xf32>
    %c0_20 = arith.constant 0 : index
    %c0_21 = arith.constant 0 : index
    %c1 = arith.constant 1 : index
    %c0_22 = arith.constant 0 : index
    %43 = vector.load %arg7[%c0_20, %c0_21, %c1, %c0_22] : memref<1x1x2x128xf32, #tpu.memory_space<vmem>>, vector<1x1x1x128xf32>
    %44 = vector.shape_cast %43 : vector<1x1x1x128xf32> to vector<1x128xf32>
    %45 = vector.shape_cast %42 : vector<1x128xf32> to vector<1x1x1x128xf32>
    tpu.vector_store %arg7[%c0_20, %c0_21, %c1, %c0_22], %45 {strides = array<i32>} : memref<1x1x2x128xf32, #tpu.memory_space<vmem>>, vector<1x1x1x128xf32>,
    return
  }
  func.func @transform_0(%arg0: i32, %arg1: i32) -> (i32, i32, i32, i32) {
    %c0_i32 = arith.constant 0 : i32
    %c0_i32_0 = arith.constant 0 : i32
    %c0_i32_1 = arith.constant 0 : i32
    %c0_i32_2 = arith.constant 0 : i32
    return %arg0, %c0_i32, %c0_i32_0, %c0_i32_1 : i32, i32, i32, i32
  }
  func.func @transform_1(%arg0: i32, %arg1: i32) -> (i32, i32) {
    %c0_i32 = arith.constant 0 : i32
    %c0_i32_0 = arith.constant 0 : i32
    %c0_i32_1 = arith.constant 0 : i32
    return %c0_i32, %c0_i32_0 : i32, i32
  }
  func.func @transform_2(%arg0: i32, %arg1: i32) -> (i32, i32) {
    %c0_i32 = arith.constant 0 : i32
    %c0_i32_0 = arith.constant 0 : i32
    %c0_i32_1 = arith.constant 0 : i32
    return %c0_i32, %c0_i32_0 : i32, i32
  }
  func.func @transform_3(%arg0: i32, %arg1: i32) -> (i32, i32) {
    %c0_i32 = arith.constant 0 : i32
    %c0_i32_0 = arith.constant 0 : i32
    %c0_i32_1 = arith.constant 0 : i32
    return %c0_i32, %c0_i32_0 : i32, i32
  }
  func.func @transform_4(%arg0: i32, %arg1: i32) -> (i32, i32, i32, i32) {
    %c0_i32 = arith.constant 0 : i32
    %c0_i32_0 = arith.constant 0 : i32
    %c0_i32_1 = arith.constant 0 : i32
    return %arg0, %arg1, %c0_i32, %c0_i32_0 : i32, i32, i32, i32
  }
  func.func @transform_5(%arg0: i32, %arg1: i32) -> (i32, i32, i32, i32) {
    %c0_i32 = arith.constant 0 : i32
    %c0_i32_0 = arith.constant 0 : i32
    %c0_i32_1 = arith.constant 0 : i32
    return %arg0, %arg1, %c0_i32, %c0_i32_0 : i32, i32, i32, i32
  }
}

</mosaic_0001>

<bundles_post_ra>
// kernel: conv_block_forward.5
= control target key start
LH: loop header
LB: loop body
LE: loop exit
PB: predicated region body
PF: predicated region fallthrough
CT: control target
= control target key end

     0   :  { %s1023_s0 = inlined_call_operand.vmem [shape: bf16[512,128], index: 0, kind: input, shape index: {}]   ;;  %s1024_s1 = inlined_call_operand.vmem [shape: f32[1,128], index: 1, kind: input, shape index: {}]   ;;  %s1025_s2 = inlined_call_operand.vmem [shape: f32[1,128], index: 2, kind: input, shape index: {}]   ;;  %s1026_s3 = inlined_call_operand.vmem [shape: f32[512,128], index: 3, kind: output, shape index: {}]  }
   0x1   :  { %v419_v0 = vld [vmem:[%s1023_s0] sm:$0xff]   ;;  %v546_v4 = vld [vmem:[%s1023_s0 + $0x8] sm:$0xff]   ;;  %v547_v5 = vld [vmem:[%s1023_s0 + $0x10] sm:$0xff]  }
   0x2   :  { %v603_v1 = vld [vmem:[%s1024_s1] ss:$0 sm:$0xff]  ;;  %v420_v2 = vunpack.c.l.bf16 %v419_v0  ;;  %v421_v3 = vunpack.c.h.bf16 %v419_v0  ;;  %v548_v6 = vld [vmem:[%s1023_s0 + $0x18] sm:$0xff]   ;;  %v424_v8 = vunpack.c.l.bf16 %v546_v4  ;;  %v425_v9 = vunpack.c.h.bf16 %v546_v4  ;;  %v550_v33 = vld [vmem:[%s1023_s0 + $0x28] sm:$0xff]  }
   0x3   :  { %v617_v7 = vld [vmem:[%s1025_s2] ss:$0 sm:$0xff]  ;;  %v428_v10 = vunpack.c.l.bf16 %v547_v5  ;;  %v429_v11 = vunpack.c.h.bf16 %v547_v5  ;;  %v432_v14 = vunpack.c.l.bf16 %v548_v6  ;;  %v433_v15 = vunpack.c.h.bf16 %v548_v6  ;;  %v551_v34 = vld [vmem:[%s1023_s0 + $0x30] sm:$0xff]   ;;  %v552_v39 = vld [vmem:[%s1023_s0 + $0x38] sm:$0xff]  }
   0x4   :  { %v149_v12 = vmul.f32 %v420_v2, %v603_v1  ;;  %v150_v13 = vmul.f32 %v421_v3, %v603_v1  ;;  %v151_v16 = vmul.f32 %v424_v8, %v603_v1  ;;  %v152_v17 = vmul.f32 %v425_v9, %v603_v1  ;;  %v549_v28 = vld [vmem:[%s1023_s0 + $0x20] sm:$0xff]   ;;  %v554_v6 = vld [vmem:[%s1023_s0 + $0x48] sm:$0xff]   ;;  %v555_v8 = vld [vmem:[%s1023_s0 + $0x50] sm:$0xff]  }
   0x5   :  { %v153_v18 = vmul.f32 %v428_v10, %v603_v1  ;;  %v154_v19 = vmul.f32 %v429_v11, %v603_v1  ;;  %v155_v22 = vmul.f32 %v432_v14, %v603_v1  ;;  %v156_v23 = vmul.f32 %v433_v15, %v603_v1  ;;  %v553_v0 = vld [vmem:[%s1023_s0 + $0x40] sm:$0xff]  }
   0x6   :  { %v220_v20 = vadd.f32 %v617_v7, %v149_v12  ;;  %v221_v21 = vadd.f32 %v617_v7, %v150_v13  ;;  %v222_v24 = vadd.f32 %v617_v7, %v151_v16  ;;  %v223_v25 = vadd.f32 %v617_v7, %v152_v17  ;;  %v556_v13 = vld [vmem:[%s1023_s0 + $0x58] sm:$0xff]  }
   0x7   :  { %v224_v26 = vadd.f32 %v617_v7, %v153_v18  ;;  %v225_v27 = vadd.f32 %v617_v7, %v154_v19  ;;  %v226_v31 = vadd.f32 %v617_v7, %v155_v22  ;;  %v227_v32 = vadd.f32 %v617_v7, %v156_v23 }
   0x8   :  { %v284_v29 = vmax.f32 %v220_v20, 0.0  ;;  %v285_v30 = vmax.f32 %v221_v21, 0.0  ;;  %v286_v35 = vmax.f32 %v222_v24, 0.0  ;;  %v287_v36 = vmax.f32 %v223_v25, 0.0 }
   0x9   :  { %v288_v37 = vmax.f32 %v224_v26, 0.0  ;;  %v289_v38 = vmax.f32 %v225_v27, 0.0  ;;  %v290_v40 = vmax.f32 %v226_v31, 0.0  ;;  %v291_v41 = vmax.f32 %v227_v32, 0.0 }
   0xa   :  { %348 = vst [vmem:[%s1026_s3] sm:$0xff] %v284_v29  ;;  %349 = vst [vmem:[%s1026_s3 + $0x8] sm:$0xff] %v285_v30  ;;  %v436_v42 = vunpack.c.l.bf16 %v549_v28  ;;  %v437_v43 = vunpack.c.h.bf16 %v549_v28  ;;  %v440_v44 = vunpack.c.l.bf16 %v550_v33  ;;  %v441_v45 = vunpack.c.h.bf16 %v550_v33 }
   0xb   :  { %350 = vst [vmem:[%s1026_s3 + $0x10] sm:$0xff] %v286_v35  ;;  %351 = vst [vmem:[%s1026_s3 + $0x18] sm:$0xff] %v287_v36  ;;  %v444_v46 = vunpack.c.l.bf16 %v551_v34  ;;  %v445_v47 = vunpack.c.h.bf16 %v551_v34  ;;  %v448_v50 = vunpack.c.l.bf16 %v552_v39  ;;  %v449_v51 = vunpack.c.h.bf16 %v552_v39 }
   0xc   :  { %352 = vst [vmem:[%s1026_s3 + $0x20] sm:$0xff] %v288_v37  ;;  %353 = vst [vmem:[%s1026_s3 + $0x28] sm:$0xff] %v289_v38  ;;  %v157_v48 = vmul.f32 %v436_v42, %v603_v1  ;;  %v158_v49 = vmul.f32 %v437_v43, %v603_v1  ;;  %v159_v52 = vmul.f32 %v440_v44, %v603_v1  ;;  %v452_v16 = vunpack.c.l.bf16 %v553_v0  ;;  %v557_v38 = vld [vmem:[%s1023_s0 + $0x60] sm:$0xff]   ;;  %v558_v43 = vld [vmem:[%s1023_s0 + $0x68] sm:$0xff]  }
   0xd   :  { %354 = vst [vmem:[%s1026_s3 + $0x30] sm:$0xff] %v290_v40  ;;  %355 = vst [vmem:[%s1026_s3 + $0x38] sm:$0xff] %v291_v41  ;;  %v160_v53 = vmul.f32 %v441_v45, %v603_v1  ;;  %v161_v54 = vmul.f32 %v444_v46, %v603_v1  ;;  %v162_v55 = vmul.f32 %v445_v47, %v603_v1  ;;  %v453_v17 = vunpack.c.h.bf16 %v553_v0  ;;  %v559_v44 = vld [vmem:[%s1023_s0 + $0x70] sm:$0xff]  }
   0xe   :  { %v228_v56 = vadd.f32 %v617_v7, %v157_v48  ;;  %v229_v57 = vadd.f32 %v617_v7, %v158_v49  ;;  %v163_v58 = vmul.f32 %v448_v50, %v603_v1  ;;  %v164_v59 = vmul.f32 %v449_v51, %v603_v1  ;;  %v560_v49 = vld [vmem:[%s1023_s0 + $0x78] sm:$0xff]  }
   0xf   :  { %v230_v60 = vadd.f32 %v617_v7, %v159_v52  ;;  %v231_v61 = vadd.f32 %v617_v7, %v160_v53  ;;  %v232_v62 = vadd.f32 %v617_v7, %v161_v54  ;;  %v233_v63 = vadd.f32 %v617_v7, %v162_v55 }
  0x10   :  { %v292_v2 = vmax.f32 %v228_v56, 0.0  ;;  %v293_v3 = vmax.f32 %v229_v57, 0.0  ;;  %v234_v4 = vadd.f32 %v617_v7, %v163_v58  ;;  %v235_v5 = vadd.f32 %v617_v7, %v164_v59 }
  0x11   :  { %v294_v9 = vmax.f32 %v230_v60, 0.0  ;;  %v295_v10 = vmax.f32 %v231_v61, 0.0  ;;  %v296_v11 = vmax.f32 %v232_v62, 0.0  ;;  %v297_v12 = vmax.f32 %v233_v63, 0.0 }
  0x12   :  { %356 = vst [vmem:[%s1026_s3 + $0x40] sm:$0xff] %v292_v2  ;;  %357 = vst [vmem:[%s1026_s3 + $0x48] sm:$0xff] %v293_v3  ;;  %v298_v14 = vmax.f32 %v234_v4, 0.0  ;;  %v299_v15 = vmax.f32 %v235_v5, 0.0  ;;  %v456_v18 = vunpack.c.l.bf16 %v554_v6  ;;  %v457_v19 = vunpack.c.h.bf16 %v554_v6 }
  0x13   :  { %358 = vst [vmem:[%s1026_s3 + $0x50] sm:$0xff] %v294_v9  ;;  %359 = vst [vmem:[%s1026_s3 + $0x58] sm:$0xff] %v295_v10  ;;  %v460_v20 = vunpack.c.l.bf16 %v555_v8  ;;  %v461_v21 = vunpack.c.h.bf16 %v555_v8  ;;  %v165_v22 = vmul.f32 %v452_v16, %v603_v1  ;;  %v166_v23 = vmul.f32 %v453_v17, %v603_v1  ;;  %v562_v17 = vld [vmem:[%s1023_s0 + $0x88] sm:$0xff]  }
  0x14   :  { %360 = vst [vmem:[%s1026_s3 + $0x60] sm:$0xff] %v296_v11  ;;  %361 = vst [vmem:[%s1026_s3 + $0x68] sm:$0xff] %v297_v12  ;;  %v464_v24 = vunpack.c.l.bf16 %v556_v13  ;;  %v465_v25 = vunpack.c.h.bf16 %v556_v13  ;;  %v167_v26 = vmul.f32 %v456_v18, %v603_v1  ;;  %v168_v27 = vmul.f32 %v457_v19, %v603_v1  ;;  %v561_v12 = vld [vmem:[%s1023_s0 + $0x80] sm:$0xff]   ;;  %v563_v18 = vld [vmem:[%s1023_s0 + $0x90] sm:$0xff]  }
  0x15   :  { %362 = vst [vmem:[%s1026_s3 + $0x70] sm:$0xff] %v298_v14  ;;  %363 = vst [vmem:[%s1026_s3 + $0x78] sm:$0xff] %v299_v15  ;;  %v169_v28 = vmul.f32 %v460_v20, %v603_v1  ;;  %v170_v29 = vmul.f32 %v461_v21, %v603_v1  ;;  %v236_v30 = vadd.f32 %v617_v7, %v165_v22  ;;  %v468_v52 = vunpack.c.l.bf16 %v557_v38 }
  0x16   :  { %v237_v31 = vadd.f32 %v617_v7, %v166_v23  ;;  %v171_v32 = vmul.f32 %v464_v24, %v603_v1  ;;  %v172_v33 = vmul.f32 %v465_v25, %v603_v1  ;;  %v238_v34 = vadd.f32 %v617_v7, %v167_v26  ;;  %v564_v23 = vld [vmem:[%s1023_s0 + $0x98] sm:$0xff]  }
  0x17   :  { %v239_v35 = vadd.f32 %v617_v7, %v168_v27  ;;  %v240_v36 = vadd.f32 %v617_v7, %v169_v28  ;;  %v241_v37 = vadd.f32 %v617_v7, %v170_v29  ;;  %v300_v39 = vmax.f32 %v236_v30, 0.0 }
  0x18   :  { %v301_v40 = vmax.f32 %v237_v31, 0.0  ;;  %v242_v41 = vadd.f32 %v617_v7, %v171_v32  ;;  %v243_v42 = vadd.f32 %v617_v7, %v172_v33  ;;  %v302_v45 = vmax.f32 %v238_v34, 0.0 }
  0x19   :  { %v303_v46 = vmax.f32 %v239_v35, 0.0  ;;  %v304_v47 = vmax.f32 %v240_v36, 0.0  ;;  %v305_v48 = vmax.f32 %v241_v37, 0.0  ;;  %364 = vst [vmem:[%s1026_s3 + $0x80] sm:$0xff] %v300_v39  ;;  %v469_v53 = vunpack.c.h.bf16 %v557_v38 }
  0x1a   :  { %365 = vst [vmem:[%s1026_s3 + $0x88] sm:$0xff] %v301_v40  ;;  %v306_v50 = vmax.f32 %v242_v41, 0.0  ;;  %v307_v51 = vmax.f32 %v243_v42, 0.0  ;;  %366 = vst [vmem:[%s1026_s3 + $0x90] sm:$0xff] %v302_v45  ;;  %v472_v54 = vunpack.c.l.bf16 %v558_v43  ;;  %v473_v55 = vunpack.c.h.bf16 %v558_v43 }
  0x1b   :  { %367 = vst [vmem:[%s1026_s3 + $0x98] sm:$0xff] %v303_v46  ;;  %368 = vst [vmem:[%s1026_s3 + $0xa0] sm:$0xff] %v304_v47  ;;  %v476_v56 = vunpack.c.l.bf16 %v559_v44  ;;  %v477_v57 = vunpack.c.h.bf16 %v559_v44  ;;  %v173_v58 = vmul.f32 %v468_v52, %v603_v1  ;;  %v174_v59 = vmul.f32 %v469_v53, %v603_v1  ;;  %v566_v53 = vld [vmem:[%s1023_s0 + $0xa8] sm:$0xff]  }
  0x1c   :  { %369 = vst [vmem:[%s1026_s3 + $0xa8] sm:$0xff] %v305_v48  ;;  %370 = vst [vmem:[%s1026_s3 + $0xb0] sm:$0xff] %v306_v50  ;;  %v480_v60 = vunpack.c.l.bf16 %v560_v49  ;;  %v481_v61 = vunpack.c.h.bf16 %v560_v49  ;;  %v175_v62 = vmul.f32 %v472_v54, %v603_v1  ;;  %v176_v63 = vmul.f32 %v473_v55, %v603_v1  ;;  %v565_v48 = vld [vmem:[%s1023_s0 + $0xa0] sm:$0xff]   ;;  %v567_v54 = vld [vmem:[%s1023_s0 + $0xb0] sm:$0xff]  }
  0x1d   :  { %371 = vst [vmem:[%s1026_s3 + $0xb8] sm:$0xff] %v307_v51  ;;  %v177_v0 = vmul.f32 %v476_v56, %v603_v1  ;;  %v178_v2 = vmul.f32 %v477_v57, %v603_v1  ;;  %v244_v3 = vadd.f32 %v617_v7, %v173_v58  ;;  %v245_v4 = vadd.f32 %v617_v7, %v174_v59  ;;  %v568_v59 = vld [vmem:[%s1023_s0 + $0xb8] sm:$0xff]  }
  0x1e   :  { %v179_v5 = vmul.f32 %v480_v60, %v603_v1  ;;  %v180_v6 = vmul.f32 %v481_v61, %v603_v1  ;;  %v246_v8 = vadd.f32 %v617_v7, %v175_v62  ;;  %v247_v9 = vadd.f32 %v617_v7, %v176_v63 }
  0x1f   :  { %v248_v10 = vadd.f32 %v617_v7, %v177_v0  ;;  %v249_v11 = vadd.f32 %v617_v7, %v178_v2  ;;  %v308_v13 = vmax.f32 %v244_v3, 0.0  ;;  %v309_v14 = vmax.f32 %v245_v4, 0.0 }
  0x20   :  { %v250_v15 = vadd.f32 %v617_v7, %v179_v5  ;;  %v251_v16 = vadd.f32 %v617_v7, %v180_v6  ;;  %v310_v19 = vmax.f32 %v246_v8, 0.0  ;;  %v311_v20 = vmax.f32 %v247_v9, 0.0 }
  0x21   :  { %v312_v21 = vmax.f32 %v248_v10, 0.0  ;;  %v313_v22 = vmax.f32 %v249_v11, 0.0  ;;  %372 = vst [vmem:[%s1026_s3 + $0xc0] sm:$0xff] %v308_v13  ;;  %373 = vst [vmem:[%s1026_s3 + $0xc8] sm:$0xff] %v309_v14  ;;  %v484_v26 = vunpack.c.l.bf16 %v561_v12  ;;  %v485_v27 = vunpack.c.h.bf16 %v561_v12 }
  0x22   :  { %v314_v24 = vmax.f32 %v250_v15, 0.0  ;;  %v315_v25 = vmax.f32 %v251_v16, 0.0  ;;  %374 = vst [vmem:[%s1026_s3 + $0xd0] sm:$0xff] %v310_v19  ;;  %375 = vst [vmem:[%s1026_s3 + $0xd8] sm:$0xff] %v311_v20  ;;  %v488_v28 = vunpack.c.l.bf16 %v562_v17  ;;  %v489_v29 = vunpack.c.h.bf16 %v562_v17 }
  0x23   :  { %376 = vst [vmem:[%s1026_s3 + $0xe0] sm:$0xff] %v312_v21  ;;  %377 = vst [vmem:[%s1026_s3 + $0xe8] sm:$0xff] %v313_v22  ;;  %v492_v30 = vunpack.c.l.bf16 %v563_v18  ;;  %v493_v31 = vunpack.c.h.bf16 %v563_v18  ;;  %v181_v32 = vmul.f32 %v484_v26, %v603_v1  ;;  %v182_v33 = vmul.f32 %v485_v27, %v603_v1  ;;  %v569_v22 = vld [vmem:[%s1023_s0 + $0xc0] sm:$0xff]   ;;  %v570_v27 = vld [vmem:[%s1023_s0 + $0xc8] sm:$0xff]  }
  0x24   :  { %378 = vst [vmem:[%s1026_s3 + $0xf0] sm:$0xff] %v314_v24  ;;  %379 = vst [vmem:[%s1026_s3 + $0xf8] sm:$0xff] %v315_v25  ;;  %v496_v34 = vunpack.c.l.bf16 %v564_v23  ;;  %v497_v35 = vunpack.c.h.bf16 %v564_v23  ;;  %v183_v36 = vmul.f32 %v488_v28, %v603_v1  ;;  %v184_v37 = vmul.f32 %v489_v29, %v603_v1  ;;  %v571_v28 = vld [vmem:[%s1023_s0 + $0xd0] sm:$0xff]  }
  0x25   :  { %v185_v38 = vmul.f32 %v492_v30, %v603_v1  ;;  %v186_v39 = vmul.f32 %v493_v31, %v603_v1  ;;  %v252_v40 = vadd.f32 %v617_v7, %v181_v32  ;;  %v253_v41 = vadd.f32 %v617_v7, %v182_v33  ;;  %v572_v33 = vld [vmem:[%s1023_s0 + $0xd8] sm:$0xff]  }
  0x26   :  { %v187_v42 = vmul.f32 %v496_v34, %v603_v1  ;;  %v188_v43 = vmul.f32 %v497_v35, %v603_v1  ;;  %v254_v44 = vadd.f32 %v617_v7, %v183_v36  ;;  %v255_v45 = vadd.f32 %v617_v7, %v184_v37 }
  0x27   :  { %v256_v46 = vadd.f32 %v617_v7, %v185_v38  ;;  %v257_v47 = vadd.f32 %v617_v7, %v186_v39  ;;  %v316_v49 = vmax.f32 %v252_v40, 0.0  ;;  %v317_v50 = vmax.f32 %v253_v41, 0.0 }
  0x28   :  { %v258_v51 = vadd.f32 %v617_v7, %v187_v42  ;;  %v259_v52 = vadd.f32 %v617_v7, %v188_v43  ;;  %v318_v55 = vmax.f32 %v254_v44, 0.0  ;;  %v319_v56 = vmax.f32 %v255_v45, 0.0 }
  0x29   :  { %v320_v57 = vmax.f32 %v256_v46, 0.0  ;;  %v321_v58 = vmax.f32 %v257_v47, 0.0  ;;  %380 = vst [vmem:[%s1026_s3 + $0x100] sm:$0xff] %v316_v49  ;;  %381 = vst [vmem:[%s1026_s3 + $0x108] sm:$0xff] %v317_v50  ;;  %v500_v62 = vunpack.c.l.bf16 %v565_v48  ;;  %v501_v63 = vunpack.c.h.bf16 %v565_v48 }
  0x2a   :  { %v322_v60 = vmax.f32 %v258_v51, 0.0  ;;  %v323_v61 = vmax.f32 %v259_v52, 0.0  ;;  %382 = vst [vmem:[%s1026_s3 + $0x110] sm:$0xff] %v318_v55  ;;  %383 = vst [vmem:[%s1026_s3 + $0x118] sm:$0xff] %v319_v56  ;;  %v504_v0 = vunpack.c.l.bf16 %v566_v53  ;;  %v505_v2 = vunpack.c.h.bf16 %v566_v53 }
  0x2b   :  { %384 = vst [vmem:[%s1026_s3 + $0x120] sm:$0xff] %v320_v57  ;;  %385 = vst [vmem:[%s1026_s3 + $0x128] sm:$0xff] %v321_v58  ;;  %v508_v3 = vunpack.c.l.bf16 %v567_v54  ;;  %v509_v4 = vunpack.c.h.bf16 %v567_v54  ;;  %v189_v5 = vmul.f32 %v500_v62, %v603_v1  ;;  %v190_v6 = vmul.f32 %v501_v63, %v603_v1  ;;  %v573_v58 = vld [vmem:[%s1023_s0 + $0xe0] sm:$0xff]   ;;  %v574_v63 = vld [vmem:[%s1023_s0 + $0xe8] sm:$0xff]  }
  0x2c   :  { %386 = vst [vmem:[%s1026_s3 + $0x130] sm:$0xff] %v322_v60  ;;  %387 = vst [vmem:[%s1026_s3 + $0x138] sm:$0xff] %v323_v61  ;;  %v512_v8 = vunpack.c.l.bf16 %v568_v59  ;;  %v513_v9 = vunpack.c.h.bf16 %v568_v59  ;;  %v191_v10 = vmul.f32 %v504_v0, %v603_v1  ;;  %v192_v11 = vmul.f32 %v505_v2, %v603_v1  ;;  %v575_v0 = vld [vmem:[%s1023_s0 + $0xf0] sm:$0xff]  }
  0x2d   :  { %v193_v12 = vmul.f32 %v508_v3, %v603_v1  ;;  %v194_v13 = vmul.f32 %v509_v4, %v603_v1  ;;  %v260_v14 = vadd.f32 %v617_v7, %v189_v5  ;;  %v261_v15 = vadd.f32 %v617_v7, %v190_v6  ;;  %v576_v6 = vld [vmem:[%s1023_s0 + $0xf8] sm:$0xff]  }
  0x2e   :  { %v195_v16 = vmul.f32 %v512_v8, %v603_v1  ;;  %v196_v17 = vmul.f32 %v513_v9, %v603_v1  ;;  %v262_v18 = vadd.f32 %v617_v7, %v191_v10  ;;  %v263_v19 = vadd.f32 %v617_v7, %v192_v11 }
  0x2f   :  { %v264_v20 = vadd.f32 %v617_v7, %v193_v12  ;;  %v265_v21 = vadd.f32 %v617_v7, %v194_v13  ;;  %v324_v23 = vmax.f32 %v260_v14, 0.0  ;;  %v325_v24 = vmax.f32 %v261_v15, 0.0 }
  0x30   :  { %v266_v25 = vadd.f32 %v617_v7, %v195_v16  ;;  %v267_v26 = vadd.f32 %v617_v7, %v196_v17  ;;  %v326_v29 = vmax.f32 %v262_v18, 0.0  ;;  %v327_v30 = vmax.f32 %v263_v19, 0.0 }
  0x31   :  { %v328_v31 = vmax.f32 %v264_v20, 0.0  ;;  %v329_v32 = vmax.f32 %v265_v21, 0.0  ;;  %388 = vst [vmem:[%s1026_s3 + $0x140] sm:$0xff] %v324_v23  ;;  %389 = vst [vmem:[%s1026_s3 + $0x148] sm:$0xff] %v325_v24  ;;  %v516_v36 = vunpack.c.l.bf16 %v569_v22  ;;  %v517_v37 = vunpack.c.h.bf16 %v569_v22 }
  0x32   :  { %v330_v34 = vmax.f32 %v266_v25, 0.0  ;;  %v331_v35 = vmax.f32 %v267_v26, 0.0  ;;  %390 = vst [vmem:[%s1026_s3 + $0x150] sm:$0xff] %v326_v29  ;;  %391 = vst [vmem:[%s1026_s3 + $0x158] sm:$0xff] %v327_v30  ;;  %v520_v38 = vunpack.c.l.bf16 %v570_v27  ;;  %v521_v39 = vunpack.c.h.bf16 %v570_v27 }
  0x33   :  { %392 = vst [vmem:[%s1026_s3 + $0x160] sm:$0xff] %v328_v31  ;;  %393 = vst [vmem:[%s1026_s3 + $0x168] sm:$0xff] %v329_v32  ;;  %v524_v40 = vunpack.c.l.bf16 %v571_v28  ;;  %v525_v41 = vunpack.c.h.bf16 %v571_v28  ;;  %v197_v42 = vmul.f32 %v516_v36, %v603_v1  ;;  %v198_v43 = vmul.f32 %v517_v37, %v603_v1 }
  0x34   :  { %394 = vst [vmem:[%s1026_s3 + $0x170] sm:$0xff] %v330_v34  ;;  %395 = vst [vmem:[%s1026_s3 + $0x178] sm:$0xff] %v331_v35  ;;  %v528_v44 = vunpack.c.l.bf16 %v572_v33  ;;  %v529_v45 = vunpack.c.h.bf16 %v572_v33  ;;  %v199_v46 = vmul.f32 %v520_v38, %v603_v1  ;;  %v200_v47 = vmul.f32 %v521_v39, %v603_v1 }
  0x35   :  { %v201_v48 = vmul.f32 %v524_v40, %v603_v1  ;;  %v202_v49 = vmul.f32 %v525_v41, %v603_v1  ;;  %v268_v50 = vadd.f32 %v617_v7, %v197_v42  ;;  %v269_v51 = vadd.f32 %v617_v7, %v198_v43 }
  0x36   :  { %v203_v52 = vmul.f32 %v528_v44, %v603_v1  ;;  %v204_v53 = vmul.f32 %v529_v45, %v603_v1  ;;  %v270_v54 = vadd.f32 %v617_v7, %v199_v46  ;;  %v271_v55 = vadd.f32 %v617_v7, %v200_v47 }
  0x37   :  { %v272_v56 = vadd.f32 %v617_v7, %v201_v48  ;;  %v273_v57 = vadd.f32 %v617_v7, %v202_v49  ;;  %v332_v59 = vmax.f32 %v268_v50, 0.0  ;;  %v333_v60 = vmax.f32 %v269_v51, 0.0 }
  0x38   :  { %v274_v61 = vadd.f32 %v617_v7, %v203_v52  ;;  %v275_v62 = vadd.f32 %v617_v7, %v204_v53  ;;  %v334_v2 = vmax.f32 %v270_v54, 0.0  ;;  %v335_v3 = vmax.f32 %v271_v55, 0.0 }
  0x39   :  { %v336_v4 = vmax.f32 %v272_v56, 0.0  ;;  %v337_v5 = vmax.f32 %v273_v57, 0.0  ;;  %396 = vst [vmem:[%s1026_s3 + $0x180] sm:$0xff] %v332_v59  ;;  %397 = vst [vmem:[%s1026_s3 + $0x188] sm:$0xff] %v333_v60  ;;  %v532_v10 = vunpack.c.l.bf16 %v573_v58  ;;  %v533_v11 = vunpack.c.h.bf16 %v573_v58 }
  0x3a   :  { %v338_v8 = vmax.f32 %v274_v61, 0.0  ;;  %v339_v9 = vmax.f32 %v275_v62, 0.0  ;;  %398 = vst [vmem:[%s1026_s3 + $0x190] sm:$0xff] %v334_v2  ;;  %399 = vst [vmem:[%s1026_s3 + $0x198] sm:$0xff] %v335_v3  ;;  %v536_v12 = vunpack.c.l.bf16 %v574_v63  ;;  %v537_v13 = vunpack.c.h.bf16 %v574_v63 }
  0x3b   :  { %400 = vst [vmem:[%s1026_s3 + $0x1a0] sm:$0xff] %v336_v4  ;;  %401 = vst [vmem:[%s1026_s3 + $0x1a8] sm:$0xff] %v337_v5  ;;  %v540_v14 = vunpack.c.l.bf16 %v575_v0  ;;  %v541_v15 = vunpack.c.h.bf16 %v575_v0  ;;  %v205_v16 = vmul.f32 %v532_v10, %v603_v1  ;;  %v206_v17 = vmul.f32 %v533_v11, %v603_v1 }
  0x3c   :  { %402 = vst [vmem:[%s1026_s3 + $0x1b0] sm:$0xff] %v338_v8  ;;  %403 = vst [vmem:[%s1026_s3 + $0x1b8] sm:$0xff] %v339_v9  ;;  %v544_v18 = vunpack.c.l.bf16 %v576_v6  ;;  %v545_v19 = vunpack.c.h.bf16 %v576_v6  ;;  %v207_v20 = vmul.f32 %v536_v12, %v603_v1  ;;  %v208_v21 = vmul.f32 %v537_v13, %v603_v1 }
  0x3d   :  { %v209_v22 = vmul.f32 %v540_v14, %v603_v1  ;;  %v210_v23 = vmul.f32 %v541_v15, %v603_v1  ;;  %v276_v24 = vadd.f32 %v617_v7, %v205_v16  ;;  %v277_v25 = vadd.f32 %v617_v7, %v206_v17 }
  0x3e   :  { %v211_v26 = vmul.f32 %v544_v18, %v603_v1  ;;  %v212_v27 = vmul.f32 %v545_v19, %v603_v1  ;;  %v278_v28 = vadd.f32 %v617_v7, %v207_v20  ;;  %v279_v29 = vadd.f32 %v617_v7, %v208_v21 }
  0x3f   :  { %v280_v30 = vadd.f32 %v617_v7, %v209_v22  ;;  %v281_v31 = vadd.f32 %v617_v7, %v210_v23  ;;  %v340_v32 = vmax.f32 %v276_v24, 0.0  ;;  %v341_v33 = vmax.f32 %v277_v25, 0.0 }
  0x40   :  { %v282_v34 = vadd.f32 %v617_v7, %v211_v26  ;;  %v283_v35 = vadd.f32 %v617_v7, %v212_v27  ;;  %v342_v36 = vmax.f32 %v278_v28, 0.0  ;;  %v343_v37 = vmax.f32 %v279_v29, 0.0 }
  0x41   :  { %v344_v38 = vmax.f32 %v280_v30, 0.0  ;;  %v345_v39 = vmax.f32 %v281_v31, 0.0  ;;  %404 = vst [vmem:[%s1026_s3 + $0x1c0] sm:$0xff] %v340_v32  ;;  %405 = vst [vmem:[%s1026_s3 + $0x1c8] sm:$0xff] %v341_v33 }
  0x42   :  { %v346_v1 = vmax.f32 %v282_v34, 0.0  ;;  %v347_v40 = vmax.f32 %v283_v35, 0.0  ;;  %406 = vst [vmem:[%s1026_s3 + $0x1d0] sm:$0xff] %v342_v36  ;;  %407 = vst [vmem:[%s1026_s3 + $0x1d8] sm:$0xff] %v343_v37 }
  0x43   :  { %408 = vst [vmem:[%s1026_s3 + $0x1e0] sm:$0xff] %v344_v38  ;;  %409 = vst [vmem:[%s1026_s3 + $0x1e8] sm:$0xff] %v345_v39 }
  0x44   :  { %410 = vst [vmem:[%s1026_s3 + $0x1f0] sm:$0xff] %v346_v1  ;;  %411 = vst [vmem:[%s1026_s3 + $0x1f8] sm:$0xff] %v347_v40 }

// kernel: conv_block_forward.3
= control target key start
LH: loop header
LB: loop body
LE: loop exit
PB: predicated region body
PF: predicated region fallthrough
CT: control target
= control target key end

     0   :  { %s3994_s12 = smov 0   ;;  %s3996_s13 = smov 0   ;;  %s5381_s0 = inlined_call_operand.vmem [shape: f32[2,16,16,4], index: 0, kind: input, shape index: {}]   ;;  %s5382_s1 = inlined_call_operand.vmem [shape: bf16[36,128], index: 1, kind: input, shape index: {}]   ;;  %s5383_s2 = inlined_call_operand.vmem [shape: bf16[2,16,16,128], index: 2, kind: output, shape index: {0}]   ;;  %s5384_s3 = inlined_call_operand.vmem [shape: f32[2,1,2,128], index: 3, kind: output, shape index: {1}]  }
   0x1   :  { %s3998_s14 = smov 0  }
   0x2 LB: > { %s26_s15 = sadd.s32 1, %s3959_s13  ;;  %p3288_p0 = scmp.ge.s32.totalorder %s3963_s14, 1  ;;  %s3963_s14 = sphi %s3998_s14, %s14_s14   ;;  %s3959_s13 = sphi %s3996_s13, %s5392_s13   ;;  %s3955_s12 = sphi %s3994_s12, %s5391_s12  }
   0x3   : > { %p28_p1 = scmp.ge.s32.totalorder %s26_s15, 2  ;;  %p156_p2 = scmp.lt.s32.totalorder %s3963_s14, 3 }
   0x5   : > { %s5394_s15 = smov (%p28_p1, %s26_s15), 0  ;;  %p157_p3 = pnand %p3288_p0, %p156_p2 }
   0x6   : > { %p192_p4 = scmp.lt.s32.totalorder (!%p157_p3), %s3955_s12, 1  ;;  %s3966_s20 = smov (!%p157_p3), 8  }
   0x7   : > { %160 = sbr.rel (%p157_p3) target bundleno = 715 (0x2cb), region = 28  ;;  %s3967_s21 = smov (!%p157_p3), 4  }
   0x8   : > { %s3968_s22 = smov (!%p157_p3), 12   ;;  %s3969_s23 = smov (!%p157_p3), 24  }
   0x9   : > { %s3970_s24 = smov (!%p157_p3), 20   ;;  %s3971_s25 = smov (!%p157_p3), 32  }
   0xa   : > { %s3972_s26 = smov (!%p157_p3), 16   ;;  %s3973_s27 = smov (!%p157_p3), 28  }
   0xc   : > { %vm252_vm0 = vcmask 27648   ;;  %vm255_vm1 = vcmask 24576   ;;  %v3965_v0 = vmov 0   ;;  %s5396_s12 = smov (!%p192_p4, %s3955_s12), 1  ;;  %vm1129_vm2 = vsmask.f32 7424 }
   0xd   : > { %253 = vst.msk [vmem:[#allocation2] sm:$0xf] %vm252_vm0, %v3965_v0  ;;  %254 = vst.msk [vmem:[#allocation2 + $0x4] sm:$0xf] %vm252_vm0, %v3965_v0  ;;  %s3571_s16 = sshll.u32 %s5396_s12, 8  ;;  %vm1354_vm4 = vcmask 1046528  }
   0xe   : > { %256 = vst.msk [vmem:[#allocation2 + $0x8] sm:$0x1] %vm255_vm1, %v3965_v0  ;;  %259 = vst.msk [vmem:[#allocation2 + $0x14] sm:$0x1] %vm255_vm1, %v3965_v0  ;;  %s4076_s19 = scalar_lea.vmem %s5381_s0, %s3571_s16  ;;  %vm404_vm3 = vsmask.f32 256 }
   0xf   : > { %257 = vst.msk [vmem:[#allocation2 + $0xc] sm:$0xf] %vm252_vm0, %v3965_v0  ;;  %258 = vst.msk [vmem:[#allocation2 + $0x10] sm:$0xf] %vm252_vm0, %v3965_v0  ;;  %v222_v1 = vld [vmem:[%s4076_s19 + $0x10] sm:$0xff]  ;;  %v223_v2 = vld [vmem:[%s4076_s19 + $0x18] sm:$0xff] }
  0x10   : > { %260 = vst.msk [vmem:[#allocation2 + $0x18] sm:$0xf] %vm252_vm0, %v3965_v0  ;;  %261 = vst.msk [vmem:[#allocation2 + $0x1c] sm:$0xf] %vm252_vm0, %v3965_v0  ;;  %vm405_vm5 = vsmask.f32 4368  ;;  %v3575_v4 = vpack.c.bf16 %v222_v1, %v222_v1  ;;  %v3576_v5 = vpack.c.bf16 %v223_v2, %v223_v2 }
  0x11   : > { %262 = vst.msk [vmem:[#allocation2 + $0x20] sm:$0x1] %vm255_vm1, %v3965_v0  ;;  %265 = vst.msk [vmem:[#allocation2 + $0x2c] sm:$0x1] %vm255_vm1, %v3965_v0  ;;  %v220_v3 = vld [vmem:[%s4076_s19] sm:$0xff]  ;;  %v221_v13 = vld [vmem:[%s4076_s19 + $0x8] sm:$0xff] }
  0x12   : > { %263 = vst.msk [vmem:[#allocation2 + $0x24] sm:$0xf] %vm252_vm0, %v3965_v0  ;;  %264 = vst.msk [vmem:[#allocation2 + $0x28] sm:$0xf] %vm252_vm0, %v3965_v0  ;;  %vm729_vm6 = vsmask.f32 7938  ;;  %v3573_v8 = vpack.c.bf16 %v220_v3, %v220_v3  ;;  %v3574_v23 = vpack.c.bf16 %v221_v13, %v221_v13 }
  0x13   : > { %266 = vst.msk [vmem:[#allocation2 + $0x30] sm:$0xf] %vm252_vm0, %v3965_v0  ;;  %267 = vst.msk [vmem:[#allocation2 + $0x34] sm:$0xf] %vm252_vm0, %v3965_v0  ;;  %v425_v9 = vshrl.u32 %v3575_v4, 16  ;;  %v428_v10 = vshll.u32 %v3575_v4, 16 }
  0x14   : > { %268 = vst.msk [vmem:[#allocation2 + $0x38] sm:$0x1] %vm255_vm1, %v3965_v0  ;;  %271 = vst.msk [vmem:[#allocation2 + $0x44] sm:$0x1] %vm255_vm1, %v3965_v0  ;;  %v3830_v6 = vld [vmem:[#allocation2] sm:$0xff]   ;;  %v433_v11 = vshrl.u32 %v3576_v5, 16 }
  0x15   : > { %269 = vst.msk [vmem:[#allocation2 + $0x3c] sm:$0xf] %vm252_vm0, %v3965_v0  ;;  %270 = vst.msk [vmem:[#allocation2 + $0x40] sm:$0xf] %vm252_vm0, %v3965_v0  ;;  %v436_v12 = vshll.u32 %v3576_v5, 16  ;;  %v1355_v14 = vrot.slane %v3830_v6, 1 }
  0x16   : > { %272 = vst.msk [vmem:[#allocation2 + $0x48] sm:$0xf] %vm252_vm0, %v3965_v0  ;;  %273 = vst.msk [vmem:[#allocation2 + $0x4c] sm:$0xf] %vm252_vm0, %v3965_v0  ;;  %v1131_v16 = vshrl.u32 %v3830_v6, 16  ;;  %v1133_v17 = vshll.u32 %v3830_v6, 16 }
  0x17   : > { %274 = vst.msk [vmem:[#allocation2 + $0x50] sm:$0x1] %vm255_vm1, %v3965_v0  ;;  %277 = vst.msk [vmem:[#allocation2 + $0x5c] sm:$0x1] %vm255_vm1, %v3965_v0  ;;  %v427_v20 = vrot.slane %v425_v9, 7  ;;  %v435_v21 = vrot.slane %v433_v11, 7 }
  0x18   : > { %275 = vst.msk [vmem:[#allocation2 + $0x54] sm:$0xf] %vm252_vm0, %v3965_v0  ;;  %276 = vst.msk [vmem:[#allocation2 + $0x58] sm:$0xf] %vm252_vm0, %v3965_v0  ;;  %v740_v22 = vld [vmem:[#allocation2 + $0x18] sm:$0xf] }
  0x19   : > { %278 = vst.msk [vmem:[#allocation2 + $0x60] sm:$0xf] %vm252_vm0, %v3965_v0  ;;  %279 = vst.msk [vmem:[#allocation2 + $0x64] sm:$0xf] %vm252_vm0, %v3965_v0  ;;  %v1135_v25 = vrot.slane %v1133_v17, 1  ;;  %v408_v27 = vshrl.u32 %v3573_v8, 16  ;;  %v430_v32 = vor.u32 %v428_v10, %v427_v20  ;;  %v438_v34 = vor.u32 %v436_v12, %v435_v21 }
  0x1a   : > { %280 = vst.msk [vmem:[#allocation2 + $0x68] sm:$0x1] %vm255_vm1, %v3965_v0  ;;  %283 = vst.msk [vmem:[#allocation2 + $0x74] sm:$0x1] %vm255_vm1, %v3965_v0  ;;  %v411_v28 = vshll.u32 %v3573_v8, 16  ;;  %v224_v29 = vld [vmem:[%s4076_s19 + $0x20] sm:$0xff] }
  0x1b   : > { %281 = vst.msk [vmem:[#allocation2 + $0x6c] sm:$0xf] %vm252_vm0, %v3965_v0  ;;  %282 = vst.msk [vmem:[#allocation2 + $0x70] sm:$0xf] %vm252_vm0, %v3965_v0  ;;  %v225_v30 = vld [vmem:[%s4076_s19 + $0x28] sm:$0xff]  ;;  %v431_v33 = vrot.slane %v427_v20, 4  ;;  %v1136_v35 = vor.u32 %v1135_v25, %v1131_v16  ;;  %v3577_v42 = vpack.c.bf16 %v224_v29, %v224_v29 }
  0x1c   : > { %284 = vst.msk [vmem:[#allocation2 + $0x78] sm:$0xf] %vm252_vm0, %v3965_v0  ;;  %285 = vst.msk [vmem:[#allocation2 + $0x7c] sm:$0xf] %vm252_vm0, %v3965_v0  ;;  %v410_v36 = vrot.slane %v408_v27, 7  ;;  %v416_v37 = vshrl.u32 %v3574_v23, 16  ;;  %v3578_v43 = vpack.c.bf16 %v225_v30, %v225_v30 }
  0x1d   : > { %286 = vst.msk [vmem:[#allocation2 + $0x80] sm:$0x1] %vm255_vm1, %v3965_v0  ;;  %289 = vst.msk [vmem:[#allocation2 + $0x8c] sm:$0x1] %vm255_vm1, %v3965_v0  ;;  %v419_v38 = vshll.u32 %v3574_v23, 16  ;;  %v226_v50 = vld [vmem:[%s4076_s19 + $0x30] sm:$0xff] }
  0x1e   : > { %287 = vst.msk [vmem:[#allocation2 + $0x84] sm:$0xf] %vm252_vm0, %v3965_v0  ;;  %288 = vst.msk [vmem:[#allocation2 + $0x88] sm:$0xf] %vm252_vm0, %v3965_v0  ;;  %v731_v41 = vld [vmem:[#allocation2 + $0xc] sm:$0xf]  ;;  %v413_v46 = vor.u32 %v411_v28, %v410_v36  ;;  %v3579_v63 = vpack.c.bf16 %v226_v50, %v226_v50 }
  0x1f   : > { %290 = vst.msk [vmem:[#allocation2 + $0x90] sm:$0xf] %vm252_vm0, %v3965_v0  ;;  %291 = vst.msk [vmem:[#allocation2 + $0x94] sm:$0xf] %vm252_vm0, %v3965_v0  ;;  %v737_v44 = vld [vmem:[#allocation2 + $0x14] sm:$0x1] }
  0x20   : > { %292 = vst.msk [vmem:[#allocation2 + $0x98] sm:$0x1] %vm255_vm1, %v3965_v0  ;;  %295 = vst.msk [vmem:[#allocation2 + $0xa4] sm:$0x1] %vm255_vm1, %v3965_v0  ;;  %v414_v47 = vrot.slane %v410_v36, 4  ;;  %v418_v48 = vrot.slane %v416_v37, 7 }
  0x21   : > { %293 = vst.msk [vmem:[#allocation2 + $0x9c] sm:$0xf] %vm252_vm0, %v3965_v0  ;;  %294 = vst.msk [vmem:[#allocation2 + $0xa0] sm:$0xf] %vm252_vm0, %v3965_v0  ;;  %v744_v49 = vld [vmem:[#allocation2 + $0x20] sm:$0x1] }
  0x22   : > { %296 = vst.msk [vmem:[#allocation2 + $0xa8] sm:$0xf] %vm252_vm0, %v3965_v0  ;;  %297 = vst.msk [vmem:[#allocation2 + $0xac] sm:$0xf] %vm252_vm0, %v3965_v0  ;;  %v442_v51 = vshrl.u32 %v3577_v42, 16  ;;  %v445_v52 = vshll.u32 %v3577_v42, 16  ;;  %v421_v57 = vor.u32 %v419_v38, %v418_v48 }
  0x23   : > { %298 = vst.msk [vmem:[#allocation2 + $0xb0] sm:$0x1] %vm255_vm1, %v3965_v0  ;;  %301 = vst.msk [vmem:[#allocation2 + $0xbc] sm:$0x1] %vm255_vm1, %v3965_v0  ;;  %v450_v53 = vshrl.u32 %v3578_v43, 16  ;;  %v453_v54 = vshll.u32 %v3578_v43, 16 }
  0x24   : > { %299 = vst.msk [vmem:[#allocation2 + $0xb4] sm:$0xf] %vm252_vm0, %v3965_v0  ;;  %300 = vst.msk [vmem:[#allocation2 + $0xb8] sm:$0xf] %vm252_vm0, %v3965_v0  ;;  %v227_v56 = vld [vmem:[%s4076_s19 + $0x38] sm:$0xff]  ;;  %v423_v59 = vrot.slane %v418_v48, 4 }
  0x25   : > { %302 = vst.msk [vmem:[#allocation2 + $0xc0] sm:$0xf] %vm252_vm0, %v3965_v0  ;;  %303 = vst.msk [vmem:[#allocation2 + $0xc4] sm:$0xf] %vm252_vm0, %v3965_v0  ;;  %v440_v60 = vrot.slane %v435_v21, 4  ;;  %v444_v61 = vrot.slane %v442_v51, 7  ;;  %v4121_v5 = vpack.c.bf16 %v227_v56, %v227_v56 }
  0x26   : > { %304 = vst.msk [vmem:[#allocation2 + $0xc8] sm:$0x1] %vm255_vm1, %v3965_v0  ;;  %307 = vst.msk [vmem:[#allocation2 + $0xd4] sm:$0x1] %vm255_vm1, %v3965_v0  ;;  %v452_v62 = vrot.slane %v450_v53, 7  ;;  %v459_v10 = vshrl.u32 %v3579_v63, 16 }
  0x27   : > { %305 = vst.msk [vmem:[#allocation2 + $0xcc] sm:$0xf] %vm252_vm0, %v3965_v0  ;;  %306 = vst.msk [vmem:[#allocation2 + $0xd0] sm:$0xf] %vm252_vm0, %v3965_v0  ;;  %v747_v1 = vld [vmem:[#allocation2 + $0x24] sm:$0xf]  ;;  %v447_v6 = vor.u32 %v445_v52, %v444_v61 }
  0x28   : > { %v3831_v7 = vld [vmem:[#allocation2 + $0x8] ss:$0 sps:$4 sm:$0x11]   ;;  %vm4084_vm7 = vmor %vm404_vm3, %vm405_vm5  ;;  %v751_v4 = vld [vmem:[#allocation2 + $0x2c] sm:$0x1]  ;;  %v455_v8 = vor.u32 %v453_v54, %v452_v62  ;;  %v457_v9 = vrot.slane %v452_v62, 4 }
  0x29   : > { %v1356_v15 = vrot.slane %v3831_v7, 1  ;;  %v1138_v18 = vshll.u32 %v3831_v7, 16  ;;  %vm4091_vm8 = vmand %vm252_vm0, %vm729_vm6  ;;  %v439_v39 = vsel %vm4084_vm7, %v431_v33, %v438_v34  ;;  %v422_v0 = vsel %vm4084_vm7, %v414_v47, %v421_v57  ;;  %v754_v16 = vld [vmem:[#allocation2 + $0x30] sm:$0xf]  ;;  %v229_v36 = vld [vmem:[%s4076_s19 + $0x48] sm:$0xff]  ;;  %s3572_s7 = sshll.u32 %s5396_s12, 7 }
  0x2a   : > { %v741_v40 = vsel %vm4091_vm8, %v430_v32, %v740_v22  ;;  %743 = vst.msk [vmem:[#allocation2 + $0x1c] sm:$0xf] %vm252_vm0, %v439_v39  ;;  %vm4108_vm9 = vmand %vm255_vm1, %vm404_vm3  ;;  %v732_v58 = vsel %vm4091_vm8, %v413_v46, %v731_v41  ;;  %v448_v7 = vrot.slane %v444_v61, 4  ;;  %v462_v11 = vshll.u32 %v3579_v63, 16  ;;  %v230_v43 = vld [vmem:[%s4076_s19 + $0x50] sm:$0xff]  ;;  %s5136_s10 = scalar_lea.vmem %s5383_s2, %s3572_s7  ;;  %s3293_s11 = sshll.u32 %s5396_s12, 1 }
  0x2b   : > { %v1357_v24 = vsel %vm1354_vm4, %v1355_v14, %v1356_v15  ;;  %v1140_v31 = vrot.slane %v1138_v18, 1  ;;  %742 = vst [vmem:[#allocation2 + $0x18] sm:$0xf] %v741_v40  ;;  %733 = vst [vmem:[#allocation2 + $0xc] sm:$0xf] %v732_v58  ;;  %v738_v2 = vsel %vm4108_vm9, %v423_v59, %v737_v44  ;;  %v745_v3 = vsel %vm4108_vm9, %v440_v60, %v744_v49  ;;  %s5302_s18 = scalar_lea.vmem %s5384_s3, %s3293_s11 }
  0x2c   : > { %1403 = vrot.lane.b32.xlu1 %v1357_v24, %s3966_s20  ;;  %734 = vst.msk [vmem:[#allocation2 + $0x10] sm:$0xf] %vm252_vm0, %v422_v0  ;;  %739 = vst [vmem:[#allocation2 + $0x14] sm:$0x1] %v738_v2  ;;  %v456_v13 = vsel %vm4084_vm7, %v448_v7, %v455_v8  ;;  %v748_v14 = vsel %vm4091_vm8, %v447_v6, %v747_v1  ;;  %v752_v15 = vsel %vm4108_vm9, %v457_v9, %v751_v4  ;;  %vm2680_vm10 = vcmask 1041408  }
  0x2d   : > { %v1141_v45 = vsel %vm1129_vm2, %v1136_v35, %v1140_v31  ;;  %746 = vst [vmem:[#allocation2 + $0x20] sm:$0x1] %v745_v3  ;;  %749 = vst [vmem:[#allocation2 + $0x24] sm:$0xf] %v748_v14  ;;  %v4133_v17 = vrot.slane %v459_v10, 7  ;;  %v467_v21 = vshrl.u32 %v4121_v5, 16  ;;  %v4171_v50 = vpack.c.bf16 %v229_v36, %v229_v36 }
  0x2e   : > { %1322 = vrot.lane.b32.xlu0 %v1141_v45, %s3967_s21  ;;  %750 = vst.msk [vmem:[#allocation2 + $0x28] sm:$0xf] %vm252_vm0, %v456_v13  ;;  %753 = vst [vmem:[#allocation2 + $0x2c] sm:$0x1] %v752_v15  ;;  %v470_v24 = vshll.u32 %v4121_v5, 16  ;;  %v228_v35 = vld [vmem:[%s4076_s19 + $0x40] sm:$0xff]  ;;  %v4178_v0 = vpack.c.bf16 %v230_v43, %v230_v43 }
  0x2f   : > { %v464_v23 = vor.u32 %v462_v11, %v4133_v17  ;;  %v4169_v49 = vpack.c.bf16 %v228_v35, %v228_v35  ;;  %v231_v11 = vld [vmem:[%s4076_s19 + $0x58] sm:$0xff]  ;;  %vm2363_vm11 = vcmask 31744   ;;  %vm2396_vm12 = vcmask 64512  }
  0x30   : > { %vm2429_vm13 = vcmask 97280   ;;  %vm2462_vm14 = vcmask 130048   ;;  %vm2495_vm15 = vcmask 162816   ;;  %vm2528_vm1 = vcmask 195584  }
  0x31   : > { %v755_v32 = vsel %vm4091_vm8, %v464_v23, %v754_v16  ;;  %vm2561_vm3 = vcmask 228352   ;;  %vm2594_vm5 = vcmask 261120   ;;  %vm2647_vm6 = vcmask 293888  }
  0x32   : > { %v4124_v12 = vld [vmem:[#allocation2 + $0x18] sm:$0xff]   ;;  %756 = vst [vmem:[#allocation2 + $0x30] sm:$0xf] %v755_v32 }
  0x33   : > { %1517 = vrot.lane.b32.xlu1 %v4124_v12, %s3968_s22  ;;  %v4137_v18 = vld [vmem:[#allocation2 + $0x18] sm:$0xff]   ;;  %v1610_v20 = vshll.u32 %v4124_v12, 16  ;;  %v1822_v27 = vrot.slane %v4124_v12, 1  ;;  %v1608_v28 = vshrl.u32 %v4124_v12, 16  ;;  %v4148_v30 = vld [vmem:[#allocation2 + $0xc] sm:$0xff]  }
  0x34   : > { %v4141_v22 = vld [vmem:[#allocation2 + $0x18] sm:$0xff]   ;;  %v2283_v25 = vrot.slane %v4137_v18, 1  ;;  %v4153_v33 = vld [vmem:[#allocation2 + $0x14] ss:$0 sps:$4 sm:$0x11]   ;;  %v3837_v34 = vld [vmem:[#allocation2 + $0xc] sm:$0xff]   ;;  %1515 = vrot.lane.b32.xlu0 %v4148_v30, %s3968_s22 }
  0x35   : > { %v1612_v29 = vrot.slane %v1610_v20, 1  ;;  %v1155_v31 = vshrl.u32 %v4141_v22, 16  ;;  %v1819_v37 = vrot.slane %v4148_v30, 1  ;;  %v3838_v38 = vld [vmem:[#allocation2 + $0x14] ss:$0 sps:$4 sm:$0x11]  }
  0x36   : > { %v3834_v39 = vld [vmem:[#allocation2 + $0x24] sm:$0xff]   ;;  %v1820_v40 = vrot.slane %v4153_v33, 1  ;;  %v1358_v41 = vrot.slane %v3837_v34, 1  ;;  %v1359_v42 = vrot.slane %v3838_v38, 1  ;;  %v1157_v48 = vshll.u32 %v4141_v22, 16 }
  0x37   : > { %1981 = vrot.lane.b32.xlu1 %v3834_v39, %s3969_s23  ;;  %v4163_v44 = vld [vmem:[#allocation2 + $0x20] ss:$0 sps:$4 sm:$0x11]   ;;  %v3841_v47 = vld [vmem:[#allocation2 + $0x2c] ss:$0 sps:$4 sm:$0x11]   ;;  %v1613_v56 = vor.u32 %v1612_v29, %v1608_v28 }
  0x38   : > { %v3840_v45 = vld [vmem:[#allocation2 + $0x20] ss:$0 sps:$4 sm:$0x11]   ;;  %1979 = vrot.lane.b32.xlu0 %v4137_v18, %s3969_s23  ;;  %v1360_v46 = vsel %vm1354_vm4, %v1358_v41, %v1359_v42  ;;  %v1821_v51 = vsel %vm1354_vm4, %v1819_v37, %v1820_v40  ;;  %v2284_v52 = vrot.slane %v4163_v44, 1  ;;  %v2072_v57 = vshrl.u32 %v3834_v39, 16  ;;  %v3844_v4 = vld [vmem:[#allocation2 + $0x24] sm:$0xff]  }
  0x39   : > { %v1823_v53 = vrot.slane %v3840_v45, 1  ;;  %v1615_v54 = vshll.u32 %v3840_v45, 16  ;;  %v2074_v58 = vshll.u32 %v3834_v39, 16  ;;  %v2079_v59 = vshll.u32 %v3841_v47, 16 }
  0x3a   : > { %v1143_v61 = vshrl.u32 %v3837_v34, 16  ;;  %v1145_v62 = vshll.u32 %v3837_v34, 16  ;;  %v4176_v63 = vld [vmem:[#allocation2 + $0x20] ss:$0 sps:$4 sm:$0x11]   ;;  %v1150_v3 = vshll.u32 %v3838_v38, 16  ;;  %v2285_v7 = vsel %vm1354_vm4, %v2283_v25, %v2284_v52 }
  0x3b   : > { %1405 = vrot.lane.b32.xlu1 %v1360_v46, %s3966_s20  ;;  %v1617_v60 = vrot.slane %v1615_v54, 1  ;;  %v1824_v1 = vsel %vm1354_vm4, %v1822_v27, %v1823_v53  ;;  %v2076_v2 = vrot.slane %v2074_v58, 1  ;;  %v2062_v6 = vshll.u32 %v4137_v18, 16  ;;  %v3845_v16 = vld [vmem:[#allocation2 + $0x2c] ss:$0 sps:$4 sm:$0x11]  }
  0x3c   : > { %1867 = vrot.lane.b32.xlu0 %v1821_v51, %s3970_s24  ;;  %v2286_v8 = vrot.slane %v3834_v39, 1  ;;  %v2287_v9 = vrot.slane %v3841_v47, 1  ;;  %v1147_v10 = vrot.slane %v1145_v62, 1  ;;  %v2081_v13 = vrot.slane %v2079_v59, 1  ;;  %v232_v46 = vld [vmem:[%s4076_s19 + $0x60] sm:$0xff] }
  0x3d   : > { %v1618_v12 = vsel %vm1129_vm2, %v1613_v56, %v1617_v60  ;;  %v1159_v14 = vrot.slane %v1157_v48, 1  ;;  %v1598_v15 = vshll.u32 %v4148_v30, 16  ;;  %v2077_v20 = vor.u32 %v2076_v2, %v2072_v57  ;;  %v4218_v2 = vld [vmem:[#allocation2 + $0x24] sm:$0xff]  }
  0x3e   : > { %v1148_v23 = vor.u32 %v1147_v10, %v1143_v61  ;;  %v1152_v27 = vrot.slane %v1150_v3, 1  ;;  %v1162_v28 = vshll.u32 %v4176_v63, 16  ;;  %v1596_v25 = vshrl.u32 %v4148_v30, 16 }
  0x3f   : > { %1869 = vrot.lane.b32.xlu1 %v1824_v1, %s3970_s24  ;;  %v1600_v29 = vrot.slane %v1598_v15, 1  ;;  %v1603_v32 = vshll.u32 %v4153_v33, 16  ;;  %v1169_v34 = vshll.u32 %v3844_v4, 16  ;;  %v2288_v35 = vsel %vm1354_vm4, %v2286_v8, %v2287_v9  ;;  %v761_v8 = vld [vmem:[#allocation2 + $0x3c] sm:$0xf] }
  0x40   : > { %2331 = vrot.lane.b32.xlu0 %v2285_v7, %s3971_s25  ;;  %v1167_v36 = vshrl.u32 %v3844_v4, 16  ;;  %v1174_v37 = vshll.u32 %v3845_v16, 16  ;;  %v4193_v38 = vpack.c.bf16 %v231_v11, %v231_v11  ;;  %v2060_v40 = vshrl.u32 %v4137_v18, 16 }
  0x41   : > { %v1171_v39 = vrot.slane %v1169_v34, 1  ;;  %v2064_v41 = vrot.slane %v2062_v6, 1  ;;  %v2067_v42 = vshll.u32 %v4163_v44, 16  ;;  %v2082_v30 = vsel %vm1129_vm2, %v2077_v20, %v2081_v13 }
  0x42   : > { %v1153_v33 = vsel %vm1129_vm2, %v1148_v23, %v1152_v27  ;;  %v1160_v43 = vor.u32 %v1159_v14, %v1155_v31  ;;  %v1164_v45 = vrot.slane %v1162_v28, 1  ;;  %v1601_v47 = vor.u32 %v1600_v29, %v1596_v25  ;;  %v758_v31 = vld [vmem:[#allocation2 + $0x38] sm:$0x1] }
  0x43   : > { %1789 = vrot.lane.b32.xlu1 %v1618_v12, %s3972_s26  ;;  %v1605_v48 = vrot.slane %v1603_v32, 1  ;;  %v1364_v18 = vrot.slane %v3844_v4, 1  ;;  %v1365_v51 = vrot.slane %v3845_v16, 1  ;;  %v1172_v52 = vor.u32 %v1171_v39, %v1167_v36  ;;  %v765_v12 = vld [vmem:[#allocation2 + $0x44] sm:$0x1] }
  0x44   : > { %2333 = vrot.lane.b32.xlu0 %v2288_v35, %s3971_s25  ;;  %v1176_v44 = vrot.slane %v1174_v37, 1  ;;  %v465_v53 = vrot.slane %v4133_v17, 4  ;;  %v469_v54 = vrot.slane %v467_v21, 7  ;;  %v2065_v56 = vor.u32 %v2064_v41, %v2060_v40 }
  0x45   : > { %v2069_v57 = vrot.slane %v2067_v42, 1  ;;  %v1361_v58 = vrot.slane %v4141_v22, 1  ;;  %v4208_v59 = vpack.c.bf16 %v232_v46, %v232_v46  ;;  %v1165_v60 = vsel %vm1129_vm2, %v1160_v43, %v1164_v45  ;;  %v772_v42 = vld [vmem:[#allocation2 + $0x50] sm:$0x1]  ;;  %v775_v46 = vld [vmem:[#allocation2 + $0x54] sm:$0xf] }
  0x46   : > { %v1362_v61 = vrot.slane %v4176_v63, 1  ;;  %v472_v17 = vor.u32 %v470_v24, %v469_v54  ;;  %v474_v62 = vrot.slane %v469_v54, 4  ;;  %v1606_v21 = vsel %vm1129_vm2, %v1601_v47, %v1605_v48  ;;  %v4227_v24 = vld [vmem:[#allocation2 + $0x2c] ss:$0 sps:$4 sm:$0x11]  }
  0x47   : > { %2253 = vrot.lane.b32.xlu1 %v2082_v30, %s3973_s27  ;;  %v1366_v1 = vsel %vm1354_vm4, %v1364_v18, %v1365_v51  ;;  %v476_v3 = vshrl.u32 %v4169_v49, 16  ;;  %v479_v4 = vshll.u32 %v4169_v49, 16  ;;  %v1177_v6 = vsel %vm1129_vm2, %v1172_v52, %v1176_v44 }
  0x48   : > { %1324 = vrot.lane.b32.xlu0 %v1153_v33, %s3967_s21  ;;  %v473_v63 = vsel %vm4084_vm7, %v465_v53, %v472_v17  ;;  %v759_v5 = vsel %vm4108_vm9, %v474_v62, %v758_v31  ;;  %v484_v7 = vshrl.u32 %v4171_v50, 16  ;;  %v2070_v9 = vsel %vm1129_vm2, %v2065_v56, %v2069_v57  ;;  %v233_v53 = vld [vmem:[%s4076_s19 + $0x68] sm:$0xff] }
  0x49   : > { %757 = vst.msk [vmem:[#allocation2 + $0x34] sm:$0xf] %vm252_vm0, %v473_v63  ;;  %760 = vst [vmem:[#allocation2 + $0x38] sm:$0x1] %v759_v5  ;;  %v1620_v49 = vshrl.u32 %v4218_v2, 16  ;;  %v478_v10 = vrot.slane %v476_v3, 7  ;;  %v1363_v47 = vsel %vm1354_vm4, %v1361_v58, %v1362_v61  ;;  %v3586_v17 = vpack.c.bf16 %v233_v53, %v233_v53 }
  0x4a   : > { %v487_v11 = vshll.u32 %v4171_v50, 16  ;;  %v486_v13 = vrot.slane %v484_v7, 7  ;;  %v493_v14 = vshrl.u32 %v4178_v0, 16  ;;  %v496_v15 = vshll.u32 %v4178_v0, 16  ;;  %v768_v0 = vld [vmem:[#allocation2 + $0x48] sm:$0xf] }
  0x4b   : > { %1326 = vrot.lane.b32.xlu1 %v1165_v60, %s3967_s21  ;;  %v501_v16 = vshrl.u32 %v4193_v38, 16  ;;  %v1622_v20 = vshll.u32 %v4218_v2, 16  ;;  %v481_v23 = vor.u32 %v479_v4, %v478_v10  ;;  %v482_v27 = vrot.slane %v478_v10, 4 }
  0x4c   : > { %1787 = vrot.lane.b32.xlu0 %v1606_v21, %s3972_s26  ;;  %v504_v28 = vshll.u32 %v4193_v38, 16  ;;  %v489_v25 = vor.u32 %v487_v11, %v486_v13  ;;  %v491_v50 = vrot.slane %v486_v13, 4  ;;  %v495_v29 = vrot.slane %v493_v14, 7 }
  0x4d   : > { %v503_v32 = vrot.slane %v501_v16, 7  ;;  %v1627_v34 = vshll.u32 %v4227_v24, 16  ;;  %v762_v35 = vsel %vm4091_vm8, %v481_v23, %v761_v8  ;;  %v510_v36 = vshrl.u32 %v4208_v59, 16 }
  0x4e   : > { %v513_v37 = vshll.u32 %v4208_v59, 16  ;;  %v490_v39 = vsel %vm4084_vm7, %v482_v27, %v489_v25  ;;  %763 = vst [vmem:[#allocation2 + $0x3c] sm:$0xf] %v762_v35  ;;  %v766_v38 = vsel %vm4108_vm9, %v491_v50, %v765_v12  ;;  %v498_v40 = vor.u32 %v496_v15, %v495_v29 }
  0x4f   : > { %1328 = vrot.lane.b32.xlu1 %v1177_v6, %s3967_s21  ;;  %v499_v41 = vrot.slane %v495_v29, 4  ;;  %v1624_v30 = vrot.slane %v1622_v20, 1  ;;  %764 = vst.msk [vmem:[#allocation2 + $0x40] sm:$0xf] %vm252_vm0, %v490_v39  ;;  %767 = vst [vmem:[#allocation2 + $0x44] sm:$0x1] %v766_v38  ;;  %v506_v33 = vor.u32 %v504_v28, %v503_v32 }
  0x50   : > { %2251 = vrot.lane.b32.xlu0 %v2070_v9, %s3973_s27  ;;  %v508_v43 = vrot.slane %v503_v32, 4  ;;  %v4253_v45 = vrot.slane %v510_v36, 7  ;;  %v3846_v48 = vld [vmem:[#allocation2 + $0x30] sm:$0xff]   ;;  %v769_v18 = vsel %vm4091_vm8, %v498_v40, %v768_v0  ;;  %v3848_v51 = vld [vmem:[#allocation2 + $0x38] ss:$0 sps:$4 sm:$0x11]  }
  0x51   : > { %v507_v52 = vsel %vm4084_vm7, %v499_v41, %v506_v33  ;;  %770 = vst [vmem:[#allocation2 + $0x48] sm:$0xf] %v769_v18  ;;  %v1632_v22 = vshrl.u32 %v3846_v48, 16  ;;  %v1634_v56 = vshll.u32 %v3846_v48, 16  ;;  %v1639_v57 = vshll.u32 %v3848_v51, 16  ;;  %v4271_v61 = vld [vmem:[#allocation2 + $0x30] sm:$0xff]  }
  0x52   : > { %v773_v44 = vsel %vm4108_vm9, %v508_v43, %v772_v42  ;;  %v515_v54 = vor.u32 %v513_v37, %v4253_v45  ;;  %771 = vst.msk [vmem:[#allocation2 + $0x4c] sm:$0xf] %vm252_vm0, %v507_v52  ;;  %v1625_v58 = vor.u32 %v1624_v30, %v1620_v49  ;;  %v1629_v31 = vrot.slane %v1627_v34, 1  ;;  %v4273_v21 = vld [vmem:[#allocation2 + $0x30] sm:$0xff]   ;;  %v779_v43 = vld [vmem:[#allocation2 + $0x5c] sm:$0x1] }
  0x53   : > { %1409 = vrot.lane.b32.xlu1 %v1366_v1, %s3966_s20  ;;  %774 = vst [vmem:[#allocation2 + $0x50] sm:$0x1] %v773_v44  ;;  %v1636_v60 = vrot.slane %v1634_v56, 1  ;;  %v1641_v62 = vrot.slane %v1639_v57, 1  ;;  %v1825_v3 = vrot.slane %v4218_v2, 1  ;;  %v1828_v63 = vrot.slane %v3846_v48, 1 }
  0x54   : > { %1407 = vrot.lane.b32.xlu0 %v1363_v47, %s3966_s20  ;;  %v776_v59 = vsel %vm4091_vm8, %v515_v54, %v775_v46  ;;  %v1630_v6 = vsel %vm1129_vm2, %v1625_v58, %v1629_v31  ;;  %v1829_v5 = vrot.slane %v3848_v51, 1  ;;  %v1826_v7 = vrot.slane %v4227_v24, 1  ;;  %v3853_v10 = vld [vmem:[#allocation2 + $0x38] ss:$0 sps:$4 sm:$0x11]   ;;  %v234_v46 = vld [vmem:[%s4076_s19 + $0x70] sm:$0xff] }
  0x55   : > { %777 = vst [vmem:[#allocation2 + $0x54] sm:$0xf] %v776_v59  ;;  %v1637_v1 = vor.u32 %v1636_v60, %v1632_v22  ;;  %v2086_v11 = vshll.u32 %v4271_v61, 16  ;;  %v518_v12 = vshrl.u32 %v3586_v17, 16  ;;  %v2084_v27 = vshrl.u32 %v4271_v61, 16  ;;  %v235_v52 = vld [vmem:[%s4076_s19 + $0x78] sm:$0xff] }
  0x56   : > { %v4277_v4 = vld [vmem:[#allocation2 + $0x3c] sm:$0xff]   ;;  %v4283_v8 = vld [vmem:[#allocation2 + $0x44] ss:$0 sps:$4 sm:$0x11]   ;;  %v1830_v24 = vsel %vm1354_vm4, %v1828_v63, %v1829_v5  ;;  %v1827_v23 = vsel %vm1354_vm4, %v1825_v3, %v1826_v7  ;;  %v2091_v25 = vshll.u32 %v3853_v10, 16  ;;  %v1179_v50 = vshrl.u32 %v4273_v21, 16 }
  0x57   : > { %1521 = vrot.lane.b32.xlu1 %v3846_v48, %s3968_s22  ;;  %v1642_v9 = vsel %vm1129_vm2, %v1637_v1, %v1641_v62  ;;  %v2098_v49 = vshll.u32 %v4277_v4, 16  ;;  %v4288_v13 = vld [vmem:[#allocation2 + $0x38] ss:$0 sps:$4 sm:$0x11]   ;;  %v2103_v14 = vshll.u32 %v4283_v8, 16  ;;  %v2096_v15 = vshrl.u32 %v4277_v4, 16 }
  0x58   : > { %1519 = vrot.lane.b32.xlu0 %v4218_v2, %s3968_s22  ;;  %v1181_v2 = vshll.u32 %v4273_v21, 16  ;;  %v4296_v20 = vld [vmem:[#allocation2 + $0x3c] sm:$0xff]   ;;  %v2088_v28 = vrot.slane %v2086_v11, 1  ;;  %v520_v32 = vrot.slane %v518_v12, 7  ;;  %v521_v34 = vshll.u32 %v3586_v17, 16 }
  0x59   : > { %v2100_v16 = vrot.slane %v2098_v49, 1  ;;  %v2105_v35 = vrot.slane %v2103_v14, 1  ;;  %v1186_v0 = vshll.u32 %v4288_v13, 16  ;;  %v3857_v37 = vld [vmem:[#allocation2 + $0x44] ss:$0 sps:$4 sm:$0x11]   ;;  %v3587_v57 = vpack.c.bf16 %v234_v46, %v234_v46 }
  0x5a   : > { %v1183_v29 = vrot.slane %v1181_v2, 1  ;;  %v1193_v39 = vshll.u32 %v4296_v20, 16  ;;  %v2089_v38 = vor.u32 %v2088_v28, %v2084_v27  ;;  %v2093_v40 = vrot.slane %v2091_v25, 1  ;;  %v4329_v3 = vld [vmem:[#allocation2 + $0x3c] sm:$0xff]  }
  0x5b   : > { %1793 = vrot.lane.b32.xlu1 %v1642_v9, %s3972_s26  ;;  %v2101_v36 = vor.u32 %v2100_v16, %v2096_v15  ;;  %v2289_v42 = vrot.slane %v4271_v61, 1  ;;  %v1191_v30 = vshrl.u32 %v4296_v20, 16  ;;  %v523_v33 = vor.u32 %v521_v34, %v520_v32  ;;  %v236_v49 = vld [vmem:[%s4076_s19 + $0x80] sm:$0xff] }
  0x5c   : > { %1791 = vrot.lane.b32.xlu0 %v1630_v6, %s3972_s26  ;;  %v1184_v41 = vor.u32 %v1183_v29, %v1179_v50  ;;  %v1188_v48 = vrot.slane %v1186_v0, 1  ;;  %v1195_v18 = vrot.slane %v1193_v39, 1  ;;  %v1198_v51 = vshll.u32 %v3857_v37, 16  ;;  %v4342_v14 = vld [vmem:[#allocation2 + $0x44] ss:$0 sps:$4 sm:$0x11]  }
  0x5d   : > { %v2106_v47 = vsel %vm1129_vm2, %v2101_v36, %v2105_v35  ;;  %v2094_v44 = vsel %vm1129_vm2, %v2089_v38, %v2093_v40  ;;  %v2290_v53 = vrot.slane %v3853_v10, 1  ;;  %v516_v54 = vrot.slane %v4253_v45, 4  ;;  %v4338_v10 = vld [vmem:[#allocation2 + $0x50] ss:$0 sps:$4 sm:$0x11]   ;;  %v237_v40 = vld [vmem:[%s4076_s19 + $0x88] sm:$0xff] }
  0x5e   : > { %v525_v22 = vrot.slane %v520_v32, 4  ;;  %v3588_v58 = vpack.c.bf16 %v235_v52, %v235_v52  ;;  %v1189_v31 = vsel %vm1129_vm2, %v1184_v41, %v1188_v48  ;;  %v1196_v59 = vor.u32 %v1195_v18, %v1191_v30  ;;  %v782_v16 = vld [vmem:[#allocation2 + $0x60] sm:$0xf]  ;;  %v786_v38 = vld [vmem:[#allocation2 + $0x68] sm:$0x1] }
  0x5f   : > { %1873 = vrot.lane.b32.xlu1 %v1830_v24, %s3970_s24  ;;  %v524_v56 = vsel %vm4084_vm7, %v516_v54, %v523_v33  ;;  %v1200_v60 = vrot.slane %v1198_v51, 1  ;;  %v2291_v17 = vsel %vm1354_vm4, %v2289_v42, %v2290_v53  ;;  %v2292_v62 = vrot.slane %v4277_v4, 1  ;;  %v4363_v48 = vld [vmem:[#allocation2 + $0x48] sm:$0xff]  }
  0x60   : > { %1871 = vrot.lane.b32.xlu0 %v1827_v23, %s3970_s24  ;;  %778 = vst.msk [vmem:[#allocation2 + $0x58] sm:$0xf] %vm252_vm0, %v524_v56  ;;  %v780_v45 = vsel %vm4108_vm9, %v525_v22, %v779_v43  ;;  %v2293_v1 = vrot.slane %v4283_v8, 1  ;;  %v1370_v6 = vrot.slane %v4296_v20, 1  ;;  %v1371_v63 = vrot.slane %v3857_v37, 1  ;;  %v4375_v56 = vld [vmem:[#allocation2 + $0x48] sm:$0xff]  }
  0x61   : > { %781 = vst [vmem:[#allocation2 + $0x5c] sm:$0x1] %v780_v45  ;;  %v1367_v5 = vrot.slane %v4273_v21, 1  ;;  %v1368_v7 = vrot.slane %v4288_v13, 1  ;;  %v527_v9 = vshrl.u32 %v3587_v57, 16  ;;  %v530_v11 = vshll.u32 %v3587_v57, 16 }
  0x62   : > { %v535_v12 = vshrl.u32 %v3588_v58, 16  ;;  %v2294_v2 = vsel %vm1354_vm4, %v2292_v62, %v2293_v1  ;;  %v1646_v21 = vshll.u32 %v4329_v3, 16  ;;  %v538_v15 = vshll.u32 %v3588_v58, 16  ;;  %v4373_v22 = vld [vmem:[#allocation2 + $0x50] ss:$0 sps:$4 sm:$0x11]  }
  0x63   : > { %1985 = vrot.lane.b32.xlu1 %v4277_v4, %s3969_s23  ;;  %v1201_v4 = vsel %vm1129_vm2, %v1196_v59, %v1200_v60  ;;  %v529_v24 = vrot.slane %v527_v9, 7  ;;  %v3589_v20 = vpack.c.bf16 %v236_v49, %v236_v49  ;;  %v1372_v23 = vsel %vm1354_vm4, %v1370_v6, %v1371_v63  ;;  %v4385_v62 = vld [vmem:[#allocation2 + $0x50] ss:$0 sps:$4 sm:$0x11]  }
  0x64   : > { %1983 = vrot.lane.b32.xlu0 %v4271_v61, %s3969_s23  ;;  %v4321_v61 = vld [vmem:[#allocation2 + $0x48] sm:$0xff]   ;;  %v537_v13 = vrot.slane %v535_v12, 7  ;;  %v1369_v50 = vsel %vm1354_vm4, %v1367_v5, %v1368_v7  ;;  %v1663_v32 = vshll.u32 %v4338_v10, 16  ;;  %v1644_v35 = vshrl.u32 %v4329_v3, 16  ;;  %v793_v7 = vld [vmem:[#allocation2 + $0x74] sm:$0x1] }
  0x65   : > { %v1658_v8 = vshll.u32 %v4321_v61, 16  ;;  %v1656_v27 = vshrl.u32 %v4321_v61, 16  ;;  %v532_v28 = vor.u32 %v530_v11, %v529_v24  ;;  %v533_v25 = vrot.slane %v529_v24, 4 }
  0x66   : > { %v540_v34 = vor.u32 %v538_v15, %v537_v13  ;;  %v1648_v0 = vrot.slane %v1646_v21, 1  ;;  %v1651_v36 = vshll.u32 %v4342_v14, 16  ;;  %v542_v41 = vrot.slane %v537_v13, 4 }
  0x67   : > { %2257 = vrot.lane.b32.xlu1 %v2106_v47, %s3973_s27  ;;  %v1660_v29 = vrot.slane %v1658_v8, 1  ;;  %v783_v37 = vsel %vm4091_vm8, %v532_v28, %v782_v16  ;;  %v1665_v30 = vrot.slane %v1663_v32, 1  ;;  %v4361_v33 = vld [vmem:[#allocation2 + $0x54] sm:$0xff]   ;;  %v544_v43 = vshrl.u32 %v3589_v20, 16 }
  0x68   : > { %2255 = vrot.lane.b32.xlu0 %v2094_v44, %s3973_s27  ;;  %v541_v39 = vsel %vm4084_vm7, %v533_v25, %v540_v34  ;;  %784 = vst [vmem:[#allocation2 + $0x60] sm:$0xf] %v783_v37  ;;  %v1649_v46 = vor.u32 %v1648_v0, %v1644_v35  ;;  %v1653_v47 = vrot.slane %v1651_v36, 1  ;;  %v787_v18 = vsel %vm4108_vm9, %v542_v41, %v786_v38  ;;  %v4380_v58 = vld [vmem:[#allocation2 + $0x5c] ss:$0 sps:$4 sm:$0x11]  }
  0x69   : > { %785 = vst.msk [vmem:[#allocation2 + $0x64] sm:$0xf] %vm252_vm0, %v541_v39  ;;  %v1661_v42 = vor.u32 %v1660_v29, %v1656_v27  ;;  %v3590_v51 = vpack.c.bf16 %v237_v40, %v237_v40  ;;  %v1834_v52 = vrot.slane %v4321_v61, 1  ;;  %v1835_v44 = vrot.slane %v4338_v10, 1  ;;  %788 = vst [vmem:[#allocation2 + $0x68] sm:$0x1] %v787_v18 }
  0x6a   : > { %v1831_v53 = vrot.slane %v4329_v3, 1  ;;  %v1832_v54 = vrot.slane %v4342_v14, 1  ;;  %v546_v59 = vrot.slane %v544_v43, 7  ;;  %v547_v60 = vshll.u32 %v3589_v20, 16  ;;  %v4396_v14 = vld [vmem:[#allocation2 + $0x54] sm:$0xff]  }
  0x6b   : > { %1330 = vrot.lane.b32.xlu1 %v1189_v31, %s3967_s21  ;;  %v1666_v57 = vsel %vm1129_vm2, %v1661_v42, %v1665_v30  ;;  %v2122_v31 = vshll.u32 %v4361_v33, 16  ;;  %v1654_v45 = vsel %vm1129_vm2, %v1649_v46, %v1653_v47  ;;  %v552_v1 = vshrl.u32 %v3590_v51, 16  ;;  %v238_v16 = vld [vmem:[%s4076_s19 + $0x90] sm:$0xff]  ;;  %v4410_v34 = vld [vmem:[#allocation2 + $0x5c] ss:$0 sps:$4 sm:$0x11]  }
  0x6c   : > { %2335 = vrot.lane.b32.xlu0 %v2291_v17, %s3971_s25  ;;  %v2110_v17 = vshll.u32 %v4363_v48, 16  ;;  %v555_v6 = vshll.u32 %v3590_v51, 16  ;;  %v1836_v63 = vsel %vm1354_vm4, %v1834_v52, %v1835_v44  ;;  %v549_v5 = vor.u32 %v547_v60, %v546_v59 }
  0x6d   : > { %v2115_v9 = vshll.u32 %v4373_v22, 16  ;;  %v1205_v49 = vshll.u32 %v4375_v56, 16  ;;  %v554_v10 = vrot.slane %v552_v1, 7  ;;  %v1833_v8 = vsel %vm1354_vm4, %v1831_v53, %v1832_v54 }
  0x6e   : > { %v2120_v11 = vshrl.u32 %v4361_v33, 16  ;;  %v2124_v12 = vrot.slane %v2122_v31, 1  ;;  %v2112_v21 = vrot.slane %v2110_v17, 1  ;;  %v1203_v20 = vshrl.u32 %v4375_v56, 16 }
  0x6f   : > { %1332 = vrot.lane.b32.xlu1 %v1201_v4, %s3967_s21  ;;  %v550_v4 = vrot.slane %v546_v59, 4  ;;  %v557_v24 = vor.u32 %v555_v6, %v554_v10  ;;  %v559_v15 = vrot.slane %v554_v10, 4  ;;  %v1207_v27 = vrot.slane %v1205_v49, 1  ;;  %v241_v10 = vld [vmem:[%s4076_s19 + $0xa8] sm:$0xff] }
  0x70   : > { %2337 = vrot.lane.b32.xlu0 %v2294_v2, %s3971_s25  ;;  %v2127_v2 = vshll.u32 %v4380_v58, 16  ;;  %v1210_v28 = vshll.u32 %v4385_v62, 16  ;;  %v2125_v29 = vor.u32 %v2124_v12, %v2120_v11  ;;  %v1217_v35 = vshll.u32 %v4396_v14, 16  ;;  %v4427_v59 = vld [vmem:[#allocation2 + $0x60] sm:$0xff]  }
  0x71   : > { %v558_v25 = vsel %vm4084_vm7, %v550_v4, %v557_v24  ;;  %v3591_v0 = vpack.c.bf16 %v238_v16, %v238_v16  ;;  %v2117_v37 = vrot.slane %v2115_v9, 1  ;;  %v2295_v38 = vrot.slane %v4363_v48, 1  ;;  %v240_v4 = vld [vmem:[%s4076_s19 + $0xa0] sm:$0xff]  ;;  %v4444_v11 = vld [vmem:[#allocation2 + $0x5c] ss:$0 sps:$4 sm:$0x11]  }
  0x72   : > { %v2129_v32 = vrot.slane %v2127_v2, 1  ;;  %792 = vst.msk [vmem:[#allocation2 + $0x70] sm:$0xf] %vm252_vm0, %v558_v25  ;;  %v1208_v40 = vor.u32 %v1207_v27, %v1203_v20  ;;  %v1212_v41 = vrot.slane %v1210_v28, 1  ;;  %v2296_v42 = vrot.slane %v4373_v22, 1 }
  0x73   : > { %1413 = vrot.lane.b32.xlu1 %v1372_v23, %s3966_s20  ;;  %v239_v23 = vld [vmem:[%s4076_s19 + $0x98] sm:$0xff]  ;;  %v1215_v30 = vshrl.u32 %v4396_v14, 16  ;;  %v1219_v46 = vrot.slane %v1217_v35, 1  ;;  %v1222_v47 = vshll.u32 %v4410_v34, 16  ;;  %v561_v18 = vshrl.u32 %v3591_v0, 16 }
  0x74   : > { %1411 = vrot.lane.b32.xlu0 %v1369_v50, %s3966_s20  ;;  %v794_v50 = vsel %vm4108_vm9, %v559_v15, %v793_v7  ;;  %v3592_v39 = vpack.c.bf16 %v239_v23, %v239_v23  ;;  %v2130_v43 = vsel %vm1129_vm2, %v2125_v29, %v2129_v32  ;;  %v564_v52 = vshll.u32 %v3591_v0, 16  ;;  %v4450_v12 = vld [vmem:[#allocation2 + $0x68] ss:$0 sps:$4 sm:$0x11]   ;;  %v800_v24 = vld [vmem:[#allocation2 + $0x80] sm:$0x1] }
  0x75   : > { %795 = vst [vmem:[#allocation2 + $0x74] sm:$0x1] %v794_v50  ;;  %v563_v53 = vrot.slane %v561_v18, 7  ;;  %v1224_v31 = vrot.slane %v1222_v47, 1  ;;  %v2297_v17 = vsel %vm1354_vm4, %v2295_v38, %v2296_v42  ;;  %v2298_v1 = vrot.slane %v4361_v33, 1  ;;  %v3888_v0 = vld [vmem:[%s5382_s1] sm:$0xff]  }
  0x76   : > { %v569_v44 = vshrl.u32 %v3592_v39, 16  ;;  %v572_v54 = vshll.u32 %v3592_v39, 16  ;;  %v2299_v6 = vrot.slane %v4380_v58, 1  ;;  %v1373_v7 = vrot.slane %v4375_v56, 1 }
  0x77   : > { %1525 = vrot.lane.b32.xlu1 %v4321_v61, %s3968_s22  ;;  %v789_v61 = vld [vmem:[#allocation2 + $0x6c] sm:$0xf]  ;;  %v566_v60 = vor.u32 %v564_v52, %v563_v53  ;;  %v1374_v9 = vrot.slane %v4385_v62, 1  ;;  %v1682_v56 = vshll.u32 %v4427_v59, 16  ;;  %v3594_v23 = vpack.c.bf16 %v241_v10, %v241_v10 }
  0x78   : > { %1523 = vrot.lane.b32.xlu0 %v4329_v3, %s3968_s22  ;;  %v2108_v3 = vshrl.u32 %v4363_v48, 16  ;;  %v790_v13 = vsel %vm4091_vm8, %v549_v5, %v789_v61  ;;  %v571_v22 = vrot.slane %v569_v44, 7  ;;  %v796_v61 = vld [vmem:[#allocation2 + $0x78] sm:$0xf]  ;;  %v1376_v5 = vrot.slane %v4396_v14, 1 }
  0x79   : > { %791 = vst [vmem:[#allocation2 + $0x6c] sm:$0xf] %v790_v13  ;;  %v2300_v62 = vsel %vm1354_vm4, %v2298_v1, %v2299_v6  ;;  %v3593_v13 = vpack.c.bf16 %v240_v4, %v240_v4  ;;  %v1680_v27 = vshrl.u32 %v4427_v59, 16  ;;  %v1684_v28 = vrot.slane %v1682_v56, 1  ;;  %v242_v6 = vld [vmem:[%s4076_s19 + $0xb0] sm:$0xff] }
  0x7a   : > { %v2113_v36 = vor.u32 %v2112_v21, %v2108_v3  ;;  %v567_v3 = vrot.slane %v563_v53, 4  ;;  %v574_v49 = vor.u32 %v572_v54, %v571_v22  ;;  %v3887_v21 = vld [vmem:[%s5382_s1 + $0x8] sm:$0xff]   ;;  %v576_v20 = vrot.slane %v571_v22, 4 }
  0x7b   : > { %1797 = vrot.lane.b32.xlu1 %v1666_v57, %s3972_s26  ;;  %v1213_v57 = vsel %vm1129_vm2, %v1208_v40, %v1212_v41  ;;  %v1687_v25 = vshll.u32 %v4450_v12, 16  ;;  %v1675_v50 = vshll.u32 %v4444_v11, 16  ;;  %v1375_v29 = vsel %vm1354_vm4, %v1373_v7, %v1374_v9  ;;  %v803_v40 = vld [vmem:[#allocation2 + $0x84] sm:$0xf] }
  0x7c   : > { %1795 = vrot.lane.b32.xlu0 %v1654_v45, %s3972_s26  ;;  %v2118_v51 = vsel %vm1129_vm2, %v2113_v36, %v2117_v37  ;;  %v3884_v45 = vld [vmem:[%s5382_s1 + $0x10] ss:$0 sps:$4 sm:$0x33]   ;;  %v575_v14 = vsel %vm4084_vm7, %v567_v3, %v574_v49  ;;  %v801_v35 = vsel %vm4108_vm9, %v576_v20, %v800_v24  ;;  %v578_v36 = vshrl.u32 %v3593_v13, 16 }
  0x7d   : > { %799 = vst.msk [vmem:[#allocation2 + $0x7c] sm:$0xf] %vm252_vm0, %v575_v14  ;;  %3795 = vmatprep.subr.msk.bf16.mxu0 %vm2680_vm10, %v3884_v45  ;;  %3796 = vmatprep.subr.msk.bf16.mxu1 %vm2680_vm10, %v3884_v45  ;;  %v2682_v16 = vsel %vm2680_vm10, %v3884_v45, 0  ;;  %802 = vst [vmem:[#allocation2 + $0x80] sm:$0x1] %v801_v35  ;;  %v581_v37 = vshll.u32 %v3593_v13, 16  ;;  %v1685_v41 = vor.u32 %v1684_v28, %v1680_v27 }
  0x7e   : > { %3752 = vmatpush3.bf16.msra.mxu0 %v2682_v16  ;;  %3792 = vmatpush3.bf16.msra.mxu1 %v2682_v16  ;;  %v586_v39 = vshrl.u32 %v3594_v23, 16  ;;  %v589_v38 = vshll.u32 %v3594_v23, 16  ;;  %v1689_v42 = vrot.slane %v1687_v25, 1  ;;  %v580_v47 = vrot.slane %v578_v36, 7  ;;  %v244_v16 = vld [vmem:[%s4076_s19 + $0xc0] sm:$0xff] }
  0x7f   : > { %1877 = vrot.lane.b32.xlu1 %v1836_v63, %s3970_s24  ;;  %v4435_v63 = vld [vmem:[#allocation2 + $0x54] sm:$0xff]   ;;  %3753 = vmatprep.subr.bf16.mxu0 %v3887_v21  ;;  %v1840_v54 = vrot.slane %v4427_v59, 1  ;;  %v1841_v22 = vrot.slane %v4450_v12, 1  ;;  %v4508_v4 = vld [vmem:[#allocation2 + $0x68] ss:$0 sps:$4 sm:$0x11]  }
  0x80   : > { %1875 = vrot.lane.b32.xlu0 %v1833_v8, %s3970_s24  ;;  %v1377_v8 = vrot.slane %v4410_v34, 1  ;;  %v1670_v2 = vshll.u32 %v4435_v63, 16  ;;  %v1668_v32 = vshrl.u32 %v4435_v63, 16  ;;  %3790 = vmatprep.subr.bf16.mxu1 %v3887_v21  ;;  %v588_v52 = vrot.slane %v586_v39, 7  ;;  %v4515_v56 = vld [vmem:[#allocation2 + $0x6c] sm:$0xff]  }
  0x81   : > { %v583_v44 = vor.u32 %v581_v37, %v580_v47  ;;  %v584_v53 = vrot.slane %v580_v47, 4  ;;  %v4492_v45 = vld [vmem:[#allocation2 + $0x74] ss:$0 sps:$4 sm:$0x11]   ;;  %v1234_v23 = vshll.u32 %v4508_v4, 16  ;;  %v4533_v39 = vpack.c.bf16 %v244_v16, %v244_v16  ;;  %v245_v47 = vld [vmem:[%s4076_s19 + $0xc8] sm:$0xff] }
  0x82   : > { %v1378_v15 = vsel %vm1354_vm4, %v1376_v5, %v1377_v8  ;;  %v1672_v34 = vrot.slane %v1670_v2, 1  ;;  %3754 = vmatpush3.bf16.msra.mxu0 %v3887_v21  ;;  %3793 = vmatpush3.bf16.msra.mxu1 %v3887_v21  ;;  %v593_v1 = vrot.slane %v588_v52, 4  ;;  %v1838_v5 = vrot.slane %v4444_v11, 1  ;;  %v3881_v27 = vld [vmem:[#allocation2 + $0x74] ss:$0 sps:$4 sm:$0x11]  }
  0x83   : > { %1989 = vrot.lane.b32.xlu1 %v4361_v33, %s3969_s23  ;;  %v797_v33 = vsel %vm4091_vm8, %v566_v60, %v796_v61  ;;  %3755 = vmatprep.subr.bf16.mxu0 %v3888_v0  ;;  %v807_v60 = vld [vmem:[#allocation2 + $0x8c] sm:$0x1]  ;;  %v1690_v61 = vsel %vm1129_vm2, %v1685_v41, %v1689_v42  ;;  %v3595_v8 = vpack.c.bf16 %v242_v6, %v242_v6  ;;  %v2151_v12 = vshll.u32 %v4492_v45, 16  ;;  %v814_v16 = vld [vmem:[#allocation2 + $0x98] sm:$0x1] }
  0x84   : > { %1987 = vrot.lane.b32.xlu0 %v4363_v48, %s3969_s23  ;;  %v1220_v48 = vor.u32 %v1219_v46, %v1215_v30  ;;  %798 = vst [vmem:[#allocation2 + $0x78] sm:$0xf] %v797_v33  ;;  %v1677_v30 = vrot.slane %v1675_v50, 1  ;;  %v4478_v46 = vld [vmem:[#allocation2 + $0x68] ss:$0 sps:$4 sm:$0x11]   ;;  %v1673_v18 = vor.u32 %v1672_v34, %v1668_v32  ;;  %3791 = vmatprep.subr.bf16.mxu1 %v3888_v0 }
  0x85   : > { %v2139_v9 = vshll.u32 %v4478_v46, 16  ;;  %v808_v49 = vsel %vm4108_vm9, %v593_v1, %v807_v60  ;;  %v1842_v11 = vsel %vm1354_vm4, %v1840_v54, %v1841_v22  ;;  %v595_v28 = vshrl.u32 %v3595_v8, 16  ;;  %v4546_v54 = vld [vmem:[#allocation2 + $0x6c] sm:$0xff]  }
  0x86   : > { %v1225_v58 = vsel %vm1129_vm2, %v1220_v48, %v1224_v31  ;;  %v4487_v48 = vld [vmem:[#allocation2 + $0x60] sm:$0xff]   ;;  %v591_v31 = vor.u32 %v589_v38, %v588_v52  ;;  %3756 = vmatpush3.bf16.msra.mxu0 %v3888_v0  ;;  %v1678_v3 = vsel %vm1129_vm2, %v1673_v18, %v1677_v30  ;;  %3794 = vmatpush3.bf16.msra.mxu1 %v3888_v0  ;;  %v1241_v32 = vshll.u32 %v4515_v56, 16  ;;  %v246_v22 = vld [vmem:[%s4076_s19 + $0xd0] sm:$0xff] }
  0x87   : > { %2261 = vrot.lane.b32.xlu1 %v2130_v43, %s3973_s27  ;;  %v4476_v43 = vld [vmem:[#allocation2 + $0x6c] sm:$0xff]   ;;  %v1229_v10 = vshll.u32 %v4487_v48, 16  ;;  %809 = vst [vmem:[#allocation2 + $0x8c] sm:$0x1] %v808_v49  ;;  %v2141_v24 = vrot.slane %v2139_v9, 1  ;;  %v1227_v13 = vshrl.u32 %v4487_v48, 16  ;;  %v4564_v9 = vpack.c.bf16 %v246_v22, %v246_v22 }
  0x88   : > { %2259 = vrot.lane.b32.xlu0 %v2118_v51, %s3973_s27  ;;  %v4480_v51 = vld [vmem:[#allocation2 + $0x60] sm:$0xff]   ;;  %v2144_v33 = vshrl.u32 %v4476_v43, 16  ;;  %v4530_v35 = vrot.slane %v595_v28, 7  ;;  %v598_v0 = vshll.u32 %v3595_v8, 16  ;;  %v1236_v41 = vrot.slane %v1234_v23, 1 }
  0x89   : > { %v2134_v7 = vshll.u32 %v4480_v51, 16  ;;  %v2132_v14 = vshrl.u32 %v4480_v51, 16  ;;  %v1231_v20 = vrot.slane %v1229_v10, 1  ;;  %v2301_v36 = vrot.slane %v4480_v51, 1 }
  0x8a   : > { %v2302_v42 = vrot.slane %v4478_v46, 1  ;;  %v1379_v30 = vrot.slane %v4487_v48, 1  ;;  %v1239_v52 = vshrl.u32 %v4515_v56, 16  ;;  %v2304_v46 = vrot.slane %v4476_v43, 1 }
  0x8b   : > { %1334 = vrot.lane.b32.xlu1 %v1213_v57, %s3967_s21  ;;  %v1837_v57 = vrot.slane %v4435_v63, 1  ;;  %v2136_v21 = vrot.slane %v2134_v7, 1  ;;  %v1380_v60 = vrot.slane %v4508_v4, 1  ;;  %v1382_v1 = vrot.slane %v4515_v56, 1  ;;  %v4622_v48 = vld [vmem:[#allocation2 + $0x78] sm:$0xff]  }
  0x8c   : > { %2339 = vrot.lane.b32.xlu0 %v2297_v17, %s3971_s25  ;;  %v2146_v17 = vshll.u32 %v4476_v43, 16  ;;  %v1383_v6 = vrot.slane %v3881_v27, 1  ;;  %v1694_v8 = vshll.u32 %v4546_v54, 16  ;;  %v612_v28 = vshrl.u32 %v4533_v39, 16 }
  0x8d   : > { %v2137_v34 = vor.u32 %v2136_v21, %v2132_v14 }
  0x8f   : > { %1336 = vrot.lane.b32.xlu1 %v1225_v58, %s3967_s21  ;;  %v2148_v58 = vrot.slane %v2146_v17, 1  ;;  %v810_v17 = vld [vmem:[#allocation2 + $0x90] sm:$0xf] }
  0x90   : > { %2341 = vrot.lane.b32.xlu0 %v2300_v62, %s3971_s25  ;;  %v1839_v62 = vsel %vm1354_vm4, %v1837_v57, %v1838_v5  ;;  %v247_v57 = vld [vmem:[%s4076_s19 + $0xd8] sm:$0xff]  ;;  %v3598_v5 = vpack.c.bf16 %v245_v47, %v245_v47 }
  0x91   : > { %v2149_v50 = vor.u32 %v2148_v58, %v2144_v33  ;;  %v4566_v49 = vpack.c.bf16 %v247_v57, %v247_v57  ;;  %v2303_v58 = vsel %vm1354_vm4, %v2301_v36, %v2302_v42  ;;  %v821_v57 = vld [vmem:[#allocation2 + $0xa4] sm:$0x1] }
  0x93   : > { %1417 = vrot.lane.b32.xlu1 %v1378_v15, %s3966_s20  ;;  %v243_v15 = vld [vmem:[%s4076_s19 + $0xb8] sm:$0xff] }
  0x94   : > { %1415 = vrot.lane.b32.xlu0 %v1375_v29, %s3966_s20  ;;  %v2153_v29 = vrot.slane %v2151_v12, 1  ;;  %v3596_v37 = vpack.c.bf16 %v243_v15, %v243_v15  ;;  %v601_v12 = vrot.slane %v4530_v35, 4  ;;  %v1692_v15 = vshrl.u32 %v4546_v54, 16 }
  0x96   : > { %v2154_v18 = vsel %vm1129_vm2, %v2149_v50, %v2153_v29  ;;  %v4587_v29 = vld [vmem:[#allocation2 + $0x80] ss:$0 sps:$4 sm:$0x11]  }
  0x97   : > { %1529 = vrot.lane.b32.xlu1 %v4427_v59, %s3968_s22  ;;  %v804_v59 = vsel %vm4091_vm8, %v583_v44, %v803_v40  ;;  %v1232_v40 = vor.u32 %v1231_v20, %v1227_v13  ;;  %v1243_v44 = vrot.slane %v1241_v32, 1  ;;  %v1696_v32 = vrot.slane %v1694_v8, 1 }
  0x98   : > { %1527 = vrot.lane.b32.xlu0 %v4435_v63, %s3968_s22  ;;  %v592_v63 = vsel %vm4084_vm7, %v584_v53, %v591_v31  ;;  %805 = vst [vmem:[#allocation2 + $0x84] sm:$0xf] %v804_v59  ;;  %v1246_v53 = vshll.u32 %v3881_v27, 16  ;;  %v2142_v31 = vsel %vm1129_vm2, %v2137_v34, %v2141_v24  ;;  %v2305_v59 = vrot.slane %v4492_v45, 1 }
  0x99   : > { %806 = vst.msk [vmem:[#allocation2 + $0x88] sm:$0xf] %vm252_vm0, %v592_v63  ;;  %v1237_v7 = vsel %vm1129_vm2, %v1232_v40, %v1236_v41  ;;  %v603_v63 = vshrl.u32 %v3596_v37, 16  ;;  %v1244_v45 = vor.u32 %v1243_v44, %v1239_v52  ;;  %v1384_v24 = vsel %vm1354_vm4, %v1382_v1, %v1383_v6  ;;  %v817_v52 = vld [vmem:[#allocation2 + $0x9c] sm:$0xf] }
  0x9a   : > { %v1248_v10 = vrot.slane %v1246_v53, 1  ;;  %v2306_v21 = vsel %vm1354_vm4, %v2304_v46, %v2305_v59  ;;  %v615_v34 = vshll.u32 %v4533_v39, 16  ;;  %v614_v41 = vrot.slane %v612_v28, 7  ;;  %v824_v6 = vld [vmem:[#allocation2 + $0xa8] sm:$0xf] }
  0x9b   : > { %1801 = vrot.lane.b32.xlu1 %v1690_v61, %s3972_s26  ;;  %v600_v61 = vor.u32 %v598_v0, %v4530_v35  ;;  %v605_v56 = vrot.slane %v603_v63, 7  ;;  %v620_v35 = vshrl.u32 %v3598_v5, 16  ;;  %v623_v39 = vshll.u32 %v3598_v5, 16 }
  0x9c   : > { %1799 = vrot.lane.b32.xlu0 %v1678_v3, %s3972_s26  ;;  %v4558_v3 = vld [vmem:[#allocation2 + $0x78] sm:$0xff]   ;;  %v1249_v50 = vsel %vm1129_vm2, %v1244_v45, %v1248_v10  ;;  %v629_v44 = vshrl.u32 %v4564_v9, 16  ;;  %v617_v53 = vor.u32 %v615_v34, %v614_v41  ;;  %v618_v22 = vrot.slane %v614_v41, 4 }
  0x9d   : > { %v1706_v13 = vshll.u32 %v4558_v3, 16  ;;  %v610_v27 = vrot.slane %v605_v56, 4  ;;  %v1704_v36 = vshrl.u32 %v4558_v3, 16  ;;  %v637_v46 = vshrl.u32 %v4566_v49, 16  ;;  %v4638_v34 = vld [vmem:[#allocation2 + $0x78] sm:$0xff]  }
  0x9e   : > { %v4518_v2 = vpop.permute.xlu1 %1403  ;;  %v631_v1 = vrot.slane %v629_v44, 7  ;;  %v818_v63 = vsel %vm4091_vm8, %v617_v53, %v817_v52  ;;  %v1843_v28 = vrot.slane %v4546_v54, 1  ;;  %v1253_v52 = vshll.u32 %v4638_v34, 16  ;;  %v3930_v44 = vld [vmem:[#allocation2 + $0xc] sm:$0xff]  }
  0x9f   : > { %1881 = vrot.lane.b32.xlu1 %v1842_v11, %s3970_s24  ;;  %v606_v11 = vshll.u32 %v3596_v37, 16  ;;  %v815_v40 = vsel %vm4108_vm9, %v610_v27, %v814_v16  ;;  %v1708_v47 = vrot.slane %v1706_v13, 1  ;;  %819 = vst [vmem:[#allocation2 + $0x9c] sm:$0xf] %v818_v63  ;;  %v1846_v27 = vrot.slane %v4558_v3, 1 }
  0xa0   : > { %1879 = vrot.lane.b32.xlu0 %v1839_v62, %s3970_s24  ;;  %v4527_v25 = vpop.permute.xlu0 %1322  ;;  %v811_v62 = vsel %vm4091_vm8, %v600_v61, %v810_v17  ;;  %816 = vst [vmem:[#allocation2 + $0x98] sm:$0x1] %v815_v40  ;;  %v1711_v61 = vshll.u32 %v4587_v29, 16  ;;  %v635_v4 = vrot.slane %v631_v1, 4 }
  0xa1   : > { %812 = vst [vmem:[#allocation2 + $0x90] sm:$0xf] %v811_v62  ;;  %v608_v23 = vor.u32 %v606_v11, %v605_v56  ;;  %v1709_v11 = vor.u32 %v1708_v47, %v1704_v36  ;;  %v828_v62 = vld [vmem:[#allocation2 + $0xb0] sm:$0x1] }
  0xa2   : > { %v4654_v40 = vld [vmem:[#allocation2 + $0x80] ss:$0 sps:$4 sm:$0x11]  }
  0xa3   : > { %1993 = vrot.lane.b32.xlu1 %v4476_v43, %s3969_s23  ;;  %v4562_v43 = vld [vmem:[#allocation2 + $0x74] ss:$0 sps:$4 sm:$0x11]   ;;  %v609_v37 = vsel %vm4084_vm7, %v601_v12, %v608_v23  ;;  %v4627_v12 = vld [vmem:[#allocation2 + $0x84] sm:$0xff]  }
  0xa4   : > { %1991 = vrot.lane.b32.xlu0 %v4480_v51, %s3969_s23  ;;  %v1699_v20 = vshll.u32 %v4562_v43, 16  ;;  %813 = vst.msk [vmem:[#allocation2 + $0x94] sm:$0xf] %vm252_vm0, %v609_v37  ;;  %v2170_v37 = vshll.u32 %v4627_v12, 16 }
  0xa5   : > { %v4537_v38 = vpop.permute.xlu1 %1517 }
  0xa6   : > { %v4554_v51 = vpop.permute.xlu0 %1515  ;;  %v1701_v13 = vrot.slane %v1699_v20, 1  ;;  %v2158_v20 = vshll.u32 %v4622_v48, 16 }
  0xa7   : > { %2265 = vrot.lane.b32.xlu1 %v2154_v18, %s3973_s27  ;;  %v622_v18 = vrot.slane %v620_v35, 7  ;;  %v4642_v35 = vld [vmem:[#allocation2 + $0x8c] ss:$0 sps:$4 sm:$0x11]  }
  0xa8   : > { %2263 = vrot.lane.b32.xlu0 %v2142_v31, %s3973_s27  ;;  %v632_v31 = vshll.u32 %v4564_v9, 16 }
  0xa9   : > { %v4570_v33 = vpop.permute.xlu1 %1981  ;;  %v625_v17 = vor.u32 %v623_v39, %v622_v18  ;;  %v627_v59 = vrot.slane %v622_v18, 4 }
  0xaa   : > { %v4576_v14 = vpop.permute.xlu0 %1979  ;;  %v634_v8 = vor.u32 %v632_v31, %v631_v1  ;;  %v2160_v31 = vrot.slane %v2158_v20, 1 }
  0xab   : > { %1338 = vrot.lane.b32.xlu1 %v1237_v7, %s3967_s21  ;;  %v1381_v7 = vsel %vm1354_vm4, %v1379_v30, %v1380_v60  ;;  %v626_v45 = vsel %vm4084_vm7, %v618_v22, %v625_v17  ;;  %v822_v10 = vsel %vm4108_vm9, %v627_v59, %v821_v57  ;;  %v639_v30 = vrot.slane %v637_v46, 7  ;;  %v4668_v46 = vld [vmem:[#allocation2 + $0x84] sm:$0xff]  }
  0xac   : > { %2343 = vrot.lane.b32.xlu0 %v2303_v58, %s3971_s25  ;;  %820 = vst.msk [vmem:[#allocation2 + $0xa0] sm:$0xf] %vm252_vm0, %v626_v45  ;;  %823 = vst [vmem:[#allocation2 + $0xa4] sm:$0x1] %v822_v10  ;;  %v640_v60 = vshll.u32 %v4566_v49, 16  ;;  %v1713_v58 = vrot.slane %v1711_v61, 1  ;;  %v825_v56 = vsel %vm4091_vm8, %v634_v8, %v824_v6 }
  0xad   : > { %v4590_v0 = vpop.permute.xlu1 %1405  ;;  %826 = vst [vmem:[#allocation2 + $0xa8] sm:$0xf] %v825_v56  ;;  %v644_v23 = vrot.slane %v639_v30, 4  ;;  %v2175_v22 = vshll.u32 %v4642_v35, 16  ;;  %v2156_v57 = vshrl.u32 %v4622_v48, 16  ;;  %v2168_v17 = vshrl.u32 %v4627_v12, 16 }
  0xae   : > { %v4597_v42 = vpop.permute.xlu0 %1867  ;;  %v642_v16 = vor.u32 %v640_v60, %v639_v30  ;;  %v1714_v36 = vsel %vm1129_vm2, %v1709_v11, %v1713_v58  ;;  %v2172_v59 = vrot.slane %v2170_v37, 1  ;;  %v1258_v30 = vshll.u32 %v4654_v40, 16  ;;  %v4691_v11 = vld [vmem:[#allocation2 + $0x8c] ss:$0 sps:$4 sm:$0x11]   ;;  %v248_v56 = vld [vmem:[%s4076_s19 + $0xe0] sm:$0xff] }
  0xaf   : > { %1340 = vrot.lane.b32.xlu1 %v1249_v50, %s3967_s21  ;;  %v1844_v50 = vrot.slane %v4562_v43, 1  ;;  %v1847_v43 = vrot.slane %v4587_v29, 1  ;;  %v2177_v60 = vrot.slane %v2175_v22, 1  ;;  %v1265_v58 = vshll.u32 %v4668_v46, 16 }
  0xb0   : > { %2345 = vrot.lane.b32.xlu0 %v2306_v21, %s3971_s25  ;;  %v1263_v20 = vshrl.u32 %v4668_v46, 16  ;;  %v1270_v37 = vshll.u32 %v4691_v11, 16  ;;  %v2310_v22 = vrot.slane %v4627_v12, 1 }
  0xb1   : > { %v4606_v5 = vpop.permute.xlu1 %1869  ;;  %v1845_v39 = vsel %vm1354_vm4, %v1843_v28, %v1844_v50  ;;  %v1848_v61 = vsel %vm1354_vm4, %v1846_v27, %v1847_v43  ;;  %v1260_v50 = vrot.slane %v1258_v30, 1  ;;  %v1267_v43 = vrot.slane %v1265_v58, 1  ;;  %v831_v58 = vld [vmem:[#allocation2 + $0xb4] sm:$0xf] }
  0xb2   : > { %v4615_v9 = vpop.permute.xlu0 %2331 }
  0xb3   : > { %1421 = vrot.lane.b32.xlu1 %v1384_v24, %s3966_s20  ;;  %v1697_v24 = vor.u32 %v1696_v32, %v1692_v15  ;;  %v4644_v15 = vld [vmem:[#allocation2 + $0x80] ss:$0 sps:$4 sm:$0x11]   ;;  %v643_v32 = vsel %vm4084_vm7, %v635_v4, %v642_v16  ;;  %v1255_v4 = vrot.slane %v1253_v52, 1  ;;  %v1268_v52 = vor.u32 %v1267_v43, %v1263_v20  ;;  %v251_v20 = vld [vmem:[%s4076_s19 + $0xf8] sm:$0xff] }
  0xb4   : > { %1419 = vrot.lane.b32.xlu0 %v1381_v7, %s3966_s20  ;;  %827 = vst.msk [vmem:[#allocation2 + $0xac] sm:$0xf] %vm252_vm0, %v643_v32  ;;  %v2163_v63 = vshll.u32 %v4644_v15, 16  ;;  %v249_v32 = vld [vmem:[%s4076_s19 + $0xe8] sm:$0xff] }
  0xb5   : > { %v1790_v21 = vpop.permute.xlu1 %1789  ;;  %v1702_v47 = vsel %vm1129_vm2, %v1697_v24, %v1701_v13  ;;  %v2161_v13 = vor.u32 %v2160_v31, %v2156_v57  ;;  %v2311_v57 = vrot.slane %v4642_v35, 1  ;;  %v4740_v31 = vld [vmem:[#allocation2 + $0x84] sm:$0xff]  }
  0xb6   : > { %v4633_v49 = vpop.permute.xlu0 %2333  ;;  %v2165_v16 = vrot.slane %v2163_v63, 1  ;;  %v4750_v63 = vld [vmem:[#allocation2 + $0x98] ss:$0 sps:$4 sm:$0x11]  }
  0xb7   : > { %1533 = vrot.lane.b32.xlu1 %v4558_v3, %s3968_s22  ;;  %v829_v3 = vsel %vm4108_vm9, %v644_v23, %v828_v62 }
  0xb8   : > { %1531 = vrot.lane.b32.xlu0 %v4546_v54, %s3968_s22  ;;  %830 = vst [vmem:[#allocation2 + $0xb0] sm:$0x1] %v829_v3  ;;  %v3929_v54 = vld [vmem:[#allocation2] sm:$0xff]  }
  0xb9   : > { %v2254_v41 = vpop.permute.xlu1 %2253  ;;  %v2365_v18 = vsel %vm2363_vm11, %v3929_v54, %v4527_v25  ;;  %v2307_v54 = vrot.slane %v4622_v48, 1 }
  0xba   : > { %v1325_v29 = vpop.permute.xlu0 %1324  ;;  %v2398_v1 = vsel %vm2396_vm12, %v2365_v18, %v4518_v2  ;;  %v2308_v18 = vrot.slane %v4644_v15, 1 }
  0xbb   : > { %v2367_v53 = vsel %vm2363_vm11, %v3930_v44, %v1325_v29  ;;  %1805 = vrot.lane.b32.xlu1 %v1714_v36, %s3972_s26  ;;  %v2431_v45 = vsel %vm2429_vm13, %v2398_v1, %v4554_v51  ;;  %v3602_v29 = vpack.c.bf16 %v249_v32, %v249_v32  ;;  %v1272_v44 = vrot.slane %v1270_v37, 1 }
  0xbc   : > { %v2400_v25 = vsel %vm2396_vm12, %v2367_v53, %v4590_v0  ;;  %1803 = vrot.lane.b32.xlu0 %v1702_v47, %s3972_s26  ;;  %v1251_v0 = vshrl.u32 %v4638_v34, 16  ;;  %v2166_v47 = vsel %vm1129_vm2, %v2161_v13, %v2165_v16  ;;  %v2309_v15 = vsel %vm1354_vm4, %v2307_v54, %v2308_v18  ;;  %v4784_v54 = vld [vmem:[#allocation2 + $0x90] sm:$0xff]  }
  0xbd   : > { %v2433_v6 = vsel %vm2429_vm13, %v2400_v25, %v4537_v38  ;;  %v4679_v7 = vpop.permute.xlu1 %1326  ;;  %v654_v1 = vshrl.u32 %v3602_v29, 16 }
  0xbe   : > { %v2466_v10 = vsel %vm2462_vm14, %v2433_v6, %v1790_v21  ;;  %v1788_v8 = vpop.permute.xlu0 %1787  ;;  %v2173_v21 = vor.u32 %v2172_v59, %v2168_v17  ;;  %v1388_v17 = vrot.slane %v4668_v46, 1  ;;  %v1389_v59 = vrot.slane %v4691_v11, 1  ;;  %v250_v6 = vld [vmem:[%s4076_s19 + $0xf0] sm:$0xff] }
  0xbf   : > { %v2464_v2 = vsel %vm2462_vm14, %v2431_v45, %v1788_v8  ;;  %1885 = vrot.lane.b32.xlu1 %v1848_v61, %s3970_s24  ;;  %v2499_v38 = vsel %vm2495_vm15, %v2466_v10, %v4606_v5  ;;  %v4756_v45 = vld [vmem:[#allocation2 + $0x8c] ss:$0 sps:$4 sm:$0x11]   ;;  %v657_v46 = vshll.u32 %v3602_v29, 16  ;;  %v1718_v8 = vshll.u32 %v4740_v31, 16 }
  0xc0   : > { %v2497_v51 = vsel %vm2495_vm15, %v2464_v2, %v4597_v42  ;;  %1883 = vrot.lane.b32.xlu0 %v1845_v39, %s3970_s24  ;;  %v2532_v62 = vsel %vm2528_vm1, %v2499_v38, %v4570_v33  ;;  %v4705_v42 = vpack.c.bf16 %v248_v56, %v248_v56  ;;  %v1256_v33 = vor.u32 %v1255_v4, %v1251_v0  ;;  %v4730_v39 = vld [vmem:[#allocation2 + $0x90] sm:$0xff]  }
  0xc1   : > { %v4700_v24 = vpop.permute.xlu1 %1328  ;;  %v2530_v5 = vsel %vm2528_vm1, %v2497_v51, %v4576_v14  ;;  %v2565_v27 = vsel %vm2561_vm3, %v2532_v62, %v2254_v41  ;;  %v2178_v36 = vsel %vm1129_vm2, %v2173_v21, %v2177_v60  ;;  %v1273_v0 = vsel %vm1129_vm2, %v1268_v52, %v1272_v44 }
  0xc2   : > { %v2252_v23 = vpop.permute.xlu0 %2251  ;;  %v2598_v41 = vsel %vm2594_vm5, %v2565_v27, %v4633_v49  ;;  %v1261_v49 = vsel %vm1129_vm2, %v1256_v33, %v1260_v50  ;;  %v646_v25 = vshrl.u32 %v4705_v42, 16  ;;  %v649_v35 = vshll.u32 %v4705_v42, 16 }
  0xc3   : > { %v2563_v28 = vsel %vm2561_vm3, %v2530_v5, %v2252_v23  ;;  %1997 = vrot.lane.b32.xlu1 %v4627_v12, %s3969_s23  ;;  %v1730_v12 = vshll.u32 %v4730_v39, 16  ;;  %v3603_v30 = vpack.c.bf16 %v250_v6, %v250_v6  ;;  %v1390_v38 = vsel %vm1354_vm4, %v1388_v17, %v1389_v59  ;;  %v835_v5 = vld [vmem:[#allocation2 + $0xbc] sm:$0x1]  ;;  %v4796_v17 = vld [vmem:[#allocation2 + $0xa4] ss:$0 sps:$4 sm:$0x11]  }
  0xc4   : > { %1995 = vrot.lane.b32.xlu0 %v4622_v48, %s3969_s23  ;;  %v2596_v14 = vsel %vm2594_vm5, %v2563_v28, %v4615_v9  ;;  %v1385_v48 = vrot.slane %v4638_v34, 1  ;;  %v1386_v34 = vrot.slane %v4654_v40, 1  ;;  %v2312_v40 = vsel %vm1354_vm4, %v2310_v22, %v2311_v57 }
  0xc5   : > { %3757 = vmatprep.mubr.msk.bf16.mxu0 %vm2647_vm6, %v2596_v14  ;;  %v4719_v3 = vpop.permute.xlu1 %1409  ;;  %v648_v4 = vrot.slane %v646_v25, 7  ;;  %v656_v11 = vrot.slane %v654_v1, 7  ;;  %v1728_v56 = vshrl.u32 %v4730_v39, 16  ;;  %v1732_v51 = vrot.slane %v1730_v12, 1 }
  0xc6   : > { %3758 = vmatmul.mubr.msk.bf16.vlgmr.msra.gmra.mxu0 %vm2647_vm6, %v2598_v41  ;;  %v4727_v9 = vpop.permute.xlu0 %1407  ;;  %v1387_v60 = vsel %vm1354_vm4, %v1385_v48, %v1386_v34  ;;  %v1735_v62 = vshll.u32 %v4750_v63, 16  ;;  %v1723_v13 = vshll.u32 %v4756_v45, 16  ;;  %v1716_v28 = vshrl.u32 %v4740_v31, 16 }
  0xc7   : > { %2269 = vrot.lane.b32.xlu1 %v2178_v36, %s3973_s27  ;;  %v651_v21 = vor.u32 %v649_v35, %v648_v4  ;;  %v652_v16 = vrot.slane %v648_v4, 4  ;;  %v659_v23 = vor.u32 %v657_v46, %v656_v11  ;;  %v661_v27 = vrot.slane %v656_v11, 4  ;;  %v4804_v35 = vld [vmem:[#allocation2 + $0x90] sm:$0xff]   ;;  %v4810_v46 = vld [vmem:[#allocation2 + $0x98] ss:$0 sps:$4 sm:$0x11]  }
  0xc8   : > { %2267 = vrot.lane.b32.xlu0 %v2166_v47, %s3973_s27  ;;  %v1720_v33 = vrot.slane %v1718_v8, 1  ;;  %v663_v32 = vshrl.u32 %v3603_v30, 16  ;;  %v1733_v37 = vor.u32 %v1732_v51, %v1728_v56  ;;  %v1737_v41 = vrot.slane %v1735_v62, 1  ;;  %v4782_v47 = vld [vmem:[#allocation2 + $0x9c] sm:$0xff]  }
  0xc9   : > { %v4735_v53 = vpop.permute.xlu1 %1521  ;;  %v832_v50 = vsel %vm4091_vm8, %v651_v21, %v831_v58  ;;  %v660_v36 = vsel %vm4084_vm7, %v652_v16, %v659_v23  ;;  %v836_v43 = vsel %vm4108_vm9, %v661_v27, %v835_v5  ;;  %v1725_v18 = vrot.slane %v1723_v13, 1  ;;  %v4828_v13 = vld [vmem:[#allocation2 + $0x9c] sm:$0xff]   ;;  %v4834_v23 = vld [vmem:[#allocation2 + $0x98] ss:$0 sps:$4 sm:$0x11]  }
  0xca   : > { %v4743_v61 = vpop.permute.xlu0 %1519  ;;  %833 = vst [vmem:[#allocation2 + $0xb4] sm:$0xf] %v832_v50  ;;  %834 = vst.msk [vmem:[#allocation2 + $0xb8] sm:$0xf] %vm252_vm0, %v660_v36  ;;  %v1849_v29 = vrot.slane %v4740_v31, 1  ;;  %v3604_v52 = vpack.c.bf16 %v251_v20, %v251_v20  ;;  %v1721_v48 = vor.u32 %v1720_v33, %v1716_v28  ;;  %v1853_v22 = vrot.slane %v4750_v63, 1 }
  0xcb   : > { %1342 = vrot.lane.b32.xlu1 %v1261_v49, %s3967_s21  ;;  %837 = vst [vmem:[#allocation2 + $0xbc] sm:$0x1] %v836_v43  ;;  %v1850_v49 = vrot.slane %v4756_v45, 1  ;;  %v4794_v57 = vrot.slane %v663_v32, 7  ;;  %v666_v59 = vshll.u32 %v3603_v30, 16  ;;  %v1738_v34 = vsel %vm1129_vm2, %v1733_v37, %v1737_v41 }
  0xcc   : > { %2347 = vrot.lane.b32.xlu0 %v2309_v15, %s3971_s25  ;;  %v1852_v15 = vrot.slane %v4730_v39, 1  ;;  %v2194_v1 = vshll.u32 %v4782_v47, 16  ;;  %v2180_v6 = vshrl.u32 %v4784_v54, 16  ;;  %v2182_v12 = vshll.u32 %v4784_v54, 16  ;;  %v838_v63 = vld [vmem:[#allocation2 + $0xc0] sm:$0xf] }
  0xcd   : > { %v4758_v10 = vpop.permute.xlu1 %1793  ;;  %v674_v8 = vshll.u32 %v3604_v52, 16  ;;  %v1851_v11 = vsel %vm1354_vm4, %v1849_v29, %v1850_v49  ;;  %v2199_v58 = vshll.u32 %v4796_v17, 16  ;;  %v2192_v62 = vshrl.u32 %v4782_v47, 16  ;;  %v842_v49 = vld [vmem:[#allocation2 + $0xc8] sm:$0x1] }
  0xce   : > { %v4762_v2 = vpop.permute.xlu0 %1791  ;;  %v2196_v21 = vrot.slane %v2194_v1, 1  ;;  %v1277_v5 = vshll.u32 %v4804_v35, 16  ;;  %v2184_v20 = vrot.slane %v2182_v12, 1  ;;  %v2187_v32 = vshll.u32 %v4810_v46, 16 }
  0xcf   : > { %1344 = vrot.lane.b32.xlu1 %v1273_v0, %s3967_s21  ;;  %v3931_v0 = vld [vmem:[#allocation2 + $0x18] sm:$0xff]   ;;  %v2201_v43 = vrot.slane %v2199_v58, 1  ;;  %v1275_v37 = vshrl.u32 %v4804_v35, 16  ;;  %v2314_v55 = vrot.slane %v4810_v46, 1 }
  0xd0   : > { %2349 = vrot.lane.b32.xlu0 %v2312_v40, %s3971_s25  ;;  %v2369_v45 = vsel %vm2363_vm11, %v3931_v0, %v4679_v7  ;;  %v671_v40 = vshrl.u32 %v3604_v52, 16  ;;  %v1279_v29 = vrot.slane %v1277_v5, 1  ;;  %v1287_v0 = vshrl.u32 %v4828_v13, 16  ;;  %v3910_v46 = vld [vmem:[#allocation2 + $0x9c] sm:$0xff]  }
  0xd1   : > { %v4771_v42 = vpop.permute.xlu1 %1873  ;;  %v2402_v4 = vsel %vm2396_vm12, %v2369_v45, %v4727_v9 }
  0xd2   : > { %v1872_v14 = vpop.permute.xlu0 %1871  ;;  %v2435_v7 = vsel %vm2429_vm13, %v2402_v4, %v4743_v61  ;;  %v673_v56 = vrot.slane %v671_v40, 7  ;;  %v3932_v61 = vld [vmem:[#allocation2 + $0x24] sm:$0xff]   ;;  %v2313_v4 = vrot.slane %v4784_v54, 1 }
  0xd3   : > { %1425 = vrot.lane.b32.xlu1 %v1390_v38, %s3966_s20  ;;  %v1726_v38 = vsel %vm1129_vm2, %v1721_v48, %v1725_v18  ;;  %v2468_v9 = vsel %vm2462_vm14, %v2435_v7, %v4762_v2  ;;  %v2371_v16 = vsel %vm2363_vm11, %v3932_v61, %v4700_v24  ;;  %v669_v2 = vrot.slane %v4794_v57, 4  ;;  %v3908_v48 = vld [vmem:[#allocation2 + $0xa4] ss:$0 sps:$4 sm:$0x11]   ;;  %v4883_v7 = vld [vmem:[#allocation2 + $0xa8] sm:$0xff]  }
  0xd4   : > { %1423 = vrot.lane.b32.xlu0 %v1387_v60, %s3966_s20  ;;  %v1854_v60 = vsel %vm1354_vm4, %v1852_v15, %v1853_v22  ;;  %v2501_v26 = vsel %vm2495_vm15, %v2468_v9, %v1872_v14  ;;  %v676_v27 = vor.u32 %v674_v8, %v673_v56  ;;  %v2404_v28 = vsel %vm2396_vm12, %v2371_v16, %v4719_v3  ;;  %v3911_v9 = vld [vmem:[#allocation2 + $0xb0] ss:$0 sps:$4 sm:$0x11]  }
  0xd5   : > { %v4790_v44 = vpop.permute.xlu1 %1985  ;;  %v2437_v24 = vsel %vm2429_vm13, %v2404_v28, %v4735_v53  ;;  %v2197_v18 = vor.u32 %v2196_v21, %v2192_v62  ;;  %v1282_v53 = vshll.u32 %v4834_v23, 16  ;;  %v1289_v15 = vshll.u32 %v4828_v13, 16 }
  0xd6   : > { %v1984_v25 = vpop.permute.xlu0 %1983  ;;  %v2470_v41 = vsel %vm2462_vm14, %v2437_v24, %v4758_v10  ;;  %v677_v10 = vsel %vm4084_vm7, %v669_v2, %v676_v27  ;;  %v2315_v58 = vsel %vm1354_vm4, %v2313_v4, %v2314_v55  ;;  %v1394_v21 = vrot.slane %v4828_v13, 1  ;;  %v3912_v2 = vld [vmem:[#allocation2 + $0xa4] ss:$0 sps:$4 sm:$0x11]  }
  0xd7   : > { %1537 = vrot.lane.b32.xlu1 %v4730_v39, %s3968_s22  ;;  %v668_v39 = vor.u32 %v666_v59, %v4794_v57  ;;  %v2534_v33 = vsel %vm2528_vm1, %v2501_v26, %v1984_v25  ;;  %v2503_v52 = vsel %vm2495_vm15, %v2470_v41, %v4771_v42  ;;  %v2185_v25 = vor.u32 %v2184_v20, %v2180_v6 }
  0xd8   : > { %1535 = vrot.lane.b32.xlu0 %v4740_v31, %s3968_s22  ;;  %v2536_v22 = vsel %vm2528_vm1, %v2503_v52, %v4790_v44  ;;  %v2189_v59 = vrot.slane %v2187_v32, 1  ;;  %841 = vst.msk [vmem:[#allocation2 + $0xc4] sm:$0xf] %vm252_vm0, %v677_v10  ;;  %v678_v42 = vrot.slane %v673_v56, 4  ;;  %v2202_v19 = vsel %vm1129_vm2, %v2197_v18, %v2201_v43 }
  0xd9   : > { %v2258_v30 = vpop.permute.xlu1 %2257  ;;  %v839_v51 = vsel %vm4091_vm8, %v668_v39, %v838_v63  ;;  %v1280_v63 = vor.u32 %v1279_v29, %v1275_v37  ;;  %v1284_v6 = vrot.slane %v1282_v53, 1  ;;  %v1291_v45 = vrot.slane %v1289_v15, 1  ;;  %v4909_v29 = vld [vmem:[#allocation2 + $0xb4] sm:$0xff]  }
  0xda   : > { %v2256_v31 = vpop.permute.xlu0 %2255  ;;  %840 = vst [vmem:[#allocation2 + $0xc0] sm:$0xf] %v839_v51  ;;  %v843_v44 = vsel %vm4108_vm9, %v678_v42, %v842_v49  ;;  %v1294_v39 = vshll.u32 %v3908_v48, 16  ;;  %v2190_v8 = vsel %vm1129_vm2, %v2185_v25, %v2189_v59  ;;  %v2316_v56 = vrot.slane %v4782_v47, 1  ;;  %v4916_v42 = vld [vmem:[#allocation2 + $0xa8] sm:$0xff]  }
  0xdb   : > { %1809 = vrot.lane.b32.xlu1 %v1738_v34, %s3972_s26  ;;  %v2567_v14 = vsel %vm2561_vm3, %v2534_v33, %v2256_v31  ;;  %v2569_v34 = vsel %vm2561_vm3, %v2536_v22, %v2258_v30  ;;  %844 = vst [vmem:[#allocation2 + $0xc8] sm:$0x1] %v843_v44  ;;  %v1395_v5 = vrot.slane %v3908_v48, 1  ;;  %v1754_v61 = vshll.u32 %v4883_v7, 16  ;;  %v4911_v48 = vld [vmem:[#allocation2 + $0xa8] sm:$0xff]  }
  0xdc   : > { %1807 = vrot.lane.b32.xlu0 %v1726_v38, %s3972_s26  ;;  %v1285_v38 = vsel %vm1129_vm2, %v1280_v63, %v1284_v6  ;;  %v1392_v26 = vrot.slane %v4834_v23, 1  ;;  %v1742_v27 = vshll.u32 %v3910_v46, 16  ;;  %v1752_v20 = vshrl.u32 %v4883_v7, 16 }
  0xdd   : > { %v4840_v50 = vpop.permute.xlu1 %1330  ;;  %v1396_v33 = vsel %vm1354_vm4, %v1394_v21, %v1395_v5  ;;  %v1756_v32 = vrot.slane %v1754_v61, 1  ;;  %v1759_v24 = vshll.u32 %v3911_v9, 16  ;;  %v1740_v43 = vshrl.u32 %v3910_v46, 16 }
  0xde   : > { %v2336_v36 = vpop.permute.xlu0 %2335  ;;  %v1744_v37 = vrot.slane %v1742_v27, 1  ;;  %v1747_v23 = vshll.u32 %v3912_v2, 16  ;;  %v1858_v10 = vrot.slane %v4883_v7, 1  ;;  %v1859_v22 = vrot.slane %v3911_v9, 1  ;;  %v4945_v9 = vld [vmem:[#allocation2 + $0xb4] sm:$0xff]  }
  0xdf   : > { %v2600_v3 = vsel %vm2594_vm5, %v2567_v14, %v2336_v36  ;;  %1889 = vrot.lane.b32.xlu1 %v1854_v60, %s3970_s24  ;;  %v1292_v60 = vor.u32 %v1291_v45, %v1287_v0  ;;  %v1761_v18 = vrot.slane %v1759_v24, 1  ;;  %v1855_v25 = vrot.slane %v3910_v46, 1  ;;  %v4927_v45 = vld [vmem:[#allocation2 + $0xb0] ss:$0 sps:$4 sm:$0x11]  }
  0xe0   : > { %1887 = vrot.lane.b32.xlu0 %v1851_v11, %s3970_s24  ;;  %3761 = vmatprep.mubr.msk.bf16.mxu0 %vm2647_vm6, %v2600_v3  ;;  %v1296_v11 = vrot.slane %v1294_v39, 1  ;;  %v1757_v3 = vor.u32 %v1756_v32, %v1752_v20  ;;  %v1745_v52 = vor.u32 %v1744_v37, %v1740_v43  ;;  %v1749_v53 = vrot.slane %v1747_v23, 1  ;;  %v3920_v24 = vld [vmem:[#allocation2 + $0xbc] ss:$0 sps:$4 sm:$0x11]  }
  0xe1   : > { %v4861_v57 = vpop.permute.xlu1 %1332  ;;  %v1856_v59 = vrot.slane %v3912_v2, 1  ;;  %v2218_v63 = vshll.u32 %v4909_v29, 16  ;;  %v2206_v39 = vshll.u32 %v4911_v48, 16  ;;  %v1860_v4 = vsel %vm1354_vm4, %v1858_v10, %v1859_v22 }
  0xe2   : > { %v2338_v1 = vpop.permute.xlu0 %2337  ;;  %v1297_v62 = vsel %vm1129_vm2, %v1292_v60, %v1296_v11  ;;  %v1750_v0 = vsel %vm1129_vm2, %v1745_v52, %v1749_v53  ;;  %v2204_v60 = vshrl.u32 %v4911_v48, 16  ;;  %v4937_v11 = vld [vmem:[#allocation2 + $0xb0] ss:$0 sps:$4 sm:$0x11]   ;;  %v1299_v2 = vshrl.u32 %v4916_v42, 16 }
  0xe3   : > { %v2602_v12 = vsel %vm2594_vm5, %v2569_v34, %v2338_v1  ;;  %2001 = vrot.lane.b32.xlu1 %v4782_v47, %s3969_s23  ;;  %v3933_v34 = vld [vmem:[#allocation2 + $0x30] sm:$0xff]   ;;  %v1857_v55 = vsel %vm1354_vm4, %v1855_v25, %v1856_v59  ;;  %v2208_v61 = vrot.slane %v2206_v39, 1  ;;  %v1311_v53 = vshrl.u32 %v4945_v9, 16 }
  0xe4   : > { %1999 = vrot.lane.b32.xlu0 %v4784_v54, %s3969_s23  ;;  %3762 = vmatmul.mubr.msk.bf16.gmra.mxu0 %vm2647_vm6, %v2602_v12  ;;  %v2317_v54 = vrot.slane %v4796_v17, 1  ;;  %v1391_v17 = vrot.slane %v4804_v35, 1  ;;  %v2373_v1 = vsel %vm2363_vm11, %v3933_v34, %v4840_v50  ;;  %v1762_v12 = vsel %vm1129_vm2, %v1757_v3, %v1761_v18 }
  0xe5   : > { %v4875_v40 = vpop.permute.xlu1 %1413  ;;  %v2209_v37 = vor.u32 %v2208_v61, %v2204_v60  ;;  %v1318_v10 = vshll.u32 %v3920_v24, 16  ;;  %v2319_v59 = vrot.slane %v4911_v48, 1  ;;  %v2320_v34 = vrot.slane %v4927_v45, 1 }
  0xe6   : > { %v1412_v30 = vpop.permute.xlu0 %1411  ;;  %v2318_v47 = vsel %vm1354_vm4, %v2316_v56, %v2317_v54  ;;  %v1393_v36 = vsel %vm1354_vm4, %v1391_v17, %v1392_v26 }
  0xe7   : > { %2273 = vrot.lane.b32.xlu1 %v2202_v19, %s3973_s27  ;;  %v4922_v19 = vld [vmem:[#allocation2 + $0xbc] ss:$0 sps:$4 sm:$0x11]   ;;  %v2406_v44 = vsel %vm2396_vm12, %v2373_v1, %v1412_v30  ;;  %v2216_v30 = vshrl.u32 %v4909_v29, 16  ;;  %v2321_v39 = vsel %vm1354_vm4, %v2319_v59, %v2320_v34 }
  0xe8   : > { %2271 = vrot.lane.b32.xlu0 %v2190_v8, %s3973_s27 }
  0xe9   : > { %v4885_v31 = vpop.permute.xlu1 %1525 }
  0xea   : > { %v1524_v51 = vpop.permute.xlu0 %1523 }
  0xeb   : > { %1346 = vrot.lane.b32.xlu1 %v1285_v38, %s3967_s21  ;;  %v2439_v8 = vsel %vm2429_vm13, %v2406_v44, %v1524_v51  ;;  %v2223_v51 = vshll.u32 %v4922_v19, 16  ;;  %v1320_v44 = vrot.slane %v1318_v10, 1  ;;  %v3928_v10 = vld [vmem:[#allocation2 + $0xc8] ss:$0 sps:$4 sm:$0x11]  }
  0xec   : > { %2351 = vrot.lane.b32.xlu0 %v2315_v58, %s3971_s25  ;;  %v3934_v58 = vld [vmem:[#allocation2 + $0x3c] sm:$0xff]  }
  0xed   : > { %v4895_v16 = vpop.permute.xlu1 %1797  ;;  %v2375_v56 = vsel %vm2363_vm11, %v3934_v58, %v4861_v57  ;;  %v2225_v32 = vrot.slane %v2223_v51, 1  ;;  %v1398_v58 = vrot.slane %v4937_v11, 1 }
  0xee   : > { %v1796_v28 = vpop.permute.xlu0 %1795 }
  0xef   : > { %1348 = vrot.lane.b32.xlu1 %v1297_v62, %s3967_s21  ;;  %v2472_v38 = vsel %vm2462_vm14, %v2439_v8, %v1796_v28  ;;  %v2408_v62 = vsel %vm2396_vm12, %v2375_v56, %v4875_v40  ;;  %v2322_v8 = vrot.slane %v4909_v29, 1  ;;  %v3924_v56 = vld [vmem:[#allocation2 + $0xbc] ss:$0 sps:$4 sm:$0x11]  }
  0xf0   : > { %2353 = vrot.lane.b32.xlu0 %v2318_v47, %s3971_s25  ;;  %v2211_v47 = vshll.u32 %v4927_v45, 16  ;;  %v2441_v57 = vsel %vm2429_vm13, %v2408_v62, %v4885_v31  ;;  %v3922_v45 = vld [vmem:[#allocation2 + $0xb4] sm:$0xff]  }
  0xf1   : > { %v4904_v14 = vpop.permute.xlu1 %1877  ;;  %v2474_v27 = vsel %vm2462_vm14, %v2441_v57, %v4895_v16 }
  0xf2   : > { %v1876_v41 = vpop.permute.xlu0 %1875  ;;  %v2507_v20 = vsel %vm2495_vm15, %v2474_v27, %v4904_v14  ;;  %v2213_v23 = vrot.slane %v2211_v47, 1  ;;  %v5010_v27 = vld [vmem:[#allocation2 + $0xcc] sm:$0xff]  }
  0xf3   : > { %1429 = vrot.lane.b32.xlu1 %v1396_v33, %s3966_s20  ;;  %v2505_v54 = vsel %vm2495_vm15, %v2472_v38, %v1876_v41  ;;  %v1306_v33 = vshll.u32 %v4937_v11, 16  ;;  %v1401_v38 = vrot.slane %v3920_v24, 1 }
  0xf4   : > { %1427 = vrot.lane.b32.xlu0 %v1393_v36, %s3966_s20  ;;  %v1313_v36 = vshll.u32 %v4945_v9, 16  ;;  %v2214_v25 = vsel %vm1129_vm2, %v2209_v37, %v2213_v23  ;;  %v5017_v37 = vld [vmem:[#allocation2 + $0xd4] ss:$0 sps:$4 sm:$0x11]   ;;  %v2242_v23 = vshll.u32 %v5010_v27, 16 }
  0xf5   : > { %v1990_v49 = vpop.permute.xlu1 %1989  ;;  %v1308_v52 = vrot.slane %v1306_v33, 1 }
  0xf6   : > { %v1988_v15 = vpop.permute.xlu0 %1987  ;;  %v2540_v16 = vsel %vm2528_vm1, %v2507_v20, %v1990_v49 }
  0xf7   : > { %1541 = vrot.lane.b32.xlu1 %v4883_v7, %s3968_s22  ;;  %v1301_v7 = vshll.u32 %v4916_v42, 16  ;;  %v2538_v21 = vsel %vm2528_vm1, %v2505_v54, %v1988_v15  ;;  %v1315_v15 = vrot.slane %v1313_v36, 1  ;;  %v1766_v54 = vshll.u32 %v3922_v45, 16 }
  0xf8   : > { %1539 = vrot.lane.b32.xlu0 %v3910_v46, %s3968_s22  ;;  %v2220_v46 = vrot.slane %v2218_v63, 1  ;;  %v1861_v36 = vrot.slane %v3922_v45, 1 }
  0xf9   : > { %v2262_v6 = vpop.permute.xlu1 %2261  ;;  %v1303_v28 = vrot.slane %v1301_v7, 1  ;;  %v1316_v63 = vor.u32 %v1315_v15, %v1311_v53 }
  0xfa   : > { %v2260_v50 = vpop.permute.xlu0 %2259  ;;  %v2221_v31 = vor.u32 %v2220_v46, %v2216_v30  ;;  %v2573_v41 = vsel %vm2561_vm3, %v2540_v16, %v2262_v6  ;;  %v4987_v6 = vld [vmem:[#allocation2 + $0xc0] sm:$0xff]   ;;  %v3923_v30 = vld [vmem:[#allocation2 + $0xc8] ss:$0 sps:$4 sm:$0x11]   ;;  %v1862_v16 = vrot.slane %v3924_v56, 1 }
  0xfb   : > { %1813 = vrot.lane.b32.xlu1 %v1762_v12, %s3972_s26  ;;  %v2571_v17 = vsel %vm2561_vm3, %v2538_v21, %v2260_v50  ;;  %v1304_v18 = vor.u32 %v1303_v28, %v1299_v2  ;;  %v1778_v60 = vshll.u32 %v4987_v6, 16  ;;  %v1776_v62 = vshrl.u32 %v4987_v6, 16 }
  0xfc   : > { %1811 = vrot.lane.b32.xlu0 %v1750_v0, %s3972_s26  ;;  %v2226_v49 = vsel %vm1129_vm2, %v2221_v31, %v2225_v32  ;;  %v1783_v61 = vshll.u32 %v3923_v30, 16  ;;  %v1771_v2 = vshll.u32 %v3924_v56, 16  ;;  %v5013_v32 = vld [vmem:[#allocation2 + $0xc0] sm:$0xff]  }
  0xfd   : > { %v4950_v5 = vpop.permute.xlu1 %1334  ;;  %v1309_v12 = vsel %vm1129_vm2, %v1304_v18, %v1308_v52  ;;  %v1780_v21 = vrot.slane %v1778_v60, 1  ;;  %v1864_v18 = vrot.slane %v4987_v6, 1  ;;  %v1865_v52 = vrot.slane %v3923_v30, 1 }
  0xfe   : > { %v2340_v26 = vpop.permute.xlu0 %2339  ;;  %v1785_v28 = vrot.slane %v1783_v61, 1  ;;  %v1773_v31 = vrot.slane %v1771_v2, 1  ;;  %v2235_v30 = vshll.u32 %v3928_v10, 16 }
  0xff   : > { %v2604_v40 = vsel %vm2594_vm5, %v2571_v17, %v2340_v26  ;;  %1893 = vrot.lane.b32.xlu1 %v1860_v4, %s3970_s24  ;;  %v1321_v4 = vsel %vm1129_vm2, %v1316_v63, %v1320_v44  ;;  %v1764_v17 = vshrl.u32 %v3922_v45, 16  ;;  %v1768_v26 = vrot.slane %v1766_v54, 1 }
 0x100   : > { %1891 = vrot.lane.b32.xlu0 %v1857_v55, %s3970_s24  ;;  %3765 = vmatprep.mubr.msk.bf16.mxu0 %vm2647_vm6, %v2604_v40  ;;  %v1400_v55 = vrot.slane %v4945_v9, 1  ;;  %v1781_v40 = vor.u32 %v1780_v21, %v1776_v62  ;;  %v1863_v63 = vsel %vm1354_vm4, %v1861_v36, %v1862_v16  ;;  %v2244_v44 = vrot.slane %v2242_v23, 1 }
 0x101   : > { %v4968_v43 = vpop.permute.xlu1 %1336  ;;  %v1769_v20 = vor.u32 %v1768_v26, %v1764_v17  ;;  %v2237_v62 = vrot.slane %v2235_v30, 1  ;;  %v2329_v17 = vrot.slane %v5017_v37, 1 }
 0x102   : > { %v2342_v3 = vpop.permute.xlu0 %2341  ;;  %v1402_v51 = vsel %vm1354_vm4, %v1400_v55, %v1401_v38 }
 0x103   : > { %v2606_v14 = vsel %vm2594_vm5, %v2573_v41, %v2342_v3  ;;  %2005 = vrot.lane.b32.xlu1 %v4909_v29, %s3969_s23  ;;  %v3935_v41 = vld [vmem:[#allocation2 + $0x48] sm:$0xff]   ;;  %v1774_v15 = vsel %vm1129_vm2, %v1769_v20, %v1773_v31 }
 0x104   : > { %2003 = vrot.lane.b32.xlu0 %v4911_v48, %s3969_s23  ;;  %3766 = vmatmul.mubr.msk.bf16.gmra.mxu0 %vm2647_vm6, %v2606_v14  ;;  %v2323_v48 = vrot.slane %v4922_v19, 1  ;;  %v1397_v19 = vrot.slane %v4916_v42, 1  ;;  %v2377_v3 = vsel %vm2363_vm11, %v3935_v41, %v4950_v5  ;;  %v1786_v14 = vsel %vm1129_vm2, %v1781_v40, %v1785_v28  ;;  %v3937_v41 = vld [vmem:[#allocation2 + $0x60] sm:$0xff]  }
 0x105   : > { %v4979_v22 = vpop.permute.xlu1 %1417  ;;  %v2240_v5 = vshrl.u32 %v5010_v27, 16  ;;  %v2326_v40 = vrot.slane %v3928_v10, 1 }
 0x106   : > { %v1416_v1 = vpop.permute.xlu0 %1415  ;;  %v2324_v29 = vsel %vm1354_vm4, %v2322_v8, %v2323_v48  ;;  %v1399_v57 = vsel %vm1354_vm4, %v1397_v19, %v1398_v58  ;;  %v1866_v48 = vsel %vm1354_vm4, %v1864_v18, %v1865_v52 }
 0x107   : > { %2277 = vrot.lane.b32.xlu1 %v2226_v49, %s3973_s27  ;;  %v2410_v49 = vsel %vm2396_vm12, %v2377_v3, %v1416_v1  ;;  %v2247_v1 = vshll.u32 %v5017_v37, 16  ;;  %v2245_v56 = vor.u32 %v2244_v44, %v2240_v5 }
 0x108   : > { %2275 = vrot.lane.b32.xlu0 %v2214_v25, %s3973_s27  ;;  %v2230_v25 = vshll.u32 %v5013_v32, 16 }
 0x109   : > { %v4989_v0 = vpop.permute.xlu1 %1529  ;;  %v2249_v54 = vrot.slane %v2247_v1, 1 }
 0x10a   : > { %v1528_v50 = vpop.permute.xlu0 %1527  ;;  %v2232_v38 = vrot.slane %v2230_v25, 1 }
 0x10b   : > { %1350 = vrot.lane.b32.xlu1 %v1309_v12, %s3967_s21  ;;  %v2443_v59 = vsel %vm2429_vm13, %v2410_v49, %v1528_v50 }
 0x10c   : > { %2355 = vrot.lane.b32.xlu0 %v2321_v39, %s3971_s25 }
 0x10d   : > { %v4999_v7 = vpop.permute.xlu1 %1801 }
 0x10e   : > { %v1800_v46 = vpop.permute.xlu0 %1799 }
 0x10f   : > { %1352 = vrot.lane.b32.xlu1 %v1321_v4, %s3967_s21  ;;  %v2476_v12 = vsel %vm2462_vm14, %v2443_v59, %v1800_v46 }
 0x110   : > { %2357 = vrot.lane.b32.xlu0 %v2324_v29, %s3971_s25 }
 0x111   : > { %v1882_v47 = vpop.permute.xlu1 %1881 }
 0x112   : > { %v1880_v11 = vpop.permute.xlu0 %1879 }
 0x113   : > { %1433 = vrot.lane.b32.xlu1 %v1402_v51, %s3966_s20  ;;  %v2509_v8 = vsel %vm2495_vm15, %v2476_v12, %v1880_v11  ;;  %v2325_v11 = vrot.slane %v5013_v32, 1 }
 0x114   : > { %1431 = vrot.lane.b32.xlu0 %v1399_v57, %s3966_s20  ;;  %v2328_v57 = vrot.slane %v5010_v27, 1 }
 0x115   : > { %v1994_v33 = vpop.permute.xlu1 %1993  ;;  %v2327_v31 = vsel %vm1354_vm4, %v2325_v11, %v2326_v40 }
 0x116   : > { %v1992_v24 = vpop.permute.xlu0 %1991 }
 0x117   : > { %1545 = vrot.lane.b32.xlu1 %v4987_v6, %s3968_s22  ;;  %v3936_v6 = vld [vmem:[#allocation2 + $0x54] sm:$0xff]   ;;  %v2542_v4 = vsel %vm2528_vm1, %v2509_v8, %v1992_v24 }
 0x118   : > { %1543 = vrot.lane.b32.xlu0 %v3922_v45, %s3968_s22  ;;  %v2379_v39 = vsel %vm2363_vm11, %v3936_v6, %v4968_v43  ;;  %v2228_v45 = vshrl.u32 %v5013_v32, 16 }
 0x119   : > { %v2266_v53 = vpop.permute.xlu1 %2265  ;;  %v2412_v50 = vsel %vm2396_vm12, %v2379_v39, %v4979_v22 }
 0x11a   : > { %v2264_v34 = vpop.permute.xlu0 %2263  ;;  %v2445_v60 = vsel %vm2429_vm13, %v2412_v50, %v4989_v0  ;;  %v2233_v51 = vor.u32 %v2232_v38, %v2228_v45 }
 0x11b   : > { %1817 = vrot.lane.b32.xlu1 %v1786_v14, %s3972_s26  ;;  %v2575_v43 = vsel %vm2561_vm3, %v2542_v4, %v2264_v34  ;;  %v2478_v19 = vsel %vm2462_vm14, %v2445_v60, %v4999_v7 }
 0x11c   : > { %1815 = vrot.lane.b32.xlu0 %v1774_v15, %s3972_s26  ;;  %v2511_v22 = vsel %vm2495_vm15, %v2478_v19, %v1882_v47  ;;  %v2250_v47 = vsel %vm1129_vm2, %v2245_v56, %v2249_v54  ;;  %v2238_v2 = vsel %vm1129_vm2, %v2233_v51, %v2237_v62  ;;  %v3938_v15 = vld [vmem:[#allocation2 + $0x6c] sm:$0xff]   ;;  %v3939_v54 = vld [vmem:[#allocation2 + $0x78] sm:$0xff]  }
 0x11d   : > { %v1339_v55 = vpop.permute.xlu1 %1338  ;;  %v2544_v0 = vsel %vm2528_vm1, %v2511_v22, %v1994_v33  ;;  %v2330_v33 = vsel %vm1354_vm4, %v2328_v57, %v2329_v17 }
 0x11e   : > { %v2344_v29 = vpop.permute.xlu0 %2343  ;;  %v2577_v21 = vsel %vm2561_vm3, %v2544_v0, %v2266_v53  ;;  %v2381_v3 = vsel %vm2363_vm11, %v3937_v41, %v1339_v55 }
 0x11f   : > { %v2608_v58 = vsel %vm2594_vm5, %v2575_v43, %v2344_v29  ;;  %1897 = vrot.lane.b32.xlu1 %v1866_v48, %s3970_s24 }
 0x120   : > { %1895 = vrot.lane.b32.xlu0 %v1863_v63, %s3970_s24  ;;  %3769 = vmatprep.mubr.msk.bf16.mxu0 %vm2647_vm6, %v2608_v58 }
 0x121   : > { %v1341_v46 = vpop.permute.xlu1 %1340 }
 0x122   : > { %v2346_v7 = vpop.permute.xlu0 %2345  ;;  %v2383_v10 = vsel %vm2363_vm11, %v3938_v15, %v1341_v46 }
 0x123   : > { %v2610_v61 = vsel %vm2594_vm5, %v2577_v21, %v2346_v7  ;;  %2009 = vrot.lane.b32.xlu1 %v5010_v27, %s3969_s23 }
 0x124   : > { %2007 = vrot.lane.b32.xlu0 %v5013_v32, %s3969_s23  ;;  %3770 = vmatmul.mubr.msk.bf16.gmra.mxu0 %vm2647_vm6, %v2610_v61  ;;  %v3940_v61 = vld [vmem:[#allocation2 + $0x84] sm:$0xff]  }
 0x125   : > { %v1422_v26 = vpop.permute.xlu1 %1421 }
 0x126   : > { %v1420_v28 = vpop.permute.xlu0 %1419  ;;  %v2416_v59 = vsel %vm2396_vm12, %v2383_v10, %v1422_v26 }
 0x127   : > { %2281 = vrot.lane.b32.xlu1 %v2250_v47, %s3973_s27  ;;  %v2414_v14 = vsel %vm2396_vm12, %v2381_v3, %v1420_v28 }
 0x128   : > { %2279 = vrot.lane.b32.xlu0 %v2238_v2, %s3973_s27 }
 0x129   : > { %v1534_v20 = vpop.permute.xlu1 %1533 }
 0x12a   : > { %v1532_v24 = vpop.permute.xlu0 %1531  ;;  %v2449_v12 = vsel %vm2429_vm13, %v2416_v59, %v1534_v20 }
 0x12b   : > { %2361 = vrot.lane.b32.xlu1 %v2330_v33, %s3971_s25  ;;  %v2447_v52 = vsel %vm2429_vm13, %v2414_v14, %v1532_v24 }
 0x12c   : > { %2359 = vrot.lane.b32.xlu0 %v2327_v31, %s3971_s25 }
 0x12d   : > { %v1806_v27 = vpop.permute.xlu1 %1805 }
 0x12e   : > { %v1804_v36 = vpop.permute.xlu0 %1803  ;;  %v2482_v1 = vsel %vm2462_vm14, %v2449_v12, %v1806_v27 }
 0x12f   : > { %v2480_v53 = vsel %vm2462_vm14, %v2447_v52, %v1804_v36 }
 0x131   : > { %v1886_v16 = vpop.permute.xlu1 %1885 }
 0x132   : > { %v1884_v32 = vpop.permute.xlu0 %1883  ;;  %v2515_v39 = vsel %vm2495_vm15, %v2482_v1, %v1886_v16 }
 0x133   : > { %v2513_v25 = vsel %vm2495_vm15, %v2480_v53, %v1884_v32 }
 0x135   : > { %v1998_v37 = vpop.permute.xlu1 %1997 }
 0x136   : > { %v1996_v23 = vpop.permute.xlu0 %1995  ;;  %v2548_v8 = vsel %vm2528_vm1, %v2515_v39, %v1998_v37 }
 0x137   : > { %v2546_v34 = vsel %vm2528_vm1, %v2513_v25, %v1996_v23 }
 0x139   : > { %v2270_v18 = vpop.permute.xlu1 %2269 }
 0x13a   : > { %v2268_v49 = vpop.permute.xlu0 %2267  ;;  %v2581_v45 = vsel %vm2561_vm3, %v2548_v8, %v2270_v18 }
 0x13b   : > { %v2579_v63 = vsel %vm2561_vm3, %v2546_v34, %v2268_v49 }
 0x13d   : > { %v1343_v5 = vpop.permute.xlu1 %1342 }
 0x13e   : > { %v2348_v44 = vpop.permute.xlu0 %2347  ;;  %v2385_v0 = vsel %vm2363_vm11, %v3939_v54, %v1343_v5 }
 0x13f   : > { %v2612_v6 = vsel %vm2594_vm5, %v2579_v63, %v2348_v44 }
 0x140   : > { %3773 = vmatprep.mubr.msk.bf16.mxu1 %vm2647_vm6, %v2612_v6 }
 0x141   : > { %v1345_v48 = vpop.permute.xlu1 %1344 }
 0x142   : > { %v2350_v50 = vpop.permute.xlu0 %2349  ;;  %v2387_v47 = vsel %vm2363_vm11, %v3940_v61, %v1345_v48 }
 0x143   : > { %v2614_v4 = vsel %vm2594_vm5, %v2581_v45, %v2350_v50 }
 0x144   : > { %3774 = vmatmul.mubr.msk.bf16.vlgmr.msra.gmra.mxu1 %vm2647_vm6, %v2614_v4 }
 0x145   : > { %v1426_v55 = vpop.permute.xlu1 %1425 }
 0x146   : > { %v1424_v38 = vpop.permute.xlu0 %1423  ;;  %v2420_v17 = vsel %vm2396_vm12, %v2387_v47, %v1426_v55 }
 0x147   : > { %v2418_v46 = vsel %vm2396_vm12, %v2385_v0, %v1424_v38 }
 0x149   : > { %v1538_v30 = vpop.permute.xlu1 %1537 }
 0x14a   : > { %v1536_v60 = vpop.permute.xlu0 %1535  ;;  %v2453_v11 = vsel %vm2429_vm13, %v2420_v17, %v1538_v30 }
 0x14b   : > { %v2451_v62 = vsel %vm2429_vm13, %v2418_v46, %v1536_v60 }
 0x14d   : > { %v1810_v43 = vpop.permute.xlu1 %1809 }
 0x14e   : > { %v1808_v29 = vpop.permute.xlu0 %1807  ;;  %v2486_v33 = vsel %vm2462_vm14, %v2453_v11, %v1810_v43 }
 0x14f   : > { %v2484_v7 = vsel %vm2462_vm14, %v2451_v62, %v1808_v29 }
 0x151   : > { %v1890_v19 = vpop.permute.xlu1 %1889 }
 0x152   : > { %v1888_v58 = vpop.permute.xlu0 %1887  ;;  %v2519_v31 = vsel %vm2495_vm15, %v2486_v33, %v1890_v19 }
 0x153   : > { %v2517_v57 = vsel %vm2495_vm15, %v2484_v7, %v1888_v58 }
 0x155   : > { %v2002_v22 = vpop.permute.xlu1 %2001 }
 0x156   : > { %v2000_v56 = vpop.permute.xlu0 %1999  ;;  %v2552_v24 = vsel %vm2528_vm1, %v2519_v31, %v2002_v22 }
 0x157   : > { %v2550_v26 = vsel %vm2528_vm1, %v2517_v57, %v2000_v56 }
 0x159   : > { %v2274_v51 = vpop.permute.xlu1 %2273 }
 0x15a   : > { %v2272_v21 = vpop.permute.xlu0 %2271  ;;  %v2585_v36 = vsel %vm2561_vm3, %v2552_v24, %v2274_v51 }
 0x15b   : > { %v2583_v40 = vsel %vm2561_vm3, %v2550_v26, %v2272_v21 }
 0x15d   : > { %v1347_v2 = vpop.permute.xlu1 %1346 }
 0x15e   : > { %v2352_v28 = vpop.permute.xlu0 %2351  ;;  %v2389_v10 = vsel %vm2363_vm11, %v4804_v35, %v1347_v2 }
 0x15f   : > { %v2616_v20 = vsel %vm2594_vm5, %v2583_v40, %v2352_v28 }
 0x160   : > { %3777 = vmatprep.mubr.msk.bf16.mxu1 %vm2647_vm6, %v2616_v20 }
 0x161   : > { %v1349_v27 = vpop.permute.xlu1 %1348 }
 0x162   : > { %v2354_v16 = vpop.permute.xlu0 %2353  ;;  %v2391_v63 = vsel %vm2363_vm11, %v4828_v13, %v1349_v27 }
 0x163   : > { %v2618_v32 = vsel %vm2594_vm5, %v2585_v36, %v2354_v16 }
 0x164   : > { %3778 = vmatmul.mubr.msk.bf16.gmra.mxu1 %vm2647_vm6, %v2618_v32 }
 0x165   : > { %v1430_v37 = vpop.permute.xlu1 %1429 }
 0x166   : > { %v1428_v23 = vpop.permute.xlu0 %1427  ;;  %v2424_v1 = vsel %vm2396_vm12, %v2391_v63, %v1430_v37 }
 0x167   : > { %v2422_v25 = vsel %vm2396_vm12, %v2389_v10, %v1428_v23 }
 0x169   : > { %v1542_v41 = vpop.permute.xlu1 %1541 }
 0x16a   : > { %v1540_v3 = vpop.permute.xlu0 %1539  ;;  %v2457_v35 = vsel %vm2429_vm13, %v2424_v1, %v1542_v41 }
 0x16b   : > { %v2455_v34 = vsel %vm2429_vm13, %v2422_v25, %v1540_v3 }
 0x16d   : > { %v1814_v14 = vpop.permute.xlu1 %1813 }
 0x16e   : > { %v1812_v18 = vpop.permute.xlu0 %1811  ;;  %v2490_v45 = vsel %vm2462_vm14, %v2457_v35, %v1814_v14 }
 0x16f   : > { %v2488_v12 = vsel %vm2462_vm14, %v2455_v34, %v1812_v18 }
 0x171   : > { %v1894_v52 = vpop.permute.xlu1 %1893 }
 0x172   : > { %v1892_v49 = vpop.permute.xlu0 %1891  ;;  %v2523_v4 = vsel %vm2495_vm15, %v2490_v45, %v1894_v52 }
 0x173   : > { %v2521_v44 = vsel %vm2495_vm15, %v2488_v12, %v1892_v49 }
 0x175   : > { %v2006_v53 = vpop.permute.xlu1 %2005 }
 0x176   : > { %v2004_v15 = vpop.permute.xlu0 %2003  ;;  %v2556_v13 = vsel %vm2528_vm1, %v2523_v4, %v2006_v53 }
 0x177   : > { %v2554_v6 = vsel %vm2528_vm1, %v2521_v44, %v2004_v15 }
 0x179   : > { %v2278_v59 = vpop.permute.xlu1 %2277 }
 0x17a   : > { %v2276_v5 = vpop.permute.xlu0 %2275  ;;  %v2589_v38 = vsel %vm2561_vm3, %v2556_v13, %v2278_v59 }
 0x17b   : > { %v2587_v8 = vsel %vm2561_vm3, %v2554_v6, %v2276_v5 }
 0x17d   : > { %v1351_v39 = vpop.permute.xlu1 %1350 }
 0x17e   : > { %v2356_v48 = vpop.permute.xlu0 %2355  ;;  %v2393_v26 = vsel %vm2363_vm11, %v4916_v42, %v1351_v39 }
 0x17f   : > { %v2620_v50 = vsel %vm2594_vm5, %v2587_v8, %v2356_v48 }
 0x180   : > { %3781 = vmatprep.mubr.msk.bf16.mxu1 %vm2647_vm6, %v2620_v50 }
 0x181   : > { %v1353_v55 = vpop.permute.xlu1 %1352 }
 0x182   : > { %v2358_v30 = vpop.permute.xlu0 %2357  ;;  %v2395_v17 = vsel %vm2363_vm11, %v4945_v9, %v1353_v55 }
 0x183   : > { %v2622_v60 = vsel %vm2594_vm5, %v2589_v38, %v2358_v30 }
 0x184   : > { %3782 = vmatmul.mubr.msk.bf16.gmra.mxu1 %vm2647_vm6, %v2622_v60 }
 0x185   : > { %v1434_v43 = vpop.permute.xlu1 %1433 }
 0x186   : > { %v5128_v29 = vpop.f32.mrf.mxu0  ;;  %v1432_v19 = vpop.permute.xlu0 %1431  ;;  %v2428_v2 = vsel %vm2396_vm12, %v2395_v17, %v1434_v43 }
 0x187   : > { %v2426_v11 = vsel %vm2396_vm12, %v2393_v26, %v1432_v19 }
 0x188   : > { %v5131_v58 = vpop.f32.mrf.mxu0 }
 0x189   : > { %v1546_v22 = vpop.permute.xlu1 %1545 }
 0x18a   : > { %v5138_v56 = vpop.f32.mrf.mxu0  ;;  %v1544_v54 = vpop.permute.xlu0 %1543  ;;  %v2461_v40 = vsel %vm2429_vm13, %v2428_v2, %v1546_v22 }
 0x18b   : > { %v3645_v0 = vpack.c.bf16 %v5138_v56, %v5128_v29  ;;  %v2459_v33 = vsel %vm2429_vm13, %v2426_v11, %v1544_v54 }
 0x18c   : > { %v5142_v46 = vpop.f32.mrf.mxu0 }
 0x18d   : > { %3717 = vst [vmem:[%s5136_s10 + $0x8] sm:$0xff] %v3645_v0   ;;  %v3640_v51 = vpack.c.bf16 %v5142_v46, %v5131_v58  ;;  %v1818_v62 = vpop.permute.xlu1 %1817  ;;  %v3005_v55 = vadd.f32 %v5142_v46, %v5131_v58 }
 0x18e   : > { %v1816_v21 = vpop.permute.xlu0 %1815  ;;  %v2494_v20 = vsel %vm2462_vm14, %v2461_v40, %v1818_v62 }
 0x18f   : > { %3641 = vst [vmem:[%s5136_s10] sm:$0xff] %v3640_v51   ;;  %v2492_v24 = vsel %vm2462_vm14, %v2459_v33, %v1816_v21  ;;  %v3006_v38 = vadd.f32 %v5128_v29, %v3005_v55 }
 0x191   : > { %v1898_v7 = vpop.permute.xlu1 %1897  ;;  %v3007_v30 = vadd.f32 %v5138_v56, %v3006_v38 }
 0x192   : > { %v1896_v61 = vpop.permute.xlu0 %1895  ;;  %v2527_v27 = vsel %vm2495_vm15, %v2494_v20, %v1898_v7 }
 0x193   : > { %v2525_v9 = vsel %vm2495_vm15, %v2492_v24, %v1896_v61 }
 0x195   : > { %v2010_v47 = vpop.permute.xlu1 %2009 }
 0x196   : > { %v2008_v57 = vpop.permute.xlu0 %2007  ;;  %v2560_v42 = vsel %vm2528_vm1, %v2527_v27, %v2010_v47 }
 0x197   : > { %v2558_v36 = vsel %vm2528_vm1, %v2525_v9, %v2008_v57 }
 0x199   : > { %v2282_v28 = vpop.permute.xlu1 %2281 }
 0x19a   : > { %v2280_v31 = vpop.permute.xlu0 %2279  ;;  %v2593_v16 = vsel %vm2561_vm3, %v2560_v42, %v2282_v28 }
 0x19b   : > { %v2591_v37 = vsel %vm2561_vm3, %v2558_v36, %v2280_v31 }
 0x19d   : > { %v2362_v32 = vpop.permute.xlu1 %2361 }
 0x19e   : > { %v2626_v23 = vsel %vm2594_vm5, %v2593_v16, %v2362_v32  ;;  %v2360_v41 = vpop.permute.xlu0 %2359 }
 0x19f   : > { %v2624_v3 = vsel %vm2594_vm5, %v2591_v37, %v2360_v41 }
 0x1a0   : > { %3785 = vmatprep.mubr.msk.bf16.mxu1 %vm2647_vm6, %v2624_v3 }
 0x1a1   : > { %3786 = vmatmul.mubr.msk.bf16.gmra.mxu1 %vm2647_vm6, %v2626_v23 }
 0x1a4   : > { %v5168_v14 = vpop.f32.mrf.mxu0 }
 0x1a6   : > { %v5170_v18 = vpop.f32.mrf.mxu0 }
 0x1a7   : > { %v3008_v60 = vadd.f32 %v3007_v30, %v5170_v18 }
 0x1a8   : > { %v5172_v52 = vpop.f32.mrf.mxu0 }
 0x1a9   : > { %v3655_v49 = vpack.c.bf16 %v5172_v52, %v5168_v14 }
 0x1aa   : > { %v5176_v53 = vpop.f32.mrf.mxu0 }
 0x1ab   : > { %3719 = vst [vmem:[%s5136_s10 + $0x18] sm:$0xff] %v3655_v49   ;;  %v3650_v15 = vpack.c.bf16 %v5176_v53, %v5170_v18  ;;  %v3009_v43 = vadd.f32 %v3008_v60, %v5176_v53 }
 0x1ad   : > { %3718 = vst [vmem:[%s5136_s10 + $0x10] sm:$0xff] %v3650_v15   ;;  %v3010_v19 = vadd.f32 %v5168_v14, %v3009_v43 }
 0x1af   : > { %v3011_v0 = vadd.f32 %v5172_v52, %v3010_v19 }
 0x1c4   : > { %v5182_v10 = vpop.f32.mrf.mxu0 }
 0x1c6   : > { %v5184_v25 = vpop.f32.mrf.mxu0 }
 0x1c7   : > { %v3012_v21 = vadd.f32 %v3011_v0, %v5184_v25 }
 0x1c8   : > { %v5186_v59 = vpop.f32.mrf.mxu0 }
 0x1c9   : > { %v3665_v34 = vpack.c.bf16 %v5186_v59, %v5182_v10 }
 0x1ca   : > { %v5190_v5 = vpop.f32.mrf.mxu0 }
 0x1cb   : > { %3721 = vst [vmem:[%s5136_s10 + $0x28] sm:$0xff] %v3665_v34   ;;  %v3660_v12 = vpack.c.bf16 %v5190_v5, %v5184_v25  ;;  %v3013_v47 = vadd.f32 %v3012_v21, %v5190_v5 }
 0x1cd   : > { %3720 = vst [vmem:[%s5136_s10 + $0x20] sm:$0xff] %v3660_v12   ;;  %v3014_v57 = vadd.f32 %v5182_v10, %v3013_v47 }
 0x1cf   : > { %v3015_v17 = vadd.f32 %v5186_v59, %v3014_v57 }
 0x1e4   : > { %v5196_v63 = vpop.f32.mrf.mxu0 }
 0x1e6   : > { %v5198_v44 = vpop.f32.mrf.mxu0 }
 0x1e7   : > { %v3016_v26 = vadd.f32 %v3015_v17, %v5198_v44 }
 0x1e8   : > { %v5200_v1 = vpop.f32.mrf.mxu0 }
 0x1e9   : > { %v3675_v6 = vpack.c.bf16 %v5200_v1, %v5196_v63 }
 0x1ea   : > { %v5204_v39 = vpop.f32.mrf.mxu0 }
 0x1eb   : > { %3723 = vst [vmem:[%s5136_s10 + $0x38] sm:$0xff] %v3675_v6   ;;  %v3670_v35 = vpack.c.bf16 %v5204_v39, %v5198_v44  ;;  %v3017_v2 = vadd.f32 %v3016_v26, %v5204_v39 }
 0x1ed   : > { %3722 = vst [vmem:[%s5136_s10 + $0x30] sm:$0xff] %v3670_v35   ;;  %v3018_v11 = vadd.f32 %v5196_v63, %v3017_v2 }
 0x1ef   : > { %v3019_v40 = vadd.f32 %v5200_v1, %v3018_v11 }
 0x204   : > { %v5210_v8 = vpop.f32.mrf.mxu1 }
 0x206   : > { %v5212_v48 = vpop.f32.mrf.mxu1 }
 0x207   : > { %v3020_v28 = vadd.f32 %v3019_v40, %v5212_v48 }
 0x208   : > { %v5214_v45 = vpop.f32.mrf.mxu1 }
 0x209   : > { %v3685_v50 = vpack.c.bf16 %v5214_v45, %v5210_v8 }
 0x20a   : > { %v5218_v4 = vpop.f32.mrf.mxu1 }
 0x20b   : > { %3725 = vst [vmem:[%s5136_s10 + $0x48] sm:$0xff] %v3685_v50   ;;  %v3680_v13 = vpack.c.bf16 %v5218_v4, %v5212_v48  ;;  %v3021_v33 = vadd.f32 %v3020_v28, %v5218_v4 }
 0x20d   : > { %3724 = vst [vmem:[%s5136_s10 + $0x40] sm:$0xff] %v3680_v13   ;;  %v3022_v24 = vadd.f32 %v5210_v8, %v3021_v33 }
 0x20f   : > { %v3023_v16 = vadd.f32 %v5214_v45, %v3022_v24 }
 0x224   : > { %v5231_v22 = vpop.f32.mrf.mxu1 }
 0x226   : > { %v5233_v54 = vpop.f32.mrf.mxu1 }
 0x227   : > { %v3024_v32 = vadd.f32 %v3023_v16, %v5233_v54 }
 0x228   : > { %v5236_v51 = vpop.f32.mrf.mxu1 }
 0x229   : > { %v3695_v62 = vpack.c.bf16 %v5236_v51, %v5231_v22 }
 0x22a   : > { %v5241_v7 = vpop.f32.mrf.mxu1 }
 0x22b   : > { %3727 = vst [vmem:[%s5136_s10 + $0x58] sm:$0xff] %v3695_v62   ;;  %v3690_v61 = vpack.c.bf16 %v5241_v7, %v5233_v54  ;;  %v3025_v37 = vadd.f32 %v3024_v32, %v5241_v7 }
 0x22d   : > { %3726 = vst [vmem:[%s5136_s10 + $0x50] sm:$0xff] %v3690_v61   ;;  %v3026_v23 = vadd.f32 %v5231_v22, %v3025_v37 }
 0x22f   : > { %v3027_v41 = vadd.f32 %v5236_v51, %v3026_v23 }
 0x244   : > { %v5256_v20 = vpop.f32.mrf.mxu1 }
 0x246   : > { %v5258_v31 = vpop.f32.mrf.mxu1 }
 0x247   : > { %v3028_v3 = vadd.f32 %v3027_v41, %v5258_v31 }
 0x248   : > { %v5261_v27 = vpop.f32.mrf.mxu1 }
 0x249   : > { %v3705_v9 = vpack.c.bf16 %v5261_v27, %v5256_v20 }
 0x24a   : > { %v5265_v42 = vpop.f32.mrf.mxu1 }
 0x24b   : > { %3729 = vst [vmem:[%s5136_s10 + $0x68] sm:$0xff] %v3705_v9   ;;  %v3700_v36 = vpack.c.bf16 %v5265_v42, %v5258_v31  ;;  %v3029_v49 = vadd.f32 %v3028_v3, %v5265_v42 }
 0x24d   : > { %3728 = vst [vmem:[%s5136_s10 + $0x60] sm:$0xff] %v3700_v36   ;;  %v3030_v15 = vadd.f32 %v5256_v20, %v3029_v49 }
 0x24f   : > { %v3031_v6 = vadd.f32 %v5261_v27, %v3030_v15 }
 0x261   : > { %v5279_v34 = vpop.f32.mrf.mxu1 }
 0x263   : > { %v5281_v12 = vpop.f32.mrf.mxu1 }
 0x264   : > { %v3032_v50 = vadd.f32 %v3031_v6, %v5281_v12 }
 0x265   : > { %v5284_v35 = vpop.f32.mrf.mxu1 }
 0x266   : > { %v3715_v13 = vpack.c.bf16 %v5284_v35, %v5279_v34 }
 0x267   : > { %v5289_v55 = vpop.f32.mrf.mxu1 }
 0x268   : > { %3731 = vst [vmem:[%s5136_s10 + $0x78] sm:$0xff] %v3715_v13   ;;  %v3710_v38 = vpack.c.bf16 %v5289_v55, %v5281_v12  ;;  %v3033_v30 = vadd.f32 %v3032_v50, %v5289_v55 }
 0x26a   : > { %3730 = vst [vmem:[%s5136_s10 + $0x70] sm:$0xff] %v3710_v38   ;;  %v3034_v60 = vadd.f32 %v5279_v34, %v3033_v30 }
 0x26c   : > { %v3035_v43 = vadd.f32 %v5284_v35, %v3034_v60 }
 0x26e   : > { %v3036_v19 = vrot.slane %v3035_v43, 4 }
 0x270   : > { %v3037_v0 = vadd.f32 %v3036_v19, %v3035_v43 }
 0x272   : > { %v3038_v62 = vrot.slane %v3037_v0, 2 }
 0x274   : > { %v3039_v21 = vadd.f32 %v3038_v62, %v3037_v0 }
 0x276   : > { %v3040_v61 = vrot.slane %v3039_v21, 1 }
 0x278   : > { %v3041_v47 = vadd.f32 %v3040_v61, %v3039_v21 }
 0x27a   : > { %3075 = vst [vmem:[%s5302_s18] sm:$0x1] %v3041_v47  ;;  %v5305_v57 = vmul.f32 0.00390625, %v3041_v47 }
 0x27c   : > { %v3043_v17 = vsub.f32 %v5131_v58, %v5305_v57  ;;  %v3044_v26 = vsub.f32 %v5142_v46, %v5305_v57  ;;  %v3045_v2 = vsub.f32 %v5128_v29, %v5305_v57  ;;  %v3046_v28 = vsub.f32 %v5138_v56, %v5305_v57 }
 0x27d   : > { %v3047_v33 = vsub.f32 %v5170_v18, %v5305_v57  ;;  %v3048_v36 = vsub.f32 %v5176_v53, %v5305_v57  ;;  %v3049_v46 = vsub.f32 %v5168_v14, %v5305_v57  ;;  %v3050_v37 = vsub.f32 %v5172_v52, %v5305_v57 }
 0x27e   : > { %v3076_v11 = vmul.f32 %v3043_v17, %v3043_v17  ;;  %v3077_v40 = vmul.f32 %v3044_v26, %v3044_v26  ;;  %v3078_v24 = vmul.f32 %v3045_v2, %v3045_v2  ;;  %v3079_v58 = vmul.f32 %v3046_v28, %v3046_v28 }
 0x27f   : > { %v3080_v32 = vmul.f32 %v3047_v33, %v3047_v33  ;;  %v3081_v23 = vmul.f32 %v3048_v36, %v3048_v36  ;;  %v3051_v18 = vsub.f32 %v5184_v25, %v5305_v57  ;;  %v3082_v41 = vmul.f32 %v3049_v46, %v3049_v46 }
 0x280   : > { %v3108_v9 = vadd.f32 %v3077_v40, %v3076_v11  ;;  %v3052_v53 = vsub.f32 %v5190_v5, %v5305_v57  ;;  %v3083_v49 = vmul.f32 %v3050_v37, %v3050_v37  ;;  %v3053_v14 = vsub.f32 %v5182_v10, %v5305_v57 }
 0x281   : > { %v3084_v6 = vmul.f32 %v3051_v18, %v3051_v18  ;;  %v3054_v52 = vsub.f32 %v5186_v59, %v5305_v57  ;;  %v3055_v25 = vsub.f32 %v5198_v44, %v5305_v57  ;;  %v3056_v5 = vsub.f32 %v5204_v39, %v5305_v57 }
 0x282   : > { %v3109_v16 = vadd.f32 %v3108_v9, %v3078_v24  ;;  %v3085_v13 = vmul.f32 %v3052_v53, %v3052_v53  ;;  %v3086_v30 = vmul.f32 %v3053_v14, %v3053_v14  ;;  %v3057_v10 = vsub.f32 %v5196_v63, %v5305_v57 }
 0x283   : > { %v3087_v43 = vmul.f32 %v3054_v52, %v3054_v52  ;;  %v3088_v0 = vmul.f32 %v3055_v25, %v3055_v25  ;;  %v3058_v59 = vsub.f32 %v5200_v1, %v5305_v57  ;;  %v3089_v21 = vmul.f32 %v3056_v5, %v3056_v5 }
 0x284   : > { %v3110_v29 = vadd.f32 %v3109_v16, %v3079_v58  ;;  %v3059_v44 = vsub.f32 %v5212_v48, %v5305_v57  ;;  %v3090_v47 = vmul.f32 %v3057_v10, %v3057_v10  ;;  %v3060_v39 = vsub.f32 %v5218_v4, %v5305_v57 }
 0x285   : > { %v3091_v26 = vmul.f32 %v3058_v59, %v3058_v59  ;;  %v3061_v63 = vsub.f32 %v5210_v8, %v5305_v57  ;;  %v3062_v1 = vsub.f32 %v5214_v45, %v5305_v57  ;;  %v3063_v48 = vsub.f32 %v5233_v54, %v5305_v57 }
 0x286   : > { %v3111_v56 = vadd.f32 %v3110_v29, %v3080_v32  ;;  %v3092_v11 = vmul.f32 %v3059_v44, %v3059_v44  ;;  %v3093_v28 = vmul.f32 %v3060_v39, %v3060_v39  ;;  %v3064_v4 = vsub.f32 %v5241_v7, %v5305_v57 }
 0x287   : > { %v3094_v24 = vmul.f32 %v3061_v63, %v3061_v63  ;;  %v3095_v36 = vmul.f32 %v3062_v1, %v3062_v1  ;;  %v3065_v8 = vsub.f32 %v5231_v22, %v5305_v57  ;;  %v3096_v16 = vmul.f32 %v3063_v48, %v3063_v48 }
 0x288   : > { %v3112_v3 = vadd.f32 %v3111_v56, %v3081_v23  ;;  %v3066_v45 = vsub.f32 %v5236_v51, %v5305_v57  ;;  %v3097_v32 = vmul.f32 %v3064_v4, %v3064_v4  ;;  %v3067_v54 = vsub.f32 %v5258_v31, %v5305_v57 }
 0x289   : > { %v3098_v37 = vmul.f32 %v3065_v8, %v3065_v8  ;;  %v3068_v7 = vsub.f32 %v5265_v42, %v5305_v57  ;;  %v3069_v22 = vsub.f32 %v5256_v20, %v5305_v57  ;;  %v3070_v51 = vsub.f32 %v5261_v27, %v5305_v57 }
 0x28a   : > { %v3113_v15 = vadd.f32 %v3112_v3, %v3082_v41  ;;  %v3099_v56 = vmul.f32 %v3066_v45, %v3066_v45  ;;  %v3100_v41 = vmul.f32 %v3067_v54, %v3067_v54  ;;  %v3071_v31 = vsub.f32 %v5281_v12, %v5305_v57 }
 0x28b   : > { %v3101_v53 = vmul.f32 %v3068_v7, %v3068_v7  ;;  %v3072_v42 = vsub.f32 %v5289_v55, %v5305_v57  ;;  %v3073_v20 = vsub.f32 %v5279_v34, %v5305_v57  ;;  %v3074_v27 = vsub.f32 %v5284_v35, %v5305_v57 }
 0x28c   : > { %v3114_v50 = vadd.f32 %v3113_v15, %v3083_v49  ;;  %v3102_v15 = vmul.f32 %v3069_v22, %v3069_v22  ;;  %v3104_v52 = vmul.f32 %v3071_v31, %v3071_v31 }
 0x28e   : > { %v3115_v38 = vadd.f32 %v3114_v50, %v3084_v6  ;;  %v3103_v6 = vmul.f32 %v3070_v51, %v3070_v51 }
 0x290   : > { %v3116_v60 = vadd.f32 %v3115_v38, %v3085_v13  ;;  %v3105_v38 = vmul.f32 %v3072_v42, %v3072_v42 }
 0x292   : > { %v3117_v19 = vadd.f32 %v3116_v60, %v3086_v30  ;;  %v3106_v30 = vmul.f32 %v3073_v20, %v3073_v20  ;;  %v3107_v60 = vmul.f32 %v3074_v27, %v3074_v27 }
 0x294   : > { %v3118_v62 = vadd.f32 %v3117_v19, %v3087_v43 }
 0x296   : > { %v3119_v61 = vadd.f32 %v3118_v62, %v3088_v0 }
 0x298   : > { %v3120_v17 = vadd.f32 %v3119_v61, %v3089_v21 }
 0x29a   : > { %v3121_v2 = vadd.f32 %v3120_v17, %v3090_v47 }
 0x29c   : > { %v3122_v40 = vadd.f32 %v3121_v2, %v3091_v26 }
 0x29e   : > { %v3123_v33 = vadd.f32 %v3122_v40, %v3092_v11 }
 0x2a0   : > { %v3124_v9 = vadd.f32 %v3123_v33, %v3093_v28 }
 0x2a2   : > { %v3125_v58 = vadd.f32 %v3124_v9, %v3094_v24 }
 0x2a4   : > { %v3126_v46 = vadd.f32 %v3125_v58, %v3095_v36 }
 0x2a6   : > { %v3127_v29 = vadd.f32 %v3126_v46, %v3096_v16 }
 0x2a8   : > { %v3128_v23 = vadd.f32 %v3127_v29, %v3097_v32 }
 0x2aa   : > { %v3129_v18 = vadd.f32 %v3128_v23, %v3098_v37 }
 0x2ac   : > { %v3130_v3 = vadd.f32 %v3129_v18, %v3099_v56 }
 0x2ae   : > { %v3131_v49 = vadd.f32 %v3130_v3, %v3100_v41 }
 0x2b0   : > { %v3132_v14 = vadd.f32 %v3131_v49, %v3101_v53 }
 0x2b2   : > { %v3133_v50 = vadd.f32 %v3132_v14, %v3102_v15 }
 0x2b4   : > { %v3134_v13 = vadd.f32 %v3133_v50, %v3103_v6 }
 0x2b6   : > { %v3135_v25 = vadd.f32 %v3134_v13, %v3104_v52 }
 0x2b8   : > { %v3136_v12 = vadd.f32 %v3135_v25, %v3105_v38 }
 0x2ba   : > { %v3137_v5 = vadd.f32 %v3136_v12, %v3106_v30 }
 0x2bc   : > { %v3138_v43 = vadd.f32 %v3137_v5, %v3107_v60 }
 0x2be   : > { %v3139_v19 = vrot.slane %v3138_v43, 4 }
 0x2c0   : > { %v3140_v55 = vadd.f32 %v3139_v19, %v3138_v43 }
 0x2c2   : > { %v3141_v10 = vrot.slane %v3140_v55, 2 }
 0x2c4   : > { %v3142_v0 = vadd.f32 %v3141_v10, %v3140_v55 }
 0x2c6   : > { %v3143_v62 = vrot.slane %v3142_v0, 1 }
 0x2c8   : > { %v3144_v59 = vadd.f32 %v3143_v62, %v3142_v0 }
 0x2ca   : > { %3145 = vst [vmem:[%s5302_s18 + $0x1] sm:$0x1] %v3144_v59 }
 0x2cb PF: > { %s14_s14 = sadd.s32 1, %s3963_s14   ;;  %s5391_s12 = smov %s3959_s13 }
 0x2cc   : > { %p11_p5 = scmp.ge.s32.totalorder %s14_s14, 4   ;;  %s5392_s13 = smov %s5394_s15 }
 0x2ce   :  { %13 = sbr.rel (!%p11_p5) target bundleno = 2 (0x2), region = 78 }

// kernel: conv_block_forward.4
= control target key start
LH: loop header
LB: loop body
LE: loop exit
PB: predicated region body
PF: predicated region fallthrough
CT: control target
= control target key end

     0   :  { %s5641_s18 = smov 0   ;;  %s5643_s19 = smov 0   ;;  %s7228_s0 = inlined_call_operand.vmem [shape: bf16[2,16,16,128], index: 0, kind: input, shape index: {}]   ;;  %s7229_s1 = inlined_call_operand.vmem [shape: bf16[1152,128], index: 1, kind: input, shape index: {}]   ;;  %s7230_s2 = inlined_call_operand.vmem [shape: f32[1,128], index: 2, kind: input, shape index: {}]   ;;  %s7231_s3 = inlined_call_operand.vmem [shape: f32[1,128], index: 3, kind: input, shape index: {}]   ;;  %s7232_s4 = inlined_call_operand.vmem [shape: bf16[2,16,16,128], index: 4, kind: output, shape index: {0}]   ;;  %s7233_s5 = inlined_call_operand.vmem [shape: f32[2,1,2,128], index: 5, kind: output, shape index: {1}]  }
   0x1   :  { %s5645_s20 = smov 0  }
   0x2 LB: > { %s28_s21 = sadd.s32 1, %s5604_s19  ;;  %p4269_p0 = scmp.ge.s32.totalorder %s5608_s20, 1  ;;  %s5608_s20 = sphi %s5645_s20, %s16_s20   ;;  %s5604_s19 = sphi %s5643_s19, %s7263_s19   ;;  %s5600_s18 = sphi %s5641_s18, %s7262_s18  }
   0x3   : > { %p30_p1 = scmp.ge.s32.totalorder %s28_s21, 2  ;;  %p206_p2 = scmp.lt.s32.totalorder %s5608_s20, 3 }
   0x5   : > { %s7265_s21 = smov (%p30_p1, %s28_s21), 0  ;;  %p207_p3 = pnand %p4269_p0, %p206_p2 }
   0x7   : > { %210 = sbr.rel (%p207_p3) target bundleno = 666 (0x29a), region = 36 }
   0xc   : > { %v5408_v0 = vld [vmem:[%s7229_s1 + $0x78] sm:$0xff]   ;;  %v5610_v2 = vmov 0   ;;  %v5410_v3 = vld [vmem:[%s7229_s1 + $0x70] sm:$0xff]   ;;  %v5412_v5 = vld [vmem:[%s7229_s1 + $0x68] sm:$0xff]   ;;  %p246_p4 = scmp.lt.s32.totalorder %s5600_s18, 1  ;;  %vm1548_vm0 = vcmask 1046528  }
   0xd   : > { %v5409_v1 = vld [vmem:[%s7229_s1 + $0x38] sm:$0xff]   ;;  %448 = vst [vmem:[#allocation2] sm:$0xf] %v5610_v2  ;;  %449 = vst [vmem:[#allocation2 + $0x4] sm:$0xf] %v5610_v2  ;;  %4847 = vmatprep.subr.bf16.mxu0 %v5408_v0  ;;  %5367 = vmatprep.subr.bf16.mxu1 %v5408_v0  ;;  %v5411_v4 = vld [vmem:[%s7229_s1 + $0x30] sm:$0xff]  }
   0xe   : > { %450 = vst [vmem:[#allocation2 + $0x8] sm:$0x1] %v5610_v2  ;;  %451 = vst [vmem:[#allocation2 + $0xc] sm:$0xf] %v5610_v2  ;;  %4848 = vmatpush3.bf16.msra.mxu0 %v5409_v1  ;;  %5375 = vmatpush3.bf16.msra.mxu1 %v5409_v1  ;;  %v5413_v6 = vld [vmem:[%s7229_s1 + $0x28] sm:$0xff]   ;;  %v5414_v7 = vld [vmem:[%s7229_s1 + $0x60] sm:$0xff]  }
   0xf   : > { %452 = vst [vmem:[#allocation2 + $0x10] sm:$0xf] %v5610_v2  ;;  %453 = vst [vmem:[#allocation2 + $0x14] sm:$0x1] %v5610_v2  ;;  %4849 = vmatprep.subr.bf16.mxu0 %v5410_v3  ;;  %5368 = vmatprep.subr.bf16.mxu1 %v5410_v3  ;;  %s7267_s18 = smov (!%p246_p4, %s5600_s18), 1  ;;  %v5415_v8 = vld [vmem:[%s7229_s1 + $0x20] sm:$0xff]  }
  0x10   : > { %454 = vst [vmem:[#allocation2 + $0x18] sm:$0xf] %v5610_v2  ;;  %455 = vst [vmem:[#allocation2 + $0x1c] sm:$0xf] %v5610_v2  ;;  %v5416_v9 = vld [vmem:[%s7229_s1 + $0x58] sm:$0xff]   ;;  %s4607_s15 = sshll.u32 %s7267_s18, 7 }
  0x11   : > { %456 = vst [vmem:[#allocation2 + $0x20] sm:$0x1] %v5610_v2  ;;  %457 = vst [vmem:[#allocation2 + $0x24] sm:$0xf] %v5610_v2  ;;  %v5417_v10 = vld [vmem:[%s7229_s1 + $0x18] sm:$0xff]   ;;  %v5418_v11 = vld [vmem:[%s7229_s1 + $0x50] sm:$0xff]   ;;  %s5704_s26 = scalar_lea.vmem %s7228_s0, %s4607_s15  ;;  %s6956_s24 = scalar_lea.vmem %s7232_s4, %s4607_s15 }
  0x12   : > { %458 = vst [vmem:[#allocation2 + $0x28] sm:$0xf] %v5610_v2  ;;  %459 = vst [vmem:[#allocation2 + $0x2c] sm:$0x1] %v5610_v2  ;;  %4850 = vmatpush3.bf16.msra.mxu0 %v5411_v4  ;;  %5376 = vmatpush3.bf16.msra.mxu1 %v5411_v4  ;;  %v4827_v14 = vld [vmem:[%s5704_s26 + $0x58] sm:$0xff]   ;;  %v5419_v15 = vld [vmem:[%s7229_s1 + $0x10] sm:$0xff]  }
  0x13   : > { %460 = vst [vmem:[#allocation2 + $0x30] sm:$0xf] %v5610_v2  ;;  %461 = vst [vmem:[#allocation2 + $0x34] sm:$0xf] %v5610_v2  ;;  %4851 = vmatprep.subr.bf16.mxu0 %v5412_v5  ;;  %5369 = vmatprep.subr.bf16.mxu1 %v5412_v5  ;;  %v5717_v19 = vld [vmem:[%s7230_s2] ss:$0 sm:$0xff]  ;;  %v4719_v22 = vunpack.c.l.bf16 %v4827_v14  ;;  %v4720_v23 = vunpack.c.h.bf16 %v4827_v14 }
  0x14   : > { %462 = vst [vmem:[#allocation2 + $0x38] sm:$0x1] %v5610_v2  ;;  %463 = vst [vmem:[#allocation2 + $0x3c] sm:$0xf] %v5610_v2  ;;  %v5706_v12 = vld [vmem:[#allocation2] sm:$0xff]   ;;  %v5420_v20 = vld [vmem:[%s7229_s1 + $0x48] sm:$0xff]  }
  0x15   : > { %464 = vst [vmem:[#allocation2 + $0x40] sm:$0xf] %v5610_v2  ;;  %465 = vst [vmem:[#allocation2 + $0x44] sm:$0x1] %v5610_v2  ;;  %v1341_v16 = vshrl.u32 %v5706_v12, 16  ;;  %v1343_v17 = vshll.u32 %v5706_v12, 16  ;;  %v367_v27 = vmul.f32 %v4719_v22, %v5717_v19  ;;  %v368_v28 = vmul.f32 %v4720_v23, %v5717_v19 }
  0x16   : > { %466 = vst [vmem:[#allocation2 + $0x48] sm:$0xf] %v5610_v2  ;;  %467 = vst [vmem:[#allocation2 + $0x4c] sm:$0xf] %v5610_v2  ;;  %4852 = vmatpush3.bf16.msra.mxu0 %v5413_v6  ;;  %5377 = vmatpush3.bf16.msra.mxu1 %v5413_v6  ;;  %v5725_v26 = vld [vmem:[%s7231_s3] ss:$0 sm:$0xff] }
  0x17   : > { %468 = vst [vmem:[#allocation2 + $0x50] sm:$0x1] %v5610_v2  ;;  %469 = vst [vmem:[#allocation2 + $0x54] sm:$0xf] %v5610_v2  ;;  %4853 = vmatprep.subr.bf16.mxu0 %v5414_v7  ;;  %5370 = vmatprep.subr.bf16.mxu1 %v5414_v7  ;;  %v1345_v24 = vrot.slane %v1343_v17, 1  ;;  %v1549_v29 = vrot.slane %v5706_v12, 1  ;;  %v406_v33 = vadd.f32 %v5725_v26, %v367_v27 }
  0x18   : > { %470 = vst [vmem:[#allocation2 + $0x58] sm:$0xf] %v5610_v2  ;;  %471 = vst [vmem:[#allocation2 + $0x5c] sm:$0x1] %v5610_v2  ;;  %vm1339_vm1 = vsmask.f32 7424  ;;  %v407_v34 = vadd.f32 %v5725_v26, %v368_v28 }
  0x19   : > { %472 = vst [vmem:[#allocation2 + $0x60] sm:$0xf] %v5610_v2  ;;  %473 = vst [vmem:[#allocation2 + $0x64] sm:$0xf] %v5610_v2  ;;  %v5421_v30 = vld [vmem:[%s7229_s1 + $0x8] sm:$0xff]   ;;  %v1346_v31 = vor.u32 %v1345_v24, %v1341_v16  ;;  %v5422_v32 = vld [vmem:[%s7229_s1 + $0x40] sm:$0xff]  }
  0x1a   : > { %474 = vst [vmem:[#allocation2 + $0x68] sm:$0x1] %v5610_v2  ;;  %475 = vst [vmem:[#allocation2 + $0x6c] sm:$0xf] %v5610_v2  ;;  %4854 = vmatpush3.bf16.msra.mxu0 %v5415_v8  ;;  %5378 = vmatpush3.bf16.msra.mxu1 %v5415_v8  ;;  %vm598_vm2 = vsmask.f32 256 }
  0x1b   : > { %476 = vst [vmem:[#allocation2 + $0x70] sm:$0xf] %v5610_v2  ;;  %477 = vst [vmem:[#allocation2 + $0x74] sm:$0x1] %v5610_v2  ;;  %4855 = vmatprep.subr.bf16.mxu0 %v5416_v9  ;;  %5371 = vmatprep.subr.bf16.mxu1 %v5416_v9  ;;  %v4674_v35 = vld [vmem:[%s5704_s26] sm:$0xff]   ;;  %v438_v41 = vmax.f32 %v406_v33, 0.0 }
  0x1c   : > { %478 = vst [vmem:[#allocation2 + $0x78] sm:$0xf] %v5610_v2  ;;  %479 = vst [vmem:[#allocation2 + $0x7c] sm:$0xf] %v5610_v2  ;;  %vm599_vm3 = vsmask.f32 4368  ;;  %v4675_v38 = vunpack.c.l.bf16 %v4674_v35  ;;  %v4676_v39 = vunpack.c.h.bf16 %v4674_v35 }
  0x1d   : > { %480 = vst [vmem:[#allocation2 + $0x80] sm:$0x1] %v5610_v2  ;;  %481 = vst [vmem:[#allocation2 + $0x84] sm:$0xf] %v5610_v2  ;;  %v5423_v40 = vld [vmem:[%s7229_s1] sm:$0xff]   ;;  %v439_v42 = vmax.f32 %v407_v34, 0.0  ;;  %v4631_v46 = vpack.c.bf16 %v438_v41, %v438_v41 }
  0x1e   : > { %482 = vst [vmem:[#allocation2 + $0x88] sm:$0xf] %v5610_v2  ;;  %483 = vst [vmem:[#allocation2 + $0x8c] sm:$0x1] %v5610_v2  ;;  %4856 = vmatpush3.bf16.msra.mxu0 %v5417_v10  ;;  %5379 = vmatpush3.bf16.msra.mxu1 %v5417_v10  ;;  %v5428_v43 = vld [vmem:[%s7229_s1 + $0xf8] sm:$0xff]   ;;  %v345_v44 = vmul.f32 %v4675_v38, %v5717_v19  ;;  %v346_v45 = vmul.f32 %v4676_v39, %v5717_v19  ;;  %vm922_vm4 = vcmask 1043456  }
  0x1f   : > { %484 = vst [vmem:[#allocation2 + $0x90] sm:$0xf] %v5610_v2  ;;  %485 = vst [vmem:[#allocation2 + $0x94] sm:$0xf] %v5610_v2  ;;  %4857 = vmatprep.subr.bf16.mxu0 %v5418_v11  ;;  %5372 = vmatprep.subr.bf16.mxu1 %v5418_v11  ;;  %v4632_v47 = vpack.c.bf16 %v439_v42, %v439_v42  ;;  %v5429_v48 = vld [vmem:[%s7229_s1 + $0x178] sm:$0xff]   ;;  %vm929_vm6 = vcmask 1040384  }
  0x20   : > { %486 = vst [vmem:[#allocation2 + $0x98] sm:$0x1] %v5610_v2  ;;  %487 = vst [vmem:[#allocation2 + $0x9c] sm:$0xf] %v5610_v2  ;;  %vm923_vm5 = vsmask.f32 7938  ;;  %v384_v49 = vadd.f32 %v5725_v26, %v345_v44  ;;  %v385_v50 = vadd.f32 %v5725_v26, %v346_v45 }
  0x21   : > { %488 = vst [vmem:[#allocation2 + $0xa0] sm:$0xf] %v5610_v2  ;;  %489 = vst [vmem:[#allocation2 + $0xa4] sm:$0x1] %v5610_v2  ;;  %v4828_v51 = vld [vmem:[%s5704_s26 + $0x60] sm:$0xff]   ;;  %v789_v52 = vshrl.u32 %v4631_v46, 16 }
  0x22   : > { %490 = vst [vmem:[#allocation2 + $0xa8] sm:$0xf] %v5610_v2  ;;  %491 = vst [vmem:[#allocation2 + $0xac] sm:$0xf] %v5610_v2  ;;  %4858 = vmatpush3.bf16.msra.mxu0 %v5419_v15  ;;  %5380 = vmatpush3.bf16.msra.mxu1 %v5419_v15  ;;  %v792_v53 = vshll.u32 %v4631_v46, 16  ;;  %v797_v54 = vshrl.u32 %v4632_v47, 16  ;;  %v4723_v60 = vunpack.c.l.bf16 %v4828_v51  ;;  %v4724_v61 = vunpack.c.h.bf16 %v4828_v51 }
  0x23   : > { %492 = vst [vmem:[#allocation2 + $0xb0] sm:$0x1] %v5610_v2  ;;  %493 = vst [vmem:[#allocation2 + $0xb4] sm:$0xf] %v5610_v2  ;;  %4859 = vmatprep.subr.bf16.mxu0 %v5420_v20  ;;  %5373 = vmatprep.subr.bf16.mxu1 %v5420_v20  ;;  %v800_v55 = vshll.u32 %v4632_v47, 16  ;;  %v5433_v56 = vld [vmem:[%s7229_s1 + $0x138] sm:$0xff]  }
  0x24   : > { %494 = vst [vmem:[#allocation2 + $0xb8] sm:$0xf] %v5610_v2  ;;  %495 = vst [vmem:[#allocation2 + $0xbc] sm:$0x1] %v5610_v2  ;;  %v416_v58 = vmax.f32 %v384_v49, 0.0  ;;  %v417_v59 = vmax.f32 %v385_v50, 0.0  ;;  %v369_v6 = vmul.f32 %v4723_v60, %v5717_v19  ;;  %v370_v7 = vmul.f32 %v4724_v61, %v5717_v19 }
  0x25   : > { %496 = vst [vmem:[#allocation2 + $0xc0] sm:$0xf] %v5610_v2  ;;  %497 = vst [vmem:[#allocation2 + $0xc4] sm:$0xf] %v5610_v2  ;;  %v791_v62 = vrot.slane %v789_v52, 7  ;;  %v799_v63 = vrot.slane %v797_v54, 7 }
  0x26   : > { %498 = vst [vmem:[#allocation2 + $0xc8] sm:$0x1] %v5610_v2  ;;  %499 = vst [vmem:[#allocation2 + $0xcc] sm:$0xf] %v5610_v2  ;;  %4860 = vmatpush3.bf16.msra.mxu0 %v5421_v30  ;;  %5381 = vmatpush3.bf16.msra.mxu1 %v5421_v30  ;;  %v1004_v1 = vld [vmem:[#allocation2 + $0x90] sm:$0xf]  ;;  %v4609_v4 = vpack.c.bf16 %v416_v58, %v416_v58  ;;  %v4610_v5 = vpack.c.bf16 %v417_v59, %v417_v59 }
  0x27   : > { %500 = vst [vmem:[#allocation2 + $0xd0] sm:$0xf] %v5610_v2  ;;  %501 = vst [vmem:[#allocation2 + $0xd4] sm:$0x1] %v5610_v2  ;;  %4861 = vmatprep.subr.bf16.mxu0 %v5422_v32  ;;  %5374 = vmatprep.subr.bf16.mxu1 %v5422_v32  ;;  %v1008_v2 = vld [vmem:[#allocation2 + $0x98] sm:$0x1]  ;;  %v794_v8 = vor.u32 %v792_v53, %v791_v62  ;;  %v802_v10 = vor.u32 %v800_v55, %v799_v63 }
  0x28   : > { %v5425_v13 = vld [vmem:[#allocation2 + $0x8] ss:$0 sps:$4 sm:$0x11]   ;;  %vm5762_vm7 = vmor %vm598_vm2, %vm599_vm3  ;;  %v795_v9 = vrot.slane %v791_v62, 4  ;;  %v804_v11 = vrot.slane %v799_v63, 4  ;;  %v602_v14 = vshrl.u32 %v4609_v4, 16  ;;  %v408_v23 = vadd.f32 %v5725_v26, %v369_v6 }
  0x29   : > { %v1348_v18 = vshll.u32 %v5425_v13, 16  ;;  %v1550_v21 = vrot.slane %v5425_v13, 1  ;;  %vm5768_vm8 = vmand %vm922_vm4, %vm923_vm5  ;;  %v4817_v13 = vld [vmem:[%s5704_s26 + $0x8] sm:$0xff]   ;;  %v605_v15 = vshll.u32 %v4609_v4, 16  ;;  %v610_v16 = vshrl.u32 %v4610_v5, 16  ;;  %v5443_v24 = vld [vmem:[%s7229_s1 + $0x170] sm:$0xff]  }
  0x2a   : > { %4862 = vmatpush3.bf16.msra.mxu0 %v5423_v40  ;;  %5382 = vmatpush3.bf16.msra.mxu1 %v5423_v40  ;;  %vm5774_vm9 = vmand %vm929_vm6, %vm598_vm2  ;;  %v613_v17 = vshll.u32 %v4610_v5, 16  ;;  %v1005_v20 = vsel %vm5768_vm8, %v794_v8, %v1004_v1  ;;  %v931_v22 = vld [vmem:[#allocation2 + $0x14] sm:$0x1]  ;;  %v409_v28 = vadd.f32 %v5725_v26, %v370_v7  ;;  %v440_v30 = vmax.f32 %v408_v23, 0.0  ;;  %v4829_v38 = vld [vmem:[%s5704_s26 + $0x68] sm:$0xff]   ;;  %s4274_s15 = sshll.u32 %s7267_s18, 1 }
  0x2b   : > { %v1350_v25 = vrot.slane %v1348_v18, 1  ;;  %v5740_v36 = vsel %vm1548_vm0, %v1549_v29, %v1550_v21  ;;  %4959 = vmatprep.subr.bf16.mxu1 %v5428_v43  ;;  %5071 = vmatprep.subr.bf16.mxu0 %v5429_v48  ;;  %v803_v18 = vsel %vm5762_vm7, %v795_v9, %v802_v10  ;;  %v1009_v21 = vsel %vm5774_vm9, %v804_v11, %v1008_v2  ;;  %v4818_v47 = vld [vmem:[%s5704_s26 + $0x10] sm:$0xff]   ;;  %s7160_s28 = scalar_lea.vmem %s7233_s5, %s4274_s15 }
  0x2c   : > { %1006 = vst [vmem:[#allocation2 + $0x90] sm:$0xf] %v1005_v20  ;;  %1007 = vst [vmem:[#allocation2 + $0x94] sm:$0xf] %v803_v18  ;;  %v612_v27 = vrot.slane %v610_v16, 7  ;;  %v4679_v29 = vunpack.c.l.bf16 %v4817_v13  ;;  %v441_v39 = vmax.f32 %v409_v28, 0.0  ;;  %v4633_v40 = vpack.c.bf16 %v440_v30, %v440_v30 }
  0x2d   : > { %v1351_v37 = vsel %vm1339_vm1, %v1346_v31, %v1350_v25  ;;  %1010 = vst [vmem:[#allocation2 + $0x98] sm:$0x1] %v1009_v21  ;;  %v604_v25 = vrot.slane %v602_v14, 7  ;;  %v4680_v31 = vunpack.c.h.bf16 %v4817_v13  ;;  %v4727_v46 = vunpack.c.l.bf16 %v4829_v38  ;;  %v1015_v14 = vld [vmem:[#allocation2 + $0xa4] sm:$0x1]  ;;  %v5432_v30 = vld [vmem:[%s7229_s1 + $0xb8] sm:$0xff]  }
  0x2e   : > { %3053 = vmatprep.mubr.bf16.mxu0 %v1351_v37  ;;  %v615_v34 = vor.u32 %v613_v17, %v612_v27  ;;  %v617_v35 = vrot.slane %v612_v27, 4  ;;  %v5445_v37 = vld [vmem:[%s7229_s1 + $0x130] sm:$0xff]   ;;  %v347_v41 = vmul.f32 %v4679_v29, %v5717_v19  ;;  %v4634_v48 = vpack.c.bf16 %v441_v39, %v441_v39 }
  0x2f   : > { %3054 = vmatmul.mubr.bf16.vlgmr.msra.gmra.mxu0 %v5706_v12  ;;  %v925_v12 = vld [vmem:[#allocation2 + $0xc] sm:$0xf]  ;;  %v607_v32 = vor.u32 %v605_v15, %v604_v25  ;;  %v608_v33 = vrot.slane %v604_v25, 4  ;;  %v348_v42 = vmul.f32 %v4680_v31, %v5717_v19  ;;  %v806_v49 = vshrl.u32 %v4633_v40, 16  ;;  %v5813_v17 = vld [vmem:[%s5704_s26 + $0x70] sm:$0xff]  }
  0x30   : > { %5072 = vmatpush3.bf16.msra.mxu0 %v5433_v56  ;;  %v932_v45 = vsel %vm5774_vm9, %v617_v35, %v931_v22  ;;  %v809_v50 = vshll.u32 %v4633_v40, 16  ;;  %v386_v51 = vadd.f32 %v5725_v26, %v347_v41  ;;  %v4728_v53 = vunpack.c.h.bf16 %v4829_v38  ;;  %v1011_v56 = vld [vmem:[#allocation2 + $0x9c] sm:$0xf]  ;;  %v5434_v39 = vld [vmem:[%s7229_s1 + $0xf0] sm:$0xff]   ;;  %v934_v41 = vld [vmem:[#allocation2 + $0x18] sm:$0xf] }
  0x31   : > { %5073 = vmatprep.subr.bf16.mxu0 %v5443_v24  ;;  %v616_v43 = vsel %vm5762_vm7, %v608_v33, %v615_v34  ;;  %v926_v44 = vsel %vm5768_vm8, %v607_v32, %v925_v12  ;;  %933 = vst [vmem:[#allocation2 + $0x14] sm:$0x1] %v932_v45  ;;  %v387_v52 = vadd.f32 %v5725_v26, %v348_v42  ;;  %v4683_v55 = vunpack.c.l.bf16 %v4818_v47  ;;  %v5457_v34 = vld [vmem:[%s7229_s1 + $0x168] sm:$0xff]  }
  0x32   : > { %927 = vst [vmem:[#allocation2 + $0xc] sm:$0xf] %v926_v44  ;;  %928 = vst [vmem:[#allocation2 + $0x10] sm:$0xf] %v616_v43  ;;  %v371_v54 = vmul.f32 %v4727_v46, %v5717_v19  ;;  %v4684_v58 = vunpack.c.h.bf16 %v4818_v47  ;;  %v808_v61 = vrot.slane %v806_v49, 7  ;;  %v814_v62 = vshrl.u32 %v4634_v48, 16 }
  0x33   : > { %v5426_v59 = vld [vmem:[#allocation2 + $0x90] sm:$0xff]   ;;  %v372_v63 = vmul.f32 %v4728_v53, %v5717_v19  ;;  %v817_v2 = vshll.u32 %v4634_v48, 16  ;;  %v418_v4 = vmax.f32 %v386_v51, 0.0  ;;  %v419_v5 = vmax.f32 %v387_v52, 0.0 }
  0x34   : > { %5074 = vmatpush3.bf16.msra.mxu0 %v5445_v37  ;;  %v5427_v60 = vld [vmem:[#allocation2 + $0x98] ss:$0 sps:$4 sm:$0x11]   ;;  %v410_v1 = vadd.f32 %v5725_v26, %v371_v54  ;;  %v349_v6 = vmul.f32 %v4683_v55, %v5717_v19  ;;  %v1485_v7 = vshrl.u32 %v5426_v59, 16  ;;  %v1487_v8 = vshll.u32 %v5426_v59, 16  ;;  %v5435_v55 = vld [vmem:[%s7229_s1 + $0xb0] sm:$0xff]  }
  0x35   : > { %v1492_v9 = vshll.u32 %v5427_v60, 16  ;;  %v811_v10 = vor.u32 %v809_v50, %v808_v61  ;;  %v812_v11 = vrot.slane %v808_v61, 4  ;;  %v816_v13 = vrot.slane %v814_v62, 7  ;;  %5075 = vmatprep.subr.bf16.mxu0 %v5457_v34  ;;  %v5438_v62 = vld [vmem:[%s7229_s1 + $0xe8] sm:$0xff]  }
  0x36   : > { %v4611_v15 = vpack.c.bf16 %v418_v4, %v418_v4  ;;  %v4612_v16 = vpack.c.bf16 %v419_v5, %v419_v5  ;;  %v1489_v18 = vrot.slane %v1487_v8, 1  ;;  %v411_v12 = vadd.f32 %v5725_v26, %v372_v63 }
  0x37   : > { %v1494_v20 = vrot.slane %v1492_v9, 1  ;;  %v1012_v21 = vsel %vm5768_vm8, %v811_v10, %v1011_v56  ;;  %v819_v24 = vor.u32 %v817_v2, %v816_v13  ;;  %v350_v25 = vmul.f32 %v4684_v58, %v5717_v19  ;;  %v938_v56 = vld [vmem:[#allocation2 + $0x20] sm:$0x1]  ;;  %v5862_v10 = vld [vmem:[%s5704_s26 + $0x18] sm:$0xff]  }
  0x38   : > { %v5820_v23 = vld [vmem:[#allocation2 + $0x14] ss:$0 sps:$4 sm:$0x11]   ;;  %1013 = vst [vmem:[#allocation2 + $0x9c] sm:$0xf] %v1012_v21  ;;  %v5824_v27 = vadd.f32 %v5725_v26, %v349_v6  ;;  %v4731_v28 = vunpack.c.l.bf16 %v5813_v17  ;;  %v1490_v29 = vor.u32 %v1489_v18, %v1485_v7  ;;  %v821_v31 = vrot.slane %v816_v13, 4 }
  0x39   : > { %v5818_v22 = vld [vmem:[#allocation2 + $0xc] sm:$0xff]   ;;  %v619_v32 = vshrl.u32 %v4611_v15, 16  ;;  %v622_v33 = vshll.u32 %v4611_v15, 16  ;;  %v1360_v38 = vshll.u32 %v5820_v23, 16  ;;  %v820_v40 = vsel %vm5762_vm7, %v812_v11, %v819_v24  ;;  %v1018_v18 = vld [vmem:[#allocation2 + $0xa8] sm:$0xf] }
  0x3a   : > { %v1353_v35 = vshrl.u32 %v5818_v22, 16  ;;  %v1355_v37 = vshll.u32 %v5818_v22, 16  ;;  %v1495_v42 = vsel %vm1339_vm1, %v1490_v29, %v1494_v20  ;;  %1014 = vst [vmem:[#allocation2 + $0xa0] sm:$0xf] %v820_v40  ;;  %v1016_v43 = vsel %vm5774_vm9, %v821_v31, %v1015_v14  ;;  %v5441_v6 = vld [vmem:[%s7229_s1 + $0xa8] sm:$0xff]   ;;  %v5442_v14 = vld [vmem:[%s7229_s1 + $0xe0] sm:$0xff]  }
  0x3b   : > { %v621_v44 = vrot.slane %v619_v32, 7  ;;  %v627_v45 = vshrl.u32 %v4612_v16, 16  ;;  %3149 = vmatprep.mubr.bf16.mxu1 %v1495_v42  ;;  %v1362_v47 = vrot.slane %v1360_v38, 1  ;;  %1017 = vst [vmem:[#allocation2 + $0xa4] sm:$0x1] %v1016_v43  ;;  %v630_v48 = vshll.u32 %v4612_v16, 16 }
  0x3c   : > { %v1357_v46 = vrot.slane %v1355_v37, 1  ;;  %v442_v49 = vmax.f32 %v410_v1, 0.0  ;;  %3150 = vmatmul.mubr.bf16.vlgmr.msra.gmra.mxu1 %v5426_v59  ;;  %v443_v53 = vmax.f32 %v411_v12, 0.0  ;;  %v389_v60 = vadd.f32 %v5725_v26, %v350_v25  ;;  %v5461_v59 = vld [vmem:[%s7229_s1 + $0x128] sm:$0xff]   ;;  %v1022_v12 = vld [vmem:[#allocation2 + $0xb0] sm:$0x1] }
  0x3d   : > { %v624_v50 = vor.u32 %v622_v33, %v621_v44  ;;  %v625_v51 = vrot.slane %v621_v44, 4  ;;  %v629_v52 = vrot.slane %v627_v45, 7  ;;  %4960 = vmatpush3.bf16.msra.mxu1 %v5432_v30  ;;  %v420_v61 = vmax.f32 %v5824_v27, 0.0  ;;  %5076 = vmatpush3.bf16.msra.mxu0 %v5461_v59  ;;  %v5444_v40 = vld [vmem:[%s7229_s1 + $0xa0] sm:$0xff]   ;;  %v5448_v44 = vld [vmem:[%s7229_s1 + $0xd8] sm:$0xff]  }
  0x3e   : > { %v1358_v54 = vor.u32 %v1357_v46, %v1353_v35  ;;  %v4635_v58 = vpack.c.bf16 %v442_v49, %v442_v49  ;;  %4961 = vmatprep.subr.bf16.mxu1 %v5434_v39  ;;  %v4636_v4 = vpack.c.bf16 %v443_v53, %v443_v53  ;;  %v421_v9 = vmax.f32 %v389_v60, 0.0 }
  0x3f   : > { %v632_v63 = vor.u32 %v630_v48, %v629_v52  ;;  %v634_v1 = vrot.slane %v629_v52, 4  ;;  %v935_v2 = vsel %vm5768_vm8, %v624_v50, %v934_v41  ;;  %v4613_v24 = vpack.c.bf16 %v420_v61, %v420_v61  ;;  %v945_v52 = vld [vmem:[#allocation2 + $0x2c] sm:$0x1] }
  0x40   : > { %v1363_v5 = vsel %vm1339_vm1, %v1358_v54, %v1362_v47  ;;  %936 = vst [vmem:[#allocation2 + $0x18] sm:$0xf] %v935_v2  ;;  %v823_v7 = vshrl.u32 %v4635_v58, 16  ;;  %v826_v8 = vshll.u32 %v4635_v58, 16  ;;  %v831_v15 = vshrl.u32 %v4636_v4, 16 }
  0x41   : > { %3061 = vmatprep.mubr.bf16.mxu0 %v1363_v5  ;;  %v633_v11 = vsel %vm5762_vm7, %v625_v51, %v632_v63  ;;  %v939_v13 = vsel %vm5774_vm9, %v634_v1, %v938_v56  ;;  %v834_v16 = vshll.u32 %v4636_v4, 16  ;;  %4962 = vmatpush3.bf16.msra.mxu1 %v5435_v55  ;;  %v5872_v20 = vld [vmem:[#allocation2 + $0x9c] sm:$0xff]   ;;  %v4614_v25 = vpack.c.bf16 %v421_v9, %v421_v9  ;;  %v941_v47 = vld [vmem:[#allocation2 + $0x24] sm:$0xf] }
  0x42   : > { %3062 = vmatmul.mubr.bf16.gmra.mxu0 %v5818_v22  ;;  %937 = vst [vmem:[#allocation2 + $0x1c] sm:$0xf] %v633_v11  ;;  %940 = vst [vmem:[#allocation2 + $0x20] sm:$0x1] %v939_v13  ;;  %v825_v21 = vrot.slane %v823_v7, 7  ;;  %v4732_v27 = vunpack.c.h.bf16 %v5813_v17  ;;  %4963 = vmatprep.subr.bf16.mxu1 %v5438_v62  ;;  %v833_v30 = vrot.slane %v831_v15, 7  ;;  %v373_v31 = vmul.f32 %v4731_v28, %v5717_v19 }
  0x43   : > { %v5437_v29 = vld [vmem:[#allocation2 + $0xa4] ss:$0 sps:$4 sm:$0x11]   ;;  %v4687_v32 = vunpack.c.l.bf16 %v5862_v10  ;;  %v4688_v33 = vunpack.c.h.bf16 %v5862_v10  ;;  %v1497_v34 = vshrl.u32 %v5872_v20, 16  ;;  %v1499_v35 = vshll.u32 %v5872_v20, 16  ;;  %v5451_v56 = vld [vmem:[%s7229_s1 + $0x98] sm:$0xff]  }
  0x44   : > { %v828_v37 = vor.u32 %v826_v8, %v825_v21  ;;  %v829_v38 = vrot.slane %v825_v21, 4  ;;  %v1504_v39 = vshll.u32 %v5437_v29, 16  ;;  %v836_v41 = vor.u32 %v834_v16, %v833_v30  ;;  %v5452_v10 = vld [vmem:[%s7229_s1 + $0xd0] sm:$0xff]   ;;  %v4820_v13 = vld [vmem:[%s5704_s26 + $0x20] sm:$0xff]  }
  0x45   : > { %v838_v42 = vrot.slane %v833_v30, 4  ;;  %v636_v43 = vshrl.u32 %v4613_v24, 16  ;;  %v1501_v17 = vrot.slane %v1499_v35, 1  ;;  %4964 = vmatpush3.bf16.msra.mxu1 %v5441_v6  ;;  %v639_v45 = vshll.u32 %v4613_v24, 16 }
  0x46   : > { %v1019_v28 = vsel %vm5768_vm8, %v828_v37, %v1018_v18  ;;  %v644_v46 = vshrl.u32 %v4614_v25, 16  ;;  %v1506_v48 = vrot.slane %v1504_v39, 1  ;;  %4965 = vmatprep.subr.bf16.mxu1 %v5442_v14  ;;  %v837_v49 = vsel %vm5762_vm7, %v829_v38, %v836_v41  ;;  %v5453_v18 = vld [vmem:[%s7229_s1 + $0x90] sm:$0xff]  }
  0x47   : > { %1020 = vst [vmem:[#allocation2 + $0xa8] sm:$0xf] %v1019_v28  ;;  %v1023_v50 = vsel %vm5774_vm9, %v838_v42, %v1022_v12  ;;  %v638_v51 = vrot.slane %v636_v43, 7  ;;  %v1502_v53 = vor.u32 %v1501_v17, %v1497_v34  ;;  %1021 = vst [vmem:[#allocation2 + $0xac] sm:$0xf] %v837_v49  ;;  %v647_v55 = vshll.u32 %v4614_v25, 16 }
  0x48   : > { %1024 = vst [vmem:[#allocation2 + $0xb0] sm:$0x1] %v1023_v50  ;;  %v646_v54 = vrot.slane %v644_v46, 7  ;;  %v374_v58 = vmul.f32 %v4732_v27, %v5717_v19  ;;  %v412_v62 = vadd.f32 %v5725_v26, %v373_v31  ;;  %v351_v63 = vmul.f32 %v4687_v32, %v5717_v19  ;;  %v5469_v27 = vld [vmem:[%s7229_s1 + $0x160] sm:$0xff]   ;;  %v1025_v17 = vld [vmem:[#allocation2 + $0xb4] sm:$0xf] }
  0x49   : > { %v5898_v60 = vld [vmem:[#allocation2 + $0x18] sm:$0xff]   ;;  %v641_v61 = vor.u32 %v639_v45, %v638_v51  ;;  %v642_v59 = vrot.slane %v638_v51, 4  ;;  %v1507_v1 = vsel %vm1339_vm1, %v1502_v53, %v1506_v48  ;;  %v5903_v2 = vld [vmem:[#allocation2 + $0x20] ss:$0 sps:$4 sm:$0x11]   ;;  %4966 = vmatpush3.bf16.msra.mxu1 %v5444_v40  ;;  %v352_v25 = vmul.f32 %v4688_v33, %v5717_v19  ;;  %5077 = vmatprep.subr.bf16.mxu0 %v5469_v27  ;;  %v5460_v28 = vld [vmem:[%s7229_s1 + $0x88] sm:$0xff]  }
  0x4a   : > { %v649_v4 = vor.u32 %v647_v55, %v646_v54  ;;  %v651_v5 = vrot.slane %v646_v54, 4  ;;  %v413_v6 = vadd.f32 %v5725_v26, %v374_v58  ;;  %3157 = vmatprep.mubr.bf16.mxu1 %v1507_v1  ;;  %v1365_v7 = vshrl.u32 %v5898_v60, 16  ;;  %4967 = vmatprep.subr.bf16.mxu1 %v5448_v44  ;;  %v5470_v34 = vld [vmem:[%s7229_s1 + $0x120] sm:$0xff]  }
  0x4b   : > { %v1367_v8 = vshll.u32 %v5898_v60, 16  ;;  %v942_v9 = vsel %vm5768_vm8, %v641_v61, %v941_v47  ;;  %v444_v11 = vmax.f32 %v412_v62, 0.0  ;;  %v1372_v14 = vshll.u32 %v5903_v2, 16  ;;  %3158 = vmatmul.mubr.bf16.gmra.mxu1 %v5872_v20  ;;  %v5456_v20 = vld [vmem:[%s7229_s1 + $0xc8] sm:$0xff]   ;;  %5078 = vmatpush3.bf16.msra.mxu0 %v5470_v34  ;;  %v5462_v49 = vld [vmem:[%s7229_s1 + $0xc0] sm:$0xff]  }
  0x4c   : > { %v650_v15 = vsel %vm5762_vm7, %v642_v59, %v649_v4  ;;  %943 = vst [vmem:[#allocation2 + $0x24] sm:$0xf] %v942_v9  ;;  %v946_v16 = vsel %vm5774_vm9, %v651_v5, %v945_v52  ;;  %v445_v21 = vmax.f32 %v413_v6, 0.0  ;;  %v390_v31 = vadd.f32 %v5725_v26, %v351_v63  ;;  %v1029_v52 = vld [vmem:[#allocation2 + $0xbc] sm:$0x1] }
  0x4d   : > { %v1369_v12 = vrot.slane %v1367_v8, 1  ;;  %944 = vst [vmem:[#allocation2 + $0x28] sm:$0xf] %v650_v15  ;;  %947 = vst [vmem:[#allocation2 + $0x2c] sm:$0x1] %v946_v16  ;;  %v4637_v24 = vpack.c.bf16 %v444_v11, %v444_v11  ;;  %v1374_v29 = vrot.slane %v1372_v14, 1  ;;  %4968 = vmatpush3.bf16.msra.mxu1 %v5451_v56  ;;  %v4691_v32 = vunpack.c.l.bf16 %v4820_v13 }
  0x4e   : > { %v4638_v30 = vpack.c.bf16 %v445_v21, %v445_v21  ;;  %v5934_v37 = vld [vmem:[#allocation2 + $0xa8] sm:$0xff]   ;;  %4969 = vmatprep.subr.bf16.mxu1 %v5452_v10  ;;  %v391_v33 = vadd.f32 %v5725_v26, %v352_v25  ;;  %v4692_v39 = vunpack.c.h.bf16 %v4820_v13  ;;  %v422_v53 = vmax.f32 %v390_v31, 0.0  ;;  %v5463_v15 = vld [vmem:[%s7229_s1 + $0x80] sm:$0xff]   ;;  %v5465_v25 = vld [vmem:[%s7229_s1 + $0x1f8] sm:$0xff]  }
  0x4f   : > { %v1370_v35 = vor.u32 %v1369_v12, %v1365_v7  ;;  %v840_v38 = vshrl.u32 %v4637_v24, 16  ;;  %v5447_v40 = vld [vmem:[#allocation2 + $0xb0] ss:$0 sps:$4 sm:$0x11]   ;;  %v843_v41 = vshll.u32 %v4637_v24, 16  ;;  %v353_v44 = vmul.f32 %v4691_v32, %v5717_v19  ;;  %v4821_v16 = vld [vmem:[%s5704_s26 + $0x28] sm:$0xff]  }
  0x50   : > { %v848_v42 = vshrl.u32 %v4638_v30, 16  ;;  %v851_v43 = vshll.u32 %v4638_v30, 16  ;;  %v1509_v46 = vshrl.u32 %v5934_v37, 16  ;;  %v1511_v47 = vshll.u32 %v5934_v37, 16 }
  0x51   : > { %v1375_v45 = vsel %vm1339_vm1, %v1370_v35, %v1374_v29  ;;  %v842_v48 = vrot.slane %v840_v38, 7  ;;  %v1516_v50 = vshll.u32 %v5447_v40, 16  ;;  %4970 = vmatpush3.bf16.msra.mxu1 %v5453_v18  ;;  %v423_v54 = vmax.f32 %v391_v33, 0.0  ;;  %v5475_v33 = vld [vmem:[%s7229_s1 + $0x158] sm:$0xff]  }
  0x52   : > { %3069 = vmatprep.mubr.bf16.mxu0 %v1375_v45  ;;  %v850_v51 = vrot.slane %v848_v42, 7  ;;  %v1513_v55 = vrot.slane %v1511_v47, 1  ;;  %4971 = vmatprep.subr.bf16.mxu1 %v5456_v20  ;;  %v354_v61 = vmul.f32 %v4692_v39, %v5717_v19  ;;  %v4615_v1 = vpack.c.bf16 %v422_v53, %v422_v53  ;;  %v948_v20 = vld [vmem:[#allocation2 + $0x30] sm:$0xf] }
  0x53   : > { %3070 = vmatmul.mubr.bf16.gmra.mxu0 %v5898_v60  ;;  %v845_v56 = vor.u32 %v843_v41, %v842_v48  ;;  %v846_v58 = vrot.slane %v842_v48, 4  ;;  %v1518_v59 = vrot.slane %v1516_v50, 1  ;;  %v4616_v4 = vpack.c.bf16 %v423_v54, %v423_v54  ;;  %5079 = vmatprep.subr.bf16.mxu0 %v5475_v33  ;;  %v5479_v50 = vld [vmem:[%s7229_s1 + $0x118] sm:$0xff]  }
  0x54   : > { %v5949_v62 = vld [vmem:[#allocation2 + $0x24] sm:$0xff]   ;;  %v853_v63 = vor.u32 %v851_v43, %v850_v51  ;;  %v1514_v5 = vor.u32 %v1513_v55, %v1509_v46  ;;  %v5951_v6 = vld [vmem:[#allocation2 + $0x2c] ss:$0 sps:$4 sm:$0x11]   ;;  %v855_v7 = vrot.slane %v850_v51, 4  ;;  %v392_v9 = vadd.f32 %v5725_v26, %v353_v44  ;;  %5080 = vmatpush3.bf16.msra.mxu0 %v5479_v50 }
  0x55   : > { %v1026_v8 = vsel %vm5768_vm8, %v845_v56, %v1025_v17  ;;  %v1377_v10 = vshrl.u32 %v5949_v62, 16  ;;  %v1379_v11 = vshll.u32 %v5949_v62, 16  ;;  %v653_v14 = vshrl.u32 %v4615_v1, 16  ;;  %4972 = vmatpush3.bf16.msra.mxu1 %v5460_v28  ;;  %v952_v43 = vld [vmem:[#allocation2 + $0x38] sm:$0x1] }
  0x56   : > { %v854_v13 = vsel %vm5762_vm7, %v846_v58, %v853_v63  ;;  %1027 = vst [vmem:[#allocation2 + $0xb4] sm:$0xf] %v1026_v8  ;;  %v1519_v18 = vsel %vm1339_vm1, %v1514_v5, %v1518_v59  ;;  %v1384_v21 = vshll.u32 %v5951_v6, 16  ;;  %v1030_v12 = vsel %vm5774_vm9, %v855_v7, %v1029_v52  ;;  %4973 = vmatprep.subr.bf16.mxu1 %v5462_v49  ;;  %v4822_v49 = vld [vmem:[%s5704_s26 + $0x30] sm:$0xff]  }
  0x57   : > { %1028 = vst [vmem:[#allocation2 + $0xb8] sm:$0xf] %v854_v13  ;;  %v656_v24 = vshll.u32 %v4615_v1, 16  ;;  %3165 = vmatprep.mubr.bf16.mxu1 %v1519_v18  ;;  %v1381_v27 = vrot.slane %v1379_v11, 1  ;;  %1031 = vst [vmem:[#allocation2 + $0xbc] sm:$0x1] %v1030_v12  ;;  %v393_v34 = vadd.f32 %v5725_v26, %v354_v61  ;;  %v4695_v38 = vunpack.c.l.bf16 %v4821_v16 }
  0x58   : > { %v655_v29 = vrot.slane %v653_v14, 7  ;;  %v661_v30 = vshrl.u32 %v4616_v4, 16  ;;  %v664_v31 = vshll.u32 %v4616_v4, 16  ;;  %v1386_v32 = vrot.slane %v1384_v21, 1  ;;  %3166 = vmatmul.mubr.bf16.gmra.mxu1 %v5934_v37  ;;  %v955_v61 = vld [vmem:[#allocation2 + $0x3c] sm:$0xf] }
  0x59   : > { %v424_v35 = vmax.f32 %v392_v9, 0.0  ;;  %v1382_v39 = vor.u32 %v1381_v27, %v1377_v10  ;;  %4974 = vmatpush3.bf16.msra.mxu1 %v5463_v15  ;;  %v425_v17 = vmax.f32 %v393_v34, 0.0  ;;  %v4696_v44 = vunpack.c.h.bf16 %v4821_v16  ;;  %v5484_v12 = vld [vmem:[%s7229_s1 + $0x150] sm:$0xff]   ;;  %v6000_v27 = vld [vmem:[%s7230_s2] ss:$0 sm:$0xff] }
  0x5a   : > { %v658_v40 = vor.u32 %v656_v24, %v655_v29  ;;  %v659_v41 = vrot.slane %v655_v29, 4  ;;  %v663_v42 = vrot.slane %v661_v30, 7  ;;  %5183 = vmatprep.subr.bf16.mxu1 %v5465_v25  ;;  %v355_v37 = vmul.f32 %v4695_v38, %v5717_v19  ;;  %v5485_v30 = vld [vmem:[%s7229_s1 + $0x110] sm:$0xff]   ;;  %5081 = vmatprep.subr.bf16.mxu0 %v5484_v12 }
  0x5b   : > { %v4617_v28 = vpack.c.bf16 %v424_v35, %v424_v35  ;;  %v1387_v45 = vsel %vm1339_vm1, %v1382_v39, %v1386_v32  ;;  %v4618_v51 = vpack.c.bf16 %v425_v17, %v425_v17  ;;  %v356_v54 = vmul.f32 %v4696_v44, %v5717_v19  ;;  %v6006_v32 = vld [vmem:[#allocation2 + $0xc] sm:$0xff]   ;;  %5082 = vmatpush3.bf16.msra.mxu0 %v5485_v30  ;;  %v962_v44 = vld [vmem:[#allocation2 + $0x48] sm:$0xf]  ;;  %v969_v30 = vld [vmem:[#allocation2 + $0x54] sm:$0xf] }
  0x5c   : > { %v666_v46 = vor.u32 %v664_v31, %v663_v42  ;;  %v668_v47 = vrot.slane %v663_v42, 4  ;;  %v949_v48 = vsel %vm5768_vm8, %v658_v40, %v948_v20  ;;  %3077 = vmatprep.mubr.bf16.mxu0 %v1387_v45  ;;  %v394_v59 = vadd.f32 %v5725_v26, %v355_v37  ;;  %v959_v20 = vld [vmem:[#allocation2 + $0x44] sm:$0x1] }
  0x5d   : > { %950 = vst [vmem:[#allocation2 + $0x30] sm:$0xf] %v949_v48  ;;  %v670_v52 = vshrl.u32 %v4617_v28, 16  ;;  %v673_v53 = vshll.u32 %v4617_v28, 16  ;;  %3078 = vmatmul.mubr.bf16.gmra.mxu0 %v5949_v62  ;;  %v395_v4 = vadd.f32 %v5725_v26, %v356_v54  ;;  %v4699_v5 = vunpack.c.l.bf16 %v4822_v49  ;;  %v6021_v48 = vld [vmem:[%s7231_s3] ss:$0 sm:$0xff] }
  0x5e   : > { %v5454_v55 = vld [vmem:[#allocation2 + $0xb4] sm:$0xff]   ;;  %v667_v56 = vsel %vm5762_vm7, %v659_v41, %v666_v46  ;;  %v953_v58 = vsel %vm5774_vm9, %v668_v47, %v952_v43  ;;  %v5455_v63 = vld [vmem:[#allocation2 + $0xbc] ss:$0 sps:$4 sm:$0x11]   ;;  %v678_v8 = vshrl.u32 %v4618_v51, 16  ;;  %v681_v9 = vshll.u32 %v4618_v51, 16 }
  0x5f   : > { %951 = vst [vmem:[#allocation2 + $0x34] sm:$0xf] %v667_v56  ;;  %954 = vst [vmem:[#allocation2 + $0x38] sm:$0x1] %v953_v58  ;;  %v672_v1 = vrot.slane %v670_v52, 7  ;;  %v1521_v19 = vshrl.u32 %v5454_v55, 16  ;;  %v4700_v14 = vunpack.c.h.bf16 %v4822_v49  ;;  %v357_v29 = vmul.f32 %v6000_v27, %v4699_v5 }
  0x60   : > { %v1523_v7 = vshll.u32 %v5454_v55, 16  ;;  %v1528_v10 = vshll.u32 %v5455_v63, 16  ;;  %v426_v13 = vmax.f32 %v394_v59, 0.0  ;;  %v680_v18 = vrot.slane %v678_v8, 7  ;;  %v966_v47 = vld [vmem:[#allocation2 + $0x50] sm:$0x1] }
  0x61   : > { %v675_v11 = vor.u32 %v673_v53, %v672_v1  ;;  %v676_v16 = vrot.slane %v672_v1, 4  ;;  %v427_v21 = vmax.f32 %v395_v4, 0.0  ;;  %v358_v40 = vmul.f32 %v6000_v27, %v4700_v14  ;;  %v6034_v8 = vld [vmem:[#allocation2 + $0x18] sm:$0xff]  }
  0x62   : > { %v1525_v15 = vrot.slane %v1523_v7, 1  ;;  %v1530_v24 = vrot.slane %v1528_v10, 1  ;;  %v4619_v25 = vpack.c.bf16 %v426_v13, %v426_v13  ;;  %v683_v34 = vor.u32 %v681_v9, %v680_v18 }
  0x63   : > { %v956_v26 = vsel %vm5768_vm8, %v675_v11, %v955_v61  ;;  %v685_v35 = vrot.slane %v680_v18, 4  ;;  %v4620_v38 = vpack.c.bf16 %v427_v21, %v427_v21  ;;  %v396_v49 = vadd.f32 %v6021_v48, %v357_v29  ;;  %v6044_v18 = vld [vmem:[%s5704_s26 + $0x40] sm:$0xff]   ;;  %v5476_v21 = vld [vmem:[%s7229_s1 + $0x1f0] sm:$0xff]  }
  0x64   : > { %v1526_v31 = vor.u32 %v1525_v15, %v1521_v19  ;;  %957 = vst [vmem:[#allocation2 + $0x3c] sm:$0xf] %v956_v26  ;;  %v687_v33 = vshrl.u32 %v4619_v25, 16  ;;  %v690_v39 = vshll.u32 %v4619_v25, 16  ;;  %v684_v43 = vsel %vm5762_vm7, %v676_v16, %v683_v34  ;;  %v4823_v19 = vld [vmem:[%s5704_s26 + $0x38] sm:$0xff]  }
  0x65   : > { %v960_v17 = vsel %vm5774_vm9, %v685_v35, %v959_v20  ;;  %v695_v28 = vshrl.u32 %v4620_v38, 16  ;;  %958 = vst [vmem:[#allocation2 + $0x40] sm:$0xf] %v684_v43  ;;  %v698_v46 = vshll.u32 %v4620_v38, 16  ;;  %v397_v50 = vadd.f32 %v6021_v48, %v358_v40 }
  0x66   : > { %v1531_v41 = vsel %vm1339_vm1, %v1526_v31, %v1530_v24  ;;  %v6010_v42 = vld [vmem:[#allocation2 + $0x30] sm:$0xff]   ;;  %v6016_v37 = vld [vmem:[#allocation2 + $0x38] ss:$0 sps:$4 sm:$0x11]   ;;  %961 = vst [vmem:[#allocation2 + $0x44] sm:$0x1] %v960_v17  ;;  %v4703_v26 = vunpack.c.l.bf16 %v4823_v19  ;;  %v4704_v31 = vunpack.c.h.bf16 %v4823_v19  ;;  %v4707_v40 = vunpack.c.l.bf16 %v6044_v18 }
  0x67   : > { %3173 = vmatprep.mubr.bf16.mxu1 %v1531_v41  ;;  %v689_v45 = vrot.slane %v687_v33, 7  ;;  %v1389_v51 = vshrl.u32 %v6010_v42, 16  ;;  %v1391_v52 = vshll.u32 %v6010_v42, 16  ;;  %v697_v53 = vrot.slane %v695_v28, 7  ;;  %v973_v33 = vld [vmem:[#allocation2 + $0x5c] sm:$0x1] }
  0x68   : > { %3174 = vmatmul.mubr.bf16.gmra.mxu1 %v5454_v55  ;;  %v1552_v54 = vrot.slane %v5818_v22, 1  ;;  %v1396_v56 = vshll.u32 %v6016_v37, 16  ;;  %v428_v59 = vmax.f32 %v396_v49, 0.0  ;;  %v429_v5 = vmax.f32 %v397_v50, 0.0  ;;  %v5468_v55 = vld [vmem:[%s7229_s1 + $0x1b8] sm:$0xff]   ;;  %v5480_v28 = vld [vmem:[%s7229_s1 + $0x1b0] sm:$0xff]  }
  0x69   : > { %3214 = vmatprep.mubr.bf16.mxu1 %v6006_v32  ;;  %v692_v58 = vor.u32 %v690_v39, %v689_v45  ;;  %v693_v61 = vrot.slane %v689_v45, 4  ;;  %v1393_v63 = vrot.slane %v1391_v52, 1  ;;  %v700_v1 = vor.u32 %v698_v46, %v697_v53 }
  0x6a   : > { %v702_v4 = vrot.slane %v697_v53, 4  ;;  %v1398_v7 = vrot.slane %v1396_v56, 1  ;;  %v1553_v10 = vrot.slane %v5820_v23, 1  ;;  %v4621_v11 = vpack.c.bf16 %v428_v59, %v428_v59  ;;  %v5487_v53 = vld [vmem:[%s7229_s1 + $0x1e8] sm:$0xff]  }
  0x6b   : > { %v963_v9 = vsel %vm5768_vm8, %v692_v58, %v962_v44  ;;  %v1394_v13 = vor.u32 %v1393_v63, %v1389_v51  ;;  %v701_v14 = vsel %vm5762_vm7, %v693_v61, %v700_v1  ;;  %v4622_v16 = vpack.c.bf16 %v429_v5, %v429_v5  ;;  %v5492_v56 = vld [vmem:[%s7229_s1 + $0x148] sm:$0xff]  }
  0x6c   : > { %964 = vst [vmem:[#allocation2 + $0x48] sm:$0xf] %v963_v9  ;;  %v967_v15 = vsel %vm5774_vm9, %v702_v4, %v966_v47  ;;  %965 = vst [vmem:[#allocation2 + $0x4c] sm:$0xf] %v701_v14  ;;  %v704_v12 = vshrl.u32 %v4621_v11, 16  ;;  %v707_v23 = vshll.u32 %v4621_v11, 16  ;;  %v359_v39 = vmul.f32 %v6000_v27, %v4703_v26  ;;  %5083 = vmatprep.subr.bf16.mxu0 %v5492_v56 }
  0x6d   : > { %968 = vst [vmem:[#allocation2 + $0x50] sm:$0x1] %v967_v15  ;;  %v1555_v24 = vrot.slane %v5898_v60, 1  ;;  %v1399_v20 = vsel %vm1339_vm1, %v1394_v13, %v1398_v7  ;;  %v6051_v25 = vld [vmem:[#allocation2 + $0x3c] sm:$0xff]   ;;  %v712_v29 = vshrl.u32 %v4622_v16, 16  ;;  %v715_v38 = vshll.u32 %v4622_v16, 16 }
  0x6e   : > { %3085 = vmatprep.mubr.bf16.mxu0 %v1399_v20  ;;  %v6053_v34 = vld [vmem:[#allocation2 + $0x44] ss:$0 sps:$4 sm:$0x11]   ;;  %v706_v35 = vrot.slane %v704_v12, 7  ;;  %v1401_v41 = vshrl.u32 %v6051_v25, 16  ;;  %v1403_v43 = vshll.u32 %v6051_v25, 16  ;;  %v360_v44 = vmul.f32 %v6000_v27, %v4704_v31 }
  0x6f   : > { %3086 = vmatmul.mubr.bf16.gmra.mxu0 %v6010_v42  ;;  %v714_v17 = vrot.slane %v712_v29, 7  ;;  %v1408_v45 = vshll.u32 %v6053_v34, 16  ;;  %v398_v49 = vadd.f32 %v6021_v48, %v359_v39  ;;  %v1554_v61 = vsel %vm1548_vm0, %v1552_v54, %v1553_v10  ;;  %v6078_v59 = vld [vmem:[#allocation2 + $0x24] sm:$0xff]  }
  0x70   : > { %3215 = vmatmul.mubr.bf16.vlgmr.msra.gmra.mxu1 %v5740_v36  ;;  %v709_v46 = vor.u32 %v707_v23, %v706_v35  ;;  %v710_v47 = vrot.slane %v706_v35, 4  ;;  %v1405_v50 = vrot.slane %v1403_v43, 1  ;;  %v399_v52 = vadd.f32 %v6021_v48, %v360_v44  ;;  %v5490_v4 = vld [vmem:[%s7229_s1 + $0x1a8] sm:$0xff]   ;;  %v976_v35 = vld [vmem:[#allocation2 + $0x60] sm:$0xf] }
  0x71   : > { %5184 = vmatpush3.bf16.msra.mxu1 %v5468_v55  ;;  %3222 = vmatprep.mubr.bf16.mxu1 %v6034_v8  ;;  %v717_v51 = vor.u32 %v715_v38, %v714_v17  ;;  %v719_v36 = vrot.slane %v714_v17, 4  ;;  %v1410_v58 = vrot.slane %v1408_v45, 1  ;;  %v430_v1 = vmax.f32 %v398_v49, 0.0  ;;  %v5495_v5 = vld [vmem:[%s7229_s1 + $0x108] sm:$0xff]   ;;  %v5501_v60 = vld [vmem:[%s7229_s1 + $0x140] sm:$0xff]  }
  0x72   : > { %5185 = vmatprep.subr.bf16.mxu1 %v5476_v21  ;;  %v970_v63 = vsel %vm5768_vm8, %v709_v46, %v969_v30  ;;  %v1406_v19 = vor.u32 %v1405_v50, %v1401_v41  ;;  %v431_v55 = vmax.f32 %v399_v52, 0.0  ;;  %v1556_v10 = vrot.slane %v5903_v2, 1  ;;  %5084 = vmatpush3.bf16.msra.mxu0 %v5495_v5  ;;  %v980_v43 = vld [vmem:[#allocation2 + $0x68] sm:$0x1] }
  0x73   : > { %v6088_v7 = vld [vmem:[#allocation2 + $0x48] sm:$0xff]   ;;  %v718_v22 = vsel %vm5762_vm7, %v710_v47, %v717_v51  ;;  %971 = vst [vmem:[#allocation2 + $0x54] sm:$0xf] %v970_v63  ;;  %v974_v54 = vsel %vm5774_vm9, %v719_v36, %v973_v33  ;;  %v4623_v11 = vpack.c.bf16 %v430_v1, %v430_v1  ;;  %v4708_v13 = vunpack.c.h.bf16 %v6044_v18  ;;  %v5497_v18 = vld [vmem:[%s7229_s1 + $0x1e0] sm:$0xff]   ;;  %5085 = vmatprep.subr.bf16.mxu0 %v5501_v60 }
  0x74   : > { %v6094_v9 = vld [vmem:[#allocation2 + $0x50] ss:$0 sps:$4 sm:$0x11]   ;;  %972 = vst [vmem:[#allocation2 + $0x58] sm:$0xf] %v718_v22  ;;  %v361_v14 = vmul.f32 %v6000_v27, %v4707_v40  ;;  %v1411_v15 = vsel %vm1339_vm1, %v1406_v19, %v1410_v58  ;;  %v1413_v16 = vshrl.u32 %v6088_v7, 16  ;;  %v4624_v12 = vpack.c.bf16 %v431_v55, %v431_v55 }
  0x75   : > { %975 = vst [vmem:[#allocation2 + $0x5c] sm:$0x1] %v974_v54  ;;  %5186 = vmatpush3.bf16.msra.mxu1 %v5480_v28  ;;  %v1415_v21 = vshll.u32 %v6088_v7, 16  ;;  %3093 = vmatprep.mubr.bf16.mxu0 %v1411_v15  ;;  %v1420_v23 = vshll.u32 %v6094_v9, 16  ;;  %v721_v2 = vshrl.u32 %v4623_v11, 16  ;;  %v724_v26 = vshll.u32 %v4623_v11, 16 }
  0x76   : > { %5187 = vmatprep.subr.bf16.mxu1 %v5487_v53  ;;  %v362_v20 = vmul.f32 %v6000_v27, %v4708_v13  ;;  %v729_v30 = vshrl.u32 %v4624_v12, 16  ;;  %v732_v31 = vshll.u32 %v4624_v12, 16  ;;  %v400_v38 = vadd.f32 %v6021_v48, %v361_v14  ;;  %v4825_v33 = vld [vmem:[%s5704_s26 + $0x48] sm:$0xff]   ;;  %v5500_v28 = vld [vmem:[%s7229_s1 + $0x1a0] sm:$0xff]  }
  0x77   : > { %3094 = vmatmul.mubr.bf16.gmra.mxu0 %v6051_v25  ;;  %v1417_v29 = vrot.slane %v1415_v21, 1  ;;  %v1422_v39 = vrot.slane %v1420_v23, 1  ;;  %v1557_v40 = vsel %vm1548_vm0, %v1555_v24, %v1556_v10  ;;  %v723_v41 = vrot.slane %v721_v2, 7  ;;  %v6122_v24 = vld [vmem:[#allocation2 + $0x30] sm:$0xff]  }
  0x78   : > { %3223 = vmatmul.mubr.bf16.gmra.mxu1 %v1554_v61  ;;  %v401_v17 = vadd.f32 %v6021_v48, %v362_v20  ;;  %v731_v45 = vrot.slane %v729_v30, 7  ;;  %v1558_v46 = vrot.slane %v5949_v62, 1  ;;  %v432_v47 = vmax.f32 %v400_v38, 0.0  ;;  %v987_v21 = vld [vmem:[#allocation2 + $0x74] sm:$0x1] }
  0x79   : > { %3230 = vmatprep.mubr.bf16.mxu1 %v6078_v59  ;;  %5188 = vmatpush3.bf16.msra.mxu1 %v5490_v4  ;;  %v1418_v44 = vor.u32 %v1417_v29, %v1413_v16  ;;  %v726_v49 = vor.u32 %v724_v26, %v723_v41  ;;  %v727_v50 = vrot.slane %v723_v41, 4  ;;  %v4711_v36 = vunpack.c.l.bf16 %v4825_v33  ;;  %v983_v16 = vld [vmem:[#allocation2 + $0x6c] sm:$0xf] }
  0x7a   : > { %5189 = vmatprep.subr.bf16.mxu1 %v5497_v18  ;;  %v433_v51 = vmax.f32 %v401_v17, 0.0  ;;  %v734_v56 = vor.u32 %v732_v31, %v731_v45  ;;  %v736_v58 = vrot.slane %v731_v45, 4  ;;  %v4625_v61 = vpack.c.bf16 %v432_v47, %v432_v47  ;;  %v4826_v18 = vld [vmem:[%s5704_s26 + $0x50] sm:$0xff]   ;;  %v6151_v17 = vld [vmem:[#allocation2 + $0x3c] sm:$0xff]  }
  0x7b   : > { %v1423_v52 = vsel %vm1339_vm1, %v1418_v44, %v1422_v39  ;;  %v6125_v53 = vld [vmem:[#allocation2 + $0x54] sm:$0xff]   ;;  %v977_v63 = vsel %vm5768_vm8, %v726_v49, %v976_v35  ;;  %v1559_v1 = vrot.slane %v5951_v6, 1  ;;  %v4712_v5 = vunpack.c.h.bf16 %v4825_v33  ;;  %v5502_v35 = vld [vmem:[%s7229_s1 + $0x100] sm:$0xff]  }
  0x7c   : > { %3101 = vmatprep.mubr.bf16.mxu0 %v1423_v52  ;;  %v6127_v62 = vld [vmem:[#allocation2 + $0x5c] ss:$0 sps:$4 sm:$0x11]   ;;  %v4626_v4 = vpack.c.bf16 %v433_v51, %v433_v51  ;;  %v1425_v19 = vshrl.u32 %v6125_v53, 16  ;;  %v1427_v22 = vshll.u32 %v6125_v53, 16  ;;  %v735_v54 = vsel %vm5762_vm7, %v727_v50, %v734_v56  ;;  %5086 = vmatpush3.bf16.msra.mxu0 %v5502_v35 }
  0x7d   : > { %5190 = vmatpush3.bf16.msra.mxu1 %v5500_v28  ;;  %978 = vst [vmem:[#allocation2 + $0x60] sm:$0xf] %v977_v63  ;;  %v981_v55 = vsel %vm5774_vm9, %v736_v58, %v980_v43  ;;  %v1432_v10 = vshll.u32 %v6127_v62, 16  ;;  %979 = vst [vmem:[#allocation2 + $0x64] sm:$0xf] %v735_v54  ;;  %v738_v6 = vshrl.u32 %v4625_v61, 16  ;;  %v363_v12 = vmul.f32 %v6000_v27, %v4711_v36 }
  0x7e   : > { %982 = vst [vmem:[#allocation2 + $0x68] sm:$0x1] %v981_v55  ;;  %v741_v11 = vshll.u32 %v4625_v61, 16  ;;  %v746_v13 = vshrl.u32 %v4626_v4, 16  ;;  %v1429_v14 = vrot.slane %v1427_v22, 1  ;;  %v749_v15 = vshll.u32 %v4626_v4, 16 }
  0x7f   : > { %3102 = vmatmul.mubr.bf16.gmra.mxu0 %v6088_v7  ;;  %v364_v23 = vmul.f32 %v6000_v27, %v4712_v5  ;;  %v1434_v2 = vrot.slane %v1432_v10, 1  ;;  %v740_v26 = vrot.slane %v738_v6, 7  ;;  %v402_v30 = vadd.f32 %v6021_v48, %v363_v12  ;;  %v5506_v45 = vld [vmem:[%s7229_s1 + $0x1d8] sm:$0xff]   ;;  %v5513_v12 = vld [vmem:[%s7229_s1 + $0x1d0] sm:$0xff]  }
  0x80   : > { %3231 = vmatmul.mubr.bf16.gmra.mxu1 %v1557_v40  ;;  %v748_v20 = vrot.slane %v746_v13, 7  ;;  %v1430_v29 = vor.u32 %v1429_v14, %v1425_v19  ;;  %v1560_v43 = vsel %vm1548_vm0, %v1558_v46, %v1559_v1  ;;  %v4715_v46 = vunpack.c.l.bf16 %v4826_v18  ;;  %5191 = vmatprep.subr.bf16.mxu1 %v5506_v45  ;;  %v990_v55 = vld [vmem:[#allocation2 + $0x78] sm:$0xf] }
  0x81   : > { %3238 = vmatprep.mubr.bf16.mxu1 %v6122_v24  ;;  %v403_v31 = vadd.f32 %v6021_v48, %v364_v23  ;;  %v743_v38 = vor.u32 %v741_v11, %v740_v26  ;;  %v744_v33 = vrot.slane %v740_v26, 4  ;;  %v434_v28 = vmax.f32 %v402_v30, 0.0  ;;  %v5509_v6 = vld [vmem:[%s7229_s1 + $0x198] sm:$0xff]  }
  0x82   : > { %v751_v39 = vor.u32 %v749_v15, %v748_v20  ;;  %v753_v40 = vrot.slane %v748_v20, 4  ;;  %v1435_v41 = vsel %vm1339_vm1, %v1430_v29, %v1434_v2  ;;  %v1561_v51 = vrot.slane %v6010_v42, 1  ;;  %v6175_v42 = vld [vmem:[%s7229_s1 + $0x238] sm:$0xff]   ;;  %5192 = vmatpush3.bf16.msra.mxu1 %v5509_v6  ;;  %v6189_v2 = vld [vmem:[#allocation2 + $0x48] sm:$0xff]  }
  0x83   : > { %v435_v44 = vmax.f32 %v403_v31, 0.0  ;;  %3109 = vmatprep.mubr.bf16.mxu0 %v1435_v41  ;;  %v984_v60 = vsel %vm5768_vm8, %v743_v38, %v983_v16  ;;  %v4627_v36 = vpack.c.bf16 %v434_v28, %v434_v28  ;;  %v4716_v56 = vunpack.c.h.bf16 %v4826_v18  ;;  %5319 = vmatprep.subr.bf16.mxu0 %v6175_v42  ;;  %v994_v18 = vld [vmem:[#allocation2 + $0x80] sm:$0x1]  ;;  %v1001_v6 = vld [vmem:[#allocation2 + $0x8c] sm:$0x1] }
  0x84   : > { %v752_v47 = vsel %vm5762_vm7, %v744_v33, %v751_v39  ;;  %v988_v49 = vsel %vm5774_vm9, %v753_v40, %v987_v21  ;;  %v6162_v50 = vld [vmem:[#allocation2 + $0x60] sm:$0xff]   ;;  %985 = vst [vmem:[#allocation2 + $0x6c] sm:$0xf] %v984_v60  ;;  %v1562_v61 = vrot.slane %v6016_v37, 1  ;;  %v365_v63 = vmul.f32 %v6000_v27, %v4715_v46  ;;  %5193 = vmatprep.subr.bf16.mxu1 %v5513_v12 }
  0x85   : > { %986 = vst [vmem:[#allocation2 + $0x70] sm:$0xf] %v752_v47  ;;  %989 = vst [vmem:[#allocation2 + $0x74] sm:$0x1] %v988_v49  ;;  %v4628_v52 = vpack.c.bf16 %v435_v44, %v435_v44  ;;  %v1437_v1 = vshrl.u32 %v6162_v50, 16  ;;  %v1439_v4 = vshll.u32 %v6162_v50, 16  ;;  %v366_v10 = vmul.f32 %v6000_v27, %v4716_v56 }
  0x86   : > { %v6165_v58 = vld [vmem:[#allocation2 + $0x68] ss:$0 sps:$4 sm:$0x11]   ;;  %v755_v5 = vshrl.u32 %v4627_v36, 16  ;;  %v758_v19 = vshll.u32 %v4627_v36, 16  ;;  %v404_v14 = vadd.f32 %v6021_v48, %v365_v63  ;;  %v1563_v30 = vsel %vm1548_vm0, %v1561_v51, %v1562_v61 }
  0x87   : > { %3110 = vmatmul.mubr.bf16.gmra.mxu0 %v6125_v53  ;;  %v1444_v22 = vshll.u32 %v6165_v58, 16  ;;  %v763_v37 = vshrl.u32 %v4628_v52, 16  ;;  %v766_v54 = vshll.u32 %v4628_v52, 16  ;;  %v1441_v11 = vrot.slane %v1439_v4, 1  ;;  %v997_v4 = vld [vmem:[#allocation2 + $0x84] sm:$0xf] }
  0x88   : > { %3239 = vmatmul.mubr.bf16.gmra.mxu1 %v1560_v43  ;;  %v757_v13 = vrot.slane %v755_v5, 7  ;;  %v405_v21 = vadd.f32 %v6021_v48, %v366_v10  ;;  %v436_v29 = vmax.f32 %v404_v14, 0.0  ;;  %v1564_v28 = vrot.slane %v6051_v25, 1  ;;  %v5516_v5 = vld [vmem:[%s7229_s1 + $0x190] sm:$0xff]  }
  0x89   : > { %3246 = vmatprep.mubr.bf16.mxu1 %v6151_v17  ;;  %v1446_v15 = vrot.slane %v1444_v22, 1  ;;  %v765_v16 = vrot.slane %v763_v37, 7  ;;  %v1442_v23 = vor.u32 %v1441_v11, %v1437_v1  ;;  %v1565_v44 = vrot.slane %v6053_v34, 1  ;;  %v6214_v22 = vld [vmem:[#allocation2 + $0x54] sm:$0xff]   ;;  %5194 = vmatpush3.bf16.msra.mxu1 %v5516_v5 }
  0x8a   : > { %v760_v26 = vor.u32 %v758_v19, %v757_v13  ;;  %v761_v20 = vrot.slane %v757_v13, 4  ;;  %v437_v41 = vmax.f32 %v405_v21, 0.0  ;;  %v4629_v45 = vpack.c.bf16 %v436_v29, %v436_v29 }
  0x8b   : > { %v768_v31 = vor.u32 %v766_v54, %v765_v16  ;;  %v1447_v35 = vsel %vm1339_vm1, %v1442_v23, %v1446_v15  ;;  %v770_v39 = vrot.slane %v765_v16, 4  ;;  %v1566_v19 = vsel %vm1548_vm0, %v1564_v28, %v1565_v44 }
  0x8c   : > { %v6193_v38 = vld [vmem:[#allocation2 + $0x6c] sm:$0xff]   ;;  %v6195_v33 = vld [vmem:[#allocation2 + $0x74] ss:$0 sps:$4 sm:$0x11]   ;;  %v991_v40 = vsel %vm5768_vm8, %v760_v26, %v990_v55  ;;  %3117 = vmatprep.mubr.bf16.mxu0 %v1447_v35  ;;  %v4630_v25 = vpack.c.bf16 %v437_v41, %v437_v41  ;;  %v772_v51 = vshrl.u32 %v4629_v45, 16  ;;  %v775_v34 = vshll.u32 %v4629_v45, 16 }
  0x8d   : > { %v769_v43 = vsel %vm5762_vm7, %v761_v20, %v768_v31  ;;  %992 = vst [vmem:[#allocation2 + $0x78] sm:$0xf] %v991_v40  ;;  %v1449_v47 = vshrl.u32 %v6193_v38, 16  ;;  %v1451_v60 = vshll.u32 %v6193_v38, 16  ;;  %v1456_v49 = vshll.u32 %v6195_v33, 16  ;;  %v6235_v35 = vld [vmem:[#allocation2 + $0x60] sm:$0xff]  }
  0x8e   : > { %993 = vst [vmem:[#allocation2 + $0x7c] sm:$0xf] %v769_v43  ;;  %v995_v46 = vsel %vm5774_vm9, %v770_v39, %v994_v18  ;;  %v774_v56 = vrot.slane %v772_v51, 7  ;;  %v780_v61 = vshrl.u32 %v4630_v25, 16  ;;  %v783_v63 = vshll.u32 %v4630_v25, 16  ;;  %v5520_v39 = vld [vmem:[%s7229_s1 + $0x1c8] sm:$0xff]  }
  0x8f   : > { %3118 = vmatmul.mubr.bf16.gmra.mxu0 %v6162_v50  ;;  %996 = vst [vmem:[#allocation2 + $0x80] sm:$0x1] %v995_v46  ;;  %v1453_v36 = vrot.slane %v1451_v60, 1  ;;  %v1458_v52 = vrot.slane %v1456_v49, 1  ;;  %v1567_v16 = vrot.slane %v6088_v7, 1  ;;  %v1568_v12 = vrot.slane %v6094_v9, 1  ;;  %5195 = vmatprep.subr.bf16.mxu1 %v5520_v39 }
  0x90   : > { %3247 = vmatmul.mubr.bf16.gmra.mxu1 %v1563_v30  ;;  %v777_v37 = vor.u32 %v775_v34, %v774_v56  ;;  %v778_v54 = vrot.slane %v774_v56, 4  ;;  %v782_v55 = vrot.slane %v780_v61, 7  ;;  %v1570_v41 = vrot.slane %v6125_v53, 1  ;;  %v5504_v43 = vld [vmem:[#allocation2 + $0x14] ss:$0 sps:$4 sm:$0x11]  }
  0x91   : > { %3254 = vmatprep.mubr.bf16.mxu1 %v6189_v2  ;;  %v1454_v1 = vor.u32 %v1453_v36, %v1449_v47  ;;  %v1569_v9 = vsel %vm1548_vm0, %v1567_v16, %v1568_v12  ;;  %v1571_v44 = vrot.slane %v6127_v62, 1  ;;  %v1760_v46 = vshll.u32 %v6006_v32, 16  ;;  %v5523_v53 = vld [vmem:[%s7229_s1 + $0x188] sm:$0xff]   ;;  %v5514_v12 = vld [vmem:[%s7229_s1 + $0x230] sm:$0xff]  }
  0x92   : > { %v785_v13 = vor.u32 %v783_v63, %v782_v55  ;;  %v787_v14 = vrot.slane %v782_v55, 4  ;;  %v998_v15 = vsel %vm5768_vm8, %v777_v37, %v997_v4  ;;  %v1965_v34 = vrot.slane %v6006_v32, 1  ;;  %v6258_v36 = vld [vmem:[#allocation2 + $0x6c] sm:$0xff]   ;;  %5196 = vmatpush3.bf16.msra.mxu1 %v5523_v53 }
  0x93   : > { %v1459_v10 = vsel %vm1339_vm1, %v1454_v1, %v1458_v52  ;;  %999 = vst [vmem:[#allocation2 + $0x84] sm:$0xf] %v998_v15  ;;  %v1572_v51 = vsel %vm1548_vm0, %v1570_v41, %v1571_v44  ;;  %v1966_v62 = vrot.slane %v5504_v43, 1  ;;  %v1765_v61 = vshll.u32 %v5504_v43, 16 }
  0x94   : > { %3125 = vmatprep.mubr.bf16.mxu0 %v1459_v10  ;;  %v786_v20 = vsel %vm5762_vm7, %v778_v54, %v785_v13  ;;  %v1002_v7 = vsel %vm5774_vm9, %v787_v14, %v1001_v6  ;;  %v1758_v63 = vshrl.u32 %v6006_v32, 16  ;;  %v1762_v1 = vrot.slane %v1760_v46, 1  ;;  %v5508_v54 = vld [vmem:[#allocation2 + $0x20] ss:$0 sps:$4 sm:$0x11]  }
  0x95   : > { %v6217_v11 = vld [vmem:[#allocation2 + $0x78] sm:$0xff]   ;;  %1000 = vst [vmem:[#allocation2 + $0x88] sm:$0xf] %v786_v20  ;;  %1003 = vst [vmem:[#allocation2 + $0x8c] sm:$0x1] %v1002_v7  ;;  %v1967_v5 = vsel %vm1548_vm0, %v1965_v34, %v1966_v62  ;;  %v1574_v37 = vrot.slane %v6165_v58, 1 }
  0x96   : > { %v6223_v21 = vld [vmem:[#allocation2 + $0x80] ss:$0 sps:$4 sm:$0x11]   ;;  %v1461_v23 = vshrl.u32 %v6217_v11, 16  ;;  %v1463_v26 = vshll.u32 %v6217_v11, 16  ;;  %v1763_v55 = vor.u32 %v1762_v1, %v1758_v63  ;;  %v1767_v10 = vrot.slane %v1765_v61, 1 }
  0x97   : > { %3126 = vmatmul.mubr.bf16.gmra.mxu0 %v6193_v38  ;;  %v1468_v18 = vshll.u32 %v6223_v21, 16  ;;  %v1772_v32 = vshll.u32 %v6034_v8, 16  ;;  %v1968_v13 = vrot.slane %v6034_v8, 1  ;;  %v1969_v14 = vrot.slane %v5508_v54, 1  ;;  %v6270_v15 = vld [vmem:[#allocation2 + $0x78] sm:$0xff]  }
  0x98   : > { %3255 = vmatmul.mubr.bf16.gmra.mxu1 %v1566_v19  ;;  %v1465_v29 = vrot.slane %v1463_v26, 1  ;;  %v1573_v19 = vrot.slane %v6162_v50, 1  ;;  %v5527_v50 = vld [vmem:[%s7229_s1 + $0x1c0] sm:$0xff]   ;;  %v1770_v58 = vshrl.u32 %v6034_v8, 16  ;;  %v1777_v20 = vshll.u32 %v5508_v54, 16 }
  0x99   : > { %3262 = vmatprep.mubr.bf16.mxu1 %v6214_v22  ;;  %v1470_v30 = vrot.slane %v1468_v18, 1  ;;  %v5511_v16 = vld [vmem:[#allocation2 + $0x2c] ss:$0 sps:$4 sm:$0x11]   ;;  %v1774_v26 = vrot.slane %v1772_v32, 1  ;;  %5197 = vmatprep.subr.bf16.mxu1 %v5527_v50  ;;  %v1970_v7 = vsel %vm1548_vm0, %v1968_v13, %v1969_v14  ;;  %v1576_v18 = vrot.slane %v6193_v38, 1 }
  0x9a   : > { %v1466_v31 = vor.u32 %v1465_v29, %v1461_v23  ;;  %v1575_v6 = vsel %vm1548_vm0, %v1573_v19, %v1574_v37  ;;  %v1768_v23 = vsel %vm1339_vm1, %v1763_v55, %v1767_v10  ;;  %v1577_v8 = vrot.slane %v6195_v33, 1  ;;  %v5530_v29 = vld [vmem:[%s7229_s1 + $0x180] sm:$0xff]   ;;  %v5521_v38 = vld [vmem:[%s7229_s1 + $0x228] sm:$0xff]   ;;  %v5515_v34 = vld [vmem:[#allocation2 + $0x38] ss:$0 sps:$4 sm:$0x11]  }
  0x9b   : > { %v1784_v39 = vshll.u32 %v6078_v59, 16  ;;  %v1972_v41 = vrot.slane %v5511_v16, 1  ;;  %5198 = vmatpush3.bf16.msra.mxu1 %v5530_v29  ;;  %v1975_v37 = vrot.slane %v5515_v34, 1  ;;  %v1794_v10 = vshrl.u32 %v6122_v24, 16 }
  0x9c   : > { %v1471_v40 = vsel %vm1339_vm1, %v1466_v31, %v1470_v30  ;;  %v6243_v28 = vld [vmem:[#allocation2 + $0x84] sm:$0xff]   ;;  %v6247_v45 = vld [vmem:[#allocation2 + $0x8c] ss:$0 sps:$4 sm:$0x11]   ;;  %v1775_v30 = vor.u32 %v1774_v26, %v1770_v58  ;;  %v1779_v31 = vrot.slane %v1777_v20, 1  ;;  %v1578_v33 = vsel %vm1548_vm0, %v1576_v18, %v1577_v8  ;;  %v5542_v18 = vld [vmem:[%s7229_s1 + $0x210] sm:$0xff]  }
  0x9d   : > { %3133 = vmatprep.mubr.bf16.mxu0 %v1471_v40  ;;  %v1473_v47 = vshrl.u32 %v6243_v28, 16  ;;  %v1475_v60 = vshll.u32 %v6243_v28, 16  ;;  %v1480_v49 = vshll.u32 %v6247_v45, 16  ;;  %v4831_v40 = vld [vmem:[%s5704_s26 + $0x78] sm:$0xff]   ;;  %v6295_v43 = vld [vmem:[#allocation2 + $0x84] sm:$0xff]   ;;  %v1786_v53 = vrot.slane %v1784_v39, 1 }
  0x9e   : > { %v4735_v44 = vunpack.c.l.bf16 %v4831_v40  ;;  %v1780_v46 = vsel %vm1339_vm1, %v1775_v30, %v1779_v31  ;;  %v1583_v20 = vrot.slane %v6247_v45, 1  ;;  %v1032_v8 = vld [vmem:[#allocation2 + $0xc0] sm:$0xf]  ;;  %v1977_v39 = vrot.slane %v6151_v17, 1 }
  0x9f   : > { %3134 = vmatmul.mubr.bf16.gmra.mxu0 %v6217_v11  ;;  %v1477_v25 = vrot.slane %v1475_v60, 1  ;;  %v1482_v52 = vrot.slane %v1480_v49, 1  ;;  %v1808_v45 = vshll.u32 %v6151_v17, 16 }
  0xa0   : > { %3263 = vmatmul.mubr.bf16.gmra.mxu1 %v1569_v9  ;;  %v1971_v9 = vrot.slane %v6078_v59, 1  ;;  %v375_v60 = vmul.f32 %v6000_v27, %v4735_v44 }
  0xa1   : > { %3270 = vmatprep.mubr.bf16.mxu1 %v6235_v35  ;;  %v1478_v56 = vor.u32 %v1477_v25, %v1473_v47  ;;  %v1782_v47 = vshrl.u32 %v6078_v59, 16  ;;  %v1789_v25 = vshll.u32 %v5511_v16, 16  ;;  %v1801_v16 = vshll.u32 %v5515_v34, 16  ;;  %v5522_v34 = vld [vmem:[#allocation2 + $0x50] ss:$0 sps:$4 sm:$0x11]  }
  0xa2   : > { %v1973_v62 = vsel %vm1548_vm0, %v1971_v9, %v1972_v41  ;;  %v414_v59 = vadd.f32 %v6021_v48, %v375_v60 }
  0xa3   : > { %v1483_v4 = vsel %vm1339_vm1, %v1478_v56, %v1482_v52  ;;  %v1580_v52 = vrot.slane %v6223_v21, 1  ;;  %v1787_v63 = vor.u32 %v1786_v53, %v1782_v47  ;;  %v1791_v1 = vrot.slane %v1789_v25, 1  ;;  %v6312_v21 = vld [vmem:[#allocation2 + $0x90] sm:$0xff]   ;;  %v5579_v25 = vld [vmem:[#allocation2 + $0x98] ss:$0 sps:$4 sm:$0x11]  }
  0xa4   : > { %3141 = vmatprep.mubr.bf16.mxu0 %v1483_v4  ;;  %v446_v61 = vmax.f32 %v414_v59, 0.0  ;;  %v1974_v4 = vrot.slane %v6122_v24, 1  ;;  %v1803_v9 = vrot.slane %v1801_v16, 1  ;;  %v1806_v47 = vshrl.u32 %v6151_v17, 16  ;;  %v5578_v53 = vld [vmem:[#allocation2 + $0x90] sm:$0xff]   ;;  %v5556_v17 = vld [vmem:[%s7229_s1 + $0x200] sm:$0xff]  }
  0xa5   : > { %v1792_v50 = vsel %vm1339_vm1, %v1787_v63, %v1791_v1  ;;  %v1585_v57 = vrot.slane %v5578_v53, 1  ;;  %v1820_v59 = vshll.u32 %v6189_v2, 16  ;;  %v1818_v63 = vshrl.u32 %v6189_v2, 16 }
  0xa6   : > { %v4639_v54 = vpack.c.bf16 %v446_v61, %v446_v61  ;;  %v1976_v26 = vsel %vm1548_vm0, %v1974_v4, %v1975_v37  ;;  %v1981_v61 = vrot.slane %v5522_v34, 1  ;;  %v1825_v1 = vshll.u32 %v5522_v34, 16 }
  0xa7   : > { %3142 = vmatmul.mubr.bf16.gmra.mxu0 %v6243_v28  ;;  %v1830_v16 = vshrl.u32 %v6214_v22, 16 }
  0xa8   : > { %3271 = vmatmul.mubr.bf16.gmra.mxu1 %v1572_v51  ;;  %3375 = vmatprep.mubr.bf16.mxu0 %v1967_v5  ;;  %v1579_v51 = vrot.slane %v6217_v11, 1  ;;  %v1796_v5 = vshll.u32 %v6122_v24, 16  ;;  %v857_v32 = vshrl.u32 %v4639_v54, 16 }
  0xa9   : > { %3278 = vmatprep.mubr.bf16.mxu1 %v6258_v36 }
  0xaa   : > { %v1581_v19 = vsel %vm1548_vm0, %v1579_v51, %v1580_v52  ;;  %v1798_v58 = vrot.slane %v1796_v5, 1  ;;  %v859_v24 = vrot.slane %v857_v32, 7  ;;  %v1586_v51 = vrot.slane %v5579_v25, 1 }
  0xab   : > { %v1822_v5 = vrot.slane %v1820_v59, 1  ;;  %v1832_v32 = vshll.u32 %v6214_v22, 16 }
  0xac   : > { %v1799_v31 = vor.u32 %v1798_v58, %v1794_v10  ;;  %v6361_v58 = vld [vmem:[#allocation2 + $0xb4] sm:$0xff]  }
  0xaf   : > { %3376 = vmatmul.mubr.bf16.vlgmr.msra.gmra.mxu0 %v1768_v23  ;;  %v5518_v23 = vld [vmem:[#allocation2 + $0x44] ss:$0 sps:$4 sm:$0x11]  }
  0xb0   : > { %3279 = vmatmul.mubr.bf16.gmra.mxu1 %v1575_v6  ;;  %3383 = vmatprep.mubr.bf16.mxu0 %v1970_v7  ;;  %v860_v6 = vshll.u32 %v4639_v54, 16  ;;  %v1813_v60 = vshll.u32 %v5518_v23, 16  ;;  %v5581_v54 = vld [vmem:[#allocation2 + $0xa4] ss:$0 sps:$4 sm:$0x11]  }
  0xb1   : > { %3286 = vmatprep.mubr.bf16.mxu1 %v6270_v15  ;;  %5320 = vmatpush3.bf16.msra.mxu0 %v6175_v42  ;;  %v4736_v42 = vunpack.c.h.bf16 %v4831_v40 }
  0xb2   : > { %5321 = vmatprep.subr.bf16.mxu0 %v5514_v12  ;;  %v862_v29 = vor.u32 %v860_v6, %v859_v24  ;;  %v1815_v52 = vrot.slane %v1813_v60, 1  ;;  %v1827_v6 = vrot.slane %v1825_v1, 1 }
  0xb3   : > { %v376_v49 = vmul.f32 %v6000_v27, %v4736_v42  ;;  %v5528_v27 = vld [vmem:[%s7229_s1 + $0x220] sm:$0xff]   ;;  %v5549_v42 = vld [vmem:[%s7229_s1 + $0x208] sm:$0xff]  }
  0xb4   : > { %v1033_v44 = vsel %vm5768_vm8, %v862_v29, %v1032_v8  ;;  %v5529_v8 = vld [vmem:[#allocation2 + $0x68] ss:$0 sps:$4 sm:$0x11]  }
  0xb5   : > { %5322 = vmatpush3.bf16.msra.mxu0 %v5514_v12  ;;  %v415_v56 = vadd.f32 %v6021_v48, %v376_v49  ;;  %v5535_v48 = vld [vmem:[%s7229_s1 + $0x218] sm:$0xff]   ;;  %v1582_v12 = vrot.slane %v6243_v28, 1  ;;  %v863_v28 = vrot.slane %v859_v24, 4  ;;  %1034 = vst [vmem:[#allocation2 + $0xc0] sm:$0xf] %v1033_v44  ;;  %v1804_v49 = vsel %vm1339_vm1, %v1799_v31, %v1803_v9  ;;  %v5582_v24 = vld [vmem:[#allocation2 + $0xa8] sm:$0xff]  }
  0xb6   : > { %5323 = vmatprep.subr.bf16.mxu0 %v5521_v38  ;;  %v5534_v31 = vld [vmem:[#allocation2 + $0x20] ss:$0 sps:$4 sm:$0x11]   ;;  %v1987_v44 = vrot.slane %v5529_v8, 1  ;;  %v1849_v34 = vshll.u32 %v5529_v8, 16 }
  0xb7   : > { %3384 = vmatmul.mubr.bf16.gmra.mxu0 %v1780_v46  ;;  %v447_v11 = vmax.f32 %v415_v56, 0.0  ;;  %v1584_v40 = vsel %vm1548_vm0, %v1582_v12, %v1583_v20  ;;  %v1810_v46 = vrot.slane %v1808_v45, 1  ;;  %v1587_v56 = vsel %vm1548_vm0, %v1585_v57, %v1586_v51  ;;  %v6380_v51 = vld [vmem:[#allocation2 + $0x24] sm:$0xff]  }
  0xb8   : > { %3287 = vmatmul.mubr.bf16.gmra.mxu1 %v1578_v33  ;;  %3391 = vmatprep.mubr.bf16.mxu0 %v1973_v62  ;;  %v1978_v33 = vrot.slane %v5518_v23, 1  ;;  %v1834_v12 = vrot.slane %v1832_v32, 1  ;;  %v1986_v45 = vrot.slane %v6235_v35, 1  ;;  %v2382_v3 = vrot.slane %v5534_v31, 1 }
  0xb9   : > { %3294 = vmatprep.mubr.bf16.mxu1 %v6295_v43  ;;  %5324 = vmatpush3.bf16.msra.mxu0 %v5521_v38  ;;  %v4640_v55 = vpack.c.bf16 %v447_v11, %v447_v11  ;;  %v6332_v38 = vld [vmem:[#allocation2 + $0x9c] sm:$0xff]   ;;  %v1811_v62 = vor.u32 %v1810_v46, %v1806_v47  ;;  %v6352_v11 = vld [vmem:[#allocation2 + $0xa8] sm:$0xff]   ;;  %v2181_v46 = vshll.u32 %v5534_v31, 16  ;;  %v1989_v32 = vrot.slane %v6258_v36, 1 }
  0xba   : > { %5325 = vmatprep.subr.bf16.mxu0 %v5528_v27  ;;  %v1979_v0 = vsel %vm1548_vm0, %v1977_v39, %v1978_v33  ;;  %v1835_v9 = vor.u32 %v1834_v12, %v1830_v16  ;;  %v1844_v33 = vshll.u32 %v6235_v35, 16  ;;  %v1036_v47 = vld [vmem:[#allocation2 + $0xc8] sm:$0x1]  ;;  %v6404_v31 = vld [vmem:[#allocation2 + $0x38] ss:$0 sps:$4 sm:$0x11]  }
  0xbb   : > { %v865_v13 = vshrl.u32 %v4640_v55, 16  ;;  %v868_v14 = vshll.u32 %v4640_v55, 16  ;;  %v1816_v4 = vsel %vm1339_vm1, %v1811_v62, %v1815_v52  ;;  %v1589_v55 = vrot.slane %v5581_v54, 1  ;;  %v5584_v62 = vld [vmem:[#allocation2 + $0xb4] sm:$0xff]  }
  0xbc   : > { %v1594_v52 = vrot.slane %v5584_v62, 1  ;;  %v2183_v1 = vrot.slane %v2181_v46, 1  ;;  %v6414_v46 = vld [vmem:[#allocation2 + $0x3c] sm:$0xff]   ;;  %v6420_v62 = vld [vmem:[#allocation2 + $0x44] ss:$0 sps:$4 sm:$0x11]  }
  0xbd   : > { %5326 = vmatpush3.bf16.msra.mxu0 %v5528_v27  ;;  %v6324_v7 = vrot.slane %v865_v13, 7  ;;  %v1980_v27 = vrot.slane %v6189_v2, 1  ;;  %v1823_v2 = vor.u32 %v1822_v5, %v1818_v63  ;;  %v5532_v63 = vld [vmem:[#allocation2 + $0x74] ss:$0 sps:$4 sm:$0x11]   ;;  %v2188_v5 = vshll.u32 %v6380_v51, 16 }
  0xbe   : > { %5327 = vmatprep.subr.bf16.mxu0 %v5535_v48 }
  0xbf   : > { %3392 = vmatmul.mubr.bf16.gmra.mxu0 %v1792_v50  ;;  %v870_v30 = vor.u32 %v868_v14, %v6324_v7  ;;  %v1982_v10 = vsel %vm1548_vm0, %v1980_v27, %v1981_v61  ;;  %v1983_v14 = vrot.slane %v6214_v22, 1  ;;  %v1828_v20 = vsel %vm1339_vm1, %v1823_v2, %v1827_v6  ;;  %v5585_v27 = vld [vmem:[#allocation2 + $0xbc] ss:$0 sps:$4 sm:$0x11]  }
  0xc0   : > { %3295 = vmatmul.mubr.bf16.gmra.mxu1 %v1581_v19  ;;  %3399 = vmatprep.mubr.bf16.mxu0 %v1976_v26  ;;  %v5580_v19 = vld [vmem:[#allocation2 + $0x9c] sm:$0xff]   ;;  %v1595_v59 = vrot.slane %v5585_v27, 1  ;;  %v1988_v61 = vsel %vm1548_vm0, %v1986_v45, %v1987_v44  ;;  %v1990_v2 = vrot.slane %v5532_v63, 1  ;;  %v2190_v16 = vrot.slane %v2188_v5, 1 }
  0xc1   : > { %3302 = vmatprep.mubr.bf16.mxu1 %v6312_v21  ;;  %5328 = vmatpush3.bf16.msra.mxu0 %v5535_v48  ;;  %v871_v41 = vsel %vm5762_vm7, %v863_v28, %v870_v30  ;;  %v1588_v37 = vrot.slane %v5580_v19, 1  ;;  %v5525_v48 = vld [vmem:[#allocation2 + $0x5c] ss:$0 sps:$4 sm:$0x11]   ;;  %v1878_v5 = vshrl.u32 %v6295_v43, 16 }
  0xc2   : > { %5329 = vmatprep.subr.bf16.mxu0 %v5542_v18  ;;  %1035 = vst [vmem:[#allocation2 + $0xc4] sm:$0xf] %v871_v41  ;;  %v1984_v50 = vrot.slane %v5525_v48, 1  ;;  %v1837_v23 = vshll.u32 %v5525_v48, 16  ;;  %v6364_v26 = vld [vmem:[#allocation2 + $0x18] sm:$0xff]   ;;  %v872_v41 = vrot.slane %v6324_v7, 4  ;;  %v1991_v8 = vsel %vm1548_vm0, %v1989_v32, %v1990_v2 }
  0xc3   : > { %v1590_v13 = vsel %vm1548_vm0, %v1588_v37, %v1589_v55  ;;  %v5583_v28 = vld [vmem:[#allocation2 + $0xb0] ss:$0 sps:$4 sm:$0x11]   ;;  %v2176_v22 = vshll.u32 %v6364_v26, 16  ;;  %v2174_v57 = vshrl.u32 %v6364_v26, 16  ;;  %v1851_v55 = vrot.slane %v1849_v34, 1 }
  0xc4   : > { %v1985_v29 = vsel %vm1548_vm0, %v1983_v14, %v1984_v50  ;;  %v1592_v30 = vrot.slane %v5583_v28, 1  ;;  %v1839_v39 = vrot.slane %v1837_v23, 1  ;;  %v1037_v53 = vsel %vm5774_vm9, %v872_v41, %v1036_v47  ;;  %v5543_v32 = vld [vmem:[#allocation2 + $0x98] ss:$0 sps:$4 sm:$0x11]  }
  0xc5   : > { %5330 = vmatpush3.bf16.msra.mxu0 %v5542_v18  ;;  %v1591_v18 = vrot.slane %v5582_v24, 1  ;;  %v2178_v25 = vrot.slane %v2176_v22, 1  ;;  %1038 = vst [vmem:[#allocation2 + $0xc8] sm:$0x1] %v1037_v53  ;;  %v1856_v48 = vshll.u32 %v6258_v36, 16  ;;  %v2186_v50 = vshrl.u32 %v6380_v51, 16 }
  0xc6   : > { %5331 = vmatprep.subr.bf16.mxu0 %v5549_v42  ;;  %v1840_v7 = vsel %vm1339_vm1, %v1835_v9, %v1839_v39  ;;  %v1854_v23 = vshrl.u32 %v6258_v36, 16  ;;  %v1861_v24 = vshll.u32 %v5532_v63, 16 }
  0xc7   : > { %3400 = vmatmul.mubr.bf16.gmra.mxu0 %v1804_v49  ;;  %v1593_v60 = vsel %vm1548_vm0, %v1591_v18, %v1592_v30  ;;  %v2191_v30 = vor.u32 %v2190_v16, %v2186_v50  ;;  %v6436_v50 = vld [vmem:[#allocation2 + $0x50] ss:$0 sps:$4 sm:$0x11]  }
  0xc8   : > { %3303 = vmatmul.mubr.bf16.gmra.mxu1 %v1584_v40  ;;  %3407 = vmatprep.mubr.bf16.mxu0 %v1979_v0  ;;  %v1842_v40 = vshrl.u32 %v6235_v35, 16  ;;  %v1846_v0 = vrot.slane %v1844_v33, 1  ;;  %v1863_v36 = vrot.slane %v1861_v24, 1  ;;  %v1992_v33 = vrot.slane %v6270_v15, 1 }
  0xc9   : > { %3310 = vmatprep.mubr.bf16.mxu1 %v6332_v38  ;;  %5332 = vmatpush3.bf16.msra.mxu0 %v5549_v42  ;;  %v5538_v42 = vld [vmem:[#allocation2 + $0x2c] ss:$0 sps:$4 sm:$0x11]   ;;  %v6375_v49 = vld [vmem:[#allocation2 + $0xc0] sm:$0xff]  }
  0xca   : > { %5333 = vmatprep.subr.bf16.mxu0 %v5556_v17  ;;  %v2385_v35 = vrot.slane %v5538_v42, 1  ;;  %v1847_v54 = vor.u32 %v1846_v0, %v1842_v40  ;;  %v2193_v6 = vshll.u32 %v5538_v42, 16  ;;  %v1868_v40 = vshll.u32 %v6270_v15, 16  ;;  %v5539_v0 = vld [vmem:[#allocation2 + $0x8c] ss:$0 sps:$4 sm:$0x11]  }
  0xcc   : > { %v1852_v12 = vsel %vm1339_vm1, %v1847_v54, %v1851_v55  ;;  %v2195_v28 = vrot.slane %v2193_v6, 1 }
  0xcd   : > { %5334 = vmatpush3.bf16.msra.mxu0 %v5556_v17  ;;  %v2381_v17 = vrot.slane %v6364_v26, 1 }
  0xce   : > { %v2196_v44 = vsel %vm1339_vm1, %v2191_v30, %v2195_v28  ;;  %v2229_v30 = vshll.u32 %v6436_v50, 16 }
  0xcf   : > { %3408 = vmatmul.mubr.bf16.gmra.mxu0 %v1816_v4  ;;  %v2179_v4 = vor.u32 %v2178_v25, %v2174_v57  ;;  %v6389_v19 = vsel %vm1548_vm0, %v2381_v17, %v2382_v3  ;;  %v1866_v57 = vshrl.u32 %v6270_v15, 16  ;;  %v1870_v25 = vrot.slane %v1868_v40, 1 }
  0xd0   : > { %3311 = vmatmul.mubr.bf16.gmra.mxu1 %v1587_v56  ;;  %3415 = vmatprep.mubr.bf16.mxu0 %v1982_v10  ;;  %v2384_v56 = vrot.slane %v6380_v51, 1  ;;  %v1596_v10 = vsel %vm1548_vm0, %v1594_v52, %v1595_v59  ;;  %v2212_v52 = vshll.u32 %v6414_v46, 16  ;;  %v1995_v15 = vrot.slane %v6295_v43, 1 }
  0xd1   : > { %3318 = vmatprep.mubr.bf16.mxu1 %v6352_v11  ;;  %v2184_v14 = vsel %vm1339_vm1, %v2179_v4, %v2183_v1  ;;  %v1871_v27 = vor.u32 %v1870_v25, %v1866_v57  ;;  %v1996_v3 = vrot.slane %v5539_v0, 1  ;;  %v2217_v1 = vshll.u32 %v6420_v62, 16  ;;  %v6428_v4 = vld [vmem:[#allocation2 + $0x48] sm:$0xff]   ;;  %v6454_v25 = vld [vmem:[#allocation2 + $0x5c] ss:$0 sps:$4 sm:$0x11]  }
  0xd2   : > { %v6392_v37 = vsel %vm1548_vm0, %v2384_v56, %v2385_v35  ;;  %v2214_v63 = vrot.slane %v2212_v52, 1  ;;  %v2224_v16 = vshll.u32 %v6428_v4, 16 }
  0xd3   : > { %v2219_v6 = vrot.slane %v2217_v1, 1  ;;  %v6466_v1 = vld [vmem:[#allocation2 + $0x60] sm:$0xff]  }
  0xd4   : > { %v2226_v28 = vrot.slane %v2224_v16, 1 }
  0xd7   : > { %3416 = vmatmul.mubr.bf16.gmra.mxu0 %v1828_v20  ;;  %v1858_v20 = vrot.slane %v1856_v48, 1  ;;  %v1885_v48 = vshll.u32 %v5539_v0, 16 }
  0xd8   : > { %3319 = vmatmul.mubr.bf16.gmra.mxu1 %v1590_v13  ;;  %3423 = vmatprep.mubr.bf16.mxu0 %v1985_v29  ;;  %v6397_v13 = vld [vmem:[#allocation2 + $0x30] sm:$0xff]   ;;  %v5536_v29 = vld [vmem:[#allocation2 + $0x80] ss:$0 sps:$4 sm:$0x11]  }
  0xd9   : > { %3326 = vmatprep.mubr.bf16.mxu1 %v6361_v58  ;;  %v2200_v9 = vshll.u32 %v6397_v13, 16  ;;  %v1859_v45 = vor.u32 %v1858_v20, %v1854_v23  ;;  %v1993_v41 = vrot.slane %v5536_v29, 1  ;;  %v2198_v42 = vshrl.u32 %v6397_v13, 16 }
  0xda   : > { %v1873_v35 = vshll.u32 %v5536_v29, 16  ;;  %v1998_v23 = vrot.slane %v6312_v21, 1  ;;  %v1999_v20 = vrot.slane %v5543_v32, 1  ;;  %v2222_v29 = vshrl.u32 %v6428_v4, 16 }
  0xdb   : > { %v2202_v47 = vrot.slane %v2200_v9, 1  ;;  %v1864_v53 = vsel %vm1339_vm1, %v1859_v45, %v1863_v36  ;;  %v6446_v9 = vld [vmem:[#allocation2 + $0x54] sm:$0xff]  }
  0xdc   : > { %v1875_v59 = vrot.slane %v1873_v35, 1 }
  0xdd   : > { %v2203_v34 = vor.u32 %v2202_v47, %v2198_v42  ;;  %v5546_v42 = vld [vmem:[#allocation2 + $0xa4] ss:$0 sps:$4 sm:$0x11]  }
  0xde   : > { %v1876_v54 = vsel %vm1339_vm1, %v1871_v27, %v1875_v59  ;;  %v2001_v27 = vrot.slane %v6332_v38, 1  ;;  %v2002_v59 = vrot.slane %v5546_v42, 1 }
  0xdf   : > { %3424 = vmatmul.mubr.bf16.gmra.mxu0 %v1840_v7  ;;  %v1994_v7 = vsel %vm1548_vm0, %v1992_v33, %v1993_v41  ;;  %v1897_v33 = vshll.u32 %v5543_v32, 16 }
  0xe0   : > { %3327 = vmatmul.mubr.bf16.gmra.mxu1 %v1593_v60  ;;  %3431 = vmatprep.mubr.bf16.mxu0 %v1988_v61  ;;  %v2205_v60 = vshll.u32 %v6404_v31, 16  ;;  %v2210_v61 = vshrl.u32 %v6414_v46, 16  ;;  %v2003_v32 = vsel %vm1548_vm0, %v2001_v27, %v2002_v59 }
  0xe1   : > { %3334 = vmatprep.mubr.bf16.mxu1 %v6375_v49  ;;  %v1899_v0 = vrot.slane %v1897_v33, 1 }
  0xe2   : > { %v2207_v17 = vrot.slane %v2205_v60, 1  ;;  %v2215_v2 = vor.u32 %v2214_v63, %v2210_v61  ;;  %v2227_v60 = vor.u32 %v2226_v28, %v2222_v29  ;;  %v2241_v63 = vshll.u32 %v6454_v25, 16 }
  0xe4   : > { %v2208_v56 = vsel %vm1339_vm1, %v2203_v34, %v2207_v17  ;;  %v1904_v34 = vshll.u32 %v6332_v38, 16 }
  0xe7   : > { %3432 = vmatmul.mubr.bf16.gmra.mxu0 %v1852_v12  ;;  %v1887_v12 = vrot.slane %v1885_v48, 1  ;;  %v1909_v48 = vshll.u32 %v5546_v42, 16  ;;  %v1914_v42 = vshrl.u32 %v6352_v11, 16 }
  0xe8   : > { %3335 = vmatmul.mubr.bf16.gmra.mxu1 %v1596_v10  ;;  %3439 = vmatprep.mubr.bf16.mxu0 %v1991_v8  ;;  %v1997_v10 = vsel %vm1548_vm0, %v1995_v15, %v1996_v3 }
  0xe9   : > { %3536 = vmatprep.mubr.bf16.mxu1 %v2184_v14 }
  0xef   : > { %v4863_v18 = vpop.f32.mrf.mxu0  ;;  %3440 = vmatmul.mubr.bf16.gmra.mxu0 %v1864_v53  ;;  %v2231_v53 = vrot.slane %v2229_v30, 1 }
  0xf0   : > { %3537 = vmatmul.mubr.bf16.vlgmr.msra.gmra.mxu1 %v6364_v26  ;;  %3447 = vmatprep.mubr.bf16.mxu0 %v1994_v7  ;;  %v1880_v26 = vshll.u32 %v6295_v43, 16 }
  0xf1   : > { %v4864_v39 = vpop.f32.mrf.mxu0  ;;  %3544 = vmatprep.mubr.bf16.mxu1 %v2196_v44  ;;  %v2000_v44 = vsel %vm1548_vm0, %v1998_v23, %v1999_v20  ;;  %v2232_v15 = vsel %vm1339_vm1, %v2227_v60, %v2231_v53  ;;  %v1911_v20 = vrot.slane %v1909_v48, 1 }
  0xf2   : > { %v6407_v22 = vadd.f32 %v4864_v39, %v4863_v18  ;;  %v1882_v55 = vrot.slane %v1880_v26, 1  ;;  %v2220_v18 = vsel %vm1339_vm1, %v2215_v2, %v2219_v6  ;;  %v1890_v39 = vshrl.u32 %v6312_v21, 16  ;;  %v5550_v2 = vld [vmem:[#allocation2 + $0xb0] ss:$0 sps:$4 sm:$0x11]  }
  0xf3   : > { %v6434_v14 = vpop.f32.mrf.mxu0  ;;  %v2005_v29 = vrot.slane %v5550_v2, 1  ;;  %v1921_v60 = vshll.u32 %v5550_v2, 16 }
  0xf4   : > { %v1883_v43 = vor.u32 %v1882_v55, %v1878_v5  ;;  %v1906_v55 = vrot.slane %v1904_v34, 1  ;;  %v6490_v34 = vld [vmem:[#allocation2 + $0x74] ss:$0 sps:$4 sm:$0x11]  }
  0xf5   : > { %v6442_v8 = vpop.f32.mrf.mxu0 }
  0xf6   : > { %v1888_v36 = vsel %vm1339_vm1, %v1883_v43, %v1887_v12  ;;  %v2243_v43 = vrot.slane %v2241_v63, 1  ;;  %v6474_v12 = vld [vmem:[#allocation2 + $0x68] ss:$0 sps:$4 sm:$0x11]  }
  0xf7   : > { %3448 = vmatmul.mubr.bf16.gmra.mxu0 %v1876_v54  ;;  %v1902_v54 = vshrl.u32 %v6332_v38, 16  ;;  %v1916_v38 = vshll.u32 %v6352_v11, 16 }
  0xf8   : > { %3545 = vmatmul.mubr.bf16.gmra.mxu1 %v6380_v51  ;;  %3455 = vmatprep.mubr.bf16.mxu0 %v1997_v10  ;;  %v1892_v51 = vshll.u32 %v6312_v21, 16  ;;  %v2236_v21 = vshll.u32 %v6446_v9, 16 }
  0xf9   : > { %3552 = vmatprep.mubr.bf16.mxu1 %v2208_v56  ;;  %v2234_v56 = vshrl.u32 %v6446_v9, 16  ;;  %v1907_v23 = vor.u32 %v1906_v55, %v1902_v54 }
  0xfa   : > { %v1894_v40 = vrot.slane %v1892_v51, 1  ;;  %v2238_v61 = vrot.slane %v2236_v21, 1  ;;  %v2248_v51 = vshll.u32 %v6466_v1, 16  ;;  %v5553_v21 = vld [vmem:[#allocation2 + $0xbc] ss:$0 sps:$4 sm:$0x11]  }
  0xfc   : > { %v4935_v24 = vpop.f32.mrf.mxu1  ;;  %v1895_v7 = vor.u32 %v1894_v40, %v1890_v39  ;;  %v2239_v16 = vor.u32 %v2238_v61, %v2234_v56  ;;  %v2246_v39 = vshrl.u32 %v6466_v1, 16  ;;  %v6482_v40 = vld [vmem:[#allocation2 + $0x6c] sm:$0xff]   ;;  %v2007_v56 = vrot.slane %v6361_v58, 1 }
  0xfd   : > { %v2008_v61 = vrot.slane %v5553_v21, 1 }
  0xfe   : > { %v4936_v45 = vpop.f32.mrf.mxu1  ;;  %v1900_v5 = vsel %vm1339_vm1, %v1895_v7, %v1899_v0  ;;  %v2244_v28 = vsel %vm1339_vm1, %v2239_v16, %v2243_v43  ;;  %v1926_v43 = vshrl.u32 %v6361_v58, 16 }
  0xff   : > { %v6451_v41 = vadd.f32 %v4936_v45, %v4935_v24  ;;  %3456 = vmatmul.mubr.bf16.gmra.mxu0 %v1888_v36  ;;  %v2250_v45 = vrot.slane %v2248_v51, 1  ;;  %v2253_v36 = vshll.u32 %v6474_v12, 16 }
 0x100   : > { %3553 = vmatmul.mubr.bf16.gmra.mxu1 %v6397_v13  ;;  %v4938_v47 = vpop.f32.mrf.mxu1  ;;  %3463 = vmatprep.mubr.bf16.mxu0 %v2000_v44  ;;  %v1912_v44 = vsel %vm1339_vm1, %v1907_v23, %v1911_v20  ;;  %v1933_v23 = vshll.u32 %v5553_v21, 16  ;;  %v2009_v20 = vsel %vm1548_vm0, %v2007_v56, %v2008_v61 }
 0x101   : > { %3560 = vmatprep.mubr.bf16.mxu1 %v2220_v18  ;;  %v2004_v18 = vrot.slane %v6352_v11, 1  ;;  %v2251_v7 = vor.u32 %v2250_v45, %v2246_v39  ;;  %v2255_v0 = vrot.slane %v2253_v36, 1  ;;  %v6510_v39 = vld [vmem:[#allocation2 + $0x80] ss:$0 sps:$4 sm:$0x11]  }
 0x102   : > { %v4869_v57 = vpop.f32.mrf.mxu0  ;;  %v4939_v35 = vpop.f32.mrf.mxu1 }
 0x103   : > { %v6458_v52 = vadd.f32 %v4939_v35, %v4938_v47  ;;  %v1918_v47 = vrot.slane %v1916_v38, 1  ;;  %v2256_v55 = vsel %vm1339_vm1, %v2251_v7, %v2255_v0 }
 0x104   : > { %v4870_v17 = vpop.f32.mrf.mxu0 }
 0x105   : > { %v6461_v26 = vadd.f32 %v4870_v17, %v4869_v57  ;;  %v2006_v57 = vsel %vm1548_vm0, %v2004_v18, %v2005_v29  ;;  %v2260_v17 = vshll.u32 %v6482_v40, 16  ;;  %v1919_v11 = vor.u32 %v1918_v47, %v1914_v42  ;;  %v5557_v18 = vld [vmem:[#allocation2 + $0xc8] ss:$0 sps:$4 sm:$0x11]  }
 0x106   : > { %v4872_v3 = vpop.f32.mrf.mxu0  ;;  %v1940_v42 = vshll.u32 %v6375_v49, 16  ;;  %v1945_v61 = vshll.u32 %v5557_v18, 16 }
 0x107   : > { %3464 = vmatmul.mubr.bf16.gmra.mxu0 %v1900_v5  ;;  %v2258_v5 = vshrl.u32 %v6482_v40, 16  ;;  %v2262_v48 = vrot.slane %v2260_v17, 1  ;;  %v2277_v17 = vshll.u32 %v6510_v39, 16 }
 0x108   : > { %3561 = vmatmul.mubr.bf16.gmra.mxu1 %v6414_v46  ;;  %v4873_v10 = vpop.f32.mrf.mxu0  ;;  %3471 = vmatprep.mubr.bf16.mxu0 %v2003_v32  ;;  %v6502_v32 = vld [vmem:[#allocation2 + $0x78] sm:$0xff]   ;;  %v1942_v56 = vrot.slane %v1940_v42, 1 }
 0x109   : > { %3568 = vmatprep.mubr.bf16.mxu1 %v2232_v15  ;;  %v6472_v6 = vadd.f32 %v4873_v10, %v4872_v3  ;;  %v1923_v15 = vrot.slane %v1921_v60, 1  ;;  %v1928_v3 = vshll.u32 %v6361_v58, 16  ;;  %v2265_v10 = vshll.u32 %v6490_v34, 16 }
 0x10a   : > { %v2272_v45 = vshll.u32 %v6502_v32, 16  ;;  %v2010_v60 = vrot.slane %v6375_v49, 1  ;;  %v2270_v7 = vshrl.u32 %v6502_v32, 16 }
 0x10b   : > { %v4941_v24 = vpop.f32.mrf.mxu1  ;;  %v1924_v16 = vsel %vm1339_vm1, %v1919_v11, %v1923_v15  ;;  %v1930_v51 = vrot.slane %v1928_v3, 1  ;;  %v1938_v11 = vshrl.u32 %v6375_v49, 16 }
 0x10c   : > { %v2274_v0 = vrot.slane %v2272_v45, 1  ;;  %v6538_v45 = vld [vmem:[#allocation2 + $0x90] sm:$0xff]  }
 0x10d   : > { %v4942_v30 = vpop.f32.mrf.mxu1  ;;  %v1931_v58 = vor.u32 %v1930_v51, %v1926_v43  ;;  %v6530_v43 = vld [vmem:[#allocation2 + $0x8c] ss:$0 sps:$4 sm:$0x11]   ;;  %v1943_v51 = vor.u32 %v1942_v56, %v1938_v11 }
 0x10e   : > { %v6484_v33 = vadd.f32 %v4942_v30, %v4941_v24  ;;  %v2267_v30 = vrot.slane %v2265_v10, 1 }
 0x10f   : > { %v4944_v53 = vpop.f32.mrf.mxu1  ;;  %3472 = vmatmul.mubr.bf16.gmra.mxu0 %v1912_v44  ;;  %v1935_v44 = vrot.slane %v1933_v23, 1  ;;  %v1947_v23 = vrot.slane %v1945_v61, 1  ;;  %v6553_v61 = vld [vmem:[#allocation2 + $0x9c] sm:$0xff]  }
 0x110   : > { %3569 = vmatmul.mubr.bf16.gmra.mxu1 %v6428_v4  ;;  %3479 = vmatprep.mubr.bf16.mxu0 %v2006_v57 }
 0x111   : > { %3576 = vmatprep.mubr.bf16.mxu1 %v2244_v28  ;;  %v4945_v35 = vpop.f32.mrf.mxu1  ;;  %v2263_v28 = vor.u32 %v2262_v48, %v2258_v5  ;;  %v1936_v3 = vsel %vm1339_vm1, %v1931_v58, %v1935_v44 }
 0x112   : > { %v6493_v59 = vadd.f32 %v4945_v35, %v4944_v53  ;;  %v2011_v53 = vrot.slane %v5557_v18, 1 }
 0x113   : > { %v4875_v27 = vpop.f32.mrf.mxu0  ;;  %v2268_v35 = vsel %vm1339_vm1, %v2263_v28, %v2267_v30  ;;  %v2289_v30 = vshll.u32 %v6530_v43, 16 }
 0x115   : > { %v4876_v63 = vpop.f32.mrf.mxu0 }
 0x116   : > { %v6498_v54 = vadd.f32 %v4876_v63, %v4875_v27  ;;  %v6520_v27 = vld [vmem:[#allocation2 + $0x84] sm:$0xff]  }
 0x117   : > { %v4878_v2 = vpop.f32.mrf.mxu0  ;;  %3480 = vmatmul.mubr.bf16.gmra.mxu0 %v1924_v16  ;;  %v2279_v16 = vrot.slane %v2277_v17, 1  ;;  %v2284_v49 = vshll.u32 %v6520_v27, 16  ;;  %v2282_v18 = vshrl.u32 %v6520_v27, 16 }
 0x118   : > { %3577 = vmatmul.mubr.bf16.gmra.mxu1 %v6446_v9  ;;  %v4947_v24 = vpop.f32.mrf.mxu1  ;;  %3487 = vmatprep.mubr.bf16.mxu0 %v2009_v20 }
 0x119   : > { %v4879_v38 = vpop.f32.mrf.mxu0  ;;  %3584 = vmatprep.mubr.bf16.mxu1 %v2256_v55  ;;  %v2012_v55 = vsel %vm1548_vm0, %v2010_v60, %v2011_v53  ;;  %v2286_v28 = vrot.slane %v2284_v49, 1  ;;  %v2291_v60 = vrot.slane %v2289_v30, 1  ;;  %v6542_v53 = vld [vmem:[#allocation2 + $0x98] ss:$0 sps:$4 sm:$0x11]  }
 0x11a   : > { %v6508_v29 = vadd.f32 %v4879_v38, %v4878_v2  ;;  %v4948_v36 = vpop.f32.mrf.mxu1  ;;  %v2275_v2 = vor.u32 %v2274_v0, %v2270_v7  ;;  %v2387_v7 = vrot.slane %v6397_v13, 1  ;;  %v2388_v0 = vrot.slane %v6404_v31, 1  ;;  %v6559_v49 = vld [vmem:[#allocation2 + $0xa4] ss:$0 sps:$4 sm:$0x11]  }
 0x11b   : > { %v6514_v47 = vadd.f32 %v4948_v36, %v4947_v24  ;;  %v1948_v36 = vsel %vm1339_vm1, %v1943_v51, %v1947_v23  ;;  %v2287_v42 = vor.u32 %v2286_v28, %v2282_v18  ;;  %v2301_v56 = vshll.u32 %v6542_v53, 16 }
 0x11c   : > { %v4950_v57 = vpop.f32.mrf.mxu1  ;;  %v2280_v24 = vsel %vm1339_vm1, %v2275_v2, %v2279_v16  ;;  %v2308_v51 = vshll.u32 %v6553_v61, 16  ;;  %v2390_v18 = vrot.slane %v6414_v46, 1  ;;  %v2391_v28 = vrot.slane %v6420_v62, 1  ;;  %v6575_v46 = vld [vmem:[#allocation2 + $0xa8] sm:$0xff]  }
 0x11d   : > { %v4881_v21 = vpop.f32.mrf.mxu0  ;;  %v2292_v11 = vsel %vm1339_vm1, %v2287_v42, %v2291_v60  ;;  %v2303_v16 = vrot.slane %v2301_v56, 1  ;;  %v4868_v62 = vadd.f32 %v6442_v8, %v6434_v14  ;;  %v2320_v14 = vshll.u32 %v6575_v46, 16 }
 0x11e   : > { %v4951_v15 = vpop.f32.mrf.mxu1 }
 0x11f   : > { %v4882_v63 = vpop.f32.mrf.mxu0  ;;  %v6525_v5 = vadd.f32 %v4951_v15, %v4950_v57  ;;  %3488 = vmatmul.mubr.bf16.gmra.mxu0 %v1936_v3  ;;  %v2296_v57 = vshll.u32 %v6538_v45, 16  ;;  %v2294_v15 = vshrl.u32 %v6538_v45, 16 }
 0x120   : > { %3585 = vmatmul.mubr.bf16.gmra.mxu1 %v6466_v1  ;;  %v6528_v48 = vadd.f32 %v4882_v63, %v4881_v21  ;;  %3495 = vmatprep.mubr.bf16.mxu0 %v2012_v55 }
 0x121   : > { %3592 = vmatprep.mubr.bf16.mxu1 %v2268_v35  ;;  %v4884_v10 = vpop.f32.mrf.mxu0  ;;  %v2298_v3 = vrot.slane %v2296_v57, 1  ;;  %v2306_v57 = vshrl.u32 %v6553_v61, 16 }
 0x123   : > { %v4885_v20 = vpop.f32.mrf.mxu0  ;;  %v2299_v2 = vor.u32 %v2298_v3, %v2294_v15 }
 0x124   : > { %v6533_v38 = vadd.f32 %v4885_v20, %v4884_v10 }
 0x127   : > { %3496 = vmatmul.mubr.bf16.gmra.mxu0 %v1948_v36 }
 0x128   : > { %v4953_v58 = vpop.f32.mrf.mxu1  ;;  %3593 = vmatmul.mubr.bf16.gmra.mxu1 %v6482_v40  ;;  %5335 = vmatprep.mubr.bf16.mxu0 %v6389_v19  ;;  %v2389_v19 = vsel %vm1548_vm0, %v2387_v7, %v2388_v0  ;;  %v2313_v7 = vshll.u32 %v6559_v49, 16 }
 0x129   : > { %3600 = vmatprep.mubr.bf16.mxu1 %v2280_v24 }
 0x12a   : > { %v4954_v44 = vpop.f32.mrf.mxu1 }
 0x12b   : > { %v6545_v21 = vadd.f32 %v4954_v44, %v4953_v58  ;;  %v2393_v58 = vrot.slane %v6428_v4, 1  ;;  %v2394_v44 = vrot.slane %v6436_v50, 1  ;;  %v2392_v50 = vsel %vm1548_vm0, %v2390_v18, %v2391_v28 }
 0x12c   : > { %v4956_v35 = vpop.f32.mrf.mxu1  ;;  %v2400_v18 = vrot.slane %v6474_v12, 1 }
 0x12d   : > { %v2395_v15 = vsel %vm1548_vm0, %v2393_v58, %v2394_v44  ;;  %v2318_v44 = vshrl.u32 %v6575_v46, 16 }
 0x12e   : > { %v4957_v17 = vpop.f32.mrf.mxu1 }
 0x12f   : > { %v6555_v63 = vadd.f32 %v4957_v17, %v4956_v35  ;;  %v4887_v55 = vpop.f32.mrf.mxu0  ;;  %5336 = vmatmul.mubr.bf16.vlgmr.msra.gmra.mxu0 %v6392_v37  ;;  %v2304_v37 = vsel %vm1339_vm1, %v2299_v2, %v2303_v16  ;;  %v2310_v35 = vrot.slane %v2308_v51, 1  ;;  %v2396_v2 = vrot.slane %v6446_v9, 1  ;;  %v6601_v9 = vld [vmem:[#allocation2 + $0xb4] sm:$0xff]  }
 0x130   : > { %v4975_v10 = vpop.f32.mrf.mxu1  ;;  %3601 = vmatmul.mubr.bf16.gmra.mxu1 %v6502_v32  ;;  %5339 = vmatprep.mubr.bf16.mxu0 %v2389_v19  ;;  %v6586_v19 = vld [vmem:[#allocation2 + $0xb0] ss:$0 sps:$4 sm:$0x11]   ;;  %v2397_v16 = vrot.slane %v6454_v25, 1 }
 0x131   : > { %3608 = vmatprep.mubr.bf16.mxu1 %v2292_v11  ;;  %v4888_v13 = vpop.f32.mrf.mxu0 }
 0x132   : > { %v4976_v31 = vpop.f32.mrf.mxu1  ;;  %v6563_v23 = vadd.f32 %v4888_v13, %v4887_v55  ;;  %v2311_v55 = vor.u32 %v2310_v35, %v2306_v57  ;;  %v2398_v57 = vsel %vm1548_vm0, %v2396_v2, %v2397_v16 }
 0x133   : > { %v4977_v20 = vadd.f32 %v4976_v31, %v4975_v10  ;;  %v4890_v24 = vpop.f32.mrf.mxu0  ;;  %v2315_v10 = vrot.slane %v2313_v7, 1 }
 0x134   : > { %v4978_v30 = vpop.f32.mrf.mxu1 }
 0x135   : > { %v6568_v36 = vadd.f32 %v4977_v20, %v6407_v22  ;;  %v4891_v42 = vpop.f32.mrf.mxu0  ;;  %v2316_v58 = vsel %vm1339_vm1, %v2311_v55, %v2315_v10  ;;  %v2403_v55 = vrot.slane %v6490_v34, 1 }
 0x136   : > { %v4979_v60 = vpop.f32.mrf.mxu1  ;;  %v6579_v22 = vadd.f32 %v4891_v42, %v4890_v24  ;;  %v2399_v24 = vrot.slane %v6466_v1, 1  ;;  %v2322_v42 = vrot.slane %v2320_v14, 1 }
 0x137   : > { %v4980_v0 = vadd.f32 %v4979_v60, %v4978_v30  ;;  %v4893_v4 = vpop.f32.mrf.mxu0  ;;  %5340 = vmatmul.mubr.bf16.gmra.mxu0 %v2392_v50  ;;  %v2325_v60 = vshll.u32 %v6586_v19, 16  ;;  %v6611_v50 = vld [vmem:[#allocation2 + $0xbc] ss:$0 sps:$4 sm:$0x11]  }
 0x138   : > { %v4981_v17 = vpop.f32.mrf.mxu1  ;;  %3609 = vmatmul.mubr.bf16.gmra.mxu1 %v6520_v27  ;;  %5343 = vmatprep.mubr.bf16.mxu0 %v2395_v15  ;;  %v2401_v35 = vsel %vm1548_vm0, %v2399_v24, %v2400_v18  ;;  %v2330_v24 = vshrl.u32 %v6601_v9, 16 }
 0x139   : > { %v6583_v11 = vadd.f32 %v4980_v0, %v4868_v62  ;;  %3616 = vmatprep.mubr.bf16.mxu1 %v2304_v37  ;;  %v4894_v3 = vpop.f32.mrf.mxu0  ;;  %v2323_v0 = vor.u32 %v2322_v42, %v2318_v44 }
 0x13a   : > { %v4982_v56 = vpop.f32.mrf.mxu1  ;;  %v6589_v8 = vadd.f32 %v4894_v3, %v4893_v4  ;;  %v2327_v4 = vrot.slane %v2325_v60, 1 }
 0x13b   : > { %v4983_v13 = vadd.f32 %v4982_v56, %v4981_v17  ;;  %v4896_v31 = vpop.f32.mrf.mxu0  ;;  %v2332_v17 = vshll.u32 %v6601_v9, 16 }
 0x13c   : > { %v4984_v51 = vpop.f32.mrf.mxu1 }
 0x13d   : > { %v6594_v20 = vadd.f32 %v4983_v13, %v6461_v26  ;;  %v4897_v28 = vpop.f32.mrf.mxu0  ;;  %v2405_v13 = vrot.slane %v6502_v32, 1  ;;  %v2334_v18 = vrot.slane %v2332_v17, 1 }
 0x13e   : > { %v4985_v30 = vpop.f32.mrf.mxu1  ;;  %v6603_v25 = vadd.f32 %v4897_v28, %v4896_v31  ;;  %v2406_v31 = vrot.slane %v6510_v39, 1  ;;  %v2337_v28 = vshll.u32 %v6611_v50, 16 }
 0x13f   : > { %v4986_v37 = vadd.f32 %v4985_v30, %v4984_v51  ;;  %v4899_v26 = vpop.f32.mrf.mxu0  ;;  %5344 = vmatmul.mubr.bf16.gmra.mxu0 %v2398_v57  ;;  %v2328_v51 = vsel %vm1339_vm1, %v2323_v0, %v2327_v4  ;;  %v6636_v57 = vld [vmem:[#allocation2 + $0xc8] ss:$0 sps:$4 sm:$0x11]   ;;  %v2409_v0 = vrot.slane %v6530_v43, 1 }
 0x140   : > { %v4987_v1 = vpop.f32.mrf.mxu1  ;;  %3617 = vmatmul.mubr.bf16.gmra.mxu1 %v6538_v45  ;;  %5347 = vmatprep.mubr.bf16.mxu0 %v2401_v35  ;;  %v2407_v44 = vsel %vm1548_vm0, %v2405_v13, %v2406_v31 }
 0x141   : > { %v6608_v12 = vadd.f32 %v4986_v37, %v6472_v6  ;;  %3624 = vmatprep.mubr.bf16.mxu1 %v2316_v58  ;;  %v4900_v7 = vpop.f32.mrf.mxu0  ;;  %v2402_v6 = vrot.slane %v6482_v40, 1  ;;  %v6626_v40 = vld [vmem:[#allocation2 + $0xc0] sm:$0xff]   ;;  %v2335_v37 = vor.u32 %v2334_v18, %v2330_v24 }
 0x142   : > { %v4988_v62 = vpop.f32.mrf.mxu1  ;;  %v6614_v15 = vadd.f32 %v4900_v7, %v4899_v26  ;;  %v2339_v26 = vrot.slane %v2337_v28, 1  ;;  %v2342_v13 = vshrl.u32 %v6626_v40, 16 }
 0x143   : > { %v4989_v3 = vadd.f32 %v4988_v62, %v4987_v1  ;;  %v4902_v56 = vpop.f32.mrf.mxu0  ;;  %v2404_v58 = vsel %vm1548_vm0, %v2402_v6, %v2403_v55  ;;  %v2344_v1 = vshll.u32 %v6626_v40, 16 }
 0x144   : > { %v4990_v10 = vpop.f32.mrf.mxu1 }
 0x145   : > { %v6619_v14 = vadd.f32 %v4989_v3, %v6498_v54  ;;  %v4903_v2 = vpop.f32.mrf.mxu0  ;;  %v2411_v3 = vrot.slane %v6538_v45, 1  ;;  %v2346_v31 = vrot.slane %v2344_v1, 1 }
 0x146   : > { %v4991_v16 = vpop.f32.mrf.mxu1  ;;  %v6628_v34 = vadd.f32 %v4903_v2, %v4902_v56  ;;  %v2412_v56 = vrot.slane %v6542_v53, 1  ;;  %v2349_v2 = vshll.u32 %v6636_v57, 16 }
 0x147   : > { %v4992_v30 = vadd.f32 %v4991_v16, %v4990_v10  ;;  %v4905_v54 = vpop.f32.mrf.mxu0  ;;  %5348 = vmatmul.mubr.bf16.gmra.mxu0 %v2404_v58  ;;  %v2340_v10 = vsel %vm1339_vm1, %v2335_v37, %v2339_v26  ;;  %v6666_v26 = vld [vmem:[#allocation2 + $0xd4] ss:$0 sps:$4 sm:$0x11]  }
 0x148   : > { %v4993_v32 = vpop.f32.mrf.mxu1  ;;  %3625 = vmatmul.mubr.bf16.gmra.mxu1 %v6553_v61  ;;  %5351 = vmatprep.mubr.bf16.mxu0 %v2407_v44  ;;  %v2413_v24 = vsel %vm1548_vm0, %v2411_v3, %v2412_v56 }
 0x149   : > { %v6633_v39 = vadd.f32 %v4992_v30, %v6508_v29  ;;  %3632 = vmatprep.mubr.bf16.mxu1 %v2328_v51  ;;  %v4906_v42 = vpop.f32.mrf.mxu0  ;;  %v2408_v29 = vrot.slane %v6520_v27, 1  ;;  %v6651_v27 = vld [vmem:[#allocation2 + $0xcc] sm:$0xff]   ;;  %v2347_v30 = vor.u32 %v2346_v31, %v2342_v13 }
 0x14a   : > { %v4994_v60 = vpop.f32.mrf.mxu1  ;;  %v6639_v35 = vadd.f32 %v4906_v42, %v4905_v54  ;;  %v2351_v54 = vrot.slane %v2349_v2, 1  ;;  %v2356_v58 = vshll.u32 %v6651_v27, 16  ;;  %v2354_v3 = vshrl.u32 %v6651_v27, 16 }
 0x14b   : > { %v4995_v7 = vadd.f32 %v4994_v60, %v4993_v32  ;;  %v4908_v62 = vpop.f32.mrf.mxu0  ;;  %v2410_v51 = vsel %vm1548_vm0, %v2408_v29, %v2409_v0  ;;  %v2414_v60 = vrot.slane %v6553_v61, 1  ;;  %v2361_v61 = vshll.u32 %v6666_v26, 16 }
 0x14c   : > { %v4996_v4 = vpop.f32.mrf.mxu1  ;;  %v2358_v56 = vrot.slane %v2356_v58, 1 }
 0x14d   : > { %v6644_v17 = vadd.f32 %v4995_v7, %v6528_v48  ;;  %v4909_v6 = vpop.f32.mrf.mxu0  ;;  %v2417_v7 = vrot.slane %v6575_v46, 1 }
 0x14e   : > { %v4997_v55 = vpop.f32.mrf.mxu1  ;;  %v6653_v43 = vadd.f32 %v4909_v6, %v4908_v62  ;;  %v2418_v62 = vrot.slane %v6586_v19, 1  ;;  %v2359_v2 = vor.u32 %v2358_v56, %v2354_v3  ;;  %v2427_v3 = vrot.slane %v6666_v26, 1 }
 0x14f   : > { %v4998_v16 = vadd.f32 %v4997_v55, %v4996_v4  ;;  %v4911_v48 = vpop.f32.mrf.mxu0  ;;  %5352 = vmatmul.mubr.bf16.gmra.mxu0 %v2410_v51  ;;  %v2352_v4 = vsel %vm1339_vm1, %v2347_v30, %v2351_v54  ;;  %v2423_v30 = vrot.slane %v6626_v40, 1  ;;  %v2424_v54 = vrot.slane %v6636_v57, 1 }
 0x150   : > { %v4999_v45 = vpop.f32.mrf.mxu1  ;;  %3633 = vmatmul.mubr.bf16.gmra.mxu1 %v6575_v46  ;;  %5355 = vmatprep.mubr.bf16.mxu0 %v2413_v24  ;;  %v2419_v19 = vsel %vm1548_vm0, %v2417_v7, %v2418_v62  ;;  %v2420_v24 = vrot.slane %v6601_v9, 1 }
 0x151   : > { %v6658_v53 = vadd.f32 %v4998_v16, %v6533_v38  ;;  %3640 = vmatprep.mubr.bf16.mxu1 %v2340_v10  ;;  %v4912_v18 = vpop.f32.mrf.mxu0  ;;  %v2415_v38 = vrot.slane %v6559_v49, 1  ;;  %v2363_v16 = vrot.slane %v2361_v61, 1  ;;  %v2425_v7 = vsel %vm1548_vm0, %v2423_v30, %v2424_v54 }
 0x152   : > { %v5000_v28 = vpop.f32.mrf.mxu1  ;;  %v6662_v32 = vadd.f32 %v4912_v18, %v4911_v48  ;;  %v2421_v18 = vrot.slane %v6611_v50, 1 }
 0x153   : > { %v5001_v44 = vadd.f32 %v5000_v28, %v4999_v45  ;;  %v4914_v42 = vpop.f32.mrf.mxu0 }
 0x154   : > { %v5002_v37 = vpop.f32.mrf.mxu1 }
 0x155   : > { %v6669_v1 = vadd.f32 %v5001_v44, %v6563_v23  ;;  %v4915_v29 = vpop.f32.mrf.mxu0  ;;  %v2416_v23 = vsel %vm1548_vm0, %v2414_v60, %v2415_v38 }
 0x156   : > { %v5003_v0 = vpop.f32.mrf.mxu1  ;;  %v6676_v49 = vadd.f32 %v4915_v29, %v4914_v42  ;;  %v2364_v42 = vsel %vm1339_vm1, %v2359_v2, %v2363_v16 }
 0x157   : > { %v5004_v6 = vadd.f32 %v5003_v0, %v5002_v37  ;;  %v4917_v55 = vpop.f32.mrf.mxu0  ;;  %5356 = vmatmul.mubr.bf16.gmra.mxu0 %v2416_v23  ;;  %v2422_v37 = vsel %vm1548_vm0, %v2420_v24, %v2421_v18 }
 0x158   : > { %v5005_v10 = vpop.f32.mrf.mxu1  ;;  %3641 = vmatmul.mubr.bf16.gmra.mxu1 %v6601_v9  ;;  %5359 = vmatprep.mubr.bf16.mxu0 %v2419_v19 }
 0x159   : > { %v6681_v46 = vadd.f32 %v5004_v6, %v6579_v22  ;;  %3648 = vmatprep.mubr.bf16.mxu1 %v2352_v4  ;;  %v4918_v13 = vpop.f32.mrf.mxu0  ;;  %v2426_v4 = vrot.slane %v6651_v27, 1 }
 0x15a   : > { %v5006_v31 = vpop.f32.mrf.mxu1  ;;  %v6684_v48 = vadd.f32 %v4918_v13, %v4917_v55 }
 0x15b   : > { %v5007_v51 = vadd.f32 %v5006_v31, %v5005_v10  ;;  %v4920_v45 = vpop.f32.mrf.mxu0  ;;  %v2428_v10 = vsel %vm1548_vm0, %v2426_v4, %v2427_v3 }
 0x15c   : > { %v5008_v28 = vpop.f32.mrf.mxu1 }
 0x15d   : > { %v6689_v22 = vadd.f32 %v5007_v51, %v6589_v8  ;;  %v4921_v58 = vpop.f32.mrf.mxu0 }
 0x15e   : > { %v5009_v44 = vpop.f32.mrf.mxu1  ;;  %v6694_v60 = vadd.f32 %v4921_v58, %v4920_v45 }
 0x15f   : > { %v5010_v38 = vadd.f32 %v5009_v44, %v5008_v28  ;;  %v4923_v50 = vpop.f32.mrf.mxu0  ;;  %5360 = vmatmul.mubr.bf16.gmra.mxu0 %v2422_v37 }
 0x160   : > { %v5011_v9 = vpop.f32.mrf.mxu1  ;;  %3649 = vmatmul.mubr.bf16.gmra.mxu1 %v6626_v40  ;;  %5363 = vmatprep.mubr.bf16.mxu0 %v2425_v7 }
 0x161   : > { %v6699_v8 = vadd.f32 %v5010_v38, %v6603_v25  ;;  %3656 = vmatprep.mubr.bf16.mxu1 %v2364_v42  ;;  %v4924_v62 = vpop.f32.mrf.mxu0 }
 0x162   : > { %v5012_v57 = vpop.f32.mrf.mxu1  ;;  %v6702_v0 = vadd.f32 %v4924_v62, %v4923_v50 }
 0x163   : > { %v5013_v29 = vadd.f32 %v5012_v57, %v5011_v9  ;;  %v4926_v40 = vpop.f32.mrf.mxu0 }
 0x164   : > { %v5014_v56 = vpop.f32.mrf.mxu1 }
 0x165   : > { %v6707_v61 = vadd.f32 %v5013_v29, %v6614_v15  ;;  %v4927_v6 = vpop.f32.mrf.mxu0 }
 0x166   : > { %v5015_v25 = vpop.f32.mrf.mxu1  ;;  %v6709_v23 = vadd.f32 %v4927_v6, %v4926_v40 }
 0x167   : > { %v5016_v55 = vadd.f32 %v5015_v25, %v5014_v56  ;;  %v4929_v26 = vpop.f32.mrf.mxu0  ;;  %5364 = vmatmul.mubr.bf16.gmra.mxu0 %v2428_v10 }
 0x168   : > { %v5017_v19 = vpop.f32.mrf.mxu1  ;;  %3657 = vmatmul.mubr.bf16.gmra.mxu1 %v6651_v27 }
 0x169   : > { %v6714_v13 = vadd.f32 %v5016_v55, %v6628_v34  ;;  %v4930_v15 = vpop.f32.mrf.mxu0 }
 0x16a   : > { %v5018_v31 = vpop.f32.mrf.mxu1  ;;  %v4931_v45 = vadd.f32 %v4930_v15, %v4929_v26 }
 0x16b   : > { %v5019_v2 = vadd.f32 %v5018_v31, %v5017_v19  ;;  %v4932_v18 = vpop.f32.mrf.mxu0 }
 0x16c   : > { %v5020_v16 = vpop.f32.mrf.mxu1 }
 0x16d   : > { %v6717_v51 = vadd.f32 %v5019_v2, %v6639_v35  ;;  %v4933_v54 = vpop.f32.mrf.mxu0 }
 0x16e   : > { %v5021_v24 = vpop.f32.mrf.mxu1  ;;  %v4934_v34 = vadd.f32 %v4933_v54, %v4932_v18 }
 0x16f   : > { %v5022_v28 = vadd.f32 %v5021_v24, %v5020_v16  ;;  %v5087_v44 = vpop.f32.mrf.mxu0 }
 0x170   : > { %v5023_v30 = vpop.f32.mrf.mxu1 }
 0x171   : > { %v6720_v27 = vadd.f32 %v5022_v28, %v6653_v43  ;;  %v5088_v37 = vpop.f32.mrf.mxu0 }
 0x172   : > { %v5024_v58 = vpop.f32.mrf.mxu1  ;;  %v5089_v35 = vadd.f32 %v5088_v37, %v5087_v44 }
 0x173   : > { %v5025_v42 = vadd.f32 %v5024_v58, %v5023_v30  ;;  %v5090_v7 = vpop.f32.mrf.mxu0 }
 0x174   : > { %v5026_v38 = vpop.f32.mrf.mxu1  ;;  %v6726_v62 = vadd.f32 %v5089_v35, %v6568_v36 }
 0x175   : > { %v6723_v9 = vadd.f32 %v5025_v42, %v6662_v32  ;;  %v5091_v4 = vpop.f32.mrf.mxu0 }
 0x176   : > { %v5027_v50 = vpop.f32.mrf.mxu1  ;;  %v5092_v3 = vadd.f32 %v5091_v4, %v5090_v7 }
 0x177   : > { %v5028_v57 = vadd.f32 %v5027_v50, %v5026_v38  ;;  %v5093_v40 = vpop.f32.mrf.mxu0 }
 0x178   : > { %v5029_v29 = vpop.f32.mrf.mxu1  ;;  %v6732_v6 = vadd.f32 %v5092_v3, %v6583_v11 }
 0x179   : > { %v6729_v43 = vadd.f32 %v5028_v57, %v6676_v49  ;;  %v5094_v55 = vpop.f32.mrf.mxu0 }
 0x17a   : > { %v5030_v56 = vpop.f32.mrf.mxu1  ;;  %v5095_v19 = vadd.f32 %v5094_v55, %v5093_v40 }
 0x17b   : > { %v5031_v25 = vadd.f32 %v5030_v56, %v5029_v29  ;;  %v5096_v31 = vpop.f32.mrf.mxu0 }
 0x17c   : > { %v5032_v32 = vpop.f32.mrf.mxu1  ;;  %v6738_v2 = vadd.f32 %v5095_v19, %v6594_v20 }
 0x17d   : > { %v6735_v10 = vadd.f32 %v5031_v25, %v6684_v48  ;;  %v5097_v16 = vpop.f32.mrf.mxu0 }
 0x17e   : > { %v5033_v36 = vpop.f32.mrf.mxu1  ;;  %v5098_v24 = vadd.f32 %v5097_v16, %v5096_v31 }
 0x17f   : > { %v5034_v26 = vadd.f32 %v5033_v36, %v5032_v32  ;;  %v5099_v18 = vpop.f32.mrf.mxu0 }
 0x180   : > { %v5035_v49 = vpop.f32.mrf.mxu1  ;;  %v6744_v30 = vadd.f32 %v5098_v24, %v6608_v12 }
 0x181   : > { %v6741_v15 = vadd.f32 %v5034_v26, %v6694_v60  ;;  %v5100_v54 = vpop.f32.mrf.mxu0 }
 0x182   : > { %v5036_v11 = vpop.f32.mrf.mxu1  ;;  %v5101_v44 = vadd.f32 %v5100_v54, %v5099_v18 }
 0x183   : > { %v5037_v28 = vadd.f32 %v5036_v11, %v5035_v49  ;;  %v5102_v42 = vpop.f32.mrf.mxu0 }
 0x184   : > { %v5038_v48 = vpop.f32.mrf.mxu1  ;;  %v6750_v37 = vadd.f32 %v5101_v44, %v6619_v14 }
 0x185   : > { %v6747_v58 = vadd.f32 %v5037_v28, %v6702_v0  ;;  %v5103_v35 = vpop.f32.mrf.mxu0 }
 0x186   : > { %v5039_v20 = vpop.f32.mrf.mxu1  ;;  %v5104_v7 = vadd.f32 %v5103_v35, %v5102_v42 }
 0x187   : > { %v5040_v38 = vadd.f32 %v5039_v20, %v5038_v48  ;;  %v5105_v57 = vpop.f32.mrf.mxu0 }
 0x188   : > { %v5041_v60 = vpop.f32.mrf.mxu1  ;;  %v6756_v4 = vadd.f32 %v5104_v7, %v6633_v39 }
 0x189   : > { %v6753_v50 = vadd.f32 %v5040_v38, %v6709_v23  ;;  %v5106_v3 = vpop.f32.mrf.mxu0 }
 0x18a   : > { %v5042_v12 = vpop.f32.mrf.mxu1  ;;  %v5107_v40 = vadd.f32 %v5106_v3, %v5105_v57 }
 0x18b   : > { %v5043_v29 = vadd.f32 %v5042_v12, %v5041_v60  ;;  %v5108_v14 = vpop.f32.mrf.mxu0 }
 0x18c   : > { %v5044_v0 = vpop.f32.mrf.mxu1  ;;  %v6761_v55 = vadd.f32 %v5107_v40, %v6644_v17 }
 0x18d   : > { %v6758_v56 = vadd.f32 %v5043_v29, %v4931_v45  ;;  %v5109_v19 = vpop.f32.mrf.mxu0 }
 0x18e   : > { %v5045_v25 = vpop.f32.mrf.mxu1  ;;  %v5110_v31 = vadd.f32 %v5109_v19, %v5108_v14 }
 0x18f   : > { %v5046_v32 = vadd.f32 %v5045_v25, %v5044_v0  ;;  %v5111_v49 = vpop.f32.mrf.mxu0 }
 0x190   : > { %v5047_v23 = vpop.f32.mrf.mxu1  ;;  %v6766_v16 = vadd.f32 %v5110_v31, %v6658_v53 }
 0x191   : > { %v6763_v36 = vadd.f32 %v5046_v32, %v4934_v34  ;;  %v5112_v24 = vpop.f32.mrf.mxu0 }
 0x192   : > { %v5048_v26 = vpop.f32.mrf.mxu1  ;;  %v5113_v18 = vadd.f32 %v5112_v24, %v5111_v49 }
 0x193   : > { %v5049_v39 = vadd.f32 %v5048_v26, %v5047_v23  ;;  %v5114_v17 = vpop.f32.mrf.mxu0 }
 0x194   : > { %v5050_v45 = vpop.f32.mrf.mxu1  ;;  %v6772_v54 = vadd.f32 %v5113_v18, %v6669_v1 }
 0x195   : > { %v6769_v11 = vadd.f32 %v5049_v39, %v6451_v41  ;;  %v5115_v44 = vpop.f32.mrf.mxu0 }
 0x196   : > { %v5051_v28 = vpop.f32.mrf.mxu1  ;;  %v5116_v42 = vadd.f32 %v5115_v44, %v5114_v17 }
 0x197   : > { %v5052_v48 = vadd.f32 %v5051_v28, %v5050_v45  ;;  %v5117_v38 = vpop.f32.mrf.mxu0 }
 0x198   : > { %v5053_v34 = vpop.f32.mrf.mxu1  ;;  %v6778_v35 = vadd.f32 %v5116_v42, %v6681_v46 }
 0x199   : > { %v6775_v20 = vadd.f32 %v5052_v48, %v6458_v52  ;;  %v5118_v7 = vpop.f32.mrf.mxu0 }
 0x19a   : > { %v5054_v53 = vpop.f32.mrf.mxu1  ;;  %v5119_v57 = vadd.f32 %v5118_v7, %v5117_v38 }
 0x19b   : > { %v5055_v60 = vadd.f32 %v5054_v53, %v5053_v34  ;;  %v5120_v29 = vpop.f32.mrf.mxu0 }
 0x19c   : > { %v5056_v41 = vpop.f32.mrf.mxu1  ;;  %v6784_v3 = vadd.f32 %v5119_v57, %v6689_v22 }
 0x19d   : > { %v6781_v12 = vadd.f32 %v5055_v60, %v6484_v33  ;;  %v5121_v40 = vpop.f32.mrf.mxu0 }
 0x19e   : > { %v5057_v1 = vpop.f32.mrf.mxu1  ;;  %v5122_v14 = vadd.f32 %v5121_v40, %v5120_v29 }
 0x19f   : > { %v5058_v0 = vadd.f32 %v5057_v1, %v5056_v41  ;;  %v5123_v32 = vpop.f32.mrf.mxu0 }
 0x1a0   : > { %v5059_v52 = vpop.f32.mrf.mxu1  ;;  %v6790_v19 = vadd.f32 %v5122_v14, %v6699_v8 }
 0x1a1   : > { %v6787_v25 = vadd.f32 %v5058_v0, %v6493_v59  ;;  %v5124_v31 = vpop.f32.mrf.mxu0 }
 0x1a2   : > { %v5060_v46 = vpop.f32.mrf.mxu1  ;;  %v5125_v49 = vadd.f32 %v5124_v31, %v5123_v32 }
 0x1a3   : > { %v5061_v23 = vadd.f32 %v5060_v46, %v5059_v52  ;;  %v5126_v39 = vpop.f32.mrf.mxu0 }
 0x1a4   : > { %v5062_v33 = vpop.f32.mrf.mxu1  ;;  %v6796_v24 = vadd.f32 %v5125_v49, %v6707_v61 }
 0x1a5   : > { %v6793_v26 = vadd.f32 %v5061_v23, %v6514_v47  ;;  %v5127_v18 = vpop.f32.mrf.mxu0 }
 0x1a6   : > { %v5063_v22 = vpop.f32.mrf.mxu1  ;;  %v5128_v17 = vadd.f32 %v5127_v18, %v5126_v39 }
 0x1a7   : > { %v5064_v45 = vadd.f32 %v5063_v22, %v5062_v33  ;;  %v5129_v48 = vpop.f32.mrf.mxu0 }
 0x1a8   : > { %v5065_v59 = vpop.f32.mrf.mxu1  ;;  %v6802_v44 = vadd.f32 %v5128_v17, %v6714_v13 }
 0x1a9   : > { %v6799_v28 = vadd.f32 %v5064_v45, %v6525_v5  ;;  %v5130_v42 = vpop.f32.mrf.mxu0 }
 0x1aa   : > { %v5066_v8 = vpop.f32.mrf.mxu1  ;;  %v5131_v38 = vadd.f32 %v5130_v42, %v5129_v48 }
 0x1ab   : > { %v5067_v34 = vadd.f32 %v5066_v8, %v5065_v59  ;;  %v5132_v60 = vpop.f32.mrf.mxu0 }
 0x1ac   : > { %v5068_v47 = vpop.f32.mrf.mxu1  ;;  %v6808_v7 = vadd.f32 %v5131_v38, %v6717_v51 }
 0x1ad   : > { %v6805_v53 = vadd.f32 %v5067_v34, %v6545_v21  ;;  %v5133_v57 = vpop.f32.mrf.mxu0 }
 0x1ae   : > { %v5069_v61 = vpop.f32.mrf.mxu1  ;;  %v5134_v29 = vadd.f32 %v5133_v57, %v5132_v60 }
 0x1af   : > { %v5070_v41 = vadd.f32 %v5069_v61, %v5068_v47  ;;  %v5135_v0 = vpop.f32.mrf.mxu0 }
 0x1b0   : > { %v5199_v5 = vpop.f32.mrf.mxu1  ;;  %v6814_v40 = vadd.f32 %v5134_v29, %v6720_v27 }
 0x1b1   : > { %v6811_v1 = vadd.f32 %v5070_v41, %v6555_v63  ;;  %v5136_v14 = vpop.f32.mrf.mxu0 }
 0x1b2   : > { %v5200_v13 = vpop.f32.mrf.mxu1  ;;  %v5137_v32 = vadd.f32 %v5136_v14, %v5135_v0 }
 0x1b3   : > { %7240 = vst [vmem:[#allocation3_spill] sm:$0xff] %v6811_v1  ;;  %v5201_v52 = vadd.f32 %v5200_v13, %v5199_v5  ;;  %v5138_v23 = vpop.f32.mrf.mxu0 }
 0x1b4   : > { %v5202_v21 = vpop.f32.mrf.mxu1  ;;  %v6820_v31 = vadd.f32 %v5137_v32, %v6723_v9 }
 0x1b5   : > { %v6817_v46 = vadd.f32 %v5201_v52, %v6726_v62  ;;  %v5139_v49 = vpop.f32.mrf.mxu0 }
 0x1b6   : > { %v5203_v51 = vpop.f32.mrf.mxu1  ;;  %v5140_v27 = vadd.f32 %v5139_v49, %v5138_v23 }
 0x1b7   : > { %v5204_v33 = vadd.f32 %v5203_v51, %v5202_v21  ;;  %v5141_v45 = vpop.f32.mrf.mxu0 }
 0x1b8   : > { %v6822_v63 = vpop.f32.mrf.mxu1  ;;  %v6830_v62 = vadd.f32 %v5140_v27, %v6729_v43 }
 0x1b9   : > { %v6825_v22 = vadd.f32 %v5204_v33, %v6732_v6  ;;  %v5142_v18 = vpop.f32.mrf.mxu0 }
 0x1ba   : > { %v6827_v39 = vpop.f32.mrf.mxu1  ;;  %v5143_v17 = vadd.f32 %v5142_v18, %v5141_v45 }
 0x1bb   : > { %v5144_v9 = vpop.f32.mrf.mxu0 }
 0x1bc   : > { %v6832_v59 = vpop.f32.mrf.mxu1  ;;  %v6837_v48 = vadd.f32 %v5143_v17, %v6735_v10 }
 0x1bd   : > { %v5145_v6 = vpop.f32.mrf.mxu0 }
 0x1be   : > { %v6834_v8 = vpop.f32.mrf.mxu1  ;;  %v5146_v47 = vadd.f32 %v5145_v6, %v5144_v9 }
 0x1bf   : > { %v5147_v38 = vpop.f32.mrf.mxu0 }
 0x1c0   : > { %v6839_v34 = vpop.f32.mrf.mxu1  ;;  %v6844_v43 = vadd.f32 %v5146_v47, %v6741_v15 }
 0x1c1   : > { %v5148_v60 = vpop.f32.mrf.mxu0 }
 0x1c2   : > { %v6841_v42 = vpop.f32.mrf.mxu1  ;;  %v5149_v41 = vadd.f32 %v5148_v60, %v5147_v38 }
 0x1c3   : > { %v5150_v57 = vpop.f32.mrf.mxu0 }
 0x1c4   : > { %v6846_v61 = vpop.f32.mrf.mxu1  ;;  %v6851_v10 = vadd.f32 %v5149_v41, %v6747_v58 }
 0x1c5   : > { %v5151_v13 = vpop.f32.mrf.mxu0 }
 0x1c6   : > { %v6848_v5 = vpop.f32.mrf.mxu1  ;;  %v5152_v0 = vadd.f32 %v5151_v13, %v5150_v57 }
 0x1c7   : > { %v5153_v21 = vpop.f32.mrf.mxu0 }
 0x1c8   : > { %v6853_v29 = vpop.f32.mrf.mxu1  ;;  %v6858_v15 = vadd.f32 %v5152_v0, %v6753_v50 }
 0x1c9   : > { %v5154_v32 = vpop.f32.mrf.mxu0 }
 0x1ca   : > { %v6855_v52 = vpop.f32.mrf.mxu1  ;;  %7241 = vst [vmem:[#allocation4_spill] sm:$0xff] %v6858_v15  ;;  %v5155_v51 = vadd.f32 %v5154_v32, %v5153_v21 }
 0x1cb   : > { %v5156_v33 = vpop.f32.mrf.mxu0 }
 0x1cc   : > { %v6860_v14 = vpop.f32.mrf.mxu1  ;;  %v6865_v58 = vadd.f32 %v5155_v51, %v6758_v56 }
 0x1cd   : > { %v5157_v27 = vpop.f32.mrf.mxu0 }
 0x1ce   : > { %v6862_v23 = vpop.f32.mrf.mxu1  ;;  %v5158_v45 = vadd.f32 %v5157_v27, %v5156_v33 }
 0x1cf   : > { %v5159_v17 = vpop.f32.mrf.mxu0 }
 0x1d0   : > { %v6867_v49 = vpop.f32.mrf.mxu1  ;;  %v6872_v50 = vadd.f32 %v5158_v45, %v6763_v36 }
 0x1d1   : > { %v5160_v6 = vpop.f32.mrf.mxu0 }
 0x1d2   : > { %v6869_v18 = vpop.f32.mrf.mxu1  ;;  %v5161_v47 = vadd.f32 %v5160_v6, %v5159_v17 }
 0x1d3   : > { %v5162_v60 = vpop.f32.mrf.mxu0 }
 0x1d4   : > { %v6874_v9 = vpop.f32.mrf.mxu1  ;;  %v6879_v56 = vadd.f32 %v5161_v47, %v6769_v11 }
 0x1d5   : > { %v5163_v57 = vpop.f32.mrf.mxu0 }
 0x1d6   : > { %v6876_v38 = vpop.f32.mrf.mxu1  ;;  %7242 = vst [vmem:[#allocation5_spill] sm:$0xff] %v6879_v56  ;;  %v5164_v13 = vadd.f32 %v5163_v57, %v5162_v60 }
 0x1d7   : > { %v5165_v21 = vpop.f32.mrf.mxu0 }
 0x1d8   : > { %v6881_v41 = vpop.f32.mrf.mxu1  ;;  %v6886_v36 = vadd.f32 %v5164_v13, %v6775_v20 }
 0x1d9   : > { %v5166_v51 = vpop.f32.mrf.mxu0 }
 0x1da   : > { %v6883_v0 = vpop.f32.mrf.mxu1  ;;  %7243 = vst [vmem:[#allocation6_spill] sm:$0xff] %v6886_v36  ;;  %v5167_v33 = vadd.f32 %v5166_v51, %v5165_v21 }
 0x1db   : > { %v5168_v45 = vpop.f32.mrf.mxu0 }
 0x1dc   : > { %v6888_v32 = vpop.f32.mrf.mxu1  ;;  %v6893_v11 = vadd.f32 %v5167_v33, %v6781_v12 }
 0x1dd   : > { %v5169_v6 = vpop.f32.mrf.mxu0 }
 0x1de   : > { %v6890_v27 = vpop.f32.mrf.mxu1  ;;  %7244 = vst [vmem:[#allocation7_spill] sm:$0xff] %v6893_v11  ;;  %v5170_v47 = vadd.f32 %v5169_v6, %v5168_v45 }
 0x1df   : > { %v5171_v57 = vpop.f32.mrf.mxu0 }
 0x1e0   : > { %v6895_v17 = vpop.f32.mrf.mxu1  ;;  %v6900_v20 = vadd.f32 %v5170_v47, %v6787_v25 }
 0x1e1   : > { %v5172_v1 = vpop.f32.mrf.mxu0 }
 0x1e2   : > { %v6897_v60 = vpop.f32.mrf.mxu1  ;;  %7245 = vst [vmem:[#allocation8_spill] sm:$0xff] %v6900_v20  ;;  %v5173_v21 = vadd.f32 %v5172_v1, %v5171_v57 }
 0x1e3   : > { %v5174_v36 = vpop.f32.mrf.mxu0 }
 0x1e4   : > { %v6902_v13 = vpop.f32.mrf.mxu1  ;;  %v6907_v12 = vadd.f32 %v5173_v21, %v6793_v26 }
 0x1e5   : > { %v5175_v56 = vpop.f32.mrf.mxu0 }
 0x1e6   : > { %v6904_v51 = vpop.f32.mrf.mxu1  ;;  %7246 = vst [vmem:[#allocation9_spill] sm:$0xff] %v6907_v12  ;;  %v5176_v45 = vadd.f32 %v5175_v56, %v5174_v36  ;;  %v5210_v36 = vadd.f32 %v6834_v8, %v6832_v59  ;;  %v5219_v59 = vadd.f32 %v6855_v52, %v6853_v29  ;;  %v5216_v52 = vadd.f32 %v6848_v5, %v6846_v61 }
 0x1e7   : > { %v5177_v11 = vpop.f32.mrf.mxu0 }
 0x1e8   : > { %v6909_v33 = vpop.f32.mrf.mxu1  ;;  %v6914_v25 = vadd.f32 %v5176_v45, %v6799_v28  ;;  %v5207_v28 = vadd.f32 %v6827_v39, %v6822_v63  ;;  %v5213_v39 = vadd.f32 %v6841_v42, %v6839_v34 }
 0x1e9   : > { %v5178_v20 = vpop.f32.mrf.mxu0 }
 0x1ea   : > { %v6911_v6 = vpop.f32.mrf.mxu1  ;;  %7247 = vst [vmem:[#allocation10_spill] sm:$0xff] %v6914_v25  ;;  %v5179_v1 = vadd.f32 %v5178_v20, %v5177_v11 }
 0x1eb   : > { %v6920_v15 = vpop.f32.mrf.mxu0 }
 0x1ec   : > { %v6916_v47 = vpop.f32.mrf.mxu1  ;;  %7248 = vst [vmem:[#allocation11_spill] sm:$0xff] %v6920_v15  ;;  %v6923_v26 = vadd.f32 %v5179_v1, %v6805_v53  ;;  %v3547_v53 = vadd.f32 %v5207_v28, %v6738_v2  ;;  %v3550_v1 = vadd.f32 %v5210_v36, %v6744_v30  ;;  %v5222_v30 = vadd.f32 %v6862_v23, %v6860_v14 }
 0x1ed   : > { %v6927_v56 = vpop.f32.mrf.mxu0  ;;  %v3555_v36 = vadd.f32 %v5213_v39, %v6750_v37  ;;  %v5225_v37 = vadd.f32 %v6869_v18, %v6867_v49 }
 0x1ee   : > { %v6918_v57 = vpop.f32.mrf.mxu1  ;;  %7249 = vst [vmem:[#allocation12_spill] sm:$0xff] %v6923_v26  ;;  %7250 = vst [vmem:[#allocation13_spill] sm:$0xff] %v6927_v56  ;;  %v3566_v61 = vadd.f32 %v5222_v30, %v6766_v16 }
 0x1ef   : > { %v5337_v11 = vpop.f32.mrf.mxu0 }
 0x1f0   : > { %v6925_v21 = vpop.f32.mrf.mxu1  ;;  %v6941_v15 = vadd.f32 %v5337_v11, %v3547_v53  ;;  %v3558_v53 = vadd.f32 %v5216_v52, %v6756_v4  ;;  %v5234_v4 = vadd.f32 %v6890_v27, %v6888_v32 }
 0x1f1   : > { %v3699_v25 = vpop.f32.mrf.mxu0 }
 0x1f2   : > { %v6933_v45 = vpop.f32.mrf.mxu1  ;;  %v6961_v8 = vadd.f32 %v3699_v25, %v6817_v46  ;;  %v3563_v25 = vadd.f32 %v5219_v59, %v6761_v55  ;;  %v5231_v55 = vadd.f32 %v6883_v0, %v6881_v41 }
 0x1f3   : > { %v5338_v56 = vpop.f32.mrf.mxu0 }
 0x1f4   : > { %v6935_v20 = vpop.f32.mrf.mxu1  ;;  %v6943_v12 = vadd.f32 %v5338_v56, %v3550_v1 }
 0x1f5   : > { %v3702_v2 = vpop.f32.mrf.mxu0 }
 0x1f6   : > { %v6939_v26 = vpop.f32.mrf.mxu1  ;;  %v4745_v34 = vpack.c.bf16 %v6943_v12, %v6941_v15  ;;  %v6966_v42 = vadd.f32 %v3702_v2, %v6825_v22 }
 0x1f7   : > { %v5341_v56 = vpop.f32.mrf.mxu0 }
 0x1f8   : > { %v6945_v63 = vpop.f32.mrf.mxu1  ;;  %4832 = vst [vmem:[%s6956_s24 + $0x8] sm:$0xff] %v4745_v34   ;;  %v4740_v28 = vpack.c.bf16 %v6966_v42, %v6961_v8  ;;  %v3986_v46 = vadd.f32 %v6966_v42, %v6961_v8  ;;  %v6987_v1 = vadd.f32 %v5341_v56, %v3563_v25  ;;  %v5228_v56 = vadd.f32 %v6876_v38, %v6874_v9 }
 0x1f9   : > { %v3715_v23 = vpop.f32.mrf.mxu0  ;;  %v3582_v25 = vadd.f32 %v5234_v4, %v6790_v19 }
 0x1fa   : > { %v6968_v29 = vpop.f32.mrf.mxu1  ;;  %4741 = vst [vmem:[%s6956_s24] sm:$0xff] %v4740_v28   ;;  %v3987_v22 = vadd.f32 %v3986_v46, %v6941_v15  ;;  %v6989_v2 = vadd.f32 %v3715_v23, %v3555_v36  ;;  %v3579_v23 = vadd.f32 %v5231_v55, %v6784_v3  ;;  %v3574_v36 = vadd.f32 %v5228_v56, %v6778_v35 }
 0x1fb   : > { %v5342_v11 = vpop.f32.mrf.mxu0  ;;  %v5243_v3 = vadd.f32 %v6911_v6, %v6909_v33  ;;  %v5246_v35 = vadd.f32 %v6918_v57, %v6916_v47 }
 0x1fc   : > { %v6977_v14 = vpop.f32.mrf.mxu1  ;;  %v3988_v34 = vadd.f32 %v3987_v22, %v6943_v12  ;;  %v6992_v28 = vadd.f32 %v5342_v11, %v3566_v61  ;;  %v3571_v22 = vadd.f32 %v5225_v37, %v6772_v54  ;;  %v5237_v54 = vadd.f32 %v6897_v60, %v6895_v17 }
 0x1fd   : > { %v3718_v16 = vpop.f32.mrf.mxu0  ;;  %v3595_v57 = vadd.f32 %v5243_v3, %v6808_v7  ;;  %v5255_v7 = vadd.f32 %v6968_v29, %v6945_v63  ;;  %v5252_v3 = vadd.f32 %v6939_v26, %v6935_v20 }
 0x1fe   : > { %v6984_v5 = vpop.f32.mrf.mxu1  ;;  %v3989_v39 = vadd.f32 %v3988_v34, %v6989_v2  ;;  %v4755_v59 = vpack.c.bf16 %v6992_v28, %v6987_v1  ;;  %v7005_v30 = vadd.f32 %v3718_v16, %v3558_v53 }
 0x1ff   : > { %v5345_v49 = vpop.f32.mrf.mxu0  ;;  %v3606_v20 = vadd.f32 %v5252_v3, %v6830_v62 }
 0x200   : > { %v6994_v46 = vpop.f32.mrf.mxu1  ;;  %4834 = vst [vmem:[%s6956_s24 + $0x18] sm:$0xff] %v4755_v59   ;;  %v4750_v18 = vpack.c.bf16 %v7005_v30, %v6989_v2  ;;  %v3990_v41 = vadd.f32 %v3989_v39, %v7005_v30  ;;  %v7025_v61 = vadd.f32 %v5345_v49, %v3579_v23  ;;  %v5240_v59 = vadd.f32 %v6904_v51, %v6902_v13 }
 0x201   : > { %v3731_v32 = vpop.f32.mrf.mxu0  ;;  %v3587_v49 = vadd.f32 %v5237_v54, %v6796_v24  ;;  %v5249_v24 = vadd.f32 %v6933_v45, %v6925_v21 }
 0x202   : > { %v7007_v52 = vpop.f32.mrf.mxu1  ;;  %4833 = vst [vmem:[%s6956_s24 + $0x10] sm:$0xff] %v4750_v18   ;;  %v3991_v27 = vadd.f32 %v3990_v41, %v6987_v1  ;;  %v7027_v11 = vadd.f32 %v3731_v32, %v3571_v22  ;;  %v3598_v18 = vadd.f32 %v5246_v35, %v6814_v40  ;;  %v3590_v51 = vadd.f32 %v5240_v59, %v6802_v44 }
 0x203   : > { %v5346_v38 = vpop.f32.mrf.mxu0  ;;  %v5258_v44 = vadd.f32 %v6984_v5, %v6977_v14  ;;  %v3611_v5 = vadd.f32 %v5255_v7, %v6837_v48  ;;  %v3603_v35 = vadd.f32 %v5249_v24, %v6820_v31  ;;  %v5261_v48 = vadd.f32 %v7007_v52, %v6994_v46 }
 0x204   : > { %v7015_v0 = vpop.f32.mrf.mxu1  ;;  %v3992_v53 = vadd.f32 %v3991_v27, %v6992_v28  ;;  %v7030_v34 = vadd.f32 %v5346_v38, %v3582_v25 }
 0x205   : > { %v3734_v19 = vpop.f32.mrf.mxu0 }
 0x206   : > { %v7022_v9 = vpop.f32.mrf.mxu1  ;;  %v3993_v37 = vadd.f32 %v3992_v53, %v7027_v11  ;;  %v4765_v55 = vpack.c.bf16 %v7030_v34, %v7025_v61  ;;  %v7041_v4 = vadd.f32 %v3734_v19, %v3574_v36 }
 0x207   : > { %v5349_v56 = vpop.f32.mrf.mxu0 }
 0x208   : > { %v5265_v16 = vpop.f32.mrf.mxu1  ;;  %4836 = vst [vmem:[%s6956_s24 + $0x28] sm:$0xff] %v4765_v55   ;;  %v4760_v17 = vpack.c.bf16 %v7041_v4, %v7027_v11  ;;  %v3994_v60 = vadd.f32 %v3993_v37, %v7041_v4  ;;  %v7055_v32 = vadd.f32 %v5349_v56, %v3595_v57  ;;  %v3614_v37 = vadd.f32 %v5258_v44, %v6844_v43 }
 0x209   : > { %v3747_v6 = vpop.f32.mrf.mxu0 }
 0x20a   : > { %v5266_v39 = vpop.f32.mrf.mxu1  ;;  %4835 = vst [vmem:[%s6956_s24 + $0x20] sm:$0xff] %v4760_v17   ;;  %v3995_v47 = vadd.f32 %v3994_v60, %v7025_v61  ;;  %v7057_v27 = vadd.f32 %v3747_v6, %v3587_v49 }
 0x20b   : > { %v5350_v13 = vpop.f32.mrf.mxu0  ;;  %v5267_v31 = vadd.f32 %v5266_v39, %v5265_v16 }
 0x20c   : > { %v5268_v33 = vpop.f32.mrf.mxu1  ;;  %v3996_v23 = vadd.f32 %v3995_v47, %v7030_v34  ;;  %v7060_v22 = vadd.f32 %v5350_v13, %v3598_v18  ;;  %v5264_v13 = vadd.f32 %v7022_v9, %v7015_v0 }
 0x20d   : > { %v3750_v40 = vpop.f32.mrf.mxu0  ;;  %v3627_v39 = vadd.f32 %v5267_v31, %v6865_v58 }
 0x20e   : > { %v5269_v41 = vpop.f32.mrf.mxu1  ;;  %v3997_v38 = vadd.f32 %v3996_v23, %v7057_v27  ;;  %v4775_v36 = vpack.c.bf16 %v7060_v22, %v7055_v32  ;;  %v7071_v53 = vadd.f32 %v3750_v40, %v3590_v51  ;;  %v7251_v40 = vld [vmem:[#allocation4_spill] sm:$0xff] }
 0x20f   : > { %v5353_v19 = vpop.f32.mrf.mxu0  ;;  %v5270_v57 = vadd.f32 %v5269_v41, %v5268_v33  ;;  %v3619_v41 = vadd.f32 %v5261_v48, %v6851_v10  ;;  %v3622_v44 = vadd.f32 %v5264_v13, %v7251_v40  ;;  %v7253_v48 = vld [vmem:[#allocation8_spill] sm:$0xff] }
 0x210   : > { %v5271_v25 = vpop.f32.mrf.mxu1  ;;  %4838 = vst [vmem:[%s6956_s24 + $0x38] sm:$0xff] %v4775_v36   ;;  %v4770_v21 = vpack.c.bf16 %v7071_v53, %v7057_v27  ;;  %v3998_v45 = vadd.f32 %v3997_v38, %v7071_v53  ;;  %v7085_v59 = vadd.f32 %v5353_v19, %v3611_v5 }
 0x211   : > { %v3763_v29 = vpop.f32.mrf.mxu0  ;;  %v3630_v24 = vadd.f32 %v5270_v57, %v6872_v50 }
 0x212   : > { %v5272_v54 = vpop.f32.mrf.mxu1  ;;  %4837 = vst [vmem:[%s6956_s24 + $0x30] sm:$0xff] %v4770_v21   ;;  %v3999_v14 = vadd.f32 %v3998_v45, %v7055_v32  ;;  %v7087_v56 = vadd.f32 %v3763_v29, %v3603_v35 }
 0x213   : > { %v5354_v26 = vpop.f32.mrf.mxu0  ;;  %v5273_v10 = vadd.f32 %v5272_v54, %v5271_v25 }
 0x214   : > { %v5274_v63 = vpop.f32.mrf.mxu1  ;;  %v4000_v17 = vadd.f32 %v3999_v14, %v7060_v22  ;;  %v7090_v60 = vadd.f32 %v5354_v26, %v3614_v37 }
 0x215   : > { %v3766_v43 = vpop.f32.mrf.mxu0 }
 0x216   : > { %v5275_v55 = vpop.f32.mrf.mxu1  ;;  %v4001_v47 = vadd.f32 %v4000_v17, %v7087_v56  ;;  %v4785_v62 = vpack.c.bf16 %v7090_v60, %v7085_v59  ;;  %v7097_v49 = vadd.f32 %v3766_v43, %v3606_v20  ;;  %v7252_v17 = vld [vmem:[#allocation7_spill] sm:$0xff] }
 0x217   : > { %v5357_v51 = vpop.f32.mrf.mxu0  ;;  %v5276_v35 = vadd.f32 %v5275_v55, %v5274_v63 }
 0x218   : > { %v5277_v6 = vpop.f32.mrf.mxu1  ;;  %4840 = vst [vmem:[%s6956_s24 + $0x48] sm:$0xff] %v4785_v62   ;;  %v4780_v46 = vpack.c.bf16 %v7097_v49, %v7087_v56  ;;  %v4002_v52 = vadd.f32 %v4001_v47, %v7097_v49  ;;  %v7110_v0 = vadd.f32 %v5357_v51, %v3627_v39  ;;  %v7254_v62 = vld [vmem:[#allocation5_spill] sm:$0xff] }
 0x219   : > { %v3779_v23 = vpop.f32.mrf.mxu0  ;;  %v3635_v57 = vadd.f32 %v5273_v10, %v7254_v62 }
 0x21a   : > { %v5278_v18 = vpop.f32.mrf.mxu1  ;;  %4839 = vst [vmem:[%s6956_s24 + $0x40] sm:$0xff] %v4780_v46   ;;  %v4003_v33 = vadd.f32 %v4002_v52, %v7085_v59  ;;  %v7113_v36 = vadd.f32 %v3779_v23, %v3619_v41 }
 0x21b   : > { %v5358_v9 = vpop.f32.mrf.mxu0  ;;  %v5279_v38 = vadd.f32 %v5278_v18, %v5277_v6  ;;  %v7255_v18 = vld [vmem:[#allocation6_spill] sm:$0xff] }
 0x21c   : > { %v5280_v16 = vpop.f32.mrf.mxu1  ;;  %v4004_v58 = vadd.f32 %v4003_v33, %v7090_v60  ;;  %v7116_v3 = vadd.f32 %v5358_v9, %v3630_v24  ;;  %v3638_v13 = vadd.f32 %v5276_v35, %v7255_v18  ;;  %v7256_v33 = vld [vmem:[#allocation9_spill] sm:$0xff] }
 0x21d   : > { %v3782_v45 = vpop.f32.mrf.mxu0  ;;  %v3643_v6 = vadd.f32 %v5279_v38, %v7252_v17  ;;  %v7257_v38 = vld [vmem:[#allocation11_spill] sm:$0xff]  ;;  %v7260_v17 = vld [vmem:[#allocation12_spill] sm:$0xff] }
 0x21e   : > { %v5281_v7 = vpop.f32.mrf.mxu1  ;;  %v4005_v50 = vadd.f32 %v4004_v58, %v7113_v36  ;;  %v4795_v29 = vpack.c.bf16 %v7116_v3, %v7110_v0  ;;  %v7121_v14 = vadd.f32 %v3782_v45, %v3622_v44  ;;  %v7258_v58 = vld [vmem:[#allocation13_spill] sm:$0xff] }
 0x21f   : > { %v5282_v19 = vadd.f32 %v5281_v7, %v5280_v16  ;;  %v5361_v37 = vpop.f32.mrf.mxu0 }
 0x220   : > { %v5283_v21 = vpop.f32.mrf.mxu1  ;;  %4842 = vst [vmem:[%s6956_s24 + $0x58] sm:$0xff] %v4795_v29   ;;  %v4790_v26 = vpack.c.bf16 %v7121_v14, %v7113_v36  ;;  %v4006_v20 = vadd.f32 %v4005_v50, %v7121_v14  ;;  %v7133_v51 = vadd.f32 %v5361_v37, %v3643_v6 }
 0x221   : > { %v3646_v25 = vadd.f32 %v5282_v19, %v7253_v48  ;;  %v3795_v31 = vpop.f32.mrf.mxu0  ;;  %v5182_v19 = vadd.f32 %v7258_v58, %v7257_v38 }
 0x222   : > { %v5284_v5 = vpop.f32.mrf.mxu1  ;;  %4841 = vst [vmem:[%s6956_s24 + $0x50] sm:$0xff] %v4790_v26   ;;  %v4007_v47 = vadd.f32 %v4006_v20, %v7110_v0  ;;  %v7135_v46 = vadd.f32 %v3795_v31, %v3635_v57  ;;  %v7259_v26 = vld [vmem:[#allocation10_spill] sm:$0xff] }
 0x223   : > { %v5285_v43 = vadd.f32 %v5284_v5, %v5283_v21  ;;  %v5362_v55 = vpop.f32.mrf.mxu0 }
 0x224   : > { %v5286_v54 = vpop.f32.mrf.mxu1  ;;  %v4008_v52 = vadd.f32 %v4007_v47, %v7116_v3  ;;  %v7138_v16 = vadd.f32 %v5362_v55, %v3646_v25  ;;  %v7261_v25 = vld [vmem:[#allocation3_spill] sm:$0xff] }
 0x225   : > { %v3798_v23 = vpop.f32.mrf.mxu0  ;;  %v3651_v41 = vadd.f32 %v5285_v43, %v7256_v33 }
 0x226   : > { %v5287_v63 = vpop.f32.mrf.mxu1  ;;  %v4009_v24 = vadd.f32 %v4008_v52, %v7135_v46  ;;  %v4805_v7 = vpack.c.bf16 %v7138_v16, %v7133_v51  ;;  %v3799_v9 = vadd.f32 %v3798_v23, %v3638_v13 }
 0x227   : > { %v5288_v40 = vadd.f32 %v5287_v63, %v5286_v54  ;;  %v5365_v21 = vpop.f32.mrf.mxu0  ;;  %v3501_v54 = vadd.f32 %v5182_v19, %v7261_v25 }
 0x228   : > { %v5289_v39 = vpop.f32.mrf.mxu1  ;;  %4844 = vst [vmem:[%s6956_s24 + $0x68] sm:$0xff] %v4805_v7   ;;  %v4800_v10 = vpack.c.bf16 %v3799_v9, %v7135_v46  ;;  %v4010_v50 = vadd.f32 %v4009_v24, %v3799_v9 }
 0x229   : > { %v3811_v5 = vpop.f32.mrf.mxu0  ;;  %v3654_v20 = vadd.f32 %v5288_v40, %v7259_v26 }
 0x22a   : > { %v5290_v44 = vpop.f32.mrf.mxu1  ;;  %4843 = vst [vmem:[%s6956_s24 + $0x60] sm:$0xff] %v4800_v10   ;;  %v4011_v35 = vadd.f32 %v4010_v50, %v7133_v51  ;;  %v3812_v37 = vadd.f32 %v3811_v5, %v3651_v41 }
 0x22b   : > { %v5291_v45 = vadd.f32 %v5290_v44, %v5289_v39  ;;  %v5366_v31 = vpop.f32.mrf.mxu0 }
 0x22c   : > { %v5292_v29 = vpop.f32.mrf.mxu1  ;;  %v4012_v47 = vadd.f32 %v4011_v35, %v7138_v16 }
 0x22d   : > { %v3659_v6 = vadd.f32 %v5291_v45, %v7260_v17  ;;  %v3814_v62 = vpop.f32.mrf.mxu0 }
 0x22e   : > { %v5293_v48 = vpop.f32.mrf.mxu1  ;;  %v4013_v63 = vadd.f32 %v4012_v47, %v3812_v37  ;;  %v3815_v55 = vadd.f32 %v3814_v62, %v3654_v20 }
 0x22f   : > { %v5294_v43 = vadd.f32 %v5293_v48, %v5292_v29  ;;  %v3820_v18 = vadd.f32 %v5365_v21, %v3659_v6 }
 0x230   : > { %v4810_v52 = vpack.c.bf16 %v3815_v55, %v3812_v37  ;;  %v4014_v39 = vadd.f32 %v4013_v63, %v3815_v55 }
 0x231   : > { %v3662_v57 = vadd.f32 %v5294_v43, %v3501_v54 }
 0x232   : > { %4845 = vst [vmem:[%s6956_s24 + $0x70] sm:$0xff] %v4810_v52   ;;  %v4015_v33 = vadd.f32 %v4014_v39, %v3820_v18 }
 0x233   : > { %v3823_v13 = vadd.f32 %v5366_v31, %v3662_v57 }
 0x235   : > { %v4815_v23 = vpack.c.bf16 %v3823_v13, %v3820_v18  ;;  %v4016_v41 = vadd.f32 %v4015_v33, %v3823_v13 }
 0x237   : > { %4846 = vst [vmem:[%s6956_s24 + $0x78] sm:$0xff] %v4815_v23   ;;  %v4017_v24 = vrot.slane %v4016_v41, 4 }
 0x239   : > { %v4018_v7 = vadd.f32 %v4017_v24, %v4016_v41 }
 0x23b   : > { %v4019_v40 = vrot.slane %v4018_v7, 2 }
 0x23d   : > { %v4020_v44 = vadd.f32 %v4019_v40, %v4018_v7 }
 0x23f   : > { %v4021_v38 = vrot.slane %v4020_v44, 1 }
 0x241   : > { %v4022_v58 = vadd.f32 %v4021_v38, %v4020_v44 }
 0x243   : > { %v4023_v19 = vmul.f32 0.00390625, %v4022_v58  ;;  %4056 = vst [vmem:[%s7160_s28] sm:$0x1] %v4022_v58 }
 0x245   : > { %v4032_v21 = vsub.f32 %v7027_v11, %v4023_v19  ;;  %v4033_v45 = vsub.f32 %v7041_v4, %v4023_v19  ;;  %v4034_v10 = vsub.f32 %v7025_v61, %v4023_v19  ;;  %v4035_v50 = vsub.f32 %v7030_v34, %v4023_v19 }
 0x246   : > { %v4036_v29 = vsub.f32 %v7057_v27, %v4023_v19  ;;  %v4037_v5 = vsub.f32 %v7071_v53, %v4023_v19  ;;  %v4038_v35 = vsub.f32 %v7055_v32, %v4023_v19  ;;  %v4039_v26 = vsub.f32 %v7060_v22, %v4023_v19 }
 0x247   : > { %v4040_v20 = vsub.f32 %v7087_v56, %v4023_v19  ;;  %v4041_v17 = vsub.f32 %v7097_v49, %v4023_v19  ;;  %v4042_v11 = vsub.f32 %v7085_v59, %v4023_v19  ;;  %v4043_v4 = vsub.f32 %v7090_v60, %v4023_v19 }
 0x248   : > { %v4044_v61 = vsub.f32 %v7113_v36, %v4023_v19  ;;  %v4045_v34 = vsub.f32 %v7121_v14, %v4023_v19  ;;  %v4046_v27 = vsub.f32 %v7110_v0, %v4023_v19  ;;  %v4047_v53 = vsub.f32 %v7116_v3, %v4023_v19 }
 0x249   : > { %v4048_v32 = vsub.f32 %v7135_v46, %v4023_v19  ;;  %v7180_v6 = vsub.f32 %v3799_v9, %v4023_v19  ;;  %v7183_v22 = vsub.f32 %v7133_v51, %v4023_v19  ;;  %v7186_v56 = vsub.f32 %v7138_v16, %v4023_v19 }
 0x24a   : > { %v7188_v59 = vsub.f32 %v3812_v37, %v4023_v19  ;;  %v7190_v60 = vsub.f32 %v3815_v55, %v4023_v19  ;;  %v7192_v49 = vsub.f32 %v3820_v18, %v4023_v19  ;;  %v7194_v36 = vsub.f32 %v3823_v13, %v4023_v19 }
 0x24b   : > { %v4024_v0 = vsub.f32 %v6961_v8, %v4023_v19  ;;  %v4025_v3 = vsub.f32 %v6966_v42, %v4023_v19  ;;  %v4026_v14 = vsub.f32 %v6941_v15, %v4023_v19  ;;  %v4027_v9 = vsub.f32 %v6943_v12, %v4023_v19 }
 0x24c   : > { %v4028_v16 = vsub.f32 %v6989_v2, %v4023_v19  ;;  %v4029_v25 = vsub.f32 %v7005_v30, %v4023_v19  ;;  %v4030_v43 = vsub.f32 %v6987_v1, %v4023_v19  ;;  %v4031_v42 = vsub.f32 %v6992_v28, %v4023_v19 }
 0x24d   : > { %v4057_v46 = vmul.f32 %v4024_v0, %v4024_v0  ;;  %v4058_v51 = vmul.f32 %v4025_v3, %v4025_v3  ;;  %v4059_v37 = vmul.f32 %v4026_v14, %v4026_v14  ;;  %v4060_v54 = vmul.f32 %v4027_v9, %v4027_v9 }
 0x24e   : > { %v4061_v47 = vmul.f32 %v4028_v16, %v4028_v16  ;;  %v4062_v62 = vmul.f32 %v4029_v25, %v4029_v25  ;;  %v4063_v57 = vmul.f32 %v4030_v43, %v4030_v43  ;;  %v4064_v55 = vmul.f32 %v4031_v42, %v4031_v42 }
 0x24f   : > { %v4089_v48 = vadd.f32 %v4058_v51, %v4057_v46  ;;  %v4065_v18 = vmul.f32 %v4032_v21, %v4032_v21  ;;  %v4066_v13 = vmul.f32 %v4033_v45, %v4033_v45  ;;  %v4067_v39 = vmul.f32 %v4034_v10, %v4034_v10 }
 0x250   : > { %v4068_v23 = vmul.f32 %v4035_v50, %v4035_v50  ;;  %v4069_v41 = vmul.f32 %v4036_v29, %v4036_v29  ;;  %v4070_v24 = vmul.f32 %v4037_v5, %v4037_v5  ;;  %v4071_v40 = vmul.f32 %v4038_v35, %v4038_v35 }
 0x251   : > { %v4090_v31 = vadd.f32 %v4089_v48, %v4059_v37  ;;  %v4072_v44 = vmul.f32 %v4039_v26, %v4039_v26  ;;  %v4073_v58 = vmul.f32 %v4040_v20, %v4040_v20  ;;  %v4074_v0 = vmul.f32 %v4041_v17, %v4041_v17 }
 0x252   : > { %v4075_v21 = vmul.f32 %v4042_v11, %v4042_v11  ;;  %v4076_v45 = vmul.f32 %v4043_v4, %v4043_v4  ;;  %v4077_v10 = vmul.f32 %v4044_v61, %v4044_v61  ;;  %v4078_v50 = vmul.f32 %v4045_v34, %v4045_v34 }
 0x253   : > { %v4091_v8 = vadd.f32 %v4090_v31, %v4060_v54  ;;  %v4079_v29 = vmul.f32 %v4046_v27, %v4046_v27  ;;  %v4080_v5 = vmul.f32 %v4047_v53, %v4047_v53  ;;  %v4081_v35 = vmul.f32 %v4048_v32, %v4048_v32 }
 0x254   : > { %v4082_v26 = vmul.f32 %v7180_v6, %v7180_v6  ;;  %v4083_v17 = vmul.f32 %v7183_v22, %v7183_v22  ;;  %v4084_v4 = vmul.f32 %v7186_v56, %v7186_v56  ;;  %v4085_v34 = vmul.f32 %v7188_v59, %v7188_v59 }
 0x255   : > { %v4092_v15 = vadd.f32 %v4091_v8, %v4061_v47  ;;  %v4086_v53 = vmul.f32 %v7190_v60, %v7190_v60  ;;  %v4087_v6 = vmul.f32 %v7192_v49, %v7192_v49  ;;  %v4088_v22 = vmul.f32 %v7194_v36, %v7194_v36 }
 0x257   : > { %v4093_v63 = vadd.f32 %v4092_v15, %v4062_v62 }
 0x259   : > { %v4094_v12 = vadd.f32 %v4093_v63, %v4063_v57 }
 0x25b   : > { %v4095_v2 = vadd.f32 %v4094_v12, %v4064_v55 }
 0x25d   : > { %v4096_v52 = vadd.f32 %v4095_v2, %v4065_v18 }
 0x25f   : > { %v4097_v30 = vadd.f32 %v4096_v52, %v4066_v13 }
 0x261   : > { %v4098_v33 = vadd.f32 %v4097_v30, %v4067_v39 }
 0x263   : > { %v4099_v1 = vadd.f32 %v4098_v33, %v4068_v23 }
 0x265   : > { %v4100_v7 = vadd.f32 %v4099_v1, %v4069_v41 }
 0x267   : > { %v4101_v28 = vadd.f32 %v4100_v7, %v4070_v24 }
 0x269   : > { %v4102_v38 = vadd.f32 %v4101_v28, %v4071_v40 }
 0x26b   : > { %v4103_v19 = vadd.f32 %v4102_v38, %v4072_v44 }
 0x26d   : > { %v4104_v3 = vadd.f32 %v4103_v19, %v4073_v58 }
 0x26f   : > { %v4105_v14 = vadd.f32 %v4104_v3, %v4074_v0 }
 0x271   : > { %v4106_v46 = vadd.f32 %v4105_v14, %v4075_v21 }
 0x273   : > { %v4107_v51 = vadd.f32 %v4106_v46, %v4076_v45 }
 0x275   : > { %v4108_v9 = vadd.f32 %v4107_v51, %v4077_v10 }
 0x277   : > { %v4109_v16 = vadd.f32 %v4108_v9, %v4078_v50 }
 0x279   : > { %v4110_v37 = vadd.f32 %v4109_v16, %v4079_v29 }
 0x27b   : > { %v4111_v48 = vadd.f32 %v4110_v37, %v4080_v5 }
 0x27d   : > { %v4112_v20 = vadd.f32 %v4111_v48, %v4081_v35 }
 0x27f   : > { %v4113_v11 = vadd.f32 %v4112_v20, %v4082_v26 }
 0x281   : > { %v4114_v61 = vadd.f32 %v4113_v11, %v4083_v17 }
 0x283   : > { %v4115_v27 = vadd.f32 %v4114_v61, %v4084_v4 }
 0x285   : > { %v4116_v32 = vadd.f32 %v4115_v27, %v4085_v34 }
 0x287   : > { %v4117_v25 = vadd.f32 %v4116_v32, %v4086_v53 }
 0x289   : > { %v4118_v54 = vadd.f32 %v4117_v25, %v4087_v6 }
 0x28b   : > { %v4119_v31 = vadd.f32 %v4118_v54, %v4088_v22 }
 0x28d   : > { %v4120_v56 = vrot.slane %v4119_v31, 4 }
 0x28f   : > { %v4121_v43 = vadd.f32 %v4120_v56, %v4119_v31 }
 0x291   : > { %v4122_v47 = vrot.slane %v4121_v43, 2 }
 0x293   : > { %v4123_v8 = vadd.f32 %v4122_v47, %v4121_v43 }
 0x295   : > { %v4124_v42 = vrot.slane %v4123_v8, 1 }
 0x297   : > { %v4125_v59 = vadd.f32 %v4124_v42, %v4123_v8 }
 0x299   : > { %4126 = vst [vmem:[%s7160_s28 + $0x1] sm:$0x1] %v4125_v59 }
 0x29a PF: > { %s16_s20 = sadd.s32 1, %s5608_s20   ;;  %s7262_s18 = smov %s5604_s19 }
 0x29b   : > { %p13_p5 = scmp.ge.s32.totalorder %s16_s20, 4   ;;  %s7263_s19 = smov %s7265_s21 }
 0x29d   :  { %15 = sbr.rel (!%p13_p5) target bundleno = 2 (0x2), region = 86 }

</bundles_post_ra>
